<compile_context>
chip_gen: v7x
topology: tpu7x:2x2x1
jax: 0.10.0
libtpu: 0.0.40
codegen_flags: <defaults>
</compile_context>

<pallas_src>
import functools

import jax
import jax.numpy as jnp
from jax.experimental import pallas as pl
from jax.experimental.pallas import tpu as pltpu

LN_EPS = 1e-5  # PyTorch nn.LayerNorm default

_PARAM_ORDER = ('wq_t', 'bq', 'wk_t', 'bk', 'wvo_t', 'bvo', 'bo',
                'g1', 'be1', 'w1_t', 'b1', 'w2_t', 'b2', 'g2', 'be2')
_BF16_PARAMS = frozenset({'wq_t', 'wk_t', 'wvo_t', 'w1_t', 'w2_t'})


def _gelu(x):
    # TODO(synk): PyTorch nn.GELU() defaults to the exact erf formulation; erf is not
    # guaranteed to lower in Mosaic, so the tanh approximation is used (max abs
    # deviation ~1e-3 vs exact GELU).
    c = 0.7978845608028654  # sqrt(2/pi)
    return 0.5 * x * (1.0 + jnp.tanh(c * (x + 0.044715 * x * x * x)))


def _layer_norm(x, gamma, beta):
    mean = jnp.mean(x, axis=-1, keepdims=True)
    xc = x - mean
    var = jnp.mean(xc * xc, axis=-1, keepdims=True)
    return xc * jax.lax.rsqrt(var + LN_EPS) * gamma + beta


# ----------------------------------------------------------------------------------
# Kernel
# ----------------------------------------------------------------------------------
def _vl_loftr_kernel(num_heads, n_img, n_text,
                     img_ref, text_ref, pos_ref,
                     wq_ref, bq_ref, wk_ref, bk_ref, wvo_ref, bvo_ref, bo_ref,
                     g1_ref, be1_ref, w1_ref, b1_ref, w2_ref, b2_ref,
                     g2_ref, be2_ref,
                     img_out_ref, text_out_ref):
    """All three TransformerLayers for a block of `nb` batch elements; intermediates
    never leave VMEM.  Blocks are 2D (nb * N, C) so weight-shared matmuls / LayerNorm /
    MLP amortize over the whole block; only the attention score/value matmuls are
    done per (batch, head)."""
    f32, bf16 = jnp.float32, jnp.bfloat16
    C = img_ref.shape[-1]
    d = C // num_heads
    nb = img_ref.shape[0] // n_img  # batch elements folded into this grid step

    # Per-head lane masks, built once and reused across all layers / batches.
    lane = jax.lax.broadcasted_iota(jnp.int32, (1, C), 1)
    head_masks = [
        jnp.logical_and(lane >= h * d, lane < (h + 1) * d).astype(f32)
        for h in range(num_heads)
    ]

    def transformer_layer(i, q, kv, nq, nk):
        # Post-norm TransformerLayer `i` (0=lv_cross, 1=text_self, 2=vl_cross).
        # q: (nb*nq, C) f32 (query_pos already added), kv: (nb*nk, C) f32.
        # Projections (weight-shared over the batch fold).  Weights arrive
        # pre-transposed, pre-scaled, Wo-folded and bf16; accumulation is f32.
        qp = jnp.dot(q.astype(bf16), wq_ref[i], preferred_element_type=f32) + bq_ref[i]
        kp = jnp.dot(kv.astype(bf16), wk_ref[i], preferred_element_type=f32) + bk_ref[i]
        vf = jnp.dot(kv.astype(bf16), wvo_ref[i], preferred_element_type=f32) + bvo_ref[i]
        # vf: (nb*nk, H*C) already carries Wo; per head block h lives in [:, h*C:(h+1)*C].

        outs = []
        for b in range(nb):
            qp_b = qp[b * nq:(b + 1) * nq] if nb > 1 else qp           # (nq, C)
            kp_b = kp[b * nk:(b + 1) * nk] if nb > 1 else kp           # (nk, C)
            vf_b = (vf[b * nk:(b + 1) * nk] if nb > 1 else vf).astype(bf16)
            kpT_b = kp_b.T.astype(bf16)                                 # (C, nk), one XLU transpose

            acc = jnp.zeros((nq, C), f32)
            for h in range(num_heads):
                # Head-h scores via masked-Q full-width contraction (no lane slices).
                qm = (qp_b * head_masks[h]).astype(bf16)
                s = jnp.dot(qm, kpT_b, preferred_element_type=f32)      # (nq, nk)
                s = s - jnp.max(s, axis=-1, keepdims=True)
                p = jnp.exp(s)
                p = p * pl.reciprocal(jnp.sum(p, axis=-1, keepdims=True), approx=True)
                # Accumulating chain of full 32-wide PV matmuls (Wo already folded in).
                acc = acc + jnp.dot(p.astype(bf16), vf_b[:, h * C:(h + 1) * C],
                                    preferred_element_type=f32)
            outs.append(acc)

        attn = (outs[0] if nb == 1 else jnp.concatenate(outs, axis=0)) + bo_ref[i]

        # Residual + LN1, MLP (bf16 matmuls, f32 accum), residual + LN2.
        x = _layer_norm(q + attn, g1_ref[i], be1_ref[i])
        hmid = _gelu(jnp.dot(x.astype(bf16), w1_ref[i],
                             preferred_element_type=f32) + b1_ref[i])
        mlp = jnp.dot(hmid.astype(bf16), w2_ref[i],
                      preferred_element_type=f32) + b2_ref[i]
        return _layer_norm(x + mlp, g2_ref[i], be2_ref[i])

    img = img_ref[...]     # (nb*N_img, C)
    text = text_ref[...]   # (nb*N_text, C)
    pos = pos_ref[...]     # (nb*N_img, C)

    # text_feats = lv_cross_attn(text_feats, img_feats, img_feats)
    text = transformer_layer(0, text, img, n_text, n_img)
    # text_feats = text_self_attn(text_feats, text_feats, text_feats)
    text = transformer_layer(1, text, text, n_text, n_text)
    # img_feats = vl_cross_attn(img_feats, text_feats, text_feats, query_pos=img_pos)
    # query_pos is added to the query at the top of TransformerLayer.forward and carried
    # through the residual/LayerNorm path (matches the repo's TransformerLayer).
    img = transformer_layer(2, img + pos, text, n_img, n_text)

    img_out_ref[...] = img
    text_out_ref[...] = text


# ----------------------------------------------------------------------------------
# One-time parameter preparation (hoisted out of the per-call wrapper)
# ----------------------------------------------------------------------------------
def init_layer_params(key, C, mlp_ratio=4):
    """Deterministic synthetic parameters with PyTorch shapes
    (nn.MultiheadAttention in/out proj, 2x LayerNorm, Linear(C,4C)->GELU->Linear(4C,C))."""
    Hm = C * mlp_ratio
    ks = jax.random.split(key, 8)
    w = lambda k, s: 0.02 * jax.random.normal(k, s, jnp.float32)
    return {
        'in_proj_weight': w(ks[0], (3 * C, C)),
        'in_proj_bias': w(ks[1], (3 * C,)),
        'out_proj_weight': w(ks[2], (C, C)),
        'out_proj_bias': w(ks[3], (C,)),
        'ln1_weight': jnp.ones((C,), jnp.float32),
        'ln1_bias': jnp.zeros((C,), jnp.float32),
        'mlp_w1': w(ks[4], (Hm, C)), 'mlp_b1': w(ks[5], (Hm,)),
        'mlp_w2': w(ks[6], (C, Hm)), 'mlp_b2': w(ks[7], (C,)),
        'ln2_weight': jnp.ones((C,), jnp.float32),
        'ln2_bias': jnp.zeros((C,), jnp.float32),
    }


def prepare_params(params, num_heads=8):
    """One-time packing of the 3 layers' parameters into kernel-ready arrays.

      * weights are pre-transposed (kernel only does row-major x @ W_t),
      * 1/sqrt(head_dim) is folded into the Q weight/bias,
      * the out-projection is folded into per-head V weights/bias,
      * matmul weights are cast to bf16; biases / LayerNorm affines stay f32.
    """
    layers = [params['lv'], params['text_self'], params['vl']]
    C = layers[0]['in_proj_weight'].shape[1]
    d = C // num_heads
    scale = 1.0 / float(d) ** 0.5

    def per_layer(p):
        wq, wk, wv = (p['in_proj_weight'][:C], p['in_proj_weight'][C:2 * C],
                      p['in_proj_weight'][2 * C:])
        bq, bk, bv = (p['in_proj_bias'][:C], p['in_proj_bias'][C:2 * C],
                      p['in_proj_bias'][2 * C:])
        wo_t = p['out_proj_weight'].T                                  # (C, C)
        wv_t = wv.T                                                    # (C, C)
        # Fold out-proj rows of head h into head-h's V columns.
        wvo_t = jnp.concatenate(
            [wv_t[:, h * d:(h + 1) * d] @ wo_t[h * d:(h + 1) * d, :]
             for h in range(num_heads)], axis=1)                       # (C, H*C)
        bvo = jnp.concatenate(
            [bv[h * d:(h + 1) * d] @ wo_t[h * d:(h + 1) * d, :]
             for h in range(num_heads)], axis=0)                       # (H*C,)
        return {
            'wq_t': wq.T * scale, 'bq': (bq * scale).reshape(1, C),
            'wk_t': wk.T, 'bk': bk.reshape(1, C),
            'wvo_t': wvo_t, 'bvo': bvo.reshape(1, num_heads * C),
            'bo': p['out_proj_bias'].reshape(1, C),
            'g1': p['ln1_weight'].reshape(1, C), 'be1': p['ln1_bias'].reshape(1, C),
            'w1_t': p['mlp_w1'].T, 'b1': p['mlp_b1'].reshape(1, -1),
            'w2_t': p['mlp_w2'].T, 'b2': p['mlp_b2'].reshape(1, C),
            'g2': p['ln2_weight'].reshape(1, C), 'be2': p['ln2_bias'].reshape(1, C),
        }

    per = [per_layer(p) for p in layers]
    out = {}
    for name in _PARAM_ORDER:
        arr = jnp.stack([pp[name] for pp in per], axis=0)
        out[name] = arr.astype(jnp.bfloat16 if name in _BF16_PARAMS else jnp.float32)
    return out


# ----------------------------------------------------------------------------------
# Wrapper
# ----------------------------------------------------------------------------------
def _default_batch_per_step(batch):
    # v5e / v6e have a single TensorCore per chip -> fold the whole batch into the
    # matmul M dimension (one grid step, fewer & wider matmuls).  Multi-TensorCore
    # chips (v4 megacore, v7x) keep one batch element per grid step so the "parallel"
    # grid axis maps batches onto separate cores.
    try:
        kind = jax.devices()[0].device_kind.lower()
    except Exception:
        return batch
    single_tc = any(t in kind for t in ("v5 lite", "v5e", "v5litepod", "v6 lite", "v6e"))
    return batch if single_tc else 1


def vision_language_loftr_layer(prepped_params, img_feats, text_feats, img_pos,
                                num_heads=8, batch_per_step=None):
    """Forward of VisionLanguageLoftrLayer — one fused pallas_call."""
    B, N_img, C = img_feats.shape
    N_text = text_feats.shape[1]
    assert C % num_heads == 0
    assert N_img % 8 == 0 and N_text % 8 == 0  # sublane-aligned blocks

    if batch_per_step is None:
        batch_per_step = _default_batch_per_step(B)
    if B % batch_per_step != 0:
        batch_per_step = 1
    gb = batch_per_step
    grid = (B // gb,)

    # 2D, channels-last presentation; batch folds into the row (M) dimension.
    img2 = img_feats.reshape(B * N_img, C)
    text2 = text_feats.reshape(B * N_text, C)
    pos2 = img_pos.reshape(B * N_img, C)

    param_arrays = [prepped_params[name] for name in _PARAM_ORDER]

    def seq_spec(n):
        return pl.BlockSpec((gb * n, C), lambda i: (i, 0))

    def const_spec(a):
        # Constant block index across the grid -> parameters stay VMEM-resident.
        return pl.BlockSpec(a.shape, lambda i: (0, 0, 0))

    in_specs = ([seq_spec(N_img), seq_spec(N_text), seq_spec(N_img)]
                + [const_spec(a) for a in param_arrays])

    img_out, text_out = pl.pallas_call(
        functools.partial(_vl_loftr_kernel, num_heads, N_img, N_text),
        out_shape=(jax.ShapeDtypeStruct((B * N_img, C), jnp.float32),
                   jax.ShapeDtypeStruct((B * N_text, C), jnp.float32)),
        grid=grid,
        in_specs=in_specs,
        out_specs=(seq_spec(N_img), seq_spec(N_text)),
        compiler_params=pltpu.CompilerParams(dimension_semantics=("parallel",)),
    )(img2, text2, pos2, *param_arrays)

    return img_out.reshape(B, N_img, C), text_out.reshape(B, N_text, C)


# ----------------------------------------------------------------------------------
# Pure-JAX reference (f32, unfused) for a tolerance check
# ----------------------------------------------------------------------------------
def _reference_forward(params, img_feats, text_feats, img_pos, num_heads=8):
    hi = jax.lax.Precision.HIGHEST

    def mha(q, k, v, p):
        C = q.shape[-1]
        d = C // num_heads
        wq, wk, wv = (p['in_proj_weight'][:C], p['in_proj_weight'][C:2 * C],
                      p['in_proj_weight'][2 * C:])
        bq, bk, bv = (p['in_proj_bias'][:C], p['in_proj_bias'][C:2 * C],
                      p['in_proj_bias'][2 * C:])
        qp = jnp.einsum('bnc,dc->bnd', q, wq, precision=hi) + bq
        kp = jnp.einsum('bnc,dc->bnd', k, wk, precision=hi) + bk
        vp = jnp.einsum('bnc,dc->bnd', v, wv, precision=hi) + bv
        B, Nq = qp.shape[0], qp.shape[1]
        Nk = kp.shape[1]
        qh = qp.reshape(B, Nq, num_heads, d).transpose(0, 2, 1, 3) * (1.0 / d ** 0.5)
        kh = kp.reshape(B, Nk, num_heads, d).transpose(0, 2, 1, 3)
        vh = vp.reshape(B, Nk, num_heads, d).transpose(0, 2, 1, 3)
        s = jnp.einsum('bhqd,bhkd->bhqk', qh, kh, precision=hi)
        pr = jax.nn.softmax(s, axis=-1)
        o = jnp.einsum('bhqk,bhkd->bhqd', pr, vh, precision=hi)
        o = o.transpose(0, 2, 1, 3).reshape(B, Nq, C)
        return jnp.einsum('bnc,dc->bnd', o, p['out_proj_weight'], precision=hi) \
            + p['out_proj_bias']

    def layer(p, q, k, v, query_pos=None):
        if query_pos is not None:
            q = q + query_pos
        x = _layer_norm(q + mha(q, k, v, p), p['ln1_weight'], p['ln1_bias'])
        h = _gelu(jnp.einsum('bnc,hc->bnh', x, p['mlp_w1'], precision=hi) + p['mlp_b1'])
        m = jnp.einsum('bnh,ch->bnc', h, p['mlp_w2'], precision=hi) + p['mlp_b2']
        return _layer_norm(x + m, p['ln2_weight'], p['ln2_bias'])

    text = layer(params['lv'], text_feats, img_feats, img_feats)
    text = layer(params['text_self'], text, text, text)
    img = layer(params['vl'], img_feats, text, text, query_pos=img_pos)
    return img, text


if __name__ == "__main__":
    B = 2
    C = 32            # embed_dims (8 heads -> head_dim 4)
    Hs, Ws = 8, 8
    N_img = Hs * Ws   # 64 flattened image tokens
    N_text = 8        # text tokens

    root = jax.random.PRNGKey(0)
    k_img, k_txt, k_pos, k_lv, k_self, k_vl = jax.random.split(root, 6)

    img_feats = jax.random.normal(k_img, (B, N_img, C), jnp.float32)
    text_feats = jax.random.normal(k_txt, (B, N_text, C), jnp.float32)
    img_pos = jax.random.normal(k_pos, (B, N_img, C), jnp.float32)

    params = {
        'lv': init_layer_params(k_lv, C),
        'text_self': init_layer_params(k_self, C),
        'vl': init_layer_params(k_vl, C),
    }

    # One-time parameter preparation (kept OUT of the jitted per-call path).
    prepped = prepare_params(params, num_heads=8)

    fwd = jax.jit(vision_language_loftr_layer)
    img_out, text_out = fwd(prepped, img_feats, text_feats, img_pos)
    jax.block_until_ready((img_out, text_out))

    assert img_out.shape == (B, N_img, C) and text_out.shape == (B, N_text, C)
    assert bool(jnp.all(jnp.isfinite(img_out))) and bool(jnp.all(jnp.isfinite(text_out)))

    # Tolerance check vs an f32 unfused reference (bf16 matmuls + approx reciprocal
    # + tanh GELU on both sides give ~1e-2 expected max abs deviation).
    ref_img, ref_text = _reference_forward(params, img_feats, text_feats, img_pos)
    err = max(float(jnp.max(jnp.abs(img_out - ref_img))),
              float(jnp.max(jnp.abs(text_out - ref_text))))
    assert err < 5e-2, f"max abs error vs reference: {err}"

    print("KERNEL_OK")
</pallas_src>

<mosaic_0001>
module attributes {stable_mosaic.version = 11 : i64} {
  func.func @_vl_loftr_kernel(%arg0: i32, %arg1: memref<64x32xf32, #tpu.memory_space<vmem>>, %arg2: memref<8x32xf32, #tpu.memory_space<vmem>>, %arg3: memref<64x32xf32, #tpu.memory_space<vmem>>, %arg4: memref<3x32x32xbf16, #tpu.memory_space<vmem>>, %arg5: memref<3x1x32xf32, #tpu.memory_space<vmem>>, %arg6: memref<3x32x32xbf16, #tpu.memory_space<vmem>>, %arg7: memref<3x1x32xf32, #tpu.memory_space<vmem>>, %arg8: memref<3x32x256xbf16, #tpu.memory_space<vmem>>, %arg9: memref<3x1x256xf32, #tpu.memory_space<vmem>>, %arg10: memref<3x1x32xf32, #tpu.memory_space<vmem>>, %arg11: memref<3x1x32xf32, #tpu.memory_space<vmem>>, %arg12: memref<3x1x32xf32, #tpu.memory_space<vmem>>, %arg13: memref<3x32x128xbf16, #tpu.memory_space<vmem>>, %arg14: memref<3x1x128xf32, #tpu.memory_space<vmem>>, %arg15: memref<3x128x32xbf16, #tpu.memory_space<vmem>>, %arg16: memref<3x1x32xf32, #tpu.memory_space<vmem>>, %arg17: memref<3x1x32xf32, #tpu.memory_space<vmem>>, %arg18: memref<3x1x32xf32, #tpu.memory_space<vmem>>, %arg19: memref<64x32xf32, #tpu.memory_space<vmem>>, %arg20: memref<8x32xf32, #tpu.memory_space<vmem>>) attributes {dimension_semantics = [#tpu.dimension_semantics<parallel>], iteration_bounds = array<i64: 2>, scalar_prefetch = 0 : i64, scratch_operands = 0 : i64, tpu.core_type = #tpu.core_type<tc>, window_params = [{transform_indices = @transform_0, window_bounds = array<i64: 64, 32>}, {transform_indices = @transform_1, window_bounds = array<i64: 8, 32>}, {transform_indices = @transform_2, window_bounds = array<i64: 64, 32>}, {pipeline_mode = #tpu.pipeline_mode<synchronous>, transform_indices = @transform_3, window_bounds = array<i64: 3, 32, 32>}, {pipeline_mode = #tpu.pipeline_mode<synchronous>, transform_indices = @transform_4, window_bounds = array<i64: 3, 1, 32>}, {pipeline_mode = #tpu.pipeline_mode<synchronous>, transform_indices = @transform_5, window_bounds = array<i64: 3, 32, 32>}, {pipeline_mode = #tpu.pipeline_mode<synchronous>, transform_indices = @transform_6, window_bounds = array<i64: 3, 1, 32>}, {pipeline_mode = #tpu.pipeline_mode<synchronous>, transform_indices = @transform_7, window_bounds = array<i64: 3, 32, 256>}, {pipeline_mode = #tpu.pipeline_mode<synchronous>, transform_indices = @transform_8, window_bounds = array<i64: 3, 1, 256>}, {pipeline_mode = #tpu.pipeline_mode<synchronous>, transform_indices = @transform_9, window_bounds = array<i64: 3, 1, 32>}, {pipeline_mode = #tpu.pipeline_mode<synchronous>, transform_indices = @transform_10, window_bounds = array<i64: 3, 1, 32>}, {pipeline_mode = #tpu.pipeline_mode<synchronous>, transform_indices = @transform_11, window_bounds = array<i64: 3, 1, 32>}, {pipeline_mode = #tpu.pipeline_mode<synchronous>, transform_indices = @transform_12, window_bounds = array<i64: 3, 32, 128>}, {pipeline_mode = #tpu.pipeline_mode<synchronous>, transform_indices = @transform_13, window_bounds = array<i64: 3, 1, 128>}, {pipeline_mode = #tpu.pipeline_mode<synchronous>, transform_indices = @transform_14, window_bounds = array<i64: 3, 128, 32>}, {pipeline_mode = #tpu.pipeline_mode<synchronous>, transform_indices = @transform_15, window_bounds = array<i64: 3, 1, 32>}, {pipeline_mode = #tpu.pipeline_mode<synchronous>, transform_indices = @transform_16, window_bounds = array<i64: 3, 1, 32>}, {pipeline_mode = #tpu.pipeline_mode<synchronous>, transform_indices = @transform_17, window_bounds = array<i64: 3, 1, 32>}, {transform_indices = @transform_18, window_bounds = array<i64: 64, 32>}, {transform_indices = @transform_19, window_bounds = array<i64: 8, 32>}]} {
    %0 = tpu.iota {dimensions = array<i32: 1>} : vector<1x32xi32>
    %c0_i32 = arith.constant 0 : i32
    %1 = vector.broadcast %c0_i32 : i32 to vector<1x32xi32>
    %2 = arith.cmpi sge, %0, %1 : vector<1x32xi32>
    %c4_i32 = arith.constant 4 : i32
    %3 = vector.broadcast %c4_i32 : i32 to vector<1x32xi32>
    %4 = arith.cmpi slt, %0, %3 : vector<1x32xi32>
    %5 = arith.andi %2, %4 : vector<1x32xi1>
    %6 = arith.extui %5 : vector<1x32xi1> to vector<1x32xi32>
    %7 = arith.sitofp %6 : vector<1x32xi32> to vector<1x32xf32>
    %c4_i32_0 = arith.constant 4 : i32
    %8 = vector.broadcast %c4_i32_0 : i32 to vector<1x32xi32>
    %9 = arith.cmpi sge, %0, %8 : vector<1x32xi32>
    %c8_i32 = arith.constant 8 : i32
    %10 = vector.broadcast %c8_i32 : i32 to vector<1x32xi32>
    %11 = arith.cmpi slt, %0, %10 : vector<1x32xi32>
    %12 = arith.andi %9, %11 : vector<1x32xi1>
    %13 = arith.extui %12 : vector<1x32xi1> to vector<1x32xi32>
    %14 = arith.sitofp %13 : vector<1x32xi32> to vector<1x32xf32>
    %c8_i32_1 = arith.constant 8 : i32
    %15 = vector.broadcast %c8_i32_1 : i32 to vector<1x32xi32>
    %16 = arith.cmpi sge, %0, %15 : vector<1x32xi32>
    %c12_i32 = arith.constant 12 : i32
    %17 = vector.broadcast %c12_i32 : i32 to vector<1x32xi32>
    %18 = arith.cmpi slt, %0, %17 : vector<1x32xi32>
    %19 = arith.andi %16, %18 : vector<1x32xi1>
    %20 = arith.extui %19 : vector<1x32xi1> to vector<1x32xi32>
    %21 = arith.sitofp %20 : vector<1x32xi32> to vector<1x32xf32>
    %c12_i32_2 = arith.constant 12 : i32
    %22 = vector.broadcast %c12_i32_2 : i32 to vector<1x32xi32>
    %23 = arith.cmpi sge, %0, %22 : vector<1x32xi32>
    %c16_i32 = arith.constant 16 : i32
    %24 = vector.broadcast %c16_i32 : i32 to vector<1x32xi32>
    %25 = arith.cmpi slt, %0, %24 : vector<1x32xi32>
    %26 = arith.andi %23, %25 : vector<1x32xi1>
    %27 = arith.extui %26 : vector<1x32xi1> to vector<1x32xi32>
    %28 = arith.sitofp %27 : vector<1x32xi32> to vector<1x32xf32>
    %c16_i32_3 = arith.constant 16 : i32
    %29 = vector.broadcast %c16_i32_3 : i32 to vector<1x32xi32>
    %30 = arith.cmpi sge, %0, %29 : vector<1x32xi32>
    %c20_i32 = arith.constant 20 : i32
    %31 = vector.broadcast %c20_i32 : i32 to vector<1x32xi32>
    %32 = arith.cmpi slt, %0, %31 : vector<1x32xi32>
    %33 = arith.andi %30, %32 : vector<1x32xi1>
    %34 = arith.extui %33 : vector<1x32xi1> to vector<1x32xi32>
    %35 = arith.sitofp %34 : vector<1x32xi32> to vector<1x32xf32>
    %c20_i32_4 = arith.constant 20 : i32
    %36 = vector.broadcast %c20_i32_4 : i32 to vector<1x32xi32>
    %37 = arith.cmpi sge, %0, %36 : vector<1x32xi32>
    %c24_i32 = arith.constant 24 : i32
    %38 = vector.broadcast %c24_i32 : i32 to vector<1x32xi32>
    %39 = arith.cmpi slt, %0, %38 : vector<1x32xi32>
    %40 = arith.andi %37, %39 : vector<1x32xi1>
    %41 = arith.extui %40 : vector<1x32xi1> to vector<1x32xi32>
    %42 = arith.sitofp %41 : vector<1x32xi32> to vector<1x32xf32>
    %c24_i32_5 = arith.constant 24 : i32
    %43 = vector.broadcast %c24_i32_5 : i32 to vector<1x32xi32>
    %44 = arith.cmpi sge, %0, %43 : vector<1x32xi32>
    %c28_i32 = arith.constant 28 : i32
    %45 = vector.broadcast %c28_i32 : i32 to vector<1x32xi32>
    %46 = arith.cmpi slt, %0, %45 : vector<1x32xi32>
    %47 = arith.andi %44, %46 : vector<1x32xi1>
    %48 = arith.extui %47 : vector<1x32xi1> to vector<1x32xi32>
    %49 = arith.sitofp %48 : vector<1x32xi32> to vector<1x32xf32>
    %c28_i32_6 = arith.constant 28 : i32
    %50 = vector.broadcast %c28_i32_6 : i32 to vector<1x32xi32>
    %51 = arith.cmpi sge, %0, %50 : vector<1x32xi32>
    %c32_i32 = arith.constant 32 : i32
    %52 = vector.broadcast %c32_i32 : i32 to vector<1x32xi32>
    %53 = arith.cmpi slt, %0, %52 : vector<1x32xi32>
    %54 = arith.andi %51, %53 : vector<1x32xi1>
    %55 = arith.extui %54 : vector<1x32xi1> to vector<1x32xi32>
    %56 = arith.sitofp %55 : vector<1x32xi32> to vector<1x32xf32>
    %c0 = arith.constant 0 : index
    %c0_7 = arith.constant 0 : index
    %57 = vector.load %arg1[%c0, %c0_7] : memref<64x32xf32, #tpu.memory_space<vmem>>, vector<64x32xf32>
    %c0_8 = arith.constant 0 : index
    %c0_9 = arith.constant 0 : index
    %58 = vector.load %arg2[%c0_8, %c0_9] : memref<8x32xf32, #tpu.memory_space<vmem>>, vector<8x32xf32>
    %c0_10 = arith.constant 0 : index
    %c0_11 = arith.constant 0 : index
    %59 = vector.load %arg3[%c0_10, %c0_11] : memref<64x32xf32, #tpu.memory_space<vmem>>, vector<64x32xf32>
    %60 = arith.truncf %58 : vector<8x32xf32> to vector<8x32xbf16>
    %c0_12 = arith.constant 0 : index
    %c0_13 = arith.constant 0 : index
    %c0_14 = arith.constant 0 : index
    %61 = vector.load %arg4[%c0_12, %c0_13, %c0_14] : memref<3x32x32xbf16, #tpu.memory_space<vmem>>, vector<1x32x32xbf16>
    %62 = vector.shape_cast %61 : vector<1x32x32xbf16> to vector<32x32xbf16>
    %cst = arith.constant dense<0.000000e+00> : vector<8x32xf32>
    %63 = tpu.matmul %60, %62, %cst {dimension_numbers = #tpu.dot_dimension_numbers<[1], [0], [0], [1], [0, 0, 1, 1], [], []>} : vector<8x32xbf16>, vector<32x32xbf16>, vector<8x32xf32> -> vector<8x32xf32>
    %c0_15 = arith.constant 0 : index
    %c0_16 = arith.constant 0 : index
    %c0_17 = arith.constant 0 : index
    %64 = vector.load %arg5[%c0_15, %c0_16, %c0_17] : memref<3x1x32xf32, #tpu.memory_space<vmem>>, vector<1x1x32xf32>
    %65 = vector.shape_cast %64 : vector<1x1x32xf32> to vector<1x32xf32>
    %66 = vector.broadcast %65 : vector<1x32xf32> to vector<8x32xf32>
    %67 = arith.addf %63, %66 : vector<8x32xf32>
    %68 = arith.truncf %57 : vector<64x32xf32> to vector<64x32xbf16>
    %c0_18 = arith.constant 0 : index
    %c0_19 = arith.constant 0 : index
    %c0_20 = arith.constant 0 : index
    %69 = vector.load %arg6[%c0_18, %c0_19, %c0_20] : memref<3x32x32xbf16, #tpu.memory_space<vmem>>, vector<1x32x32xbf16>
    %70 = vector.shape_cast %69 : vector<1x32x32xbf16> to vector<32x32xbf16>
    %cst_21 = arith.constant dense<0.000000e+00> : vector<64x32xf32>
    %71 = tpu.matmul %68, %70, %cst_21 {dimension_numbers = #tpu.dot_dimension_numbers<[1], [0], [0], [1], [0, 0, 1, 1], [], []>} : vector<64x32xbf16>, vector<32x32xbf16>, vector<64x32xf32> -> vector<64x32xf32>
    %c0_22 = arith.constant 0 : index
    %c0_23 = arith.constant 0 : index
    %c0_24 = arith.constant 0 : index
    %72 = vector.load %arg7[%c0_22, %c0_23, %c0_24] : memref<3x1x32xf32, #tpu.memory_space<vmem>>, vector<1x1x32xf32>
    %73 = vector.shape_cast %72 : vector<1x1x32xf32> to vector<1x32xf32>
    %74 = vector.broadcast %73 : vector<1x32xf32> to vector<64x32xf32>
    %75 = arith.addf %71, %74 : vector<64x32xf32>
    %76 = arith.truncf %57 : vector<64x32xf32> to vector<64x32xbf16>
    %c0_25 = arith.constant 0 : index
    %c0_26 = arith.constant 0 : index
    %c0_27 = arith.constant 0 : index
    %77 = vector.load %arg8[%c0_25, %c0_26, %c0_27] : memref<3x32x256xbf16, #tpu.memory_space<vmem>>, vector<1x32x256xbf16>
    %78 = vector.shape_cast %77 : vector<1x32x256xbf16> to vector<32x256xbf16>
    %cst_28 = arith.constant dense<0.000000e+00> : vector<64x256xf32>
    %79 = tpu.matmul %76, %78, %cst_28 {dimension_numbers = #tpu.dot_dimension_numbers<[1], [0], [0], [1], [0, 0, 1, 1], [], []>} : vector<64x32xbf16>, vector<32x256xbf16>, vector<64x256xf32> -> vector<64x256xf32>
    %c0_29 = arith.constant 0 : index
    %c0_30 = arith.constant 0 : index
    %c0_31 = arith.constant 0 : index
    %80 = vector.load %arg9[%c0_29, %c0_30, %c0_31] : memref<3x1x256xf32, #tpu.memory_space<vmem>>, vector<1x1x256xf32>
    %81 = vector.shape_cast %80 : vector<1x1x256xf32> to vector<1x256xf32>
    %82 = vector.broadcast %81 : vector<1x256xf32> to vector<64x256xf32>
    %83 = arith.addf %79, %82 : vector<64x256xf32>
    %84 = arith.truncf %83 : vector<64x256xf32> to vector<64x256xbf16>
    %85 = tpu.transpose %75, [1, 0] : vector<64x32xf32> -> vector<32x64xf32>
    %86 = arith.truncf %85 : vector<32x64xf32> to vector<32x64xbf16>
    %cst_32 = arith.constant 0.000000e+00 : f32
    %87 = vector.broadcast %cst_32 : f32 to vector<8x32xf32>
    %88 = vector.broadcast %7 : vector<1x32xf32> to vector<8x32xf32>
    %89 = arith.mulf %67, %88 : vector<8x32xf32>
    %90 = arith.truncf %89 : vector<8x32xf32> to vector<8x32xbf16>
    %cst_33 = arith.constant dense<0.000000e+00> : vector<8x64xf32>
    %91 = tpu.matmul %90, %86, %cst_33 {dimension_numbers = #tpu.dot_dimension_numbers<[1], [0], [0], [1], [0, 0, 1, 1], [], []>} : vector<8x32xbf16>, vector<32x64xbf16>, vector<8x64xf32> -> vector<8x64xf32>
    %cst_34 = arith.constant dense<0xFF800000> : vector<8xf32>
    %92 = vector.multi_reduction <maximumf>, %91, %cst_34 [1] : vector<8x64xf32> to vector<8xf32>
    %93 = vector.shape_cast %92 : vector<8xf32> to vector<8x1xf32>
    %94 = vector.broadcast %93 : vector<8x1xf32> to vector<8x64xf32>
    %95 = arith.subf %91, %94 : vector<8x64xf32>
    %96 = math.exp %95 : vector<8x64xf32>
    %cst_35 = arith.constant dense<0.000000e+00> : vector<8xf32>
    %97 = vector.multi_reduction <add>, %96, %cst_35 [1] : vector<8x64xf32> to vector<8xf32>
    %98 = vector.shape_cast %97 : vector<8xf32> to vector<8x1xf32>
    %99 = tpu.reciprocal %98 {approx = true} : vector<8x1xf32> -> vector<8x1xf32>
    %100 = vector.broadcast %99 : vector<8x1xf32> to vector<8x64xf32>
    %101 = arith.mulf %96, %100 : vector<8x64xf32>
    %102 = arith.truncf %101 : vector<8x64xf32> to vector<8x64xbf16>
    %103 = vector.extract_strided_slice %84 {offsets = [0, 0], sizes = [64, 32], strides = [1, 1]} : vector<64x256xbf16> to vector<64x32xbf16>
    %cst_36 = arith.constant dense<0.000000e+00> : vector<8x32xf32>
    %104 = tpu.matmul %102, %103, %cst_36 {dimension_numbers = #tpu.dot_dimension_numbers<[1], [0], [0], [1], [0, 0, 1, 1], [], []>} : vector<8x64xbf16>, vector<64x32xbf16>, vector<8x32xf32> -> vector<8x32xf32>
    %105 = arith.addf %87, %104 : vector<8x32xf32>
    %106 = vector.broadcast %14 : vector<1x32xf32> to vector<8x32xf32>
    %107 = arith.mulf %67, %106 : vector<8x32xf32>
    %108 = arith.truncf %107 : vector<8x32xf32> to vector<8x32xbf16>
    %cst_37 = arith.constant dense<0.000000e+00> : vector<8x64xf32>
    %109 = tpu.matmul %108, %86, %cst_37 {dimension_numbers = #tpu.dot_dimension_numbers<[1], [0], [0], [1], [0, 0, 1, 1], [], []>} : vector<8x32xbf16>, vector<32x64xbf16>, vector<8x64xf32> -> vector<8x64xf32>
    %cst_38 = arith.constant dense<0xFF800000> : vector<8xf32>
    %110 = vector.multi_reduction <maximumf>, %109, %cst_38 [1] : vector<8x64xf32> to vector<8xf32>
    %111 = vector.shape_cast %110 : vector<8xf32> to vector<8x1xf32>
    %112 = vector.broadcast %111 : vector<8x1xf32> to vector<8x64xf32>
    %113 = arith.subf %109, %112 : vector<8x64xf32>
    %114 = math.exp %113 : vector<8x64xf32>
    %cst_39 = arith.constant dense<0.000000e+00> : vector<8xf32>
    %115 = vector.multi_reduction <add>, %114, %cst_39 [1] : vector<8x64xf32> to vector<8xf32>
    %116 = vector.shape_cast %115 : vector<8xf32> to vector<8x1xf32>
    %117 = tpu.reciprocal %116 {approx = true} : vector<8x1xf32> -> vector<8x1xf32>
    %118 = vector.broadcast %117 : vector<8x1xf32> to vector<8x64xf32>
    %119 = arith.mulf %114, %118 : vector<8x64xf32>
    %120 = arith.truncf %119 : vector<8x64xf32> to vector<8x64xbf16>
    %121 = vector.extract_strided_slice %84 {offsets = [0, 32], sizes = [64, 32], strides = [1, 1]} : vector<64x256xbf16> to vector<64x32xbf16>
    %cst_40 = arith.constant dense<0.000000e+00> : vector<8x32xf32>
    %122 = tpu.matmul %120, %121, %cst_40 {dimension_numbers = #tpu.dot_dimension_numbers<[1], [0], [0], [1], [0, 0, 1, 1], [], []>} : vector<8x64xbf16>, vector<64x32xbf16>, vector<8x32xf32> -> vector<8x32xf32>
    %123 = arith.addf %105, %122 : vector<8x32xf32>
    %124 = vector.broadcast %21 : vector<1x32xf32> to vector<8x32xf32>
    %125 = arith.mulf %67, %124 : vector<8x32xf32>
    %126 = arith.truncf %125 : vector<8x32xf32> to vector<8x32xbf16>
    %cst_41 = arith.constant dense<0.000000e+00> : vector<8x64xf32>
    %127 = tpu.matmul %126, %86, %cst_41 {dimension_numbers = #tpu.dot_dimension_numbers<[1], [0], [0], [1], [0, 0, 1, 1], [], []>} : vector<8x32xbf16>, vector<32x64xbf16>, vector<8x64xf32> -> vector<8x64xf32>
    %cst_42 = arith.constant dense<0xFF800000> : vector<8xf32>
    %128 = vector.multi_reduction <maximumf>, %127, %cst_42 [1] : vector<8x64xf32> to vector<8xf32>
    %129 = vector.shape_cast %128 : vector<8xf32> to vector<8x1xf32>
    %130 = vector.broadcast %129 : vector<8x1xf32> to vector<8x64xf32>
    %131 = arith.subf %127, %130 : vector<8x64xf32>
    %132 = math.exp %131 : vector<8x64xf32>
    %cst_43 = arith.constant dense<0.000000e+00> : vector<8xf32>
    %133 = vector.multi_reduction <add>, %132, %cst_43 [1] : vector<8x64xf32> to vector<8xf32>
    %134 = vector.shape_cast %133 : vector<8xf32> to vector<8x1xf32>
    %135 = tpu.reciprocal %134 {approx = true} : vector<8x1xf32> -> vector<8x1xf32>
    %136 = vector.broadcast %135 : vector<8x1xf32> to vector<8x64xf32>
    %137 = arith.mulf %132, %136 : vector<8x64xf32>
    %138 = arith.truncf %137 : vector<8x64xf32> to vector<8x64xbf16>
    %139 = vector.extract_strided_slice %84 {offsets = [0, 64], sizes = [64, 32], strides = [1, 1]} : vector<64x256xbf16> to vector<64x32xbf16>
    %cst_44 = arith.constant dense<0.000000e+00> : vector<8x32xf32>
    %140 = tpu.matmul %138, %139, %cst_44 {dimension_numbers = #tpu.dot_dimension_numbers<[1], [0], [0], [1], [0, 0, 1, 1], [], []>} : vector<8x64xbf16>, vector<64x32xbf16>, vector<8x32xf32> -> vector<8x32xf32>
    %141 = arith.addf %123, %140 : vector<8x32xf32>
    %142 = vector.broadcast %28 : vector<1x32xf32> to vector<8x32xf32>
    %143 = arith.mulf %67, %142 : vector<8x32xf32>
    %144 = arith.truncf %143 : vector<8x32xf32> to vector<8x32xbf16>
    %cst_45 = arith.constant dense<0.000000e+00> : vector<8x64xf32>
    %145 = tpu.matmul %144, %86, %cst_45 {dimension_numbers = #tpu.dot_dimension_numbers<[1], [0], [0], [1], [0, 0, 1, 1], [], []>} : vector<8x32xbf16>, vector<32x64xbf16>, vector<8x64xf32> -> vector<8x64xf32>
    %cst_46 = arith.constant dense<0xFF800000> : vector<8xf32>
    %146 = vector.multi_reduction <maximumf>, %145, %cst_46 [1] : vector<8x64xf32> to vector<8xf32>
    %147 = vector.shape_cast %146 : vector<8xf32> to vector<8x1xf32>
    %148 = vector.broadcast %147 : vector<8x1xf32> to vector<8x64xf32>
    %149 = arith.subf %145, %148 : vector<8x64xf32>
    %150 = math.exp %149 : vector<8x64xf32>
    %cst_47 = arith.constant dense<0.000000e+00> : vector<8xf32>
    %151 = vector.multi_reduction <add>, %150, %cst_47 [1] : vector<8x64xf32> to vector<8xf32>
    %152 = vector.shape_cast %151 : vector<8xf32> to vector<8x1xf32>
    %153 = tpu.reciprocal %152 {approx = true} : vector<8x1xf32> -> vector<8x1xf32>
    %154 = vector.broadcast %153 : vector<8x1xf32> to vector<8x64xf32>
    %155 = arith.mulf %150, %154 : vector<8x64xf32>
    %156 = arith.truncf %155 : vector<8x64xf32> to vector<8x64xbf16>
    %157 = vector.extract_strided_slice %84 {offsets = [0, 96], sizes = [64, 32], strides = [1, 1]} : vector<64x256xbf16> to vector<64x32xbf16>
    %cst_48 = arith.constant dense<0.000000e+00> : vector<8x32xf32>
    %158 = tpu.matmul %156, %157, %cst_48 {dimension_numbers = #tpu.dot_dimension_numbers<[1], [0], [0], [1], [0, 0, 1, 1], [], []>} : vector<8x64xbf16>, vector<64x32xbf16>, vector<8x32xf32> -> vector<8x32xf32>
    %159 = arith.addf %141, %158 : vector<8x32xf32>
    %160 = vector.broadcast %35 : vector<1x32xf32> to vector<8x32xf32>
    %161 = arith.mulf %67, %160 : vector<8x32xf32>
    %162 = arith.truncf %161 : vector<8x32xf32> to vector<8x32xbf16>
    %cst_49 = arith.constant dense<0.000000e+00> : vector<8x64xf32>
    %163 = tpu.matmul %162, %86, %cst_49 {dimension_numbers = #tpu.dot_dimension_numbers<[1], [0], [0], [1], [0, 0, 1, 1], [], []>} : vector<8x32xbf16>, vector<32x64xbf16>, vector<8x64xf32> -> vector<8x64xf32>
    %cst_50 = arith.constant dense<0xFF800000> : vector<8xf32>
    %164 = vector.multi_reduction <maximumf>, %163, %cst_50 [1] : vector<8x64xf32> to vector<8xf32>
    %165 = vector.shape_cast %164 : vector<8xf32> to vector<8x1xf32>
    %166 = vector.broadcast %165 : vector<8x1xf32> to vector<8x64xf32>
    %167 = arith.subf %163, %166 : vector<8x64xf32>
    %168 = math.exp %167 : vector<8x64xf32>
    %cst_51 = arith.constant dense<0.000000e+00> : vector<8xf32>
    %169 = vector.multi_reduction <add>, %168, %cst_51 [1] : vector<8x64xf32> to vector<8xf32>
    %170 = vector.shape_cast %169 : vector<8xf32> to vector<8x1xf32>
    %171 = tpu.reciprocal %170 {approx = true} : vector<8x1xf32> -> vector<8x1xf32>
    %172 = vector.broadcast %171 : vector<8x1xf32> to vector<8x64xf32>
    %173 = arith.mulf %168, %172 : vector<8x64xf32>
    %174 = arith.truncf %173 : vector<8x64xf32> to vector<8x64xbf16>
    %175 = vector.extract_strided_slice %84 {offsets = [0, 128], sizes = [64, 32], strides = [1, 1]} : vector<64x256xbf16> to vector<64x32xbf16>
    %cst_52 = arith.constant dense<0.000000e+00> : vector<8x32xf32>
    %176 = tpu.matmul %174, %175, %cst_52 {dimension_numbers = #tpu.dot_dimension_numbers<[1], [0], [0], [1], [0, 0, 1, 1], [], []>} : vector<8x64xbf16>, vector<64x32xbf16>, vector<8x32xf32> -> vector<8x32xf32>
    %177 = arith.addf %159, %176 : vector<8x32xf32>
    %178 = vector.broadcast %42 : vector<1x32xf32> to vector<8x32xf32>
    %179 = arith.mulf %67, %178 : vector<8x32xf32>
    %180 = arith.truncf %179 : vector<8x32xf32> to vector<8x32xbf16>
    %cst_53 = arith.constant dense<0.000000e+00> : vector<8x64xf32>
    %181 = tpu.matmul %180, %86, %cst_53 {dimension_numbers = #tpu.dot_dimension_numbers<[1], [0], [0], [1], [0, 0, 1, 1], [], []>} : vector<8x32xbf16>, vector<32x64xbf16>, vector<8x64xf32> -> vector<8x64xf32>
    %cst_54 = arith.constant dense<0xFF800000> : vector<8xf32>
    %182 = vector.multi_reduction <maximumf>, %181, %cst_54 [1] : vector<8x64xf32> to vector<8xf32>
    %183 = vector.shape_cast %182 : vector<8xf32> to vector<8x1xf32>
    %184 = vector.broadcast %183 : vector<8x1xf32> to vector<8x64xf32>
    %185 = arith.subf %181, %184 : vector<8x64xf32>
    %186 = math.exp %185 : vector<8x64xf32>
    %cst_55 = arith.constant dense<0.000000e+00> : vector<8xf32>
    %187 = vector.multi_reduction <add>, %186, %cst_55 [1] : vector<8x64xf32> to vector<8xf32>
    %188 = vector.shape_cast %187 : vector<8xf32> to vector<8x1xf32>
    %189 = tpu.reciprocal %188 {approx = true} : vector<8x1xf32> -> vector<8x1xf32>
    %190 = vector.broadcast %189 : vector<8x1xf32> to vector<8x64xf32>
    %191 = arith.mulf %186, %190 : vector<8x64xf32>
    %192 = arith.truncf %191 : vector<8x64xf32> to vector<8x64xbf16>
    %193 = vector.extract_strided_slice %84 {offsets = [0, 160], sizes = [64, 32], strides = [1, 1]} : vector<64x256xbf16> to vector<64x32xbf16>
    %cst_56 = arith.constant dense<0.000000e+00> : vector<8x32xf32>
    %194 = tpu.matmul %192, %193, %cst_56 {dimension_numbers = #tpu.dot_dimension_numbers<[1], [0], [0], [1], [0, 0, 1, 1], [], []>} : vector<8x64xbf16>, vector<64x32xbf16>, vector<8x32xf32> -> vector<8x32xf32>
    %195 = arith.addf %177, %194 : vector<8x32xf32>
    %196 = vector.broadcast %49 : vector<1x32xf32> to vector<8x32xf32>
    %197 = arith.mulf %67, %196 : vector<8x32xf32>
    %198 = arith.truncf %197 : vector<8x32xf32> to vector<8x32xbf16>
    %cst_57 = arith.constant dense<0.000000e+00> : vector<8x64xf32>
    %199 = tpu.matmul %198, %86, %cst_57 {dimension_numbers = #tpu.dot_dimension_numbers<[1], [0], [0], [1], [0, 0, 1, 1], [], []>} : vector<8x32xbf16>, vector<32x64xbf16>, vector<8x64xf32> -> vector<8x64xf32>
    %cst_58 = arith.constant dense<0xFF800000> : vector<8xf32>
    %200 = vector.multi_reduction <maximumf>, %199, %cst_58 [1] : vector<8x64xf32> to vector<8xf32>
    %201 = vector.shape_cast %200 : vector<8xf32> to vector<8x1xf32>
    %202 = vector.broadcast %201 : vector<8x1xf32> to vector<8x64xf32>
    %203 = arith.subf %199, %202 : vector<8x64xf32>
    %204 = math.exp %203 : vector<8x64xf32>
    %cst_59 = arith.constant dense<0.000000e+00> : vector<8xf32>
    %205 = vector.multi_reduction <add>, %204, %cst_59 [1] : vector<8x64xf32> to vector<8xf32>
    %206 = vector.shape_cast %205 : vector<8xf32> to vector<8x1xf32>
    %207 = tpu.reciprocal %206 {approx = true} : vector<8x1xf32> -> vector<8x1xf32>
    %208 = vector.broadcast %207 : vector<8x1xf32> to vector<8x64xf32>
    %209 = arith.mulf %204, %208 : vector<8x64xf32>
    %210 = arith.truncf %209 : vector<8x64xf32> to vector<8x64xbf16>
    %211 = vector.extract_strided_slice %84 {offsets = [0, 192], sizes = [64, 32], strides = [1, 1]} : vector<64x256xbf16> to vector<64x32xbf16>
    %cst_60 = arith.constant dense<0.000000e+00> : vector<8x32xf32>
    %212 = tpu.matmul %210, %211, %cst_60 {dimension_numbers = #tpu.dot_dimension_numbers<[1], [0], [0], [1], [0, 0, 1, 1], [], []>} : vector<8x64xbf16>, vector<64x32xbf16>, vector<8x32xf32> -> vector<8x32xf32>
    %213 = arith.addf %195, %212 : vector<8x32xf32>
    %214 = vector.broadcast %56 : vector<1x32xf32> to vector<8x32xf32>
    %215 = arith.mulf %67, %214 : vector<8x32xf32>
    %216 = arith.truncf %215 : vector<8x32xf32> to vector<8x32xbf16>
    %cst_61 = arith.constant dense<0.000000e+00> : vector<8x64xf32>
    %217 = tpu.matmul %216, %86, %cst_61 {dimension_numbers = #tpu.dot_dimension_numbers<[1], [0], [0], [1], [0, 0, 1, 1], [], []>} : vector<8x32xbf16>, vector<32x64xbf16>, vector<8x64xf32> -> vector<8x64xf32>
    %cst_62 = arith.constant dense<0xFF800000> : vector<8xf32>
    %218 = vector.multi_reduction <maximumf>, %217, %cst_62 [1] : vector<8x64xf32> to vector<8xf32>
    %219 = vector.shape_cast %218 : vector<8xf32> to vector<8x1xf32>
    %220 = vector.broadcast %219 : vector<8x1xf32> to vector<8x64xf32>
    %221 = arith.subf %217, %220 : vector<8x64xf32>
    %222 = math.exp %221 : vector<8x64xf32>
    %cst_63 = arith.constant dense<0.000000e+00> : vector<8xf32>
    %223 = vector.multi_reduction <add>, %222, %cst_63 [1] : vector<8x64xf32> to vector<8xf32>
    %224 = vector.shape_cast %223 : vector<8xf32> to vector<8x1xf32>
    %225 = tpu.reciprocal %224 {approx = true} : vector<8x1xf32> -> vector<8x1xf32>
    %226 = vector.broadcast %225 : vector<8x1xf32> to vector<8x64xf32>
    %227 = arith.mulf %222, %226 : vector<8x64xf32>
    %228 = arith.truncf %227 : vector<8x64xf32> to vector<8x64xbf16>
    %229 = vector.extract_strided_slice %84 {offsets = [0, 224], sizes = [64, 32], strides = [1, 1]} : vector<64x256xbf16> to vector<64x32xbf16>
    %cst_64 = arith.constant dense<0.000000e+00> : vector<8x32xf32>
    %230 = tpu.matmul %228, %229, %cst_64 {dimension_numbers = #tpu.dot_dimension_numbers<[1], [0], [0], [1], [0, 0, 1, 1], [], []>} : vector<8x64xbf16>, vector<64x32xbf16>, vector<8x32xf32> -> vector<8x32xf32>
    %231 = arith.addf %213, %230 : vector<8x32xf32>
    %c0_65 = arith.constant 0 : index
    %c0_66 = arith.constant 0 : index
    %c0_67 = arith.constant 0 : index
    %232 = vector.load %arg10[%c0_65, %c0_66, %c0_67] : memref<3x1x32xf32, #tpu.memory_space<vmem>>, vector<1x1x32xf32>
    %233 = vector.shape_cast %232 : vector<1x1x32xf32> to vector<1x32xf32>
    %234 = vector.broadcast %233 : vector<1x32xf32> to vector<8x32xf32>
    %235 = arith.addf %231, %234 : vector<8x32xf32>
    %236 = arith.addf %58, %235 : vector<8x32xf32>
    %c0_68 = arith.constant 0 : index
    %c0_69 = arith.constant 0 : index
    %c0_70 = arith.constant 0 : index
    %237 = vector.load %arg11[%c0_68, %c0_69, %c0_70] : memref<3x1x32xf32, #tpu.memory_space<vmem>>, vector<1x1x32xf32>
    %238 = vector.shape_cast %237 : vector<1x1x32xf32> to vector<1x32xf32>
    %c0_71 = arith.constant 0 : index
    %c0_72 = arith.constant 0 : index
    %c0_73 = arith.constant 0 : index
    %239 = vector.load %arg12[%c0_71, %c0_72, %c0_73] : memref<3x1x32xf32, #tpu.memory_space<vmem>>, vector<1x1x32xf32>
    %240 = vector.shape_cast %239 : vector<1x1x32xf32> to vector<1x32xf32>
    %cst_74 = arith.constant dense<0.000000e+00> : vector<8xf32>
    %241 = vector.multi_reduction <add>, %236, %cst_74 [1] : vector<8x32xf32> to vector<8xf32>
    %242 = vector.shape_cast %241 : vector<8xf32> to vector<8x1xf32>
    %cst_75 = arith.constant 3.200000e+01 : f32
    %243 = vector.broadcast %cst_75 : f32 to vector<8x1xf32>
    %244 = arith.divf %242, %243 : vector<8x1xf32>
    %245 = vector.broadcast %244 : vector<8x1xf32> to vector<8x32xf32>
    %246 = arith.subf %236, %245 : vector<8x32xf32>
    %247 = arith.mulf %246, %246 : vector<8x32xf32>
    %cst_76 = arith.constant dense<0.000000e+00> : vector<8xf32>
    %248 = vector.multi_reduction <add>, %247, %cst_76 [1] : vector<8x32xf32> to vector<8xf32>
    %249 = vector.shape_cast %248 : vector<8xf32> to vector<8x1xf32>
    %cst_77 = arith.constant 3.200000e+01 : f32
    %250 = vector.broadcast %cst_77 : f32 to vector<8x1xf32>
    %251 = arith.divf %249, %250 : vector<8x1xf32>
    %cst_78 = arith.constant 9.99999974E-6 : f32
    %252 = vector.broadcast %cst_78 : f32 to vector<8x1xf32>
    %253 = arith.addf %251, %252 : vector<8x1xf32>
    %254 = math.rsqrt %253 : vector<8x1xf32>
    %255 = vector.broadcast %254 : vector<8x1xf32> to vector<8x32xf32>
    %256 = arith.mulf %246, %255 : vector<8x32xf32>
    %257 = vector.broadcast %238 : vector<1x32xf32> to vector<8x32xf32>
    %258 = arith.mulf %256, %257 : vector<8x32xf32>
    %259 = vector.broadcast %240 : vector<1x32xf32> to vector<8x32xf32>
    %260 = arith.addf %258, %259 : vector<8x32xf32>
    %261 = arith.truncf %260 : vector<8x32xf32> to vector<8x32xbf16>
    %c0_79 = arith.constant 0 : index
    %c0_80 = arith.constant 0 : index
    %c0_81 = arith.constant 0 : index
    %262 = vector.load %arg13[%c0_79, %c0_80, %c0_81] : memref<3x32x128xbf16, #tpu.memory_space<vmem>>, vector<1x32x128xbf16>
    %263 = vector.shape_cast %262 : vector<1x32x128xbf16> to vector<32x128xbf16>
    %cst_82 = arith.constant dense<0.000000e+00> : vector<8x128xf32>
    %264 = tpu.matmul %261, %263, %cst_82 {dimension_numbers = #tpu.dot_dimension_numbers<[1], [0], [0], [1], [0, 0, 1, 1], [], []>} : vector<8x32xbf16>, vector<32x128xbf16>, vector<8x128xf32> -> vector<8x128xf32>
    %c0_83 = arith.constant 0 : index
    %c0_84 = arith.constant 0 : index
    %c0_85 = arith.constant 0 : index
    %265 = vector.load %arg14[%c0_83, %c0_84, %c0_85] : memref<3x1x128xf32, #tpu.memory_space<vmem>>, vector<1x1x128xf32>
    %266 = vector.shape_cast %265 : vector<1x1x128xf32> to vector<1x128xf32>
    %267 = vector.broadcast %266 : vector<1x128xf32> to vector<8x128xf32>
    %268 = arith.addf %264, %267 : vector<8x128xf32>
    %cst_86 = arith.constant 5.000000e-01 : f32
    %269 = vector.broadcast %cst_86 : f32 to vector<8x128xf32>
    %270 = arith.mulf %269, %268 : vector<8x128xf32>
    %cst_87 = arith.constant 4.471500e-02 : f32
    %271 = vector.broadcast %cst_87 : f32 to vector<8x128xf32>
    %272 = arith.mulf %271, %268 : vector<8x128xf32>
    %273 = arith.mulf %272, %268 : vector<8x128xf32>
    %274 = arith.mulf %273, %268 : vector<8x128xf32>
    %275 = arith.addf %268, %274 : vector<8x128xf32>
    %cst_88 = arith.constant 0.797884583 : f32
    %276 = vector.broadcast %cst_88 : f32 to vector<8x128xf32>
    %277 = arith.mulf %276, %275 : vector<8x128xf32>
    %278 = math.tanh %277 : vector<8x128xf32>
    %cst_89 = arith.constant 1.000000e+00 : f32
    %279 = vector.broadcast %cst_89 : f32 to vector<8x128xf32>
    %280 = arith.addf %279, %278 : vector<8x128xf32>
    %281 = arith.mulf %270, %280 : vector<8x128xf32>
    %282 = arith.truncf %281 : vector<8x128xf32> to vector<8x128xbf16>
    %c0_90 = arith.constant 0 : index
    %c0_91 = arith.constant 0 : index
    %c0_92 = arith.constant 0 : index
    %283 = vector.load %arg15[%c0_90, %c0_91, %c0_92] : memref<3x128x32xbf16, #tpu.memory_space<vmem>>, vector<1x128x32xbf16>
    %284 = vector.shape_cast %283 : vector<1x128x32xbf16> to vector<128x32xbf16>
    %cst_93 = arith.constant dense<0.000000e+00> : vector<8x32xf32>
    %285 = tpu.matmul %282, %284, %cst_93 {dimension_numbers = #tpu.dot_dimension_numbers<[1], [0], [0], [1], [0, 0, 1, 1], [], []>} : vector<8x128xbf16>, vector<128x32xbf16>, vector<8x32xf32> -> vector<8x32xf32>
    %c0_94 = arith.constant 0 : index
    %c0_95 = arith.constant 0 : index
    %c0_96 = arith.constant 0 : index
    %286 = vector.load %arg16[%c0_94, %c0_95, %c0_96] : memref<3x1x32xf32, #tpu.memory_space<vmem>>, vector<1x1x32xf32>
    %287 = vector.shape_cast %286 : vector<1x1x32xf32> to vector<1x32xf32>
    %288 = vector.broadcast %287 : vector<1x32xf32> to vector<8x32xf32>
    %289 = arith.addf %285, %288 : vector<8x32xf32>
    %290 = arith.addf %260, %289 : vector<8x32xf32>
    %c0_97 = arith.constant 0 : index
    %c0_98 = arith.constant 0 : index
    %c0_99 = arith.constant 0 : index
    %291 = vector.load %arg17[%c0_97, %c0_98, %c0_99] : memref<3x1x32xf32, #tpu.memory_space<vmem>>, vector<1x1x32xf32>
    %292 = vector.shape_cast %291 : vector<1x1x32xf32> to vector<1x32xf32>
    %c0_100 = arith.constant 0 : index
    %c0_101 = arith.constant 0 : index
    %c0_102 = arith.constant 0 : index
    %293 = vector.load %arg18[%c0_100, %c0_101, %c0_102] : memref<3x1x32xf32, #tpu.memory_space<vmem>>, vector<1x1x32xf32>
    %294 = vector.shape_cast %293 : vector<1x1x32xf32> to vector<1x32xf32>
    %cst_103 = arith.constant dense<0.000000e+00> : vector<8xf32>
    %295 = vector.multi_reduction <add>, %290, %cst_103 [1] : vector<8x32xf32> to vector<8xf32>
    %296 = vector.shape_cast %295 : vector<8xf32> to vector<8x1xf32>
    %cst_104 = arith.constant 3.200000e+01 : f32
    %297 = vector.broadcast %cst_104 : f32 to vector<8x1xf32>
    %298 = arith.divf %296, %297 : vector<8x1xf32>
    %299 = vector.broadcast %298 : vector<8x1xf32> to vector<8x32xf32>
    %300 = arith.subf %290, %299 : vector<8x32xf32>
    %301 = arith.mulf %300, %300 : vector<8x32xf32>
    %cst_105 = arith.constant dense<0.000000e+00> : vector<8xf32>
    %302 = vector.multi_reduction <add>, %301, %cst_105 [1] : vector<8x32xf32> to vector<8xf32>
    %303 = vector.shape_cast %302 : vector<8xf32> to vector<8x1xf32>
    %cst_106 = arith.constant 3.200000e+01 : f32
    %304 = vector.broadcast %cst_106 : f32 to vector<8x1xf32>
    %305 = arith.divf %303, %304 : vector<8x1xf32>
    %cst_107 = arith.constant 9.99999974E-6 : f32
    %306 = vector.broadcast %cst_107 : f32 to vector<8x1xf32>
    %307 = arith.addf %305, %306 : vector<8x1xf32>
    %308 = math.rsqrt %307 : vector<8x1xf32>
    %309 = vector.broadcast %308 : vector<8x1xf32> to vector<8x32xf32>
    %310 = arith.mulf %300, %309 : vector<8x32xf32>
    %311 = vector.broadcast %292 : vector<1x32xf32> to vector<8x32xf32>
    %312 = arith.mulf %310, %311 : vector<8x32xf32>
    %313 = vector.broadcast %294 : vector<1x32xf32> to vector<8x32xf32>
    %314 = arith.addf %312, %313 : vector<8x32xf32>
    %315 = arith.truncf %314 : vector<8x32xf32> to vector<8x32xbf16>
    %c1 = arith.constant 1 : index
    %c0_108 = arith.constant 0 : index
    %c0_109 = arith.constant 0 : index
    %316 = vector.load %arg4[%c1, %c0_108, %c0_109] : memref<3x32x32xbf16, #tpu.memory_space<vmem>>, vector<1x32x32xbf16>
    %317 = vector.shape_cast %316 : vector<1x32x32xbf16> to vector<32x32xbf16>
    %cst_110 = arith.constant dense<0.000000e+00> : vector<8x32xf32>
    %318 = tpu.matmul %315, %317, %cst_110 {dimension_numbers = #tpu.dot_dimension_numbers<[1], [0], [0], [1], [0, 0, 1, 1], [], []>} : vector<8x32xbf16>, vector<32x32xbf16>, vector<8x32xf32> -> vector<8x32xf32>
    %c1_111 = arith.constant 1 : index
    %c0_112 = arith.constant 0 : index
    %c0_113 = arith.constant 0 : index
    %319 = vector.load %arg5[%c1_111, %c0_112, %c0_113] : memref<3x1x32xf32, #tpu.memory_space<vmem>>, vector<1x1x32xf32>
    %320 = vector.shape_cast %319 : vector<1x1x32xf32> to vector<1x32xf32>
    %321 = vector.broadcast %320 : vector<1x32xf32> to vector<8x32xf32>
    %322 = arith.addf %318, %321 : vector<8x32xf32>
    %323 = arith.truncf %314 : vector<8x32xf32> to vector<8x32xbf16>
    %c1_114 = arith.constant 1 : index
    %c0_115 = arith.constant 0 : index
    %c0_116 = arith.constant 0 : index
    %324 = vector.load %arg6[%c1_114, %c0_115, %c0_116] : memref<3x32x32xbf16, #tpu.memory_space<vmem>>, vector<1x32x32xbf16>
    %325 = vector.shape_cast %324 : vector<1x32x32xbf16> to vector<32x32xbf16>
    %cst_117 = arith.constant dense<0.000000e+00> : vector<8x32xf32>
    %326 = tpu.matmul %323, %325, %cst_117 {dimension_numbers = #tpu.dot_dimension_numbers<[1], [0], [0], [1], [0, 0, 1, 1], [], []>} : vector<8x32xbf16>, vector<32x32xbf16>, vector<8x32xf32> -> vector<8x32xf32>
    %c1_118 = arith.constant 1 : index
    %c0_119 = arith.constant 0 : index
    %c0_120 = arith.constant 0 : index
    %327 = vector.load %arg7[%c1_118, %c0_119, %c0_120] : memref<3x1x32xf32, #tpu.memory_space<vmem>>, vector<1x1x32xf32>
    %328 = vector.shape_cast %327 : vector<1x1x32xf32> to vector<1x32xf32>
    %329 = vector.broadcast %328 : vector<1x32xf32> to vector<8x32xf32>
    %330 = arith.addf %326, %329 : vector<8x32xf32>
    %331 = arith.truncf %314 : vector<8x32xf32> to vector<8x32xbf16>
    %c1_121 = arith.constant 1 : index
    %c0_122 = arith.constant 0 : index
    %c0_123 = arith.constant 0 : index
    %332 = vector.load %arg8[%c1_121, %c0_122, %c0_123] : memref<3x32x256xbf16, #tpu.memory_space<vmem>>, vector<1x32x256xbf16>
    %333 = vector.shape_cast %332 : vector<1x32x256xbf16> to vector<32x256xbf16>
    %cst_124 = arith.constant dense<0.000000e+00> : vector<8x256xf32>
    %334 = tpu.matmul %331, %333, %cst_124 {dimension_numbers = #tpu.dot_dimension_numbers<[1], [0], [0], [1], [0, 0, 1, 1], [], []>} : vector<8x32xbf16>, vector<32x256xbf16>, vector<8x256xf32> -> vector<8x256xf32>
    %c1_125 = arith.constant 1 : index
    %c0_126 = arith.constant 0 : index
    %c0_127 = arith.constant 0 : index
    %335 = vector.load %arg9[%c1_125, %c0_126, %c0_127] : memref<3x1x256xf32, #tpu.memory_space<vmem>>, vector<1x1x256xf32>
    %336 = vector.shape_cast %335 : vector<1x1x256xf32> to vector<1x256xf32>
    %337 = vector.broadcast %336 : vector<1x256xf32> to vector<8x256xf32>
    %338 = arith.addf %334, %337 : vector<8x256xf32>
    %339 = arith.truncf %338 : vector<8x256xf32> to vector<8x256xbf16>
    %340 = tpu.transpose %330, [1, 0] : vector<8x32xf32> -> vector<32x8xf32>
    %341 = arith.truncf %340 : vector<32x8xf32> to vector<32x8xbf16>
    %cst_128 = arith.constant 0.000000e+00 : f32
    %342 = vector.broadcast %cst_128 : f32 to vector<8x32xf32>
    %343 = vector.broadcast %7 : vector<1x32xf32> to vector<8x32xf32>
    %344 = arith.mulf %322, %343 : vector<8x32xf32>
    %345 = arith.truncf %344 : vector<8x32xf32> to vector<8x32xbf16>
    %cst_129 = arith.constant dense<0.000000e+00> : vector<8x8xf32>
    %346 = tpu.matmul %345, %341, %cst_129 {dimension_numbers = #tpu.dot_dimension_numbers<[1], [0], [0], [1], [0, 0, 1, 1], [], []>} : vector<8x32xbf16>, vector<32x8xbf16>, vector<8x8xf32> -> vector<8x8xf32>
    %cst_130 = arith.constant dense<0xFF800000> : vector<8xf32>
    %347 = vector.multi_reduction <maximumf>, %346, %cst_130 [1] : vector<8x8xf32> to vector<8xf32>
    %348 = vector.shape_cast %347 : vector<8xf32> to vector<8x1xf32>
    %349 = vector.broadcast %348 : vector<8x1xf32> to vector<8x8xf32>
    %350 = arith.subf %346, %349 : vector<8x8xf32>
    %351 = math.exp %350 : vector<8x8xf32>
    %cst_131 = arith.constant dense<0.000000e+00> : vector<8xf32>
    %352 = vector.multi_reduction <add>, %351, %cst_131 [1] : vector<8x8xf32> to vector<8xf32>
    %353 = vector.shape_cast %352 : vector<8xf32> to vector<8x1xf32>
    %354 = tpu.reciprocal %353 {approx = true} : vector<8x1xf32> -> vector<8x1xf32>
    %355 = vector.broadcast %354 : vector<8x1xf32> to vector<8x8xf32>
    %356 = arith.mulf %351, %355 : vector<8x8xf32>
    %357 = arith.truncf %356 : vector<8x8xf32> to vector<8x8xbf16>
    %358 = vector.extract_strided_slice %339 {offsets = [0, 0], sizes = [8, 32], strides = [1, 1]} : vector<8x256xbf16> to vector<8x32xbf16>
    %cst_132 = arith.constant dense<0.000000e+00> : vector<8x32xf32>
    %359 = tpu.matmul %357, %358, %cst_132 {dimension_numbers = #tpu.dot_dimension_numbers<[1], [0], [0], [1], [0, 0, 1, 1], [], []>} : vector<8x8xbf16>, vector<8x32xbf16>, vector<8x32xf32> -> vector<8x32xf32>
    %360 = arith.addf %342, %359 : vector<8x32xf32>
    %361 = vector.broadcast %14 : vector<1x32xf32> to vector<8x32xf32>
    %362 = arith.mulf %322, %361 : vector<8x32xf32>
    %363 = arith.truncf %362 : vector<8x32xf32> to vector<8x32xbf16>
    %cst_133 = arith.constant dense<0.000000e+00> : vector<8x8xf32>
    %364 = tpu.matmul %363, %341, %cst_133 {dimension_numbers = #tpu.dot_dimension_numbers<[1], [0], [0], [1], [0, 0, 1, 1], [], []>} : vector<8x32xbf16>, vector<32x8xbf16>, vector<8x8xf32> -> vector<8x8xf32>
    %cst_134 = arith.constant dense<0xFF800000> : vector<8xf32>
    %365 = vector.multi_reduction <maximumf>, %364, %cst_134 [1] : vector<8x8xf32> to vector<8xf32>
    %366 = vector.shape_cast %365 : vector<8xf32> to vector<8x1xf32>
    %367 = vector.broadcast %366 : vector<8x1xf32> to vector<8x8xf32>
    %368 = arith.subf %364, %367 : vector<8x8xf32>
    %369 = math.exp %368 : vector<8x8xf32>
    %cst_135 = arith.constant dense<0.000000e+00> : vector<8xf32>
    %370 = vector.multi_reduction <add>, %369, %cst_135 [1] : vector<8x8xf32> to vector<8xf32>
    %371 = vector.shape_cast %370 : vector<8xf32> to vector<8x1xf32>
    %372 = tpu.reciprocal %371 {approx = true} : vector<8x1xf32> -> vector<8x1xf32>
    %373 = vector.broadcast %372 : vector<8x1xf32> to vector<8x8xf32>
    %374 = arith.mulf %369, %373 : vector<8x8xf32>
    %375 = arith.truncf %374 : vector<8x8xf32> to vector<8x8xbf16>
    %376 = vector.extract_strided_slice %339 {offsets = [0, 32], sizes = [8, 32], strides = [1, 1]} : vector<8x256xbf16> to vector<8x32xbf16>
    %cst_136 = arith.constant dense<0.000000e+00> : vector<8x32xf32>
    %377 = tpu.matmul %375, %376, %cst_136 {dimension_numbers = #tpu.dot_dimension_numbers<[1], [0], [0], [1], [0, 0, 1, 1], [], []>} : vector<8x8xbf16>, vector<8x32xbf16>, vector<8x32xf32> -> vector<8x32xf32>
    %378 = arith.addf %360, %377 : vector<8x32xf32>
    %379 = vector.broadcast %21 : vector<1x32xf32> to vector<8x32xf32>
    %380 = arith.mulf %322, %379 : vector<8x32xf32>
    %381 = arith.truncf %380 : vector<8x32xf32> to vector<8x32xbf16>
    %cst_137 = arith.constant dense<0.000000e+00> : vector<8x8xf32>
    %382 = tpu.matmul %381, %341, %cst_137 {dimension_numbers = #tpu.dot_dimension_numbers<[1], [0], [0], [1], [0, 0, 1, 1], [], []>} : vector<8x32xbf16>, vector<32x8xbf16>, vector<8x8xf32> -> vector<8x8xf32>
    %cst_138 = arith.constant dense<0xFF800000> : vector<8xf32>
    %383 = vector.multi_reduction <maximumf>, %382, %cst_138 [1] : vector<8x8xf32> to vector<8xf32>
    %384 = vector.shape_cast %383 : vector<8xf32> to vector<8x1xf32>
    %385 = vector.broadcast %384 : vector<8x1xf32> to vector<8x8xf32>
    %386 = arith.subf %382, %385 : vector<8x8xf32>
    %387 = math.exp %386 : vector<8x8xf32>
    %cst_139 = arith.constant dense<0.000000e+00> : vector<8xf32>
    %388 = vector.multi_reduction <add>, %387, %cst_139 [1] : vector<8x8xf32> to vector<8xf32>
    %389 = vector.shape_cast %388 : vector<8xf32> to vector<8x1xf32>
    %390 = tpu.reciprocal %389 {approx = true} : vector<8x1xf32> -> vector<8x1xf32>
    %391 = vector.broadcast %390 : vector<8x1xf32> to vector<8x8xf32>
    %392 = arith.mulf %387, %391 : vector<8x8xf32>
    %393 = arith.truncf %392 : vector<8x8xf32> to vector<8x8xbf16>
    %394 = vector.extract_strided_slice %339 {offsets = [0, 64], sizes = [8, 32], strides = [1, 1]} : vector<8x256xbf16> to vector<8x32xbf16>
    %cst_140 = arith.constant dense<0.000000e+00> : vector<8x32xf32>
    %395 = tpu.matmul %393, %394, %cst_140 {dimension_numbers = #tpu.dot_dimension_numbers<[1], [0], [0], [1], [0, 0, 1, 1], [], []>} : vector<8x8xbf16>, vector<8x32xbf16>, vector<8x32xf32> -> vector<8x32xf32>
    %396 = arith.addf %378, %395 : vector<8x32xf32>
    %397 = vector.broadcast %28 : vector<1x32xf32> to vector<8x32xf32>
    %398 = arith.mulf %322, %397 : vector<8x32xf32>
    %399 = arith.truncf %398 : vector<8x32xf32> to vector<8x32xbf16>
    %cst_141 = arith.constant dense<0.000000e+00> : vector<8x8xf32>
    %400 = tpu.matmul %399, %341, %cst_141 {dimension_numbers = #tpu.dot_dimension_numbers<[1], [0], [0], [1], [0, 0, 1, 1], [], []>} : vector<8x32xbf16>, vector<32x8xbf16>, vector<8x8xf32> -> vector<8x8xf32>
    %cst_142 = arith.constant dense<0xFF800000> : vector<8xf32>
    %401 = vector.multi_reduction <maximumf>, %400, %cst_142 [1] : vector<8x8xf32> to vector<8xf32>
    %402 = vector.shape_cast %401 : vector<8xf32> to vector<8x1xf32>
    %403 = vector.broadcast %402 : vector<8x1xf32> to vector<8x8xf32>
    %404 = arith.subf %400, %403 : vector<8x8xf32>
    %405 = math.exp %404 : vector<8x8xf32>
    %cst_143 = arith.constant dense<0.000000e+00> : vector<8xf32>
    %406 = vector.multi_reduction <add>, %405, %cst_143 [1] : vector<8x8xf32> to vector<8xf32>
    %407 = vector.shape_cast %406 : vector<8xf32> to vector<8x1xf32>
    %408 = tpu.reciprocal %407 {approx = true} : vector<8x1xf32> -> vector<8x1xf32>
    %409 = vector.broadcast %408 : vector<8x1xf32> to vector<8x8xf32>
    %410 = arith.mulf %405, %409 : vector<8x8xf32>
    %411 = arith.truncf %410 : vector<8x8xf32> to vector<8x8xbf16>
    %412 = vector.extract_strided_slice %339 {offsets = [0, 96], sizes = [8, 32], strides = [1, 1]} : vector<8x256xbf16> to vector<8x32xbf16>
    %cst_144 = arith.constant dense<0.000000e+00> : vector<8x32xf32>
    %413 = tpu.matmul %411, %412, %cst_144 {dimension_numbers = #tpu.dot_dimension_numbers<[1], [0], [0], [1], [0, 0, 1, 1], [], []>} : vector<8x8xbf16>, vector<8x32xbf16>, vector<8x32xf32> -> vector<8x32xf32>
    %414 = arith.addf %396, %413 : vector<8x32xf32>
    %415 = vector.broadcast %35 : vector<1x32xf32> to vector<8x32xf32>
    %416 = arith.mulf %322, %415 : vector<8x32xf32>
    %417 = arith.truncf %416 : vector<8x32xf32> to vector<8x32xbf16>
    %cst_145 = arith.constant dense<0.000000e+00> : vector<8x8xf32>
    %418 = tpu.matmul %417, %341, %cst_145 {dimension_numbers = #tpu.dot_dimension_numbers<[1], [0], [0], [1], [0, 0, 1, 1], [], []>} : vector<8x32xbf16>, vector<32x8xbf16>, vector<8x8xf32> -> vector<8x8xf32>
    %cst_146 = arith.constant dense<0xFF800000> : vector<8xf32>
    %419 = vector.multi_reduction <maximumf>, %418, %cst_146 [1] : vector<8x8xf32> to vector<8xf32>
    %420 = vector.shape_cast %419 : vector<8xf32> to vector<8x1xf32>
    %421 = vector.broadcast %420 : vector<8x1xf32> to vector<8x8xf32>
    %422 = arith.subf %418, %421 : vector<8x8xf32>
    %423 = math.exp %422 : vector<8x8xf32>
    %cst_147 = arith.constant dense<0.000000e+00> : vector<8xf32>
    %424 = vector.multi_reduction <add>, %423, %cst_147 [1] : vector<8x8xf32> to vector<8xf32>
    %425 = vector.shape_cast %424 : vector<8xf32> to vector<8x1xf32>
    %426 = tpu.reciprocal %425 {approx = true} : vector<8x1xf32> -> vector<8x1xf32>
    %427 = vector.broadcast %426 : vector<8x1xf32> to vector<8x8xf32>
    %428 = arith.mulf %423, %427 : vector<8x8xf32>
    %429 = arith.truncf %428 : vector<8x8xf32> to vector<8x8xbf16>
    %430 = vector.extract_strided_slice %339 {offsets = [0, 128], sizes = [8, 32], strides = [1, 1]} : vector<8x256xbf16> to vector<8x32xbf16>
    %cst_148 = arith.constant dense<0.000000e+00> : vector<8x32xf32>
    %431 = tpu.matmul %429, %430, %cst_148 {dimension_numbers = #tpu.dot_dimension_numbers<[1], [0], [0], [1], [0, 0, 1, 1], [], []>} : vector<8x8xbf16>, vector<8x32xbf16>, vector<8x32xf32> -> vector<8x32xf32>
    %432 = arith.addf %414, %431 : vector<8x32xf32>
    %433 = vector.broadcast %42 : vector<1x32xf32> to vector<8x32xf32>
    %434 = arith.mulf %322, %433 : vector<8x32xf32>
    %435 = arith.truncf %434 : vector<8x32xf32> to vector<8x32xbf16>
    %cst_149 = arith.constant dense<0.000000e+00> : vector<8x8xf32>
    %436 = tpu.matmul %435, %341, %cst_149 {dimension_numbers = #tpu.dot_dimension_numbers<[1], [0], [0], [1], [0, 0, 1, 1], [], []>} : vector<8x32xbf16>, vector<32x8xbf16>, vector<8x8xf32> -> vector<8x8xf32>
    %cst_150 = arith.constant dense<0xFF800000> : vector<8xf32>
    %437 = vector.multi_reduction <maximumf>, %436, %cst_150 [1] : vector<8x8xf32> to vector<8xf32>
    %438 = vector.shape_cast %437 : vector<8xf32> to vector<8x1xf32>
    %439 = vector.broadcast %438 : vector<8x1xf32> to vector<8x8xf32>
    %440 = arith.subf %436, %439 : vector<8x8xf32>
    %441 = math.exp %440 : vector<8x8xf32>
    %cst_151 = arith.constant dense<0.000000e+00> : vector<8xf32>
    %442 = vector.multi_reduction <add>, %441, %cst_151 [1] : vector<8x8xf32> to vector<8xf32>
    %443 = vector.shape_cast %442 : vector<8xf32> to vector<8x1xf32>
    %444 = tpu.reciprocal %443 {approx = true} : vector<8x1xf32> -> vector<8x1xf32>
    %445 = vector.broadcast %444 : vector<8x1xf32> to vector<8x8xf32>
    %446 = arith.mulf %441, %445 : vector<8x8xf32>
    %447 = arith.truncf %446 : vector<8x8xf32> to vector<8x8xbf16>
    %448 = vector.extract_strided_slice %339 {offsets = [0, 160], sizes = [8, 32], strides = [1, 1]} : vector<8x256xbf16> to vector<8x32xbf16>
    %cst_152 = arith.constant dense<0.000000e+00> : vector<8x32xf32>
    %449 = tpu.matmul %447, %448, %cst_152 {dimension_numbers = #tpu.dot_dimension_numbers<[1], [0], [0], [1], [0, 0, 1, 1], [], []>} : vector<8x8xbf16>, vector<8x32xbf16>, vector<8x32xf32> -> vector<8x32xf32>
    %450 = arith.addf %432, %449 : vector<8x32xf32>
    %451 = vector.broadcast %49 : vector<1x32xf32> to vector<8x32xf32>
    %452 = arith.mulf %322, %451 : vector<8x32xf32>
    %453 = arith.truncf %452 : vector<8x32xf32> to vector<8x32xbf16>
    %cst_153 = arith.constant dense<0.000000e+00> : vector<8x8xf32>
    %454 = tpu.matmul %453, %341, %cst_153 {dimension_numbers = #tpu.dot_dimension_numbers<[1], [0], [0], [1], [0, 0, 1, 1], [], []>} : vector<8x32xbf16>, vector<32x8xbf16>, vector<8x8xf32> -> vector<8x8xf32>
    %cst_154 = arith.constant dense<0xFF800000> : vector<8xf32>
    %455 = vector.multi_reduction <maximumf>, %454, %cst_154 [1] : vector<8x8xf32> to vector<8xf32>
    %456 = vector.shape_cast %455 : vector<8xf32> to vector<8x1xf32>
    %457 = vector.broadcast %456 : vector<8x1xf32> to vector<8x8xf32>
    %458 = arith.subf %454, %457 : vector<8x8xf32>
    %459 = math.exp %458 : vector<8x8xf32>
    %cst_155 = arith.constant dense<0.000000e+00> : vector<8xf32>
    %460 = vector.multi_reduction <add>, %459, %cst_155 [1] : vector<8x8xf32> to vector<8xf32>
    %461 = vector.shape_cast %460 : vector<8xf32> to vector<8x1xf32>
    %462 = tpu.reciprocal %461 {approx = true} : vector<8x1xf32> -> vector<8x1xf32>
    %463 = vector.broadcast %462 : vector<8x1xf32> to vector<8x8xf32>
    %464 = arith.mulf %459, %463 : vector<8x8xf32>
    %465 = arith.truncf %464 : vector<8x8xf32> to vector<8x8xbf16>
    %466 = vector.extract_strided_slice %339 {offsets = [0, 192], sizes = [8, 32], strides = [1, 1]} : vector<8x256xbf16> to vector<8x32xbf16>
    %cst_156 = arith.constant dense<0.000000e+00> : vector<8x32xf32>
    %467 = tpu.matmul %465, %466, %cst_156 {dimension_numbers = #tpu.dot_dimension_numbers<[1], [0], [0], [1], [0, 0, 1, 1], [], []>} : vector<8x8xbf16>, vector<8x32xbf16>, vector<8x32xf32> -> vector<8x32xf32>
    %468 = arith.addf %450, %467 : vector<8x32xf32>
    %469 = vector.broadcast %56 : vector<1x32xf32> to vector<8x32xf32>
    %470 = arith.mulf %322, %469 : vector<8x32xf32>
    %471 = arith.truncf %470 : vector<8x32xf32> to vector<8x32xbf16>
    %cst_157 = arith.constant dense<0.000000e+00> : vector<8x8xf32>
    %472 = tpu.matmul %471, %341, %cst_157 {dimension_numbers = #tpu.dot_dimension_numbers<[1], [0], [0], [1], [0, 0, 1, 1], [], []>} : vector<8x32xbf16>, vector<32x8xbf16>, vector<8x8xf32> -> vector<8x8xf32>
    %cst_158 = arith.constant dense<0xFF800000> : vector<8xf32>
    %473 = vector.multi_reduction <maximumf>, %472, %cst_158 [1] : vector<8x8xf32> to vector<8xf32>
    %474 = vector.shape_cast %473 : vector<8xf32> to vector<8x1xf32>
    %475 = vector.broadcast %474 : vector<8x1xf32> to vector<8x8xf32>
    %476 = arith.subf %472, %475 : vector<8x8xf32>
    %477 = math.exp %476 : vector<8x8xf32>
    %cst_159 = arith.constant dense<0.000000e+00> : vector<8xf32>
    %478 = vector.multi_reduction <add>, %477, %cst_159 [1] : vector<8x8xf32> to vector<8xf32>
    %479 = vector.shape_cast %478 : vector<8xf32> to vector<8x1xf32>
    %480 = tpu.reciprocal %479 {approx = true} : vector<8x1xf32> -> vector<8x1xf32>
    %481 = vector.broadcast %480 : vector<8x1xf32> to vector<8x8xf32>
    %482 = arith.mulf %477, %481 : vector<8x8xf32>
    %483 = arith.truncf %482 : vector<8x8xf32> to vector<8x8xbf16>
    %484 = vector.extract_strided_slice %339 {offsets = [0, 224], sizes = [8, 32], strides = [1, 1]} : vector<8x256xbf16> to vector<8x32xbf16>
    %cst_160 = arith.constant dense<0.000000e+00> : vector<8x32xf32>
    %485 = tpu.matmul %483, %484, %cst_160 {dimension_numbers = #tpu.dot_dimension_numbers<[1], [0], [0], [1], [0, 0, 1, 1], [], []>} : vector<8x8xbf16>, vector<8x32xbf16>, vector<8x32xf32> -> vector<8x32xf32>
    %486 = arith.addf %468, %485 : vector<8x32xf32>
    %c1_161 = arith.constant 1 : index
    %c0_162 = arith.constant 0 : index
    %c0_163 = arith.constant 0 : index
    %487 = vector.load %arg10[%c1_161, %c0_162, %c0_163] : memref<3x1x32xf32, #tpu.memory_space<vmem>>, vector<1x1x32xf32>
    %488 = vector.shape_cast %487 : vector<1x1x32xf32> to vector<1x32xf32>
    %489 = vector.broadcast %488 : vector<1x32xf32> to vector<8x32xf32>
    %490 = arith.addf %486, %489 : vector<8x32xf32>
    %491 = arith.addf %314, %490 : vector<8x32xf32>
    %c1_164 = arith.constant 1 : index
    %c0_165 = arith.constant 0 : index
    %c0_166 = arith.constant 0 : index
    %492 = vector.load %arg11[%c1_164, %c0_165, %c0_166] : memref<3x1x32xf32, #tpu.memory_space<vmem>>, vector<1x1x32xf32>
    %493 = vector.shape_cast %492 : vector<1x1x32xf32> to vector<1x32xf32>
    %c1_167 = arith.constant 1 : index
    %c0_168 = arith.constant 0 : index
    %c0_169 = arith.constant 0 : index
    %494 = vector.load %arg12[%c1_167, %c0_168, %c0_169] : memref<3x1x32xf32, #tpu.memory_space<vmem>>, vector<1x1x32xf32>
    %495 = vector.shape_cast %494 : vector<1x1x32xf32> to vector<1x32xf32>
    %cst_170 = arith.constant dense<0.000000e+00> : vector<8xf32>
    %496 = vector.multi_reduction <add>, %491, %cst_170 [1] : vector<8x32xf32> to vector<8xf32>
    %497 = vector.shape_cast %496 : vector<8xf32> to vector<8x1xf32>
    %cst_171 = arith.constant 3.200000e+01 : f32
    %498 = vector.broadcast %cst_171 : f32 to vector<8x1xf32>
    %499 = arith.divf %497, %498 : vector<8x1xf32>
    %500 = vector.broadcast %499 : vector<8x1xf32> to vector<8x32xf32>
    %501 = arith.subf %491, %500 : vector<8x32xf32>
    %502 = arith.mulf %501, %501 : vector<8x32xf32>
    %cst_172 = arith.constant dense<0.000000e+00> : vector<8xf32>
    %503 = vector.multi_reduction <add>, %502, %cst_172 [1] : vector<8x32xf32> to vector<8xf32>
    %504 = vector.shape_cast %503 : vector<8xf32> to vector<8x1xf32>
    %cst_173 = arith.constant 3.200000e+01 : f32
    %505 = vector.broadcast %cst_173 : f32 to vector<8x1xf32>
    %506 = arith.divf %504, %505 : vector<8x1xf32>
    %cst_174 = arith.constant 9.99999974E-6 : f32
    %507 = vector.broadcast %cst_174 : f32 to vector<8x1xf32>
    %508 = arith.addf %506, %507 : vector<8x1xf32>
    %509 = math.rsqrt %508 : vector<8x1xf32>
    %510 = vector.broadcast %509 : vector<8x1xf32> to vector<8x32xf32>
    %511 = arith.mulf %501, %510 : vector<8x32xf32>
    %512 = vector.broadcast %493 : vector<1x32xf32> to vector<8x32xf32>
    %513 = arith.mulf %511, %512 : vector<8x32xf32>
    %514 = vector.broadcast %495 : vector<1x32xf32> to vector<8x32xf32>
    %515 = arith.addf %513, %514 : vector<8x32xf32>
    %516 = arith.truncf %515 : vector<8x32xf32> to vector<8x32xbf16>
    %c1_175 = arith.constant 1 : index
    %c0_176 = arith.constant 0 : index
    %c0_177 = arith.constant 0 : index
    %517 = vector.load %arg13[%c1_175, %c0_176, %c0_177] : memref<3x32x128xbf16, #tpu.memory_space<vmem>>, vector<1x32x128xbf16>
    %518 = vector.shape_cast %517 : vector<1x32x128xbf16> to vector<32x128xbf16>
    %cst_178 = arith.constant dense<0.000000e+00> : vector<8x128xf32>
    %519 = tpu.matmul %516, %518, %cst_178 {dimension_numbers = #tpu.dot_dimension_numbers<[1], [0], [0], [1], [0, 0, 1, 1], [], []>} : vector<8x32xbf16>, vector<32x128xbf16>, vector<8x128xf32> -> vector<8x128xf32>
    %c1_179 = arith.constant 1 : index
    %c0_180 = arith.constant 0 : index
    %c0_181 = arith.constant 0 : index
    %520 = vector.load %arg14[%c1_179, %c0_180, %c0_181] : memref<3x1x128xf32, #tpu.memory_space<vmem>>, vector<1x1x128xf32>
    %521 = vector.shape_cast %520 : vector<1x1x128xf32> to vector<1x128xf32>
    %522 = vector.broadcast %521 : vector<1x128xf32> to vector<8x128xf32>
    %523 = arith.addf %519, %522 : vector<8x128xf32>
    %cst_182 = arith.constant 5.000000e-01 : f32
    %524 = vector.broadcast %cst_182 : f32 to vector<8x128xf32>
    %525 = arith.mulf %524, %523 : vector<8x128xf32>
    %cst_183 = arith.constant 4.471500e-02 : f32
    %526 = vector.broadcast %cst_183 : f32 to vector<8x128xf32>
    %527 = arith.mulf %526, %523 : vector<8x128xf32>
    %528 = arith.mulf %527, %523 : vector<8x128xf32>
    %529 = arith.mulf %528, %523 : vector<8x128xf32>
    %530 = arith.addf %523, %529 : vector<8x128xf32>
    %cst_184 = arith.constant 0.797884583 : f32
    %531 = vector.broadcast %cst_184 : f32 to vector<8x128xf32>
    %532 = arith.mulf %531, %530 : vector<8x128xf32>
    %533 = math.tanh %532 : vector<8x128xf32>
    %cst_185 = arith.constant 1.000000e+00 : f32
    %534 = vector.broadcast %cst_185 : f32 to vector<8x128xf32>
    %535 = arith.addf %534, %533 : vector<8x128xf32>
    %536 = arith.mulf %525, %535 : vector<8x128xf32>
    %537 = arith.truncf %536 : vector<8x128xf32> to vector<8x128xbf16>
    %c1_186 = arith.constant 1 : index
    %c0_187 = arith.constant 0 : index
    %c0_188 = arith.constant 0 : index
    %538 = vector.load %arg15[%c1_186, %c0_187, %c0_188] : memref<3x128x32xbf16, #tpu.memory_space<vmem>>, vector<1x128x32xbf16>
    %539 = vector.shape_cast %538 : vector<1x128x32xbf16> to vector<128x32xbf16>
    %cst_189 = arith.constant dense<0.000000e+00> : vector<8x32xf32>
    %540 = tpu.matmul %537, %539, %cst_189 {dimension_numbers = #tpu.dot_dimension_numbers<[1], [0], [0], [1], [0, 0, 1, 1], [], []>} : vector<8x128xbf16>, vector<128x32xbf16>, vector<8x32xf32> -> vector<8x32xf32>
    %c1_190 = arith.constant 1 : index
    %c0_191 = arith.constant 0 : index
    %c0_192 = arith.constant 0 : index
    %541 = vector.load %arg16[%c1_190, %c0_191, %c0_192] : memref<3x1x32xf32, #tpu.memory_space<vmem>>, vector<1x1x32xf32>
    %542 = vector.shape_cast %541 : vector<1x1x32xf32> to vector<1x32xf32>
    %543 = vector.broadcast %542 : vector<1x32xf32> to vector<8x32xf32>
    %544 = arith.addf %540, %543 : vector<8x32xf32>
    %545 = arith.addf %515, %544 : vector<8x32xf32>
    %c1_193 = arith.constant 1 : index
    %c0_194 = arith.constant 0 : index
    %c0_195 = arith.constant 0 : index
    %546 = vector.load %arg17[%c1_193, %c0_194, %c0_195] : memref<3x1x32xf32, #tpu.memory_space<vmem>>, vector<1x1x32xf32>
    %547 = vector.shape_cast %546 : vector<1x1x32xf32> to vector<1x32xf32>
    %c1_196 = arith.constant 1 : index
    %c0_197 = arith.constant 0 : index
    %c0_198 = arith.constant 0 : index
    %548 = vector.load %arg18[%c1_196, %c0_197, %c0_198] : memref<3x1x32xf32, #tpu.memory_space<vmem>>, vector<1x1x32xf32>
    %549 = vector.shape_cast %548 : vector<1x1x32xf32> to vector<1x32xf32>
    %cst_199 = arith.constant dense<0.000000e+00> : vector<8xf32>
    %550 = vector.multi_reduction <add>, %545, %cst_199 [1] : vector<8x32xf32> to vector<8xf32>
    %551 = vector.shape_cast %550 : vector<8xf32> to vector<8x1xf32>
    %cst_200 = arith.constant 3.200000e+01 : f32
    %552 = vector.broadcast %cst_200 : f32 to vector<8x1xf32>
    %553 = arith.divf %551, %552 : vector<8x1xf32>
    %554 = vector.broadcast %553 : vector<8x1xf32> to vector<8x32xf32>
    %555 = arith.subf %545, %554 : vector<8x32xf32>
    %556 = arith.mulf %555, %555 : vector<8x32xf32>
    %cst_201 = arith.constant dense<0.000000e+00> : vector<8xf32>
    %557 = vector.multi_reduction <add>, %556, %cst_201 [1] : vector<8x32xf32> to vector<8xf32>
    %558 = vector.shape_cast %557 : vector<8xf32> to vector<8x1xf32>
    %cst_202 = arith.constant 3.200000e+01 : f32
    %559 = vector.broadcast %cst_202 : f32 to vector<8x1xf32>
    %560 = arith.divf %558, %559 : vector<8x1xf32>
    %cst_203 = arith.constant 9.99999974E-6 : f32
    %561 = vector.broadcast %cst_203 : f32 to vector<8x1xf32>
    %562 = arith.addf %560, %561 : vector<8x1xf32>
    %563 = math.rsqrt %562 : vector<8x1xf32>
    %564 = vector.broadcast %563 : vector<8x1xf32> to vector<8x32xf32>
    %565 = arith.mulf %555, %564 : vector<8x32xf32>
    %566 = vector.broadcast %547 : vector<1x32xf32> to vector<8x32xf32>
    %567 = arith.mulf %565, %566 : vector<8x32xf32>
    %568 = vector.broadcast %549 : vector<1x32xf32> to vector<8x32xf32>
    %569 = arith.addf %567, %568 : vector<8x32xf32>
    %570 = arith.addf %57, %59 : vector<64x32xf32>
    %571 = arith.truncf %570 : vector<64x32xf32> to vector<64x32xbf16>
    %c2 = arith.constant 2 : index
    %c0_204 = arith.constant 0 : index
    %c0_205 = arith.constant 0 : index
    %572 = vector.load %arg4[%c2, %c0_204, %c0_205] : memref<3x32x32xbf16, #tpu.memory_space<vmem>>, vector<1x32x32xbf16>
    %573 = vector.shape_cast %572 : vector<1x32x32xbf16> to vector<32x32xbf16>
    %cst_206 = arith.constant dense<0.000000e+00> : vector<64x32xf32>
    %574 = tpu.matmul %571, %573, %cst_206 {dimension_numbers = #tpu.dot_dimension_numbers<[1], [0], [0], [1], [0, 0, 1, 1], [], []>} : vector<64x32xbf16>, vector<32x32xbf16>, vector<64x32xf32> -> vector<64x32xf32>
    %c2_207 = arith.constant 2 : index
    %c0_208 = arith.constant 0 : index
    %c0_209 = arith.constant 0 : index
    %575 = vector.load %arg5[%c2_207, %c0_208, %c0_209] : memref<3x1x32xf32, #tpu.memory_space<vmem>>, vector<1x1x32xf32>
    %576 = vector.shape_cast %575 : vector<1x1x32xf32> to vector<1x32xf32>
    %577 = vector.broadcast %576 : vector<1x32xf32> to vector<64x32xf32>
    %578 = arith.addf %574, %577 : vector<64x32xf32>
    %579 = arith.truncf %569 : vector<8x32xf32> to vector<8x32xbf16>
    %c2_210 = arith.constant 2 : index
    %c0_211 = arith.constant 0 : index
    %c0_212 = arith.constant 0 : index
    %580 = vector.load %arg6[%c2_210, %c0_211, %c0_212] : memref<3x32x32xbf16, #tpu.memory_space<vmem>>, vector<1x32x32xbf16>
    %581 = vector.shape_cast %580 : vector<1x32x32xbf16> to vector<32x32xbf16>
    %cst_213 = arith.constant dense<0.000000e+00> : vector<8x32xf32>
    %582 = tpu.matmul %579, %581, %cst_213 {dimension_numbers = #tpu.dot_dimension_numbers<[1], [0], [0], [1], [0, 0, 1, 1], [], []>} : vector<8x32xbf16>, vector<32x32xbf16>, vector<8x32xf32> -> vector<8x32xf32>
    %c2_214 = arith.constant 2 : index
    %c0_215 = arith.constant 0 : index
    %c0_216 = arith.constant 0 : index
    %583 = vector.load %arg7[%c2_214, %c0_215, %c0_216] : memref<3x1x32xf32, #tpu.memory_space<vmem>>, vector<1x1x32xf32>
    %584 = vector.shape_cast %583 : vector<1x1x32xf32> to vector<1x32xf32>
    %585 = vector.broadcast %584 : vector<1x32xf32> to vector<8x32xf32>
    %586 = arith.addf %582, %585 : vector<8x32xf32>
    %587 = arith.truncf %569 : vector<8x32xf32> to vector<8x32xbf16>
    %c2_217 = arith.constant 2 : index
    %c0_218 = arith.constant 0 : index
    %c0_219 = arith.constant 0 : index
    %588 = vector.load %arg8[%c2_217, %c0_218, %c0_219] : memref<3x32x256xbf16, #tpu.memory_space<vmem>>, vector<1x32x256xbf16>
    %589 = vector.shape_cast %588 : vector<1x32x256xbf16> to vector<32x256xbf16>
    %cst_220 = arith.constant dense<0.000000e+00> : vector<8x256xf32>
    %590 = tpu.matmul %587, %589, %cst_220 {dimension_numbers = #tpu.dot_dimension_numbers<[1], [0], [0], [1], [0, 0, 1, 1], [], []>} : vector<8x32xbf16>, vector<32x256xbf16>, vector<8x256xf32> -> vector<8x256xf32>
    %c2_221 = arith.constant 2 : index
    %c0_222 = arith.constant 0 : index
    %c0_223 = arith.constant 0 : index
    %591 = vector.load %arg9[%c2_221, %c0_222, %c0_223] : memref<3x1x256xf32, #tpu.memory_space<vmem>>, vector<1x1x256xf32>
    %592 = vector.shape_cast %591 : vector<1x1x256xf32> to vector<1x256xf32>
    %593 = vector.broadcast %592 : vector<1x256xf32> to vector<8x256xf32>
    %594 = arith.addf %590, %593 : vector<8x256xf32>
    %595 = arith.truncf %594 : vector<8x256xf32> to vector<8x256xbf16>
    %596 = tpu.transpose %586, [1, 0] : vector<8x32xf32> -> vector<32x8xf32>
    %597 = arith.truncf %596 : vector<32x8xf32> to vector<32x8xbf16>
    %cst_224 = arith.constant 0.000000e+00 : f32
    %598 = vector.broadcast %cst_224 : f32 to vector<64x32xf32>
    %599 = vector.broadcast %7 : vector<1x32xf32> to vector<64x32xf32>
    %600 = arith.mulf %578, %599 : vector<64x32xf32>
    %601 = arith.truncf %600 : vector<64x32xf32> to vector<64x32xbf16>
    %cst_225 = arith.constant dense<0.000000e+00> : vector<64x8xf32>
    %602 = tpu.matmul %601, %597, %cst_225 {dimension_numbers = #tpu.dot_dimension_numbers<[1], [0], [0], [1], [0, 0, 1, 1], [], []>} : vector<64x32xbf16>, vector<32x8xbf16>, vector<64x8xf32> -> vector<64x8xf32>
    %cst_226 = arith.constant dense<0xFF800000> : vector<64xf32>
    %603 = vector.multi_reduction <maximumf>, %602, %cst_226 [1] : vector<64x8xf32> to vector<64xf32>
    %604 = vector.shape_cast %603 : vector<64xf32> to vector<64x1xf32>
    %605 = vector.broadcast %604 : vector<64x1xf32> to vector<64x8xf32>
    %606 = arith.subf %602, %605 : vector<64x8xf32>
    %607 = math.exp %606 : vector<64x8xf32>
    %cst_227 = arith.constant dense<0.000000e+00> : vector<64xf32>
    %608 = vector.multi_reduction <add>, %607, %cst_227 [1] : vector<64x8xf32> to vector<64xf32>
    %609 = vector.shape_cast %608 : vector<64xf32> to vector<64x1xf32>
    %610 = tpu.reciprocal %609 {approx = true} : vector<64x1xf32> -> vector<64x1xf32>
    %611 = vector.broadcast %610 : vector<64x1xf32> to vector<64x8xf32>
    %612 = arith.mulf %607, %611 : vector<64x8xf32>
    %613 = arith.truncf %612 : vector<64x8xf32> to vector<64x8xbf16>
    %614 = vector.extract_strided_slice %595 {offsets = [0, 0], sizes = [8, 32], strides = [1, 1]} : vector<8x256xbf16> to vector<8x32xbf16>
    %cst_228 = arith.constant dense<0.000000e+00> : vector<64x32xf32>
    %615 = tpu.matmul %613, %614, %cst_228 {dimension_numbers = #tpu.dot_dimension_numbers<[1], [0], [0], [1], [0, 0, 1, 1], [], []>} : vector<64x8xbf16>, vector<8x32xbf16>, vector<64x32xf32> -> vector<64x32xf32>
    %616 = arith.addf %598, %615 : vector<64x32xf32>
    %617 = vector.broadcast %14 : vector<1x32xf32> to vector<64x32xf32>
    %618 = arith.mulf %578, %617 : vector<64x32xf32>
    %619 = arith.truncf %618 : vector<64x32xf32> to vector<64x32xbf16>
    %cst_229 = arith.constant dense<0.000000e+00> : vector<64x8xf32>
    %620 = tpu.matmul %619, %597, %cst_229 {dimension_numbers = #tpu.dot_dimension_numbers<[1], [0], [0], [1], [0, 0, 1, 1], [], []>} : vector<64x32xbf16>, vector<32x8xbf16>, vector<64x8xf32> -> vector<64x8xf32>
    %cst_230 = arith.constant dense<0xFF800000> : vector<64xf32>
    %621 = vector.multi_reduction <maximumf>, %620, %cst_230 [1] : vector<64x8xf32> to vector<64xf32>
    %622 = vector.shape_cast %621 : vector<64xf32> to vector<64x1xf32>
    %623 = vector.broadcast %622 : vector<64x1xf32> to vector<64x8xf32>
    %624 = arith.subf %620, %623 : vector<64x8xf32>
    %625 = math.exp %624 : vector<64x8xf32>
    %cst_231 = arith.constant dense<0.000000e+00> : vector<64xf32>
    %626 = vector.multi_reduction <add>, %625, %cst_231 [1] : vector<64x8xf32> to vector<64xf32>
    %627 = vector.shape_cast %626 : vector<64xf32> to vector<64x1xf32>
    %628 = tpu.reciprocal %627 {approx = true} : vector<64x1xf32> -> vector<64x1xf32>
    %629 = vector.broadcast %628 : vector<64x1xf32> to vector<64x8xf32>
    %630 = arith.mulf %625, %629 : vector<64x8xf32>
    %631 = arith.truncf %630 : vector<64x8xf32> to vector<64x8xbf16>
    %632 = vector.extract_strided_slice %595 {offsets = [0, 32], sizes = [8, 32], strides = [1, 1]} : vector<8x256xbf16> to vector<8x32xbf16>
    %cst_232 = arith.constant dense<0.000000e+00> : vector<64x32xf32>
    %633 = tpu.matmul %631, %632, %cst_232 {dimension_numbers = #tpu.dot_dimension_numbers<[1], [0], [0], [1], [0, 0, 1, 1], [], []>} : vector<64x8xbf16>, vector<8x32xbf16>, vector<64x32xf32> -> vector<64x32xf32>
    %634 = arith.addf %616, %633 : vector<64x32xf32>
    %635 = vector.broadcast %21 : vector<1x32xf32> to vector<64x32xf32>
    %636 = arith.mulf %578, %635 : vector<64x32xf32>
    %637 = arith.truncf %636 : vector<64x32xf32> to vector<64x32xbf16>
    %cst_233 = arith.constant dense<0.000000e+00> : vector<64x8xf32>
    %638 = tpu.matmul %637, %597, %cst_233 {dimension_numbers = #tpu.dot_dimension_numbers<[1], [0], [0], [1], [0, 0, 1, 1], [], []>} : vector<64x32xbf16>, vector<32x8xbf16>, vector<64x8xf32> -> vector<64x8xf32>
    %cst_234 = arith.constant dense<0xFF800000> : vector<64xf32>
    %639 = vector.multi_reduction <maximumf>, %638, %cst_234 [1] : vector<64x8xf32> to vector<64xf32>
    %640 = vector.shape_cast %639 : vector<64xf32> to vector<64x1xf32>
    %641 = vector.broadcast %640 : vector<64x1xf32> to vector<64x8xf32>
    %642 = arith.subf %638, %641 : vector<64x8xf32>
    %643 = math.exp %642 : vector<64x8xf32>
    %cst_235 = arith.constant dense<0.000000e+00> : vector<64xf32>
    %644 = vector.multi_reduction <add>, %643, %cst_235 [1] : vector<64x8xf32> to vector<64xf32>
    %645 = vector.shape_cast %644 : vector<64xf32> to vector<64x1xf32>
    %646 = tpu.reciprocal %645 {approx = true} : vector<64x1xf32> -> vector<64x1xf32>
    %647 = vector.broadcast %646 : vector<64x1xf32> to vector<64x8xf32>
    %648 = arith.mulf %643, %647 : vector<64x8xf32>
    %649 = arith.truncf %648 : vector<64x8xf32> to vector<64x8xbf16>
    %650 = vector.extract_strided_slice %595 {offsets = [0, 64], sizes = [8, 32], strides = [1, 1]} : vector<8x256xbf16> to vector<8x32xbf16>
    %cst_236 = arith.constant dense<0.000000e+00> : vector<64x32xf32>
    %651 = tpu.matmul %649, %650, %cst_236 {dimension_numbers = #tpu.dot_dimension_numbers<[1], [0], [0], [1], [0, 0, 1, 1], [], []>} : vector<64x8xbf16>, vector<8x32xbf16>, vector<64x32xf32> -> vector<64x32xf32>
    %652 = arith.addf %634, %651 : vector<64x32xf32>
    %653 = vector.broadcast %28 : vector<1x32xf32> to vector<64x32xf32>
    %654 = arith.mulf %578, %653 : vector<64x32xf32>
    %655 = arith.truncf %654 : vector<64x32xf32> to vector<64x32xbf16>
    %cst_237 = arith.constant dense<0.000000e+00> : vector<64x8xf32>
    %656 = tpu.matmul %655, %597, %cst_237 {dimension_numbers = #tpu.dot_dimension_numbers<[1], [0], [0], [1], [0, 0, 1, 1], [], []>} : vector<64x32xbf16>, vector<32x8xbf16>, vector<64x8xf32> -> vector<64x8xf32>
    %cst_238 = arith.constant dense<0xFF800000> : vector<64xf32>
    %657 = vector.multi_reduction <maximumf>, %656, %cst_238 [1] : vector<64x8xf32> to vector<64xf32>
    %658 = vector.shape_cast %657 : vector<64xf32> to vector<64x1xf32>
    %659 = vector.broadcast %658 : vector<64x1xf32> to vector<64x8xf32>
    %660 = arith.subf %656, %659 : vector<64x8xf32>
    %661 = math.exp %660 : vector<64x8xf32>
    %cst_239 = arith.constant dense<0.000000e+00> : vector<64xf32>
    %662 = vector.multi_reduction <add>, %661, %cst_239 [1] : vector<64x8xf32> to vector<64xf32>
    %663 = vector.shape_cast %662 : vector<64xf32> to vector<64x1xf32>
    %664 = tpu.reciprocal %663 {approx = true} : vector<64x1xf32> -> vector<64x1xf32>
    %665 = vector.broadcast %664 : vector<64x1xf32> to vector<64x8xf32>
    %666 = arith.mulf %661, %665 : vector<64x8xf32>
    %667 = arith.truncf %666 : vector<64x8xf32> to vector<64x8xbf16>
    %668 = vector.extract_strided_slice %595 {offsets = [0, 96], sizes = [8, 32], strides = [1, 1]} : vector<8x256xbf16> to vector<8x32xbf16>
    %cst_240 = arith.constant dense<0.000000e+00> : vector<64x32xf32>
    %669 = tpu.matmul %667, %668, %cst_240 {dimension_numbers = #tpu.dot_dimension_numbers<[1], [0], [0], [1], [0, 0, 1, 1], [], []>} : vector<64x8xbf16>, vector<8x32xbf16>, vector<64x32xf32> -> vector<64x32xf32>
    %670 = arith.addf %652, %669 : vector<64x32xf32>
    %671 = vector.broadcast %35 : vector<1x32xf32> to vector<64x32xf32>
    %672 = arith.mulf %578, %671 : vector<64x32xf32>
    %673 = arith.truncf %672 : vector<64x32xf32> to vector<64x32xbf16>
    %cst_241 = arith.constant dense<0.000000e+00> : vector<64x8xf32>
    %674 = tpu.matmul %673, %597, %cst_241 {dimension_numbers = #tpu.dot_dimension_numbers<[1], [0], [0], [1], [0, 0, 1, 1], [], []>} : vector<64x32xbf16>, vector<32x8xbf16>, vector<64x8xf32> -> vector<64x8xf32>
    %cst_242 = arith.constant dense<0xFF800000> : vector<64xf32>
    %675 = vector.multi_reduction <maximumf>, %674, %cst_242 [1] : vector<64x8xf32> to vector<64xf32>
    %676 = vector.shape_cast %675 : vector<64xf32> to vector<64x1xf32>
    %677 = vector.broadcast %676 : vector<64x1xf32> to vector<64x8xf32>
    %678 = arith.subf %674, %677 : vector<64x8xf32>
    %679 = math.exp %678 : vector<64x8xf32>
    %cst_243 = arith.constant dense<0.000000e+00> : vector<64xf32>
    %680 = vector.multi_reduction <add>, %679, %cst_243 [1] : vector<64x8xf32> to vector<64xf32>
    %681 = vector.shape_cast %680 : vector<64xf32> to vector<64x1xf32>
    %682 = tpu.reciprocal %681 {approx = true} : vector<64x1xf32> -> vector<64x1xf32>
    %683 = vector.broadcast %682 : vector<64x1xf32> to vector<64x8xf32>
    %684 = arith.mulf %679, %683 : vector<64x8xf32>
    %685 = arith.truncf %684 : vector<64x8xf32> to vector<64x8xbf16>
    %686 = vector.extract_strided_slice %595 {offsets = [0, 128], sizes = [8, 32], strides = [1, 1]} : vector<8x256xbf16> to vector<8x32xbf16>
    %cst_244 = arith.constant dense<0.000000e+00> : vector<64x32xf32>
    %687 = tpu.matmul %685, %686, %cst_244 {dimension_numbers = #tpu.dot_dimension_numbers<[1], [0], [0], [1], [0, 0, 1, 1], [], []>} : vector<64x8xbf16>, vector<8x32xbf16>, vector<64x32xf32> -> vector<64x32xf32>
    %688 = arith.addf %670, %687 : vector<64x32xf32>
    %689 = vector.broadcast %42 : vector<1x32xf32> to vector<64x32xf32>
    %690 = arith.mulf %578, %689 : vector<64x32xf32>
    %691 = arith.truncf %690 : vector<64x32xf32> to vector<64x32xbf16>
    %cst_245 = arith.constant dense<0.000000e+00> : vector<64x8xf32>
    %692 = tpu.matmul %691, %597, %cst_245 {dimension_numbers = #tpu.dot_dimension_numbers<[1], [0], [0], [1], [0, 0, 1, 1], [], []>} : vector<64x32xbf16>, vector<32x8xbf16>, vector<64x8xf32> -> vector<64x8xf32>
    %cst_246 = arith.constant dense<0xFF800000> : vector<64xf32>
    %693 = vector.multi_reduction <maximumf>, %692, %cst_246 [1] : vector<64x8xf32> to vector<64xf32>
    %694 = vector.shape_cast %693 : vector<64xf32> to vector<64x1xf32>
    %695 = vector.broadcast %694 : vector<64x1xf32> to vector<64x8xf32>
    %696 = arith.subf %692, %695 : vector<64x8xf32>
    %697 = math.exp %696 : vector<64x8xf32>
    %cst_247 = arith.constant dense<0.000000e+00> : vector<64xf32>
    %698 = vector.multi_reduction <add>, %697, %cst_247 [1] : vector<64x8xf32> to vector<64xf32>
    %699 = vector.shape_cast %698 : vector<64xf32> to vector<64x1xf32>
    %700 = tpu.reciprocal %699 {approx = true} : vector<64x1xf32> -> vector<64x1xf32>
    %701 = vector.broadcast %700 : vector<64x1xf32> to vector<64x8xf32>
    %702 = arith.mulf %697, %701 : vector<64x8xf32>
    %703 = arith.truncf %702 : vector<64x8xf32> to vector<64x8xbf16>
    %704 = vector.extract_strided_slice %595 {offsets = [0, 160], sizes = [8, 32], strides = [1, 1]} : vector<8x256xbf16> to vector<8x32xbf16>
    %cst_248 = arith.constant dense<0.000000e+00> : vector<64x32xf32>
    %705 = tpu.matmul %703, %704, %cst_248 {dimension_numbers = #tpu.dot_dimension_numbers<[1], [0], [0], [1], [0, 0, 1, 1], [], []>} : vector<64x8xbf16>, vector<8x32xbf16>, vector<64x32xf32> -> vector<64x32xf32>
    %706 = arith.addf %688, %705 : vector<64x32xf32>
    %707 = vector.broadcast %49 : vector<1x32xf32> to vector<64x32xf32>
    %708 = arith.mulf %578, %707 : vector<64x32xf32>
    %709 = arith.truncf %708 : vector<64x32xf32> to vector<64x32xbf16>
    %cst_249 = arith.constant dense<0.000000e+00> : vector<64x8xf32>
    %710 = tpu.matmul %709, %597, %cst_249 {dimension_numbers = #tpu.dot_dimension_numbers<[1], [0], [0], [1], [0, 0, 1, 1], [], []>} : vector<64x32xbf16>, vector<32x8xbf16>, vector<64x8xf32> -> vector<64x8xf32>
    %cst_250 = arith.constant dense<0xFF800000> : vector<64xf32>
    %711 = vector.multi_reduction <maximumf>, %710, %cst_250 [1] : vector<64x8xf32> to vector<64xf32>
    %712 = vector.shape_cast %711 : vector<64xf32> to vector<64x1xf32>
    %713 = vector.broadcast %712 : vector<64x1xf32> to vector<64x8xf32>
    %714 = arith.subf %710, %713 : vector<64x8xf32>
    %715 = math.exp %714 : vector<64x8xf32>
    %cst_251 = arith.constant dense<0.000000e+00> : vector<64xf32>
    %716 = vector.multi_reduction <add>, %715, %cst_251 [1] : vector<64x8xf32> to vector<64xf32>
    %717 = vector.shape_cast %716 : vector<64xf32> to vector<64x1xf32>
    %718 = tpu.reciprocal %717 {approx = true} : vector<64x1xf32> -> vector<64x1xf32>
    %719 = vector.broadcast %718 : vector<64x1xf32> to vector<64x8xf32>
    %720 = arith.mulf %715, %719 : vector<64x8xf32>
    %721 = arith.truncf %720 : vector<64x8xf32> to vector<64x8xbf16>
    %722 = vector.extract_strided_slice %595 {offsets = [0, 192], sizes = [8, 32], strides = [1, 1]} : vector<8x256xbf16> to vector<8x32xbf16>
    %cst_252 = arith.constant dense<0.000000e+00> : vector<64x32xf32>
    %723 = tpu.matmul %721, %722, %cst_252 {dimension_numbers = #tpu.dot_dimension_numbers<[1], [0], [0], [1], [0, 0, 1, 1], [], []>} : vector<64x8xbf16>, vector<8x32xbf16>, vector<64x32xf32> -> vector<64x32xf32>
    %724 = arith.addf %706, %723 : vector<64x32xf32>
    %725 = vector.broadcast %56 : vector<1x32xf32> to vector<64x32xf32>
    %726 = arith.mulf %578, %725 : vector<64x32xf32>
    %727 = arith.truncf %726 : vector<64x32xf32> to vector<64x32xbf16>
    %cst_253 = arith.constant dense<0.000000e+00> : vector<64x8xf32>
    %728 = tpu.matmul %727, %597, %cst_253 {dimension_numbers = #tpu.dot_dimension_numbers<[1], [0], [0], [1], [0, 0, 1, 1], [], []>} : vector<64x32xbf16>, vector<32x8xbf16>, vector<64x8xf32> -> vector<64x8xf32>
    %cst_254 = arith.constant dense<0xFF800000> : vector<64xf32>
    %729 = vector.multi_reduction <maximumf>, %728, %cst_254 [1] : vector<64x8xf32> to vector<64xf32>
    %730 = vector.shape_cast %729 : vector<64xf32> to vector<64x1xf32>
    %731 = vector.broadcast %730 : vector<64x1xf32> to vector<64x8xf32>
    %732 = arith.subf %728, %731 : vector<64x8xf32>
    %733 = math.exp %732 : vector<64x8xf32>
    %cst_255 = arith.constant dense<0.000000e+00> : vector<64xf32>
    %734 = vector.multi_reduction <add>, %733, %cst_255 [1] : vector<64x8xf32> to vector<64xf32>
    %735 = vector.shape_cast %734 : vector<64xf32> to vector<64x1xf32>
    %736 = tpu.reciprocal %735 {approx = true} : vector<64x1xf32> -> vector<64x1xf32>
    %737 = vector.broadcast %736 : vector<64x1xf32> to vector<64x8xf32>
    %738 = arith.mulf %733, %737 : vector<64x8xf32>
    %739 = arith.truncf %738 : vector<64x8xf32> to vector<64x8xbf16>
    %740 = vector.extract_strided_slice %595 {offsets = [0, 224], sizes = [8, 32], strides = [1, 1]} : vector<8x256xbf16> to vector<8x32xbf16>
    %cst_256 = arith.constant dense<0.000000e+00> : vector<64x32xf32>
    %741 = tpu.matmul %739, %740, %cst_256 {dimension_numbers = #tpu.dot_dimension_numbers<[1], [0], [0], [1], [0, 0, 1, 1], [], []>} : vector<64x8xbf16>, vector<8x32xbf16>, vector<64x32xf32> -> vector<64x32xf32>
    %742 = arith.addf %724, %741 : vector<64x32xf32>
    %c2_257 = arith.constant 2 : index
    %c0_258 = arith.constant 0 : index
    %c0_259 = arith.constant 0 : index
    %743 = vector.load %arg10[%c2_257, %c0_258, %c0_259] : memref<3x1x32xf32, #tpu.memory_space<vmem>>, vector<1x1x32xf32>
    %744 = vector.shape_cast %743 : vector<1x1x32xf32> to vector<1x32xf32>
    %745 = vector.broadcast %744 : vector<1x32xf32> to vector<64x32xf32>
    %746 = arith.addf %742, %745 : vector<64x32xf32>
    %747 = arith.addf %570, %746 : vector<64x32xf32>
    %c2_260 = arith.constant 2 : index
    %c0_261 = arith.constant 0 : index
    %c0_262 = arith.constant 0 : index
    %748 = vector.load %arg11[%c2_260, %c0_261, %c0_262] : memref<3x1x32xf32, #tpu.memory_space<vmem>>, vector<1x1x32xf32>
    %749 = vector.shape_cast %748 : vector<1x1x32xf32> to vector<1x32xf32>
    %c2_263 = arith.constant 2 : index
    %c0_264 = arith.constant 0 : index
    %c0_265 = arith.constant 0 : index
    %750 = vector.load %arg12[%c2_263, %c0_264, %c0_265] : memref<3x1x32xf32, #tpu.memory_space<vmem>>, vector<1x1x32xf32>
    %751 = vector.shape_cast %750 : vector<1x1x32xf32> to vector<1x32xf32>
    %cst_266 = arith.constant dense<0.000000e+00> : vector<64xf32>
    %752 = vector.multi_reduction <add>, %747, %cst_266 [1] : vector<64x32xf32> to vector<64xf32>
    %753 = vector.shape_cast %752 : vector<64xf32> to vector<64x1xf32>
    %cst_267 = arith.constant 3.200000e+01 : f32
    %754 = vector.broadcast %cst_267 : f32 to vector<64x1xf32>
    %755 = arith.divf %753, %754 : vector<64x1xf32>
    %756 = vector.broadcast %755 : vector<64x1xf32> to vector<64x32xf32>
    %757 = arith.subf %747, %756 : vector<64x32xf32>
    %758 = arith.mulf %757, %757 : vector<64x32xf32>
    %cst_268 = arith.constant dense<0.000000e+00> : vector<64xf32>
    %759 = vector.multi_reduction <add>, %758, %cst_268 [1] : vector<64x32xf32> to vector<64xf32>
    %760 = vector.shape_cast %759 : vector<64xf32> to vector<64x1xf32>
    %cst_269 = arith.constant 3.200000e+01 : f32
    %761 = vector.broadcast %cst_269 : f32 to vector<64x1xf32>
    %762 = arith.divf %760, %761 : vector<64x1xf32>
    %cst_270 = arith.constant 9.99999974E-6 : f32
    %763 = vector.broadcast %cst_270 : f32 to vector<64x1xf32>
    %764 = arith.addf %762, %763 : vector<64x1xf32>
    %765 = math.rsqrt %764 : vector<64x1xf32>
    %766 = vector.broadcast %765 : vector<64x1xf32> to vector<64x32xf32>
    %767 = arith.mulf %757, %766 : vector<64x32xf32>
    %768 = vector.broadcast %749 : vector<1x32xf32> to vector<64x32xf32>
    %769 = arith.mulf %767, %768 : vector<64x32xf32>
    %770 = vector.broadcast %751 : vector<1x32xf32> to vector<64x32xf32>
    %771 = arith.addf %769, %770 : vector<64x32xf32>
    %772 = arith.truncf %771 : vector<64x32xf32> to vector<64x32xbf16>
    %c2_271 = arith.constant 2 : index
    %c0_272 = arith.constant 0 : index
    %c0_273 = arith.constant 0 : index
    %773 = vector.load %arg13[%c2_271, %c0_272, %c0_273] : memref<3x32x128xbf16, #tpu.memory_space<vmem>>, vector<1x32x128xbf16>
    %774 = vector.shape_cast %773 : vector<1x32x128xbf16> to vector<32x128xbf16>
    %cst_274 = arith.constant dense<0.000000e+00> : vector<64x128xf32>
    %775 = tpu.matmul %772, %774, %cst_274 {dimension_numbers = #tpu.dot_dimension_numbers<[1], [0], [0], [1], [0, 0, 1, 1], [], []>} : vector<64x32xbf16>, vector<32x128xbf16>, vector<64x128xf32> -> vector<64x128xf32>
    %c2_275 = arith.constant 2 : index
    %c0_276 = arith.constant 0 : index
    %c0_277 = arith.constant 0 : index
    %776 = vector.load %arg14[%c2_275, %c0_276, %c0_277] : memref<3x1x128xf32, #tpu.memory_space<vmem>>, vector<1x1x128xf32>
    %777 = vector.shape_cast %776 : vector<1x1x128xf32> to vector<1x128xf32>
    %778 = vector.broadcast %777 : vector<1x128xf32> to vector<64x128xf32>
    %779 = arith.addf %775, %778 : vector<64x128xf32>
    %cst_278 = arith.constant 5.000000e-01 : f32
    %780 = vector.broadcast %cst_278 : f32 to vector<64x128xf32>
    %781 = arith.mulf %780, %779 : vector<64x128xf32>
    %cst_279 = arith.constant 4.471500e-02 : f32
    %782 = vector.broadcast %cst_279 : f32 to vector<64x128xf32>
    %783 = arith.mulf %782, %779 : vector<64x128xf32>
    %784 = arith.mulf %783, %779 : vector<64x128xf32>
    %785 = arith.mulf %784, %779 : vector<64x128xf32>
    %786 = arith.addf %779, %785 : vector<64x128xf32>
    %cst_280 = arith.constant 0.797884583 : f32
    %787 = vector.broadcast %cst_280 : f32 to vector<64x128xf32>
    %788 = arith.mulf %787, %786 : vector<64x128xf32>
    %789 = math.tanh %788 : vector<64x128xf32>
    %cst_281 = arith.constant 1.000000e+00 : f32
    %790 = vector.broadcast %cst_281 : f32 to vector<64x128xf32>
    %791 = arith.addf %790, %789 : vector<64x128xf32>
    %792 = arith.mulf %781, %791 : vector<64x128xf32>
    %793 = arith.truncf %792 : vector<64x128xf32> to vector<64x128xbf16>
    %c2_282 = arith.constant 2 : index
    %c0_283 = arith.constant 0 : index
    %c0_284 = arith.constant 0 : index
    %794 = vector.load %arg15[%c2_282, %c0_283, %c0_284] : memref<3x128x32xbf16, #tpu.memory_space<vmem>>, vector<1x128x32xbf16>
    %795 = vector.shape_cast %794 : vector<1x128x32xbf16> to vector<128x32xbf16>
    %cst_285 = arith.constant dense<0.000000e+00> : vector<64x32xf32>
    %796 = tpu.matmul %793, %795, %cst_285 {dimension_numbers = #tpu.dot_dimension_numbers<[1], [0], [0], [1], [0, 0, 1, 1], [], []>} : vector<64x128xbf16>, vector<128x32xbf16>, vector<64x32xf32> -> vector<64x32xf32>
    %c2_286 = arith.constant 2 : index
    %c0_287 = arith.constant 0 : index
    %c0_288 = arith.constant 0 : index
    %797 = vector.load %arg16[%c2_286, %c0_287, %c0_288] : memref<3x1x32xf32, #tpu.memory_space<vmem>>, vector<1x1x32xf32>
    %798 = vector.shape_cast %797 : vector<1x1x32xf32> to vector<1x32xf32>
    %799 = vector.broadcast %798 : vector<1x32xf32> to vector<64x32xf32>
    %800 = arith.addf %796, %799 : vector<64x32xf32>
    %801 = arith.addf %771, %800 : vector<64x32xf32>
    %c2_289 = arith.constant 2 : index
    %c0_290 = arith.constant 0 : index
    %c0_291 = arith.constant 0 : index
    %802 = vector.load %arg17[%c2_289, %c0_290, %c0_291] : memref<3x1x32xf32, #tpu.memory_space<vmem>>, vector<1x1x32xf32>
    %803 = vector.shape_cast %802 : vector<1x1x32xf32> to vector<1x32xf32>
    %c2_292 = arith.constant 2 : index
    %c0_293 = arith.constant 0 : index
    %c0_294 = arith.constant 0 : index
    %804 = vector.load %arg18[%c2_292, %c0_293, %c0_294] : memref<3x1x32xf32, #tpu.memory_space<vmem>>, vector<1x1x32xf32>
    %805 = vector.shape_cast %804 : vector<1x1x32xf32> to vector<1x32xf32>
    %cst_295 = arith.constant dense<0.000000e+00> : vector<64xf32>
    %806 = vector.multi_reduction <add>, %801, %cst_295 [1] : vector<64x32xf32> to vector<64xf32>
    %807 = vector.shape_cast %806 : vector<64xf32> to vector<64x1xf32>
    %cst_296 = arith.constant 3.200000e+01 : f32
    %808 = vector.broadcast %cst_296 : f32 to vector<64x1xf32>
    %809 = arith.divf %807, %808 : vector<64x1xf32>
    %810 = vector.broadcast %809 : vector<64x1xf32> to vector<64x32xf32>
    %811 = arith.subf %801, %810 : vector<64x32xf32>
    %812 = arith.mulf %811, %811 : vector<64x32xf32>
    %cst_297 = arith.constant dense<0.000000e+00> : vector<64xf32>
    %813 = vector.multi_reduction <add>, %812, %cst_297 [1] : vector<64x32xf32> to vector<64xf32>
    %814 = vector.shape_cast %813 : vector<64xf32> to vector<64x1xf32>
    %cst_298 = arith.constant 3.200000e+01 : f32
    %815 = vector.broadcast %cst_298 : f32 to vector<64x1xf32>
    %816 = arith.divf %814, %815 : vector<64x1xf32>
    %cst_299 = arith.constant 9.99999974E-6 : f32
    %817 = vector.broadcast %cst_299 : f32 to vector<64x1xf32>
    %818 = arith.addf %816, %817 : vector<64x1xf32>
    %819 = math.rsqrt %818 : vector<64x1xf32>
    %820 = vector.broadcast %819 : vector<64x1xf32> to vector<64x32xf32>
    %821 = arith.mulf %811, %820 : vector<64x32xf32>
    %822 = vector.broadcast %803 : vector<1x32xf32> to vector<64x32xf32>
    %823 = arith.mulf %821, %822 : vector<64x32xf32>
    %824 = vector.broadcast %805 : vector<1x32xf32> to vector<64x32xf32>
    %825 = arith.addf %823, %824 : vector<64x32xf32>
    %c0_300 = arith.constant 0 : index
    %c0_301 = arith.constant 0 : index
    %826 = vector.load %arg19[%c0_300, %c0_301] : memref<64x32xf32, #tpu.memory_space<vmem>>, vector<64x32xf32>
    tpu.vector_store %arg19[%c0_300, %c0_301], %825 {strides = array<i32>} : memref<64x32xf32, #tpu.memory_space<vmem>>, vector<64x32xf32>,
    %c0_302 = arith.constant 0 : index
    %c0_303 = arith.constant 0 : index
    %827 = vector.load %arg20[%c0_302, %c0_303] : memref<8x32xf32, #tpu.memory_space<vmem>>, vector<8x32xf32>
    tpu.vector_store %arg20[%c0_302, %c0_303], %569 {strides = array<i32>} : memref<8x32xf32, #tpu.memory_space<vmem>>, vector<8x32xf32>,
    return
  }
  func.func @transform_0(%arg0: i32) -> (i32, i32) {
    %c0_i32 = arith.constant 0 : i32
    %c0_i32_0 = arith.constant 0 : i32
    return %arg0, %c0_i32 : i32, i32
  }
  func.func @transform_1(%arg0: i32) -> (i32, i32) {
    %c0_i32 = arith.constant 0 : i32
    %c0_i32_0 = arith.constant 0 : i32
    return %arg0, %c0_i32 : i32, i32
  }
  func.func @transform_2(%arg0: i32) -> (i32, i32) {
    %c0_i32 = arith.constant 0 : i32
    %c0_i32_0 = arith.constant 0 : i32
    return %arg0, %c0_i32 : i32, i32
  }
  func.func @transform_3(%arg0: i32) -> (i32, i32, i32) {
    %c0_i32 = arith.constant 0 : i32
    %c0_i32_0 = arith.constant 0 : i32
    %c0_i32_1 = arith.constant 0 : i32
    %c0_i32_2 = arith.constant 0 : i32
    return %c0_i32, %c0_i32_0, %c0_i32_1 : i32, i32, i32
  }
  func.func @transform_4(%arg0: i32) -> (i32, i32, i32) {
    %c0_i32 = arith.constant 0 : i32
    %c0_i32_0 = arith.constant 0 : i32
    %c0_i32_1 = arith.constant 0 : i32
    %c0_i32_2 = arith.constant 0 : i32
    return %c0_i32, %c0_i32_0, %c0_i32_1 : i32, i32, i32
  }
  func.func @transform_5(%arg0: i32) -> (i32, i32, i32) {
    %c0_i32 = arith.constant 0 : i32
    %c0_i32_0 = arith.constant 0 : i32
    %c0_i32_1 = arith.constant 0 : i32
    %c0_i32_2 = arith.constant 0 : i32
    return %c0_i32, %c0_i32_0, %c0_i32_1 : i32, i32, i32
  }
  func.func @transform_6(%arg0: i32) -> (i32, i32, i32) {
    %c0_i32 = arith.constant 0 : i32
    %c0_i32_0 = arith.constant 0 : i32
    %c0_i32_1 = arith.constant 0 : i32
    %c0_i32_2 = arith.constant 0 : i32
    return %c0_i32, %c0_i32_0, %c0_i32_1 : i32, i32, i32
  }
  func.func @transform_7(%arg0: i32) -> (i32, i32, i32) {
    %c0_i32 = arith.constant 0 : i32
    %c0_i32_0 = arith.constant 0 : i32
    %c0_i32_1 = arith.constant 0 : i32
    %c0_i32_2 = arith.constant 0 : i32
    return %c0_i32, %c0_i32_0, %c0_i32_1 : i32, i32, i32
  }
  func.func @transform_8(%arg0: i32) -> (i32, i32, i32) {
    %c0_i32 = arith.constant 0 : i32
    %c0_i32_0 = arith.constant 0 : i32
    %c0_i32_1 = arith.constant 0 : i32
    %c0_i32_2 = arith.constant 0 : i32
    return %c0_i32, %c0_i32_0, %c0_i32_1 : i32, i32, i32
  }
  func.func @transform_9(%arg0: i32) -> (i32, i32, i32) {
    %c0_i32 = arith.constant 0 : i32
    %c0_i32_0 = arith.constant 0 : i32
    %c0_i32_1 = arith.constant 0 : i32
    %c0_i32_2 = arith.constant 0 : i32
    return %c0_i32, %c0_i32_0, %c0_i32_1 : i32, i32, i32
  }
  func.func @transform_10(%arg0: i32) -> (i32, i32, i32) {
    %c0_i32 = arith.constant 0 : i32
    %c0_i32_0 = arith.constant 0 : i32
    %c0_i32_1 = arith.constant 0 : i32
    %c0_i32_2 = arith.constant 0 : i32
    return %c0_i32, %c0_i32_0, %c0_i32_1 : i32, i32, i32
  }
  func.func @transform_11(%arg0: i32) -> (i32, i32, i32) {
    %c0_i32 = arith.constant 0 : i32
    %c0_i32_0 = arith.constant 0 : i32
    %c0_i32_1 = arith.constant 0 : i32
    %c0_i32_2 = arith.constant 0 : i32
    return %c0_i32, %c0_i32_0, %c0_i32_1 : i32, i32, i32
  }
  func.func @transform_12(%arg0: i32) -> (i32, i32, i32) {
    %c0_i32 = arith.constant 0 : i32
    %c0_i32_0 = arith.constant 0 : i32
    %c0_i32_1 = arith.constant 0 : i32
    %c0_i32_2 = arith.constant 0 : i32
    return %c0_i32, %c0_i32_0, %c0_i32_1 : i32, i32, i32
  }
  func.func @transform_13(%arg0: i32) -> (i32, i32, i32) {
    %c0_i32 = arith.constant 0 : i32
    %c0_i32_0 = arith.constant 0 : i32
    %c0_i32_1 = arith.constant 0 : i32
    %c0_i32_2 = arith.constant 0 : i32
    return %c0_i32, %c0_i32_0, %c0_i32_1 : i32, i32, i32
  }
  func.func @transform_14(%arg0: i32) -> (i32, i32, i32) {
    %c0_i32 = arith.constant 0 : i32
    %c0_i32_0 = arith.constant 0 : i32
    %c0_i32_1 = arith.constant 0 : i32
    %c0_i32_2 = arith.constant 0 : i32
    return %c0_i32, %c0_i32_0, %c0_i32_1 : i32, i32, i32
  }
  func.func @transform_15(%arg0: i32) -> (i32, i32, i32) {
    %c0_i32 = arith.constant 0 : i32
    %c0_i32_0 = arith.constant 0 : i32
    %c0_i32_1 = arith.constant 0 : i32
    %c0_i32_2 = arith.constant 0 : i32
    return %c0_i32, %c0_i32_0, %c0_i32_1 : i32, i32, i32
  }
  func.func @transform_16(%arg0: i32) -> (i32, i32, i32) {
    %c0_i32 = arith.constant 0 : i32
    %c0_i32_0 = arith.constant 0 : i32
    %c0_i32_1 = arith.constant 0 : i32
    %c0_i32_2 = arith.constant 0 : i32
    return %c0_i32, %c0_i32_0, %c0_i32_1 : i32, i32, i32
  }
  func.func @transform_17(%arg0: i32) -> (i32, i32, i32) {
    %c0_i32 = arith.constant 0 : i32
    %c0_i32_0 = arith.constant 0 : i32
    %c0_i32_1 = arith.constant 0 : i32
    %c0_i32_2 = arith.constant 0 : i32
    return %c0_i32, %c0_i32_0, %c0_i32_1 : i32, i32, i32
  }
  func.func @transform_18(%arg0: i32) -> (i32, i32) {
    %c0_i32 = arith.constant 0 : i32
    %c0_i32_0 = arith.constant 0 : i32
    return %arg0, %c0_i32 : i32, i32
  }
  func.func @transform_19(%arg0: i32) -> (i32, i32) {
    %c0_i32 = arith.constant 0 : i32
    %c0_i32_0 = arith.constant 0 : i32
    return %arg0, %c0_i32 : i32, i32
  }
}

</mosaic_0001>

<bundles_post_ra>
// kernel: vision_language_loftr_layer.1
= control target key start
LH: loop header
LB: loop body
LE: loop exit
PB: predicated region body
PF: predicated region fallthrough
CT: control target
= control target key end

     0   :  { %s10981_s0 = inlined_call_operand.vmem [shape: f32[128,32], index: 0, kind: input, shape index: {}]   ;;  %s10982_s1 = inlined_call_operand.vmem [shape: f32[16,32], index: 1, kind: input, shape index: {}]   ;;  %s10983_s2 = inlined_call_operand.vmem [shape: f32[128,32], index: 2, kind: input, shape index: {}]   ;;  %s10984_s3 = inlined_call_operand.vmem [shape: bf16[3,32,32], index: 3, kind: input, shape index: {}]   ;;  %s10985_s4 = inlined_call_operand.vmem [shape: f32[3,1,32], index: 4, kind: input, shape index: {}]   ;;  %s10986_s5 = inlined_call_operand.vmem [shape: bf16[3,32,32], index: 5, kind: input, shape index: {}]   ;;  %s10987_s6 = inlined_call_operand.vmem [shape: f32[3,1,32], index: 6, kind: input, shape index: {}]   ;;  %s10988_s7 = inlined_call_operand.vmem [shape: bf16[3,32,256], index: 7, kind: input, shape index: {}]   ;;  %s10989_s8 = inlined_call_operand.vmem [shape: f32[3,1,256], index: 8, kind: input, shape index: {}]   ;;  %s10990_s9 = inlined_call_operand.vmem [shape: f32[3,1,32], index: 9, kind: input, shape index: {}]   ;;  %s10991_s10 = inlined_call_operand.vmem [shape: f32[3,1,32], index: 10, kind: input, shape index: {}]   ;;  %s10992_s11 = inlined_call_operand.vmem [shape: f32[3,1,32], index: 11, kind: input, shape index: {}]   ;;  %s10993_s12 = inlined_call_operand.vmem [shape: bf16[3,32,128], index: 12, kind: input, shape index: {}]   ;;  %s10994_s13 = inlined_call_operand.vmem [shape: f32[3,1,128], index: 13, kind: input, shape index: {}]   ;;  %s10995_s14 = inlined_call_operand.vmem [shape: bf16[3,128,32], index: 14, kind: input, shape index: {}]   ;;  %s10996_s15 = inlined_call_operand.vmem [shape: f32[3,1,32], index: 15, kind: input, shape index: {}]   ;;  %s10997_s16 = inlined_call_operand.vmem [shape: f32[3,1,32], index: 16, kind: input, shape index: {}]   ;;  %s10998_s17 = inlined_call_operand.vmem [shape: f32[3,1,32], index: 17, kind: input, shape index: {}]   ;;  %s10999_s18 = inlined_call_operand.vmem [shape: f32[128,32], index: 18, kind: output, shape index: {0}]   ;;  %s11000_s19 = inlined_call_operand.hbm [shape: f32[16,32], index: 19, kind: output, shape index: {1}]  }
   0x1   :  { %11070 = sst [smem:[#allocation47_spill]] %s10981_s0 }
   0x2   :  { %11071 = sst [smem:[#allocation48_spill]] %s10982_s1 }
   0x3   :  { %11072 = sst [smem:[#allocation49_spill]] %s10983_s2 }
   0x4   :  { %11073 = sst [smem:[#allocation50_spill]] %s10984_s3 }
   0x5   :  { %11074 = sst [smem:[#allocation51_spill]] %s10985_s4 }
   0x6   :  { %11075 = sst [smem:[#allocation52_spill]] %s10986_s5 }
   0x7   :  { %11076 = sst [smem:[#allocation53_spill]] %s10999_s18 }
   0x8   :  { %25 = vsyncpa [#allocation3], 0 }
   0x9   :  { %27 = vsyncpa [#allocation3 + $0x1], 0  ;;  %s8647_s0 = smov 0   ;;  %s8649_s30 = smov 0  }
   0xa   :  { %s8651_s20 = smov 0   ;;  %s8653_s21 = smov 0  }
   0xb LB: > { %11077 = sst [smem:[#allocation5_spill]] %s8526_s0  ;;  %s8668_s1 = sadd.s32 4294967295, %s8538_s21   ;;  %s8538_s21 = sphi %s8653_s21, %s11245_s21   ;;  %s8534_s20 = sphi %s8651_s20, %s11247_s20   ;;  %s8530_s30 = sphi %s8649_s30, %s11249_s30   ;;  %s8526_s0 = sphi %s8647_s0, %s11248_s0  }
   0xc   : > { %11078 = sst [smem:[#allocation6_spill]] %s8534_s20  ;;  %s6755_s22 = sadd.s32 4294967294, %s8538_s21  }
   0xd   : > { %11079 = sst [smem:[#allocation7_spill]] %s8538_s21  ;;  %s8672_s2 = sadd.s32 1, %s8538_s21  }
   0xe   : > { %11080 = sst [smem:[#allocation8_spill]] %s8672_s2  ;;  %s459_s23 = sadd.s32 1, %s8534_s20 }
   0xf   : > { %s456_s24 = ssub.s32 %s8538_s21, %s8672_s2  ;;  %p469_p0 = scmp.ne.s32.totalorder %s8534_s20, %s8530_s30 }
  0x10   : > { %p457_p1 = scmp.eq.s32.totalorder %s456_s24, 0  ;;  %p470_p2 = scmp.eq.s32.totalorder %s8668_s1, 1 }
  0x11   : > { %p475_p3 = scmp.ne.s32.totalorder %s8530_s30, %s8526_s0  ;;  %p476_p4 = scmp.eq.s32.totalorder %s6755_s22, 1 }
  0x12   : > { %s8683_s25 = scalar_select %p457_p1, %s8534_s20, %s459_s23  }
  0x13   : > { %p8685_p5 = por %p470_p2, %p469_p0  ;;  %p8689_p6 = por %p476_p4, %p475_p3 }
  0x14   : > { %11081 = sst [smem:[#allocation9_spill]] %s8683_s25  ;;  %p6758_p7 = scmp.ge.s32.totalorder %s8538_s21, 1 }
  0x15   : > { %s11083_s26 = scalar_select %p8689_p6, 1, 0 }
  0x16   : > { %p564_p8 = scmp.lt.s32.totalorder %s8538_s21, 3 }
  0x17   : > { %11084 = sst [smem:[#allocation10_spill]] %s11083_s26 }
  0x18   : > { %p565_p9 = pnand %p6758_p7, %p564_p8 }
  0x1a   : > { %568 = sbr.rel (%p565_p9) target bundleno = 9149 (0x23bd), region = 92 }
  0x21   : > { %s11085_s29 = sld [smem:[#allocation50_spill]]  ;;  %v8540_v1 = vmov 0.0   ;;  %vm8541_vm0 = vmmov 0   ;;  %p640_p10 = scmp.lt.s32.totalorder %s8668_s1, 1  ;;  %vm740_vm1 = vcmask 261120   ;;  %v8542_v44 = vmov 0  }
  0x22   : > { %7322 = vmatprep.subr.bf16.mxu1 %v8540_v1  ;;  %7326 = vmatprep.mubr.msk.bf16.mxu1 %vm8541_vm0, %v8540_v1  ;;  %s11086_s5 = sld [smem:[#allocation52_spill]]  ;;  %s6760_s28 = sshll.u32 %s8668_s1, 3  ;;  %v6779_v23 = vld [vmem:[%s10987_s6] ss:$0 sm:$0xff]  ;;  %v8031_v40 = vld [vmem:[%s10988_s7 + $0x4] ss:$8 sps:$4 sm:$0xff]   ;;  %v657_v45 = vlaneseq }
  0x23   : > { %s641_s25 = scalar_select %p640_p10, %s8668_s1, 1  ;;  %v8033_v41 = vld [vmem:[%s10988_s7] ss:$8 sps:$4 sm:$0xff]   ;;  %v8034_v42 = vld [vmem:[%s10988_s7 + $0x14] ss:$8 sps:$4 sm:$0xff]   ;;  %924 = vmatprep.subr.bf16.mxu0 %v8031_v40  ;;  %956 = vmatprep.mubr.bf16.mxu0 %v8542_v44  ;;  %vm1084_vm6 = vcmask 523264  }
  0x24   : > { %p635_p11 = scmp.lt.s32.totalorder %s6760_s28, 15  ;;  %s11087_s23 = sld [smem:[#allocation48_spill]]  ;;  %925 = vmatpush1.bf16.msra.mxu0 %v8033_v41  ;;  %v8036_v43 = vld [vmem:[%s10988_s7 + $0x10] ss:$8 sps:$4 sm:$0xff]   ;;  %v8770_v47 = vand.u32 127, %v657_v45  ;;  %v895_v61 = vshrl.u32 %v657_v45, 7 }
  0x25   : > { %s6762_s20 = sshll.u32 %s641_s25, 3  ;;  %s11088_s18 = sld [smem:[#allocation47_spill]]  ;;  %926 = vmatprep.subr.bf16.mxu0 %v8034_v42  ;;  %v892_v62 = vld [vmem:[%s10989_s8] sm:$0x3] }
  0x26   : > { %s11251_s28 = smov (!%p635_p11, %s6760_s28), 15  ;;  %s11089_s4 = sld [smem:[#allocation51_spill]]  ;;  %vm660_vm2 = vcmp.lt.s32.totalorder %v8770_v47, 4  ;;  %vm664_vm3 = vcmp.ge.s32.totalorder %v8770_v47, 4  ;;  %vm665_vm4 = vcmp.lt.s32.totalorder %v8770_v47, 8  ;;  %v8811_v63 = vsub.s32 0, %v895_v61 }
  0x27   : > { %v8027_v0 = vld [vmem:[%s11085_s29] sm:$0xff]   ;;  %v8028_v2 = vld [vmem:[%s11085_s29 + $0x8] sm:$0xff]   ;;  %s8720_s24 = sshll.u32 %s11251_s28, 3  ;;  %v8783_v53 = vsel %vm660_vm2, 1.0, %v8540_v1  ;;  %vm666_vm5 = vmand %vm664_vm3, %vm665_vm4  ;;  %s8543_s22 = smov 96   ;;  %vm669_vm7 = vcmp.ge.s32.totalorder %v8770_v47, 8 }
  0x28   : > { %7323 = vmatpush3.bf16.msra.mxu1 %v8027_v0  ;;  %v8029_v3 = vld [vmem:[%s11086_s5] sm:$0xff]   ;;  %v8030_v4 = vld [vmem:[%s11086_s5 + $0x8] sm:$0xff]   ;;  %927 = vmatpush1.bf16.msra.mxu0 %v8036_v43  ;;  %v8794_v58 = vsel %vm666_vm5, 1.0, %v8540_v1  ;;  %v8813_v0 = vsub.s32 1, %v895_v61  ;;  %vm670_vm8 = vcmp.lt.s32.totalorder %v8770_v47, 12  ;;  %vm674_vm10 = vcmp.ge.s32.totalorder %v8770_v47, 12 }
  0x29   : > { %7324 = vmatprep.subr.bf16.mxu1 %v8540_v1  ;;  %7358 = vmatprep.subr.bf16.mxu0 %v8540_v1  ;;  %vm671_vm9 = vmand %vm669_vm7, %vm670_vm8  ;;  %vm675_vm11 = vcmp.lt.s32.totalorder %v8770_v47, 16  ;;  %s11008_s25 = smov 32   ;;  %vm679_vm13 = vcmp.ge.s32.totalorder %v8770_v47, 16  ;;  %vm680_vm14 = vcmp.lt.s32.totalorder %v8770_v47, 20  ;;  %vm684_vm2 = vcmp.ge.s32.totalorder %v8770_v47, 20  ;;  %s11090_s0 = smov 32  }
  0x2a   : > { %s8714_s26 = scalar_lea.vmem %s11087_s23, %s6762_s20  ;;  %vm676_vm12 = vmand %vm674_vm10, %vm675_vm11  ;;  %s11010_s23 = smov 64   ;;  %vm685_vm3 = vcmp.lt.s32.totalorder %v8770_v47, 24  ;;  %vm689_vm5 = vcmp.ge.s32.totalorder %v8770_v47, 24  ;;  %vm690_vm7 = vcmp.lt.s32.totalorder %v8770_v47, 28  ;;  %vm695_vm10 = vcmp.lt.s32.totalorder %v8770_v47, 32 }
  0x2b   : > { %v707_v5 = vld [vmem:[%s8714_s26] sm:$0xff]  ;;  %s8727_s2 = scalar_lea.vmem %s11088_s18, %s8720_s24  ;;  %vm681_vm15 = vmand %vm679_vm13, %vm680_vm14  ;;  %s11091_s28 = sld [smem:[#allocation49_spill]] }
  0x2c   : > { %7325 = vmatpush3.bf16.msra.mxu1 %v8028_v2  ;;  %v716_v6 = vpack.c.bf16 %v707_v5, %v707_v5  ;;  %v699_v7 = vld [vmem:[%s8727_s2] sm:$0xff]  ;;  %v700_v8 = vld [vmem:[%s8727_s2 + $0x8] sm:$0xff]  ;;  %v701_v9 = vld [vmem:[%s8727_s2 + $0x10] sm:$0xff]  ;;  %v897_v2 = vrot.slane %v892_v62, %v8811_v63  ;;  %s11115_s21 = smov 64   ;;  %s8546_s20 = smov [#allocation2]  }
  0x2d   : > { %7330 = vmatprep.subr.bf16.mxu1 %v8029_v3  ;;  %v784_v10 = vpack.c.bf16 %v700_v8, %v699_v7  ;;  %v702_v11 = vld [vmem:[%s8727_s2 + $0x18] sm:$0xff]  ;;  %v703_v12 = vld [vmem:[%s8727_s2 + $0x20] sm:$0xff]  ;;  %v704_v13 = vld [vmem:[%s8727_s2 + $0x28] sm:$0xff] }
  0x2e   : > { %v785_v14 = vpack.c.bf16 %v702_v11, %v701_v9  ;;  %v786_v15 = vpack.c.bf16 %v704_v13, %v703_v12  ;;  %v705_v16 = vld [vmem:[%s8727_s2 + $0x30] sm:$0xff]  ;;  %v706_v17 = vld [vmem:[%s8727_s2 + $0x38] sm:$0xff]  ;;  %v6775_v49 = vld [vmem:[%s11089_s4] ss:$0 sm:$0xff] }
  0x2f   : > { %7327 = vmatmul.mubr.msk.bf16.vlgmr.msra.gmra.mrb[0].mxu1 %vm740_vm1, %v716_v6  ;;  %v787_v18 = vpack.c.bf16 %v706_v17, %v705_v16  ;;  %6790 = vmatmul.mubr.msk.bf16.vlgmr.msra.gmra.mrb[0].mxu0 %vm740_vm1, %v784_v10  ;;  %vm686_vm4 = vmand %vm684_vm2, %vm685_vm3 }
  0x30   : > { %7331 = vmatpush3.bf16.msra.mxu1 %v8029_v3  ;;  %7334 = vmatprep.mubr.msk.bf16.mxu1 %vm740_vm1, %v784_v10  ;;  %v901_v3 = vrot.slane %v892_v62, %v8813_v0  ;;  %vm691_vm8 = vmand %vm689_vm5, %vm690_vm7 }
  0x31   : > { %7332 = vmatprep.subr.bf16.mxu1 %v8030_v4  ;;  %966 = vmatprep.mubr.bf16.mxu0 %v8542_v44 }
  0x34   : > { %7333 = vmatpush3.bf16.msra.mxu1 %v8030_v4 }
  0x35   : > { %7342 = vmatprep.subr.bf16.mxu1 %v8540_v1 }
  0x37   : > { %7335 = vmatmul.mubr.msk.bf16.vlgmr.msra.gmra.mrb[4].mxu1 %vm740_vm1, %v785_v14  ;;  %6791 = vmatmul.mubr.msk.bf16.gmra.mrb[4].mxu0 %vm740_vm1, %v785_v14 }
  0x38   : > { %7338 = vmatprep.mubr.msk.bf16.mxu1 %vm740_vm1, %v786_v15  ;;  %976 = vmatprep.mubr.bf16.mxu0 %v8542_v44 }
  0x3f   : > { %7339 = vmatmul.mubr.msk.bf16.gmra.mrb[8].mxu1 %vm740_vm1, %v787_v18  ;;  %6792 = vmatmul.mubr.msk.bf16.gmra.mrb[8].mxu0 %vm740_vm1, %v786_v15 }
  0x40   : > { %7346 = vmatprep.mubr.msk.bf16.mxu1 %vm8541_vm0, %v8540_v1  ;;  %986 = vmatprep.mubr.bf16.mxu0 %v8542_v44 }
  0x47   : > { %6793 = vmatmul.mubr.msk.bf16.gmra.mrb[12].mxu0 %vm740_vm1, %v787_v18 }
  0x48   : > { %7366 = vmatprep.mubr.msk.bf16.mxu0 %vm8541_vm0, %v8540_v1 }
 0x102   : > { %v778_v19 = vpop.f32.mrb[0].mxu1  ;;  %v958_v4 = vpop.f32.mrb[0].mxu0 }
 0x103   : > { %v7328_v20 = vpop.f32.mrb[1].mxu1  ;;  %v8779_v51 = vadd.f32 %v6775_v49, %v778_v19  ;;  %v959_v5 = vadd.f32 %v958_v4, %v897_v2  ;;  %v960_v6 = vpop.f32.mrb[1].mxu0 }
 0x104   : > { %v781_v21 = vpop.f32.mrb[2].mxu1  ;;  %v961_v7 = vadd.f32 %v960_v6, %v901_v3  ;;  %v962_v8 = vpop.f32.mrb[2].mxu0 }
 0x105   : > { %v7329_v22 = vpop.f32.mrb[3].mxu1  ;;  %v1039_v55 = vmul.f32 %v8783_v53, %v8779_v51  ;;  %v1097_v59 = vmul.f32 %v8794_v58, %v8779_v51  ;;  %v963_v9 = vadd.f32 %v962_v8, %v897_v2  ;;  %v964_v10 = vpop.f32.mrb[3].mxu0 }
 0x106   : > { %v965_v11 = vadd.f32 %v964_v10, %v901_v3 }
 0x107   : > { %v1040_v57 = vpack.c.bf16 %v1039_v55, %v1039_v55  ;;  %v1098_v60 = vpack.c.bf16 %v1097_v59, %v1097_v59  ;;  %v8817_v12 = vpack.c.bf16 %v963_v9, %v959_v5 }
 0x108   : > { %v8819_v13 = vpack.c.bf16 %v965_v11, %v961_v7 }
 0x10a   : > { %v7336_v24 = vpop.f32.mrb[4].mxu1  ;;  %v968_v14 = vpop.f32.mrb[4].mxu0 }
 0x10b   : > { %v857_v25 = vpop.f32.mrb[5].mxu1  ;;  %v866_v32 = vadd.f32 %v7336_v24, %v6779_v23  ;;  %v969_v15 = vadd.f32 %v968_v14, %v897_v2  ;;  %v970_v16 = vpop.f32.mrb[5].mxu0 }
 0x10c   : > { %v7337_v26 = vpop.f32.mrb[6].mxu1  ;;  %v858_v27 = vadd.f32 %v6779_v23, %v857_v25  ;;  %v971_v17 = vadd.f32 %v970_v16, %v901_v3  ;;  %v972_v18 = vpop.f32.mrb[6].mxu0 }
 0x10d   : > { %v860_v28 = vpop.f32.mrb[7].mxu1  ;;  %v869_v35 = vadd.f32 %v7337_v26, %v6779_v23  ;;  %v973_v19 = vadd.f32 %v972_v18, %v897_v2  ;;  %v974_v20 = vpop.f32.mrb[7].mxu0  ;;  %v8876_v18 = vsel %vm676_vm12, 1.0, %v8540_v1  ;;  %vm2477_vm12 = vcmask 64512  }
 0x10e   : > { %1005 = vxpose.xlu0.b32.start [1/8] (short) (narrow) %v858_v27, 32  ;;  %v861_v29 = vadd.f32 %v6779_v23, %v860_v28  ;;  %v975_v21 = vadd.f32 %v974_v20, %v901_v3 }
 0x10f   : > { %v8823_v22 = vpack.c.bf16 %v973_v19, %v969_v15  ;;  %v8862_v15 = vsel %vm671_vm9, 1.0, %v8540_v1  ;;  %v1369_v19 = vmul.f32 %v8876_v18, %v8779_v51  ;;  %vm694_vm9 = vcmp.ge.s32.totalorder %v8770_v47, 28 }
 0x110   : > { %v1256_v16 = vmul.f32 %v8862_v15, %v8779_v51  ;;  %vm696_vm11 = vmand %vm694_vm9, %vm695_vm10 }
 0x111   : > { %v1370_v20 = vpack.c.bf16 %v1369_v19, %v1369_v19  ;;  %v9003_v47 = vsel %vm696_vm11, 1.0, %v8540_v1 }
 0x112   : > { %1006 = vxpose.xlu0.b32.cont [2/8] (short) (narrow) %v861_v29, 32  ;;  %v7340_v30 = vpop.f32.mrb[8].mxu1 }
 0x113   : > { %v873_v31 = vpop.f32.mrb[9].mxu1  ;;  %v882_v38 = vadd.f32 %v7340_v30, %v6779_v23 }
 0x114   : > { %v7341_v33 = vpop.f32.mrb[10].mxu1  ;;  %v874_v36 = vadd.f32 %v6779_v23, %v873_v31 }
 0x115   : > { %v876_v34 = vpop.f32.mrb[11].mxu1  ;;  %v885_v39 = vadd.f32 %v7341_v33, %v6779_v23  ;;  %v978_v33 = vpop.f32.mrb[8].mxu0 }
 0x116   : > { %1007 = vxpose.xlu0.b32.cont [3/8] (short) (narrow) %v866_v32, 32  ;;  %v877_v37 = vadd.f32 %v6779_v23, %v876_v34  ;;  %v8825_v23 = vpack.c.bf16 %v975_v21, %v971_v17  ;;  %v979_v34 = vadd.f32 %v978_v33, %v897_v2  ;;  %v1257_v17 = vpack.c.bf16 %v1256_v16, %v1256_v16 }
 0x11a   : > { %1008 = vxpose.xlu0.b32.cont [4/8] (short) (narrow) %v869_v35, 32  ;;  %v980_v35 = vpop.f32.mrb[9].mxu0 }
 0x11e   : > { %1009 = vxpose.xlu0.b32.cont [5/8] (short) (narrow) %v874_v36, 32  ;;  %v981_v36 = vadd.f32 %v980_v35, %v901_v3 }
 0x122   : > { %1010 = vxpose.xlu0.b32.cont [6/8] (short) (narrow) %v877_v37, 32  ;;  %v982_v37 = vpop.f32.mrb[10].mxu0 }
 0x123   : > { %v984_v40 = vpop.f32.mrb[11].mxu0 }
 0x124   : > { %v985_v41 = vadd.f32 %v984_v40, %v901_v3  ;;  %v988_v42 = vpop.f32.mrb[12].mxu0 }
 0x125   : > { %v989_v43 = vadd.f32 %v988_v42, %v897_v2  ;;  %v990_v45 = vpop.f32.mrb[13].mxu0 }
 0x126   : > { %1011 = vxpose.xlu0.b32.cont [7/8] (short) (narrow) %v882_v38, 32  ;;  %v983_v38 = vadd.f32 %v982_v37, %v897_v2  ;;  %v992_v49 = vpop.f32.mrb[14].mxu0 }
 0x12a   : > { %1012 = vxpose.xlu0.b32.end [8/8] (short) (narrow) %v885_v39, 32  ;;  %v8836_v39 = vpack.c.bf16 %v983_v38, %v979_v34 }
 0x18e   : > { %v1021_v46 = vpop.trf.xlu0 }
 0x192   : > { %v1022_v48 = vpop.trf.xlu0 }
 0x193   : > { %v8775_v50 = vpack.c.bf16 %v1022_v48, %v1021_v46  ;;  %v8840_v46 = vpack.c.bf16 %v985_v41, %v981_v36  ;;  %v991_v48 = vadd.f32 %v990_v45, %v901_v3 }
 0x195   : > { %7343 = vmatpush3.bf16.msra.mxu1 %v8775_v50 }
 0x196   : > { %v1023_v52 = vpop.trf.xlu0  ;;  %7344 = vmatprep.subr.bf16.mxu1 %v8540_v1 }
 0x19a   : > { %v1024_v54 = vpop.trf.xlu0 }
 0x19b   : > { %v8789_v56 = vpack.c.bf16 %v1024_v54, %v1023_v52  ;;  %v993_v52 = vadd.f32 %v992_v49, %v897_v2  ;;  %v994_v54 = vpop.f32.mrb[15].mxu0 }
 0x19c   : > { %v995_v55 = vadd.f32 %v994_v54, %v901_v3 }
 0x19d   : > { %7345 = vmatpush3.bf16.msra.mxu1 %v8789_v56 }
 0x19e   : > { %7350 = vmatprep.subr.bf16.mxu1 %v8540_v1  ;;  %v8844_v59 = vpack.c.bf16 %v995_v55, %v991_v48 }
 0x1a0   : > { %7347 = vmatmul.mubr.msk.bf16.vlgmr.msra.gmra.mrb[12].mxu1 %vm740_vm1, %v1040_v57  ;;  %v8842_v57 = vpack.c.bf16 %v993_v52, %v989_v43 }
 0x1a1   : > { %7351 = vmatpush3.bf16.msra.mxu1 %v8775_v50  ;;  %7354 = vmatprep.mubr.msk.bf16.mxu1 %vm8541_vm0, %v8540_v1 }
 0x1a2   : > { %7352 = vmatprep.subr.bf16.mxu1 %v8540_v1  ;;  %1164 = vrot.lane.b32.xlu0 %v8842_v57, %s8543_s22 }
 0x1a5   : > { %7353 = vmatpush3.bf16.msra.mxu1 %v8789_v56 }
 0x1a6   : > { %7370 = vmatprep.subr.bf16.mxu1 %v8540_v1 }
 0x1a8   : > { %7355 = vmatmul.mubr.msk.bf16.vlgmr.msra.gmra.mrb[16].mxu1 %vm740_vm1, %v1098_v60 }
 0x1a9   : > { %7378 = vmatprep.mubr.msk.bf16.mxu1 %vm8541_vm0, %v8540_v1  ;;  %7371 = vmatpush3.bf16.msra.mxu1 %v8817_v12 }
 0x1aa   : > { %7372 = vmatprep.subr.bf16.mxu1 %v8540_v1 }
 0x1ad   : > { %7373 = vmatpush3.bf16.msra.mxu1 %v8823_v22 }
 0x1ae   : > { %7374 = vmatprep.subr.bf16.mxu1 %v8540_v1 }
 0x1b1   : > { %7375 = vmatpush3.bf16.msra.mxu1 %v8836_v39 }
 0x1b2   : > { %7376 = vmatprep.subr.bf16.mxu1 %v8540_v1 }
 0x1b5   : > { %7377 = vmatpush3.bf16.msra.mxu1 %v8842_v57 }
 0x1b6   : > { %7390 = vmatprep.subr.bf16.mxu1 %v8540_v1 }
 0x214   : > { %v1165_v9 = vpop.permute.xlu0 %1164 }
 0x273   : > { %v8829_v24 = vpop.f32.mrb[12].mxu1 }
 0x274   : > { %v7348_v25 = vpop.f32.mrb[13].mxu1  ;;  %v1085_v6 = vsel %vm1084_vm6, %v8829_v24, -inf }
 0x275   : > { %v1081_v26 = vpop.f32.mrb[14].mxu1 }
 0x276   : > { %v7349_v27 = vpop.f32.mrb[15].mxu1 }
 0x27b   : > { %v1136_v28 = vpop.f32.mrb[16].mxu1 }
 0x27c   : > { %v7356_v29 = vpop.f32.mrb[17].mxu1  ;;  %v1142_v30 = vsel %vm1084_vm6, %v1136_v28, -inf }
 0x27d   : > { %1143 = vmax.xlane.f32.xlu1 %v1142_v30  ;;  %v1139_v31 = vpop.f32.mrb[18].mxu1 }
 0x27e   : > { %v7357_v32 = vpop.f32.mrb[19].mxu1 }
 0x28e   : > { %1158 = vrot.lane.b32.xlu1 %v8817_v12, %s8543_s22 }
 0x292   : > { %1160 = vrot.lane.b32.xlu1 %v8823_v22, %s8543_s22 }
 0x30a   : > { %v1144_v60 = vpop.xlane.xlu1 %1143 }
 0x30b   : > { %v1145_v61 = vsub.f32 %v1136_v28, %v1144_v60 }
 0x30d   : > { %v1146_v62 = vmul.f32 1.442695, %v1145_v61 }
 0x30e   : > { %v1159_v4 = vpop.permute.xlu1 %1158 }
 0x30f   : > { %8087 = vpow2.f32 %v1146_v62  ;;  %7359 = vmatpush3.bf16.msra.mxu0 %v1159_v4 }
 0x310   : > { %7360 = vmatprep.subr.bf16.mxu0 %v8540_v1 }
 0x312   : > { %v1161_v2 = vpop.permute.xlu1 %1160 }
 0x313   : > { %7361 = vmatpush3.bf16.msra.mxu0 %v1161_v2 }
 0x314   : > { %7362 = vmatprep.subr.bf16.mxu0 %v8540_v1 }
 0x319   : > { %v8088_v3 = vpop.eup %8087 }
 0x31a   : > { %v1148_v5 = vsel %vm1084_vm6, %v8088_v3, 0.0 }
 0x31b   : > { %1149 = vadd.xlane.f32.xlu1 %v1148_v5 }
 0x32c   : > { %1162 = vrot.lane.b32.xlu1 %v8836_v39, %s8543_s22 }
 0x350   : > { %1086 = vmax.xlane.f32.xlu1 %v1085_v6 }
 0x3a8   : > { %v1150_v7 = vpop.xlane.xlu1 %1149 }
 0x3a9   : > { %8089 = vrcp.f32 %v1150_v7 }
 0x3ac   : > { %v1163_v8 = vpop.permute.xlu1 %1162 }
 0x3ad   : > { %7363 = vmatpush3.bf16.msra.mxu0 %v1163_v8 }
 0x3ae   : > { %7364 = vmatprep.subr.bf16.mxu0 %v8540_v1 }
 0x3b1   : > { %7365 = vmatpush3.bf16.msra.mxu0 %v1165_v9 }
 0x3b2   : > { %7382 = vmatprep.subr.bf16.mxu0 %v8540_v1 }
 0x3b3   : > { %v8090_v10 = vpop.eup %8089 }
 0x3b4   : > { %v1152_v11 = vmul.f32 %v8090_v10, %v8088_v3 }
 0x3b6   : > { %v1153_v14 = vpack.c.bf16 %v1152_v11, %v1152_v11 }
 0x3b8   : > { %7367 = vmatmul.mubr.msk.bf16.vlgmr.msra.gmra.mrb[16].mxu0 %vm1084_vm6, %v1153_v14 }
 0x3b9   : > { %7383 = vmatpush3.bf16.msra.mxu0 %v8775_v50  ;;  %7386 = vmatprep.mubr.msk.bf16.mxu0 %vm8541_vm0, %v8540_v1 }
 0x3ba   : > { %7384 = vmatprep.subr.bf16.mxu0 %v8540_v1 }
 0x3bd   : > { %7385 = vmatpush3.bf16.msra.mxu0 %v8789_v56 }
 0x3be   : > { %7402 = vmatprep.subr.bf16.mxu0 %v8540_v1 }
 0x3c0   : > { %7387 = vmatmul.mubr.msk.bf16.vlgmr.msra.gmra.mrb[20].mxu0 %vm740_vm1, %v1257_v17 }
 0x3c1   : > { %7403 = vmatpush3.bf16.msra.mxu0 %v8775_v50  ;;  %7406 = vmatprep.mubr.msk.bf16.mxu0 %vm8541_vm0, %v8540_v1 }
 0x3c2   : > { %7404 = vmatprep.subr.bf16.mxu0 %v8540_v1 }
 0x3c5   : > { %7405 = vmatpush3.bf16.msra.mxu0 %v8789_v56 }
 0x3c6   : > { %7410 = vmatprep.subr.bf16.mxu0 %v8540_v1 }
 0x3c8   : > { %7407 = vmatmul.mubr.msk.bf16.vlgmr.msra.gmra.mrb[24].mxu0 %vm740_vm1, %v1370_v20  ;;  %v8928_v20 = vsel %vm681_vm15, 1.0, %v8540_v1 }
 0x3c9   : > { %7418 = vmatprep.mubr.msk.bf16.mxu0 %vm8541_vm0, %v8540_v1 }
 0x3dd   : > { %v1087_v21 = vpop.xlane.xlu1 %1086 }
 0x3de   : > { %v1088_v25 = vsub.f32 %v8829_v24, %v1087_v21 }
 0x3e0   : > { %v1089_v26 = vmul.f32 1.442695, %v1088_v25 }
 0x3e2   : > { %8091 = vpow2.f32 %v1089_v26 }
 0x3ec   : > { %v8092_v34 = vpop.eup %8091 }
 0x3ed   : > { %v1091_v37 = vsel %vm1084_vm6, %v8092_v34, 0.0 }
 0x48b   : > { %v8891_v27 = vpop.f32.mrb[16].mxu0 }
 0x48c   : > { %v7368_v28 = vpop.f32.mrb[17].mxu0 }
 0x48d   : > { %v1210_v29 = vpop.f32.mrb[18].mxu0 }
 0x48e   : > { %v7369_v30 = vpop.f32.mrb[19].mxu0  ;;  %v8942_v29 = vsel %vm686_vm4, 1.0, %v8540_v1 }
 0x48f   : > { %v1583_v30 = vmul.f32 %v8942_v29, %v8779_v51 }
 0x493   : > { %v1295_v31 = vpop.f32.mrb[20].mxu0 }
 0x494   : > { %v7388_v32 = vpop.f32.mrb[21].mxu0  ;;  %v1301_v33 = vsel %vm1084_vm6, %v1295_v31, -inf }
 0x495   : > { %1302 = vmax.xlane.f32.xlu1 %v1301_v33  ;;  %v1298_v35 = vpop.f32.mrb[22].mxu0 }
 0x496   : > { %v7389_v36 = vpop.f32.mrb[23].mxu0 }
 0x499   : > { %1092 = vadd.xlane.f32.xlu1 %v1091_v37 }
 0x49b   : > { %v1408_v38 = vpop.f32.mrb[24].mxu0 }
 0x49c   : > { %v7408_v24 = vpop.f32.mrb[25].mxu0  ;;  %v1414_v40 = vsel %vm1084_vm6, %v1408_v38, -inf }
 0x49d   : > { %1415 = vmax.xlane.f32.xlu0 %v1414_v40  ;;  %v1411_v41 = vpop.f32.mrb[26].mxu0 }
 0x49e   : > { %v7409_v42 = vpop.f32.mrb[27].mxu0 }
 0x4aa   : > { %1313 = vrot.lane.b32.xlu1 %v8817_v12, %s11010_s23 }
 0x4ae   : > { %1426 = vrot.lane.b32.xlu1 %v8817_v12, %s11008_s25 }
 0x4b2   : > { %1428 = vrot.lane.b32.xlu1 %v8823_v22, %s11008_s25 }
 0x4b3   : > { %1315 = vrot.lane.b32.xlu0 %v8823_v22, %s11010_s23 }
 0x4b6   : > { %1317 = vrot.lane.b32.xlu1 %v8836_v39, %s11010_s23 }
 0x4ba   : > { %1430 = vrot.lane.b32.xlu1 %v8836_v39, %s11008_s25 }
 0x4be   : > { %1319 = vrot.lane.b32.xlu1 %v8842_v57, %s11010_s23 }
 0x522   : > { %v1303_v43 = vpop.xlane.xlu1 %1302 }
 0x523   : > { %v1304_v45 = vsub.f32 %v1295_v31, %v1303_v43  ;;  %v1584_v31 = vpack.c.bf16 %v1583_v30, %v1583_v30 }
 0x525   : > { %v1305_v48 = vmul.f32 1.442695, %v1304_v45 }
 0x526   : > { %v1093_v49 = vpop.xlane.xlu1 %1092 }
 0x527   : > { %8093 = vpow2.f32 %v1305_v48 }
 0x528   : > { %8095 = vrcp.f32 %v1093_v49 }
 0x52a   : > { %v1314_v12 = vpop.permute.xlu1 %1313  ;;  %v1416_v52 = vpop.xlane.xlu0 %1415 }
 0x52b   : > { %v1417_v54 = vsub.f32 %v1408_v38, %v1416_v52 }
 0x52d   : > { %v1418_v55 = vmul.f32 1.442695, %v1417_v54 }
 0x52e   : > { %v1427_v22 = vpop.permute.xlu1 %1426  ;;  %v1316_v8 = vpop.permute.xlu0 %1315 }
 0x52f   : > { %8097 = vpow2.f32 %v1418_v55  ;;  %7411 = vmatpush3.bf16.msra.mxu0 %v1427_v22 }
 0x530   : > { %7412 = vmatprep.subr.bf16.mxu0 %v8540_v1 }
 0x531   : > { %v8094_v60 = vpop.eup %8093 }
 0x532   : > { %v8096_v39 = vpop.eup %8095  ;;  %v1429_v61 = vpop.permute.xlu1 %1428  ;;  %v1307_v62 = vsel %vm1084_vm6, %v8094_v60, 0.0 }
 0x533   : > { %1308 = vadd.xlane.f32.xlu1 %v1307_v62  ;;  %7413 = vmatpush3.bf16.msra.mxu0 %v1429_v61  ;;  %v1095_v4 = vmul.f32 %v8096_v39, %v8092_v34 }
 0x534   : > { %7414 = vmatprep.subr.bf16.mxu0 %v8540_v1 }
 0x535   : > { %v1096_v2 = vpack.c.bf16 %v1095_v4, %v1095_v4 }
 0x536   : > { %v1318_v3 = vpop.permute.xlu1 %1317 }
 0x537   : > { %7379 = vmatmul.mubr.msk.bf16.vlgmr.msra.gmra.mrb[20].mxu1 %vm1084_vm6, %v1096_v2 }
 0x538   : > { %7391 = vmatpush3.bf16.msra.mxu1 %v1314_v12  ;;  %7398 = vmatprep.mubr.msk.bf16.mxu1 %vm8541_vm0, %v8540_v1 }
 0x539   : > { %v8098_v5 = vpop.eup %8097  ;;  %7392 = vmatprep.subr.bf16.mxu1 %v8540_v1 }
 0x53a   : > { %v1431_v6 = vpop.permute.xlu1 %1430  ;;  %v1420_v7 = vsel %vm1084_vm6, %v8098_v5, 0.0 }
 0x53b   : > { %7415 = vmatpush3.bf16.msra.mxu0 %v1431_v6  ;;  %1421 = vadd.xlane.f32.xlu1 %v1420_v7 }
 0x53c   : > { %7393 = vmatpush3.bf16.msra.mxu1 %v1316_v8  ;;  %7416 = vmatprep.subr.bf16.mxu0 %v8540_v1 }
 0x53d   : > { %7394 = vmatprep.subr.bf16.mxu1 %v8540_v1 }
 0x53e   : > { %v1320_v9 = vpop.permute.xlu1 %1319 }
 0x540   : > { %7395 = vmatpush3.bf16.msra.mxu1 %v1318_v3 }
 0x541   : > { %7396 = vmatprep.subr.bf16.mxu1 %v8540_v1 }
 0x544   : > { %7397 = vmatpush3.bf16.msra.mxu1 %v1320_v9 }
 0x545   : > { %7422 = vmatprep.subr.bf16.mxu1 %v8540_v1 }
 0x54c   : > { %1432 = vrot.lane.b32.xlu1 %v8842_v57, %s11008_s25  ;;  %v1482_v57 = vmul.f32 %v8928_v20, %v8779_v51 }
 0x54e   : > { %v1483_v28 = vpack.c.bf16 %v1482_v57, %v1482_v57 }
 0x5c0   : > { %v1309_v10 = vpop.xlane.xlu1 %1308 }
 0x5c1   : > { %8099 = vrcp.f32 %v1309_v10 }
 0x5c8   : > { %v1422_v11 = vpop.xlane.xlu1 %1421 }
 0x5c9   : > { %8101 = vrcp.f32 %v1422_v11 }
 0x5cb   : > { %v8100_v14 = vpop.eup %8099 }
 0x5cc   : > { %v1433_v16 = vpop.permute.xlu1 %1432  ;;  %v1311_v17 = vmul.f32 %v8100_v14, %v8094_v60 }
 0x5cd   : > { %7417 = vmatpush3.bf16.msra.mxu0 %v1433_v16 }
 0x5ce   : > { %v1312_v19 = vpack.c.bf16 %v1311_v17, %v1311_v17  ;;  %7442 = vmatprep.subr.bf16.mxu0 %v8540_v1 }
 0x5d0   : > { %7399 = vmatmul.mubr.msk.bf16.vlgmr.msra.gmra.mrb[24].mxu1 %vm1084_vm6, %v1312_v19 }
 0x5d1   : > { %7423 = vmatpush3.bf16.msra.mxu1 %v8775_v50  ;;  %7426 = vmatprep.mubr.msk.bf16.mxu1 %vm8541_vm0, %v8540_v1 }
 0x5d2   : > { %7424 = vmatprep.subr.bf16.mxu1 %v8540_v1 }
 0x5d3   : > { %v8102_v21 = vpop.eup %8101 }
 0x5d4   : > { %v1424_v25 = vmul.f32 %v8102_v21, %v8098_v5 }
 0x5d5   : > { %7425 = vmatpush3.bf16.msra.mxu1 %v8789_v56 }
 0x5d6   : > { %7430 = vmatprep.subr.bf16.mxu1 %v8540_v1  ;;  %v1425_v26 = vpack.c.bf16 %v1424_v25, %v1424_v25 }
 0x5d8   : > { %7419 = vmatmul.mubr.msk.bf16.vlgmr.msra.gmra.mrb[28].mxu0 %vm1084_vm6, %v1425_v26  ;;  %7427 = vmatmul.mubr.msk.bf16.vlgmr.msra.gmra.mrb[28].mxu1 %vm740_vm1, %v1483_v28  ;;  %v8987_v28 = vsel %vm691_vm8, 1.0, %v8540_v1 }
 0x5d9   : > { %7431 = vmatpush3.bf16.msra.mxu1 %v8819_v13  ;;  %7443 = vmatpush3.bf16.msra.mxu0 %v8775_v50  ;;  %v1700_v30 = vmul.f32 %v8987_v28, %v8779_v51 }
 0x5da   : > { %7432 = vmatprep.subr.bf16.mxu1 %v8540_v1  ;;  %7444 = vmatprep.subr.bf16.mxu0 %v8540_v1 }
 0x5db   : > { %7446 = vmatprep.mubr.msk.bf16.mxu0 %vm8541_vm0, %v8540_v1  ;;  %7438 = vmatprep.mubr.msk.bf16.mxu1 %vm8541_vm0, %v8540_v1 }
 0x5dd   : > { %7433 = vmatpush3.bf16.msra.mxu1 %v8825_v23  ;;  %7445 = vmatpush3.bf16.msra.mxu0 %v8789_v56 }
 0x5de   : > { %7434 = vmatprep.subr.bf16.mxu1 %v8540_v1  ;;  %7450 = vmatprep.subr.bf16.mxu0 %v8540_v1 }
 0x5e0   : > { %7447 = vmatmul.mubr.msk.bf16.vlgmr.msra.gmra.mrb[32].mxu0 %vm740_vm1, %v1584_v31 }
 0x5e1   : > { %7435 = vmatpush3.bf16.msra.mxu1 %v8840_v46  ;;  %7458 = vmatprep.mubr.msk.bf16.mxu0 %vm8541_vm0, %v8540_v1 }
 0x5e2   : > { %7436 = vmatprep.subr.bf16.mxu1 %v8540_v1 }
 0x5e5   : > { %7437 = vmatpush3.bf16.msra.mxu1 %v8844_v59 }
 0x5e6   : > { %7462 = vmatprep.subr.bf16.mxu1 %v8540_v1 }
 0x60a   : > { %v1250_v32 = vpop.f32.mrb[20].mxu1 }
 0x60b   : > { %v1251_v33 = vadd.f32 %v1250_v32, %v8891_v27  ;;  %v7380_v34 = vpop.f32.mrb[21].mxu1 }
 0x60c   : > { %v1253_v35 = vpop.f32.mrb[22].mxu1 }
 0x60d   : > { %v7381_v36 = vpop.f32.mrb[23].mxu1  ;;  %v1701_v35 = vpack.c.bf16 %v1700_v30, %v1700_v30 }
 0x60e   : > { %v1813_v36 = vmul.f32 %v9003_v47, %v8779_v51 }
 0x6a3   : > { %v1362_v37 = vpop.f32.mrb[24].mxu1 }
 0x6a4   : > { %v1368_v38 = vadd.f32 %v1362_v37, %v1251_v33  ;;  %v7400_v24 = vpop.f32.mrb[25].mxu1  ;;  %v1814_v37 = vpack.c.bf16 %v1813_v36, %v1813_v36 }
 0x6a5   : > { %v1365_v40 = vpop.f32.mrb[26].mxu1 }
 0x6a6   : > { %v7401_v41 = vpop.f32.mrb[27].mxu1 }
 0x6ab   : > { %v1475_v42 = vpop.f32.mrb[28].mxu0  ;;  %v1521_v43 = vpop.f32.mrb[28].mxu1 }
 0x6ac   : > { %v8968_v45 = vadd.f32 %v1475_v42, %v1368_v38  ;;  %v7420_v48 = vpop.f32.mrb[29].mxu0  ;;  %v7428_v49 = vpop.f32.mrb[29].mxu1  ;;  %v1527_v12 = vsel %vm1084_vm6, %v1521_v43, -inf }
 0x6ad   : > { %1528 = vmax.xlane.f32.xlu0 %v1527_v12  ;;  %v1478_v52 = vpop.f32.mrb[30].mxu0  ;;  %v1524_v54 = vpop.f32.mrb[30].mxu1 }
 0x6ae   : > { %v7421_v27 = vpop.f32.mrb[31].mxu0  ;;  %v7429_v55 = vpop.f32.mrb[31].mxu1 }
 0x6b3   : > { %v1622_v22 = vpop.f32.mrb[32].mxu0 }
 0x6b4   : > { %v7448_v60 = vpop.f32.mrb[33].mxu0  ;;  %v1628_v39 = vsel %vm1084_vm6, %v1622_v22, -inf }
 0x6b5   : > { %1629 = vmax.xlane.f32.xlu1 %v1628_v39  ;;  %v1625_v61 = vpop.f32.mrb[34].mxu0 }
 0x6b6   : > { %v7449_v62 = vpop.f32.mrb[35].mxu0 }
 0x6c6   : > { %1644 = vrot.lane.b32.xlu1 %v8819_v13, %s8543_s22 }
 0x6ca   : > { %1648 = vrot.lane.b32.xlu1 %v8840_v46, %s8543_s22 }
 0x6ce   : > { %1650 = vrot.lane.b32.xlu1 %v8844_v59, %s8543_s22 }
 0x73a   : > { %v1529_v4 = vpop.xlane.xlu0 %1528 }
 0x73b   : > { %v1530_v2 = vsub.f32 %v1521_v43, %v1529_v4 }
 0x73d   : > { %v1531_v3 = vmul.f32 1.442695, %v1530_v2 }
 0x73f   : > { %8103 = vpow2.f32 %v1531_v3 }
 0x742   : > { %v1630_v5 = vpop.xlane.xlu1 %1629 }
 0x743   : > { %v1631_v6 = vsub.f32 %v1622_v22, %v1630_v5 }
 0x745   : > { %v1632_v7 = vmul.f32 1.442695, %v1631_v6 }
 0x746   : > { %v1645_v8 = vpop.permute.xlu1 %1644 }
 0x747   : > { %8105 = vpow2.f32 %v1632_v7  ;;  %7451 = vmatpush3.bf16.msra.mxu0 %v1645_v8 }
 0x748   : > { %7452 = vmatprep.subr.bf16.mxu0 %v8540_v1 }
 0x749   : > { %v8104_v9 = vpop.eup %8103 }
 0x74a   : > { %v1533_v10 = vsel %vm1084_vm6, %v8104_v9, 0.0  ;;  %v1649_v25 = vpop.permute.xlu1 %1648 }
 0x74b   : > { %1534 = vadd.xlane.f32.xlu0 %v1533_v10 }
 0x74e   : > { %v1651_v32 = vpop.permute.xlu1 %1650 }
 0x751   : > { %v8106_v11 = vpop.eup %8105 }
 0x752   : > { %v1634_v14 = vsel %vm1084_vm6, %v8106_v11, 0.0 }
 0x753   : > { %1635 = vadd.xlane.f32.xlu0 %v1634_v14 }
 0x769   : > { %1646 = vrot.lane.b32.xlu0 %v8825_v23, %s8543_s22 }
 0x7d8   : > { %v1535_v16 = vpop.xlane.xlu0 %1534 }
 0x7d9   : > { %8107 = vrcp.f32 %v1535_v16 }
 0x7e0   : > { %v1636_v17 = vpop.xlane.xlu0 %1635 }
 0x7e1   : > { %8109 = vrcp.f32 %v1636_v17 }
 0x7e3   : > { %v8108_v19 = vpop.eup %8107 }
 0x7e4   : > { %v1647_v57 = vpop.permute.xlu0 %1646  ;;  %v1537_v21 = vmul.f32 %v8108_v19, %v8104_v9 }
 0x7e5   : > { %7453 = vmatpush3.bf16.msra.mxu0 %v1647_v57 }
 0x7e6   : > { %v1538_v26 = vpack.c.bf16 %v1537_v21, %v1537_v21  ;;  %7454 = vmatprep.subr.bf16.mxu0 %v8540_v1 }
 0x7e8   : > { %7439 = vmatmul.mubr.msk.bf16.vlgmr.msra.gmra.mrb[32].mxu1 %vm1084_vm6, %v1538_v26 }
 0x7e9   : > { %7463 = vmatpush3.bf16.msra.mxu1 %v8775_v50  ;;  %7455 = vmatpush3.bf16.msra.mxu0 %v1649_v25 }
 0x7ea   : > { %7464 = vmatprep.subr.bf16.mxu1 %v8540_v1  ;;  %7456 = vmatprep.subr.bf16.mxu0 %v8540_v1 }
 0x7eb   : > { %v8110_v31 = vpop.eup %8109  ;;  %7466 = vmatprep.mubr.msk.bf16.mxu1 %vm8541_vm0, %v8540_v1 }
 0x7ec   : > { %v1638_v33 = vmul.f32 %v8110_v31, %v8106_v11 }
 0x7ed   : > { %7465 = vmatpush3.bf16.msra.mxu1 %v8789_v56  ;;  %7457 = vmatpush3.bf16.msra.mxu0 %v1651_v32 }
 0x7ee   : > { %v1639_v34 = vpack.c.bf16 %v1638_v33, %v1638_v33  ;;  %7482 = vmatprep.subr.bf16.mxu0 %v8540_v1  ;;  %7470 = vmatprep.subr.bf16.mxu1 %v8540_v1 }
 0x7f0   : > { %7459 = vmatmul.mubr.msk.bf16.vlgmr.msra.gmra.mrb[36].mxu0 %vm1084_vm6, %v1639_v34  ;;  %7467 = vmatmul.mubr.msk.bf16.vlgmr.msra.gmra.mrb[36].mxu1 %vm740_vm1, %v1701_v35 }
 0x7f1   : > { %7483 = vmatpush3.bf16.msra.mxu0 %v8775_v50  ;;  %7486 = vmatprep.mubr.msk.bf16.mxu0 %vm8541_vm0, %v8540_v1 }
 0x7f2   : > { %7484 = vmatprep.subr.bf16.mxu0 %v8540_v1  ;;  %7478 = vmatprep.mubr.msk.bf16.mxu1 %vm8541_vm0, %v8540_v1 }
 0x7f5   : > { %7485 = vmatpush3.bf16.msra.mxu0 %v8789_v56 }
 0x7f6   : > { %7490 = vmatprep.subr.bf16.mxu0 %v8540_v1 }
 0x7f8   : > { %7487 = vmatmul.mubr.msk.bf16.vlgmr.msra.gmra.mrb[40].mxu0 %vm740_vm1, %v1814_v37 }
 0x7f9   : > { %7498 = vmatprep.mubr.msk.bf16.mxu0 %vm8541_vm0, %v8540_v1 }
 0x8bb   : > { %v1576_v50 = vpop.f32.mrb[32].mxu1 }
 0x8bc   : > { %v1582_v38 = vadd.f32 %v1576_v50, %v8968_v45  ;;  %v7440_v24 = vpop.f32.mrb[33].mxu1  ;;  %v6810_v50 = vld [vmem:[%s10990_s9] ss:$0 sm:$0xff] }
 0x8bd   : > { %v1579_v40 = vpop.f32.mrb[34].mxu1 }
 0x8be   : > { %v7441_v41 = vpop.f32.mrb[35].mxu1 }
 0x8c3   : > { %v1693_v51 = vpop.f32.mrb[36].mxu0  ;;  %v1739_v42 = vpop.f32.mrb[36].mxu1 }
 0x8c4   : > { %v9021_v43 = vadd.f32 %v1693_v51, %v1582_v38  ;;  %v7460_v48 = vpop.f32.mrb[37].mxu0  ;;  %v7468_v56 = vpop.f32.mrb[37].mxu1  ;;  %v1745_v49 = vsel %vm1084_vm6, %v1739_v42, -inf }
 0x8c5   : > { %v1742_v12 = vpop.f32.mrb[38].mxu1  ;;  %1746 = vmax.xlane.f32.xlu0 %v1745_v49  ;;  %v1696_v52 = vpop.f32.mrb[38].mxu0 }
 0x8c6   : > { %v7461_v54 = vpop.f32.mrb[39].mxu0  ;;  %v7469_v27 = vpop.f32.mrb[39].mxu1 }
 0x8c7   : > { %v8037_v27 = vld [vmem:[%s10993_s12] sm:$0xff]  }
 0x8cb   : > { %v1852_v55 = vpop.f32.mrb[40].mxu0 }
 0x8cc   : > { %v7488_v22 = vpop.f32.mrb[41].mxu0  ;;  %v1858_v45 = vsel %vm1084_vm6, %v1852_v55, -inf }
 0x8cd   : > { %1859 = vmax.xlane.f32.xlu1 %v1858_v45  ;;  %v1855_v60 = vpop.f32.mrb[42].mxu0 }
 0x8ce   : > { %v7489_v39 = vpop.f32.mrb[43].mxu0 }
 0x8db   : > { %1870 = vrot.lane.b32.xlu0 %v8819_v13, %s11008_s25 }
 0x8de   : > { %1757 = vrot.lane.b32.xlu1 %v8819_v13, %s11010_s23 }
 0x8df   : > { %1761 = vrot.lane.b32.xlu0 %v8840_v46, %s11010_s23 }
 0x8e2   : > { %1759 = vrot.lane.b32.xlu1 %v8825_v23, %s11010_s23 }
 0x8e6   : > { %1872 = vrot.lane.b32.xlu1 %v8825_v23, %s11008_s25 }
 0x8ea   : > { %1874 = vrot.lane.b32.xlu1 %v8840_v46, %s11008_s25 }
 0x8ee   : > { %1876 = vrot.lane.b32.xlu1 %v8844_v59, %s11008_s25 }
 0x952   : > { %v1747_v61 = vpop.xlane.xlu0 %1746 }
 0x953   : > { %v1748_v62 = vsub.f32 %v1739_v42, %v1747_v61  ;;  %v8467_v42 = vld [vmem:[%s8714_s26] sm:$0xff]  ;;  %s648_s26 = scalar_lea.vmem %s11091_s28, %s8720_s24 }
 0x954   : > { %v6811_v61 = vld [vmem:[%s10991_s10] ss:$0 sm:$0xff] }
 0x955   : > { %v1749_v4 = vmul.f32 1.442695, %v1748_v62 }
 0x956   : > { %v1871_v2 = vpop.permute.xlu0 %1870 }
 0x957   : > { %8111 = vpow2.f32 %v1749_v4  ;;  %7491 = vmatpush3.bf16.msra.mxu0 %v1871_v2  ;;  %v6812_v4 = vld [vmem:[%s10992_s11] ss:$0 sm:$0xff] }
 0x958   : > { %7492 = vmatprep.subr.bf16.mxu0 %v8540_v1 }
 0x95a   : > { %v1860_v13 = vpop.xlane.xlu1 %1859  ;;  %v1762_v8 = vpop.permute.xlu0 %1761 }
 0x95b   : > { %v1861_v3 = vsub.f32 %v1852_v55, %v1860_v13  ;;  %v8038_v55 = vld [vmem:[%s10993_s12 + $0x8] sm:$0xff]  }
 0x95d   : > { %v1862_v5 = vmul.f32 1.442695, %v1861_v3  ;;  %v8039_v3 = vld [vmem:[%s10995_s14] sm:$0xff]  }
 0x95e   : > { %v1758_v6 = vpop.permute.xlu1 %1757 }
 0x95f   : > { %8113 = vpow2.f32 %v1862_v5  ;;  %7471 = vmatpush3.bf16.msra.mxu1 %v1758_v6  ;;  %v8040_v6 = vld [vmem:[%s10995_s14 + $0x8] sm:$0xff]  }
 0x960   : > { %7472 = vmatprep.subr.bf16.mxu1 %v8540_v1 }
 0x961   : > { %v8112_v23 = vpop.eup %8111 }
 0x962   : > { %v1760_v46 = vpop.permute.xlu1 %1759  ;;  %v1751_v7 = vsel %vm1084_vm6, %v8112_v23, 0.0 }
 0x963   : > { %1752 = vadd.xlane.f32.xlu0 %v1751_v7  ;;  %7473 = vmatpush3.bf16.msra.mxu1 %v1760_v46  ;;  %v8042_v46 = vld [vmem:[%s10995_s14 + $0x18] sm:$0xff]   ;;  %v8043_v7 = vld [vmem:[%s10995_s14 + $0x20] sm:$0xff]  }
 0x964   : > { %7474 = vmatprep.subr.bf16.mxu1 %v8540_v1 }
 0x966   : > { %v1873_v9 = vpop.permute.xlu1 %1872 }
 0x967   : > { %7475 = vmatpush3.bf16.msra.mxu1 %v1762_v8  ;;  %7493 = vmatpush3.bf16.msra.mxu0 %v1873_v9  ;;  %v8044_v8 = vld [vmem:[%s10995_s14 + $0x28] sm:$0xff]   ;;  %v8045_v9 = vld [vmem:[%s10995_s14 + $0x30] sm:$0xff]  }
 0x968   : > { %7494 = vmatprep.subr.bf16.mxu0 %v8540_v1  ;;  %7476 = vmatprep.subr.bf16.mxu1 %v8540_v1 }
 0x969   : > { %v8114_v10 = vpop.eup %8113 }
 0x96a   : > { %v1875_v11 = vpop.permute.xlu1 %1874  ;;  %v1864_v14 = vsel %vm1084_vm6, %v8114_v10, 0.0 }
 0x96b   : > { %1865 = vadd.xlane.f32.xlu0 %v1864_v14  ;;  %7495 = vmatpush3.bf16.msra.mxu0 %v1875_v11  ;;  %v6813_v11 = vld [vmem:[%s10994_s13] ss:$0 sm:$0xff] }
 0x96c   : > { %7496 = vmatprep.subr.bf16.mxu0 %v8540_v1 }
 0x96e   : > { %v1877_v16 = vpop.permute.xlu1 %1876 }
 0x96f   : > { %7497 = vmatpush3.bf16.msra.mxu0 %v1877_v16 }
 0x970   : > { %7530 = vmatprep.subr.bf16.mxu0 %v8540_v1 }
 0x981   : > { %1763 = vrot.lane.b32.xlu0 %v8844_v59, %s11010_s23 }
 0x9f0   : > { %v1753_v17 = vpop.xlane.xlu0 %1752 }
 0x9f1   : > { %8115 = vrcp.f32 %v1753_v17 }
 0x9f8   : > { %v1866_v19 = vpop.xlane.xlu0 %1865 }
 0x9f9   : > { %8117 = vrcp.f32 %v1866_v19 }
 0x9fb   : > { %v8116_v57 = vpop.eup %8115 }
 0x9fc   : > { %v1764_v21 = vpop.permute.xlu0 %1763  ;;  %v1755_v25 = vmul.f32 %v8116_v57, %v8112_v23  ;;  %v8041_v23 = vld [vmem:[%s10995_s14 + $0x10] sm:$0xff]  }
 0x9fd   : > { %7477 = vmatpush3.bf16.msra.mxu1 %v1764_v21 }
 0x9fe   : > { %v1756_v26 = vpack.c.bf16 %v1755_v25, %v1755_v25  ;;  %7502 = vmatprep.subr.bf16.mxu1 %v8540_v1 }
 0xa00   : > { %7479 = vmatmul.mubr.msk.bf16.vlgmr.msra.gmra.mrb[40].mxu1 %vm1084_vm6, %v1756_v26 }
 0xa01   : > { %7506 = vmatprep.mubr.msk.bf16.mxu1 %vm8541_vm0, %v8540_v1  ;;  %7503 = vmatpush3.bf16.msra.mxu1 %v8037_v27 }
 0xa02   : > { %7504 = vmatprep.subr.bf16.mxu1 %v8540_v1 }
 0xa03   : > { %v8118_v30 = vpop.eup %8117 }
 0xa04   : > { %v1868_v31 = vmul.f32 %v8118_v30, %v8114_v10  ;;  %v8046_v10 = vld [vmem:[%s10995_s14 + $0x38] sm:$0xff]  }
 0xa05   : > { %7505 = vmatpush3.bf16.msra.mxu1 %v8038_v55 }
 0xa06   : > { %v1869_v59 = vpack.c.bf16 %v1868_v31, %v1868_v31  ;;  %7510 = vmatprep.subr.bf16.mxu1 %v8540_v1 }
 0xa08   : > { %7499 = vmatmul.mubr.msk.bf16.vlgmr.msra.gmra.mrb[44].mxu0 %vm1084_vm6, %v1869_v59  ;;  %vm2553_vm6 = vcmask 1043456  }
 0xa09   : > { %7534 = vmatprep.mubr.msk.bf16.mxu0 %vm8541_vm0, %v8540_v1 }
 0xad3   : > { %v1806_v32 = vpop.f32.mrb[40].mxu1 }
 0xad4   : > { %v1812_v33 = vadd.f32 %v1806_v32, %v9021_v43  ;;  %v7480_v34 = vpop.f32.mrb[41].mxu1 }
 0xad5   : > { %v1809_v35 = vpop.f32.mrb[42].mxu1 }
 0xad6   : > { %v7481_v36 = vpop.f32.mrb[43].mxu1 }
 0xad7   : > { %v6817_v36 = vld [vmem:[%s10996_s15] ss:$0 sm:$0xff] }
 0xadb   : > { %v1919_v37 = vpop.f32.mrb[44].mxu0 }
 0xadc   : > { %v1925_v38 = vadd.f32 %v1919_v37, %v1812_v33  ;;  %v7500_v24 = vpop.f32.mrb[45].mxu0 }
 0xadd   : > { %v1922_v40 = vpop.f32.mrb[46].mxu0 }
 0xade   : > { %v1933_v41 = vadd.f32 %v6810_v50, %v1925_v38  ;;  %v7501_v51 = vpop.f32.mrb[47].mxu0 }
 0xae0   : > { %v1934_v48 = vadd.f32 %v8467_v42, %v1933_v41 }
 0xae2   : > { %v1937_v56 = vsel %vm740_vm1, %v1934_v48, 0.0 }
 0xae3   : > { %1938 = vadd.xlane.f32.xlu0 %v1937_v56 }
 0xb70   : > { %v1939_v49 = vpop.xlane.xlu0 %1938 }
 0xb71   : > { %v1941_v43 = vmul.f32 0.03125, %v1939_v49 }
 0xb73   : > { %v1942_v12 = vsub.f32 %v1934_v48, %v1941_v43 }
 0xb75   : > { %v1943_v52 = vmul.f32 %v1942_v12, %v1942_v12 }
 0xb77   : > { %v1944_v54 = vsel %vm740_vm1, %v1943_v52, 0.0  ;;  %v8048_v52 = vld [vmem:[%s11085_s29 + $0x18] sm:$0xff]  }
 0xb78   : > { %1945 = vadd.xlane.f32.xlu1 %v1944_v54 }
 0xc05   : > { %v1946_v22 = vpop.xlane.xlu1 %1945 }
 0xc06   : > { %v1947_v45 = vmul.f32 0.03125, %v1946_v22 }
 0xc08   : > { %v1948_v60 = vadd.f32 1e-05, %v1947_v45  ;;  %v6826_v45 = vld [vmem:[%s10997_s16] ss:$0 sm:$0xff] }
 0xc0a   : > { %8119 = vrsqrt.f32 %v1948_v60 }
 0xc14   : > { %v8120_v39 = vpop.eup %8119 }
 0xc15   : > { %v1950_v62 = vmul.f32 %v8120_v39, %v1942_v12  ;;  %v8047_v12 = vld [vmem:[%s11085_s29 + $0x10] sm:$0xff]   ;;  %v6827_v39 = vld [vmem:[%s10998_s17] ss:$0 sm:$0xff] }
 0xc16   : > { %7531 = vmatpush3.bf16.msra.mxu0 %v8047_v12 }
 0xc17   : > { %v1957_v2 = vmul.f32 %v6811_v61, %v1950_v62  ;;  %7532 = vmatprep.subr.bf16.mxu0 %v8540_v1 }
 0xc19   : > { %v1964_v13 = vadd.f32 %v6812_v4, %v1957_v2  ;;  %v8049_v4 = vld [vmem:[%s11086_s5 + $0x10] sm:$0xff]  }
 0xc1a   : > { %7533 = vmatpush3.bf16.msra.mxu0 %v8048_v52 }
 0xc1b   : > { %v1965_v5 = vpack.c.bf16 %v1964_v13, %v1964_v13  ;;  %7538 = vmatprep.subr.bf16.mxu0 %v8540_v1 }
 0xc1d   : > { %7507 = vmatmul.mubr.msk.bf16.vlgmr.msra.gmra.mrb[44].mxu1 %vm740_vm1, %v1965_v5  ;;  %v8051_v5 = vld [vmem:[%s10988_s7 + $0x20] ss:$8 sps:$4 sm:$0xff]  }
 0xc1e   : > { %7511 = vmatpush3.bf16.msra.mxu1 %v8039_v3  ;;  %7526 = vmatprep.mubr.msk.bf16.mxu1 %vm8541_vm0, %v8540_v1  ;;  %v8053_v3 = vld [vmem:[%s10988_s7 + $0x24] ss:$8 sps:$4 sm:$0xff]  }
 0xc1f   : > { %7512 = vmatprep.subr.bf16.mxu1 %v8540_v1 }
 0xc22   : > { %7513 = vmatpush3.bf16.msra.mxu1 %v8040_v6  ;;  %v8056_v6 = vld [vmem:[%s10988_s7 + $0x34] ss:$8 sps:$4 sm:$0xff]  }
 0xc23   : > { %7514 = vmatprep.subr.bf16.mxu1 %v8540_v1 }
 0xc26   : > { %7515 = vmatpush3.bf16.msra.mxu1 %v8041_v23  ;;  %v8054_v23 = vld [vmem:[%s10988_s7 + $0x30] ss:$8 sps:$4 sm:$0xff]  }
 0xc27   : > { %7516 = vmatprep.subr.bf16.mxu1 %v8540_v1 }
 0xc2a   : > { %7517 = vmatpush3.bf16.msra.mxu1 %v8042_v46 }
 0xc2b   : > { %7518 = vmatprep.subr.bf16.mxu1 %v8540_v1 }
 0xc2e   : > { %7519 = vmatpush3.bf16.msra.mxu1 %v8043_v7 }
 0xc2f   : > { %7520 = vmatprep.subr.bf16.mxu1 %v8540_v1 }
 0xc32   : > { %7521 = vmatpush3.bf16.msra.mxu1 %v8044_v8 }
 0xc33   : > { %7522 = vmatprep.subr.bf16.mxu1 %v8540_v1 }
 0xc36   : > { %7523 = vmatpush3.bf16.msra.mxu1 %v8045_v9 }
 0xc37   : > { %7524 = vmatprep.subr.bf16.mxu1 %v8540_v1 }
 0xc3a   : > { %7525 = vmatpush3.bf16.msra.mxu1 %v8046_v10  ;;  %v6842_v10 = vld [vmem:[%s10987_s6 + $0x1] ss:$0 sm:$0xff] }
 0xc3b   : > { %7554 = vmatprep.subr.bf16.mxu1 %v8540_v1 }
 0xcf0   : > { %v2026_v14 = vpop.f32.mrb[44].mxu1 }
 0xcf1   : > { %v2027_v16 = vadd.f32 %v6813_v11, %v2026_v14  ;;  %v7508_v17 = vpop.f32.mrb[45].mxu1 }
 0xcf2   : > { %v2029_v19 = vpop.f32.mrb[46].mxu1 }
 0xcf3   : > { %v2033_v57 = vmul.f32 0.044715, %v2027_v16  ;;  %v7509_v21 = vpop.f32.mrb[47].mxu1  ;;  %v2032_v32 = vmul.f32 0.5, %v2027_v16 }
 0xcf5   : > { %v2034_v25 = vmul.f32 %v2033_v57, %v2027_v16  ;;  %v6850_v57 = vld [vmem:[%s10989_s8 + $0x2] sm:$0x3] }
 0xcf6   : > { %v2332_v21 = vrot.slane %v6850_v57, %v8813_v0 }
 0xcf7   : > { %v2035_v26 = vmul.f32 %v2034_v25, %v2027_v16 }
 0xcf9   : > { %v2036_v30 = vadd.f32 %v2035_v26, %v2027_v16 }
 0xcfb   : > { %v2037_v31 = vmul.f32 0.7978846, %v2036_v30 }
 0xcfd   : > { %8121 = vtanh.f32 %v2037_v31 }
 0xd07   : > { %v8122_v59 = vpop.eup %8121 }
 0xd08   : > { %v2039_v33 = vadd.f32 1.0, %v8122_v59 }
 0xd0a   : > { %v2040_v34 = vmul.f32 %v2039_v33, %v2032_v32 }
 0xd0c   : > { %v2041_v35 = vpack.c.bf16 %v2040_v34, %v2040_v34  ;;  %v6833_v34 = vld [vmem:[%s11089_s4 + $0x1] ss:$0 sm:$0xff] }
 0xd0e   : > { %7527 = vmatmul.mubr.bf16.vlgmr.msra.gmra.mrb[48].mxu1 %v2041_v35 }
 0xd0f   : > { %7558 = vmatprep.mubr.msk.bf16.mxu1 %vm8541_vm0, %v8540_v1 }
 0xde1   : > { %v2147_v37 = vpop.f32.mrb[48].mxu1 }
 0xde2   : > { %v2148_v50 = vadd.f32 %v6817_v36, %v2147_v37  ;;  %v7528_v38 = vpop.f32.mrb[49].mxu1  ;;  %v2328_v36 = vrot.slane %v6850_v57, %v8811_v63 }
 0xde3   : > { %v2150_v24 = vpop.f32.mrb[50].mxu1 }
 0xde4   : > { %v7529_v40 = vpop.f32.mrb[51].mxu1  ;;  %v2153_v41 = vadd.f32 %v2148_v50, %v1964_v13  ;;  %v8050_v13 = vld [vmem:[%s11086_s5 + $0x18] sm:$0xff]  }
 0xde6   : > { %v2156_v51 = vsel %vm740_vm1, %v2153_v41, 0.0 }
 0xde7   : > { %2157 = vadd.xlane.f32.xlu0 %v2156_v51 }
 0xe74   : > { %v2158_v42 = vpop.xlane.xlu0 %2157 }
 0xe75   : > { %v2159_v48 = vmul.f32 0.03125, %v2158_v42 }
 0xe77   : > { %v2160_v56 = vsub.f32 %v2153_v41, %v2159_v48 }
 0xe79   : > { %v2161_v49 = vmul.f32 %v2160_v56, %v2160_v56 }
 0xe7b   : > { %v2162_v43 = vsel %vm740_vm1, %v2161_v49, 0.0 }
 0xe7c   : > { %2163 = vadd.xlane.f32.xlu0 %v2162_v43 }
 0xf09   : > { %v2164_v54 = vpop.xlane.xlu0 %2163 }
 0xf0a   : > { %v2165_v27 = vmul.f32 0.03125, %v2164_v54 }
 0xf0c   : > { %v2166_v55 = vadd.f32 1e-05, %v2165_v27 }
 0xf0e   : > { %8123 = vrsqrt.f32 %v2166_v55 }
 0xf18   : > { %v8124_v22 = vpop.eup %8123 }
 0xf19   : > { %v2168_v60 = vmul.f32 %v8124_v22, %v2160_v56 }
 0xf1b   : > { %v2175_v61 = vmul.f32 %v6826_v45, %v2168_v60 }
 0xf1d   : > { %v9137_v62 = vadd.f32 %v6827_v39, %v2175_v61 }
 0xf1f   : > { %v2183_v2 = vpack.c.bf16 %v9137_v62, %v9137_v62 }
 0xf21   : > { %7535 = vmatmul.mubr.msk.bf16.vlgmr.msra.gmra.mrb[48].mxu0 %vm740_vm1, %v2183_v2 }
 0xf22   : > { %7539 = vmatpush3.bf16.msra.mxu0 %v8049_v4  ;;  %7542 = vmatprep.mubr.msk.bf16.mxu0 %vm8541_vm0, %v8540_v1 }
 0xf23   : > { %7540 = vmatprep.subr.bf16.mxu0 %v8540_v1 }
 0xf26   : > { %7541 = vmatpush3.bf16.msra.mxu0 %v8050_v13 }
 0xf27   : > { %2355 = vmatprep.subr.bf16.mxu0 %v8053_v3 }
 0xf29   : > { %7543 = vmatmul.mubr.msk.bf16.vlgmr.msra.gmra.mrb[52].mxu0 %vm740_vm1, %v2183_v2 }
 0xf2a   : > { %2356 = vmatpush1.bf16.msra.mxu0 %v8051_v5  ;;  %2387 = vmatprep.mubr.bf16.mxu0 %v8542_v44 }
 0xf2b   : > { %2357 = vmatprep.subr.bf16.mxu0 %v8056_v6 }
 0xf2e   : > { %2358 = vmatpush1.bf16.msra.mxu0 %v8054_v23 }
 0xf2f   : > { %7546 = vmatprep.subr.bf16.mxu0 %v8540_v1 }
 0xf31   : > { %6855 = vmatmul.mubr.msk.bf16.vlgmr.msra.gmra.mrb[56].mxu0 %vm740_vm1, %v2183_v2 }
 0xf32   : > { %7550 = vmatprep.mubr.msk.bf16.mxu0 %vm8541_vm0, %v8540_v1 }
 0xff4   : > { %v2246_v46 = vpop.f32.mrb[48].mxu0 }
 0xff5   : > { %v7536_v7 = vpop.f32.mrb[49].mxu0  ;;  %v9186_v37 = vadd.f32 %v6833_v34, %v2246_v46 }
 0xff6   : > { %v2249_v8 = vpop.f32.mrb[50].mxu0 }
 0xff7   : > { %v7537_v9 = vpop.f32.mrb[51].mxu0  ;;  %v2432_v40 = vmul.f32 %v8783_v53, %v9186_v37  ;;  %v2490_v41 = vmul.f32 %v8794_v58, %v9186_v37 }
 0xff8   : > { %v2643_v9 = vmul.f32 %v8862_v15, %v9186_v37 }
 0xff9   : > { %v2433_v48 = vpack.c.bf16 %v2432_v40, %v2432_v40  ;;  %v2491_v56 = vpack.c.bf16 %v2490_v41, %v2490_v41 }
 0xffc   : > { %v2311_v11 = vpop.f32.mrb[52].mxu0 }
 0xffd   : > { %v2312_v14 = vadd.f32 %v6842_v10, %v2311_v11  ;;  %v7544_v16 = vpop.f32.mrb[53].mxu0  ;;  %v2644_v10 = vpack.c.bf16 %v2643_v9, %v2643_v9  ;;  %v2749_v11 = vmul.f32 %v8876_v18, %v9186_v37 }
 0xffe   : > { %v2314_v17 = vpop.f32.mrb[54].mxu0  ;;  %v2855_v16 = vmul.f32 %v8928_v20, %v9186_v37 }
 0xfff   : > { %2398 = vxpose.xlu1.b32.start.end [1/1] (short) (narrow) %v2312_v14, 32  ;;  %v7545_v19 = vpop.f32.mrb[55].mxu0  ;;  %v2750_v14 = vpack.c.bf16 %v2749_v11, %v2749_v11 }
0x1000   : > { %v2856_v17 = vpack.c.bf16 %v2855_v16, %v2855_v16  ;;  %v2959_v19 = vmul.f32 %v8942_v29, %v9186_v37 }
0x1002   : > { %v2960_v57 = vpack.c.bf16 %v2959_v19, %v2959_v19 }
0x1004   : > { %v2389_v25 = vpop.f32.mrb[56].mxu0 }
0x1005   : > { %v2391_v26 = vpop.f32.mrb[57].mxu0  ;;  %v2390_v38 = vadd.f32 %v2389_v25, %v2328_v36 }
0x1006   : > { %v9176_v30 = vadd.f32 %v2391_v26, %v2332_v21  ;;  %v2393_v31 = vpop.f32.mrb[58].mxu0  ;;  %v3066_v21 = vmul.f32 %v8987_v28, %v9186_v37  ;;  %v3172_v26 = vmul.f32 %v9003_v47, %v9186_v37 }
0x1007   : > { %v2394_v59 = vpop.f32.mrb[59].mxu0  ;;  %v9196_v42 = vpack.c.bf16 %v2390_v38, %v2390_v38 }
0x1008   : > { %v3067_v25 = vpack.c.bf16 %v3066_v21, %v3066_v21  ;;  %v3173_v31 = vpack.c.bf16 %v3172_v26, %v3172_v26 }
0x1009   : > { %v2601_v49 = vsel %vm2553_vm6, %v9196_v42, 0 }
0x107f   : > { %v2414_v32 = vpop.trf.xlu1 }
0x1083   : > { %v2415_v33 = vpop.trf.xlu1 }
0x1084   : > { %v9181_v35 = vpack.c.bf16 %v2415_v33, %v2414_v32 }
0x1086   : > { %7547 = vmatpush3.bf16.msra.mxu0 %v9181_v35  ;;  %7555 = vmatpush3.bf16.msra.mxu1 %v9181_v35 }
0x1087   : > { %v2416_v50 = vpop.trf.xlu1  ;;  %7548 = vmatprep.subr.bf16.mxu0 %v8540_v1  ;;  %7556 = vmatprep.subr.bf16.mxu1 %v8540_v1 }
0x108b   : > { %v2417_v24 = vpop.trf.xlu1 }
0x108c   : > { %v9194_v51 = vpack.c.bf16 %v2417_v24, %v2416_v50 }
0x108e   : > { %7549 = vmatpush3.bf16.msra.mxu0 %v9194_v51  ;;  %7557 = vmatpush3.bf16.msra.mxu1 %v9194_v51 }
0x108f   : > { %7568 = vmatprep.subr.bf16.mxu1 %v8540_v1  ;;  %7562 = vmatprep.subr.bf16.mxu0 %v8540_v1 }
0x1091   : > { %7551 = vmatmul.mubr.msk.bf16.vlgmr.msra.gmra.mrb[60].mxu0 %vm740_vm1, %v2433_v48  ;;  %7559 = vmatmul.mubr.msk.bf16.vlgmr.msra.gmra.mrb[52].mxu1 %vm740_vm1, %v2491_v56 }
0x1092   : > { %7569 = vmatpush3.bf16.msra.mxu1 %v2601_v49  ;;  %7564 = vmatprep.mubr.msk.bf16.mxu0 %vm8541_vm0, %v8540_v1 }
0x1093   : > { %7570 = vmatprep.mubr.msk.bf16.mxu1 %vm8541_vm0, %v8540_v1  ;;  %7582 = vmatprep.subr.bf16.mxu1 %v8540_v1 }
0x1164   : > { %v9211_v43 = vpop.f32.mrb[60].mxu0  ;;  %v2529_v12 = vpop.f32.mrb[52].mxu1 }
0x1165   : > { %v7552_v52 = vpop.f32.mrb[61].mxu0  ;;  %v7560_v54 = vpop.f32.mrb[53].mxu1  ;;  %v2535_v27 = vsel %vm2477_vm12, %v2529_v12, -inf  ;;  %v2478_v3 = vsel %vm2477_vm12, %v9211_v43, -inf }
0x1166   : > { %2536 = vmax.xlane.f32.xlu0 %v2535_v27  ;;  %v2474_v55 = vpop.f32.mrb[62].mxu0  ;;  %v2532_v22 = vpop.f32.mrb[54].mxu1 }
0x1167   : > { %v7553_v45 = vpop.f32.mrb[63].mxu0  ;;  %v7561_v60 = vpop.f32.mrb[55].mxu1 }
0x11f3   : > { %v2537_v39 = vpop.xlane.xlu0 %2536 }
0x11f4   : > { %v2538_v61 = vsub.f32 %v2529_v12, %v2537_v39 }
0x11f6   : > { %v2539_v4 = vmul.f32 1.442695, %v2538_v61 }
0x11f8   : > { %8125 = vpow2.f32 %v2539_v4 }
0x1202   : > { %v8126_v2 = vpop.eup %8125 }
0x1203   : > { %v2541_v13 = vsel %vm2477_vm12, %v8126_v2, 0.0 }
0x1204   : > { %2542 = vadd.xlane.f32.xlu0 %v2541_v13 }
0x121a   : > { %2548 = vrot.lane.b32.xlu0 %v9196_v42, %s8543_s22 }
0x1239   : > { %2479 = vmax.xlane.f32.xlu0 %v2478_v3 }
0x1291   : > { %v2543_v5 = vpop.xlane.xlu0 %2542 }
0x1292   : > { %8127 = vrcp.f32 %v2543_v5 }
0x1295   : > { %v2549_v6 = vpop.permute.xlu0 %2548 }
0x1296   : > { %v2555_v23 = vsel %vm2553_vm6, %v2549_v6, 0 }
0x1297   : > { %7563 = vmatpush3.bf16.msra.mxu0 %v2555_v23 }
0x1298   : > { %7574 = vmatprep.subr.bf16.mxu0 %v8540_v1 }
0x129c   : > { %v8128_v46 = vpop.eup %8127 }
0x129d   : > { %v2545_v7 = vmul.f32 %v8128_v46, %v8126_v2 }
0x129f   : > { %v2546_v8 = vpack.c.bf16 %v2545_v7, %v2545_v7 }
0x12a1   : > { %7565 = vmatmul.mubr.msk.bf16.vlgmr.msra.gmra.mrb[64].mxu0 %vm2477_vm12, %v2546_v8 }
0x12a2   : > { %7575 = vmatpush3.bf16.msra.mxu0 %v9181_v35  ;;  %7578 = vmatprep.mubr.msk.bf16.mxu0 %vm8541_vm0, %v8540_v1 }
0x12a3   : > { %7576 = vmatprep.subr.bf16.mxu0 %v8540_v1 }
0x12a6   : > { %7577 = vmatpush3.bf16.msra.mxu0 %v9194_v51 }
0x12a7   : > { %7588 = vmatprep.subr.bf16.mxu0 %v8540_v1 }
0x12a9   : > { %7579 = vmatmul.mubr.msk.bf16.vlgmr.msra.gmra.mrb[68].mxu0 %vm740_vm1, %v2644_v10 }
0x12aa   : > { %7589 = vmatpush3.bf16.msra.mxu0 %v9181_v35  ;;  %7592 = vmatprep.mubr.msk.bf16.mxu0 %vm8541_vm0, %v8540_v1 }
0x12ab   : > { %7590 = vmatprep.subr.bf16.mxu0 %v8540_v1 }
0x12ae   : > { %7591 = vmatpush3.bf16.msra.mxu0 %v9194_v51 }
0x12af   : > { %7602 = vmatprep.subr.bf16.mxu0 %v8540_v1 }
0x12b1   : > { %7593 = vmatmul.mubr.msk.bf16.vlgmr.msra.gmra.mrb[72].mxu0 %vm740_vm1, %v2750_v14 }
0x12b2   : > { %7603 = vmatpush3.bf16.msra.mxu0 %v9181_v35  ;;  %7606 = vmatprep.mubr.msk.bf16.mxu0 %vm8541_vm0, %v8540_v1 }
0x12b3   : > { %7604 = vmatprep.subr.bf16.mxu0 %v8540_v1 }
0x12b6   : > { %7605 = vmatpush3.bf16.msra.mxu0 %v9194_v51 }
0x12b7   : > { %7616 = vmatprep.subr.bf16.mxu0 %v8540_v1 }
0x12b9   : > { %7607 = vmatmul.mubr.msk.bf16.vlgmr.msra.gmra.mrb[76].mxu0 %vm740_vm1, %v2856_v17 }
0x12ba   : > { %7617 = vmatpush3.bf16.msra.mxu0 %v9181_v35  ;;  %7620 = vmatprep.mubr.msk.bf16.mxu0 %vm8541_vm0, %v8540_v1 }
0x12bb   : > { %7618 = vmatprep.subr.bf16.mxu0 %v8540_v1 }
0x12be   : > { %7619 = vmatpush3.bf16.msra.mxu0 %v9194_v51 }
0x12bf   : > { %7630 = vmatprep.subr.bf16.mxu0 %v8540_v1 }
0x12c1   : > { %7621 = vmatmul.mubr.msk.bf16.vlgmr.msra.gmra.mrb[80].mxu0 %vm740_vm1, %v2960_v57 }
0x12c2   : > { %7631 = vmatpush3.bf16.msra.mxu0 %v9181_v35  ;;  %7634 = vmatprep.mubr.msk.bf16.mxu0 %vm8541_vm0, %v8540_v1 }
0x12c3   : > { %7632 = vmatprep.subr.bf16.mxu0 %v8540_v1 }
0x12c6   : > { %7633 = vmatpush3.bf16.msra.mxu0 %v9194_v51  ;;  %v2480_v56 = vpop.xlane.xlu0 %2479 }
0x12c7   : > { %7644 = vmatprep.subr.bf16.mxu0 %v8540_v1  ;;  %v2481_v49 = vsub.f32 %v9211_v43, %v2480_v56 }
0x12c9   : > { %7635 = vmatmul.mubr.msk.bf16.vlgmr.msra.gmra.mrb[84].mxu0 %vm740_vm1, %v3067_v25  ;;  %v2482_v22 = vmul.f32 1.442695, %v2481_v49 }
0x12ca   : > { %7645 = vmatpush3.bf16.msra.mxu0 %v9181_v35  ;;  %7648 = vmatprep.mubr.msk.bf16.mxu0 %vm8541_vm0, %v8540_v1 }
0x12cb   : > { %7646 = vmatprep.subr.bf16.mxu0 %v8540_v1  ;;  %8129 = vpow2.f32 %v2482_v22 }
0x12ce   : > { %7647 = vmatpush3.bf16.msra.mxu0 %v9194_v51 }
0x12cf   : > { %7658 = vmatprep.subr.bf16.mxu0 %v8540_v1 }
0x12d1   : > { %7649 = vmatmul.mubr.msk.bf16.vlgmr.msra.gmra.mrb[88].mxu0 %vm740_vm1, %v3173_v31 }
0x12d2   : > { %7662 = vmatprep.mubr.msk.bf16.mxu0 %vm8541_vm0, %v8540_v1 }
0x12d5   : > { %v8130_v3 = vpop.eup %8129 }
0x12d6   : > { %v2484_v23 = vsel %vm2477_vm12, %v8130_v3, 0.0 }
0x1374   : > { %v9278_v59 = vpop.f32.mrb[64].mxu0 }
0x1375   : > { %v7566_v32 = vpop.f32.mrb[65].mxu0 }
0x1376   : > { %v2594_v33 = vpop.f32.mrb[66].mxu0 }
0x1377   : > { %v7567_v34 = vpop.f32.mrb[67].mxu0 }
0x137c   : > { %v2682_v35 = vpop.f32.mrb[68].mxu0 }
0x137d   : > { %v7580_v36 = vpop.f32.mrb[69].mxu0  ;;  %v2688_v50 = vsel %vm2477_vm12, %v2682_v35, -inf }
0x137e   : > { %2689 = vmax.xlane.f32.xlu1 %v2688_v50  ;;  %v2685_v37 = vpop.f32.mrb[70].mxu0 }
0x137f   : > { %v7581_v38 = vpop.f32.mrb[71].mxu0 }
0x1384   : > { %v2788_v24 = vpop.f32.mrb[72].mxu0 }
0x1385   : > { %v7594_v40 = vpop.f32.mrb[73].mxu0  ;;  %v2794_v41 = vsel %vm2477_vm12, %v2788_v24, -inf }
0x1386   : > { %2795 = vmax.xlane.f32.xlu0 %v2794_v41  ;;  %v2791_v51 = vpop.f32.mrb[74].mxu0 }
0x1387   : > { %v7595_v48 = vpop.f32.mrb[75].mxu0 }
0x138c   : > { %v2894_v12 = vpop.f32.mrb[76].mxu0 }
0x138d   : > { %v7608_v52 = vpop.f32.mrb[77].mxu0  ;;  %v2900_v54 = vsel %vm2477_vm12, %v2894_v12, -inf }
0x138e   : > { %2901 = vmax.xlane.f32.xlu0 %v2900_v54  ;;  %v2897_v27 = vpop.f32.mrb[78].mxu0 }
0x138f   : > { %2700 = vrot.lane.b32.xlu1 %v9196_v42, %s11010_s23  ;;  %v7609_v55 = vpop.f32.mrb[79].mxu0 }
0x1394   : > { %v2998_v45 = vpop.f32.mrb[80].mxu0 }
0x1395   : > { %v7622_v60 = vpop.f32.mrb[81].mxu0  ;;  %v3004_v39 = vsel %vm2477_vm12, %v2998_v45, -inf }
0x1396   : > { %3005 = vmax.xlane.f32.xlu0 %v3004_v39  ;;  %v3001_v61 = vpop.f32.mrb[82].mxu0 }
0x1397   : > { %v7623_v4 = vpop.f32.mrb[83].mxu0 }
0x1398   : > { %v2397_v4 = vpack.c.bf16 %v9176_v30, %v9176_v30 }
0x139c   : > { %v3105_v43 = vpop.f32.mrb[84].mxu0 }
0x139d   : > { %v7636_v2 = vpop.f32.mrb[85].mxu0  ;;  %v3111_v13 = vsel %vm2477_vm12, %v3105_v43, -inf }
0x139e   : > { %3112 = vmax.xlane.f32.xlu0 %v3111_v13  ;;  %v3108_v5 = vpop.f32.mrb[86].mxu0 }
0x139f   : > { %v7637_v6 = vpop.f32.mrb[87].mxu0 }
0x13a2   : > { %2485 = vadd.xlane.f32.xlu0 %v2484_v23 }
0x13a4   : > { %v3211_v46 = vpop.f32.mrb[88].mxu0 }
0x13a5   : > { %v7650_v7 = vpop.f32.mrb[89].mxu0  ;;  %v3217_v8 = vsel %vm2477_vm12, %v3211_v46, -inf }
0x13a6   : > { %v3214_v9 = vpop.f32.mrb[90].mxu0  ;;  %3218 = vmax.xlane.f32.xlu0 %v3217_v8 }
0x13a7   : > { %v7651_v10 = vpop.f32.mrb[91].mxu0 }
0x140b   : > { %v2690_v11 = vpop.xlane.xlu1 %2689 }
0x140c   : > { %v2691_v14 = vsub.f32 %v2682_v35, %v2690_v11 }
0x140e   : > { %v2692_v16 = vmul.f32 1.442695, %v2691_v14  ;;  %v2916_v14 = vsel %vm2553_vm6, %v2397_v4, 0 }
0x140f   : > { %v2701_v37 = vpop.permute.xlu1 %2700 }
0x1410   : > { %8131 = vpow2.f32 %v2692_v16  ;;  %v2706_v51 = vsel %vm2553_vm6, %v2701_v37, 0 }
0x1413   : > { %v2796_v57 = vpop.xlane.xlu0 %2795 }
0x1414   : > { %v2797_v36 = vsub.f32 %v2788_v24, %v2796_v57 }
0x1416   : > { %v2798_v40 = vmul.f32 1.442695, %v2797_v36 }
0x141a   : > { %v8132_v17 = vpop.eup %8131 }
0x141b   : > { %v2694_v19 = vsel %vm2477_vm12, %v8132_v17, 0.0  ;;  %v2902_v21 = vpop.xlane.xlu0 %2901 }
0x141c   : > { %2695 = vadd.xlane.f32.xlu0 %v2694_v19  ;;  %v2903_v41 = vsub.f32 %v2894_v12, %v2902_v21 }
0x141e   : > { %v2904_v48 = vmul.f32 1.442695, %v2903_v41 }
0x1423   : > { %v3006_v25 = vpop.xlane.xlu0 %3005 }
0x1424   : > { %v3007_v24 = vsub.f32 %v2998_v45, %v3006_v25 }
0x1426   : > { %v3008_v49 = vmul.f32 1.442695, %v3007_v24 }
0x142b   : > { %v3113_v26 = vpop.xlane.xlu0 %3112 }
0x142c   : > { %v3114_v12 = vsub.f32 %v3105_v43, %v3113_v26 }
0x142e   : > { %v3115_v52 = vmul.f32 1.442695, %v3114_v12 }
0x142f   : > { %v2486_v31 = vpop.xlane.xlu0 %2485 }
0x1430   : > { %8133 = vrcp.f32 %v2486_v31 }
0x1432   : > { %2806 = vrot.lane.b32.xlu0 %v9196_v42, %s11090_s0 }
0x1433   : > { %v3219_v32 = vpop.xlane.xlu0 %3218 }
0x1434   : > { %v3220_v33 = vsub.f32 %v3211_v46, %v3219_v32 }
0x1436   : > { %v3221_v34 = vmul.f32 1.442695, %v3220_v33 }
0x1438   : > { %8135 = vpow2.f32 %v3221_v34 }
0x1439   : > { %8137 = vpow2.f32 %v2798_v40 }
0x143a   : > { %v8134_v35 = vpop.eup %8133  ;;  %8139 = vpow2.f32 %v2904_v48 }
0x143b   : > { %v2488_v50 = vmul.f32 %v8134_v35, %v8130_v3  ;;  %8141 = vpow2.f32 %v3008_v49 }
0x143c   : > { %8143 = vpow2.f32 %v3115_v52 }
0x143d   : > { %v2489_v38 = vpack.c.bf16 %v2488_v50, %v2488_v50 }
0x143f   : > { %7571 = vmatmul.mubr.msk.bf16.vlgmr.msra.gmra.mrb[56].mxu1 %vm2477_vm12, %v2489_v38 }
0x1440   : > { %7583 = vmatpush3.bf16.msra.mxu1 %v2706_v51  ;;  %7584 = vmatprep.mubr.msk.bf16.mxu1 %vm8541_vm0, %v8540_v1 }
0x1441   : > { %7596 = vmatprep.subr.bf16.mxu1 %v8540_v1 }
0x1442   : > { %v9297_v42 = vpop.eup %8135 }
0x1443   : > { %v3223_v56 = vsel %vm2477_vm12, %v9297_v42, 0.0  ;;  %v8138_v54 = vpop.eup %8137 }
0x1444   : > { %3224 = vadd.xlane.f32.xlu1 %v3223_v56  ;;  %v2800_v27 = vsel %vm2477_vm12, %v8138_v54, 0.0  ;;  %v8140_v55 = vpop.eup %8139 }
0x1445   : > { %v2906_v22 = vsel %vm2477_vm12, %v8140_v55, 0.0  ;;  %v8142_v60 = vpop.eup %8141 }
0x1446   : > { %v3010_v45 = vsel %vm2477_vm12, %v8142_v60, 0.0  ;;  %v8144_v39 = vpop.eup %8143 }
0x1447   : > { %v3117_v61 = vsel %vm2477_vm12, %v8144_v39, 0.0 }
0x1451   : > { %2801 = vadd.xlane.f32.xlu0 %v2800_v27 }
0x1455   : > { %2907 = vadd.xlane.f32.xlu0 %v2906_v22 }
0x1459   : > { %3011 = vadd.xlane.f32.xlu0 %v3010_v45 }
0x145d   : > { %3118 = vadd.xlane.f32.xlu0 %v3117_v61 }
0x1473   : > { %3017 = vrot.lane.b32.xlu0 %v2397_v4, %s8543_s22 }
0x1477   : > { %3123 = vrot.lane.b32.xlu0 %v2397_v4, %s11010_s23 }
0x147b   : > { %3229 = vrot.lane.b32.xlu0 %v2397_v4, %s11090_s0 }
0x14a9   : > { %v2696_v43 = vpop.xlane.xlu0 %2695 }
0x14aa   : > { %8145 = vrcp.f32 %v2696_v43 }
0x14ad   : > { %v2807_v3 = vpop.permute.xlu0 %2806 }
0x14ae   : > { %v2812_v6 = vsel %vm2553_vm6, %v2807_v3, 0 }
0x14b4   : > { %v8146_v2 = vpop.eup %8145 }
0x14b5   : > { %v2698_v13 = vmul.f32 %v8146_v2, %v8132_v17 }
0x14b7   : > { %v2699_v5 = vpack.c.bf16 %v2698_v13, %v2698_v13 }
0x14b9   : > { %7585 = vmatmul.mubr.msk.bf16.vlgmr.msra.gmra.mrb[60].mxu1 %vm2477_vm12, %v2699_v5 }
0x14ba   : > { %7597 = vmatpush3.bf16.msra.mxu1 %v2812_v6  ;;  %7598 = vmatprep.mubr.msk.bf16.mxu1 %vm8541_vm0, %v8540_v1 }
0x14bb   : > { %7610 = vmatprep.subr.bf16.mxu1 %v8540_v1 }
0x14d1   : > { %v3225_v25 = vpop.xlane.xlu1 %3224 }
0x14de   : > { %v2802_v30 = vpop.xlane.xlu0 %2801 }
0x14df   : > { %8147 = vrcp.f32 %v2802_v30 }
0x14e2   : > { %v2908_v23 = vpop.xlane.xlu0 %2907 }
0x14e3   : > { %8149 = vrcp.f32 %v2908_v23 }
0x14e6   : > { %v3012_v46 = vpop.xlane.xlu0 %3011 }
0x14e7   : > { %8151 = vrcp.f32 %v3012_v46 }
0x14e9   : > { %v8148_v7 = vpop.eup %8147 }
0x14ea   : > { %v2804_v8 = vmul.f32 %v8148_v7, %v8138_v54  ;;  %v3119_v11 = vpop.xlane.xlu0 %3118 }
0x14eb   : > { %8153 = vrcp.f32 %v3119_v11  ;;  %v6873_v11 = vld [vmem:[%s10990_s9 + $0x1] ss:$0 sm:$0xff] }
0x14ec   : > { %v2805_v9 = vpack.c.bf16 %v2804_v8, %v2804_v8  ;;  %8155 = vrcp.f32 %v3225_v25 }
0x14ed   : > { %v8150_v10 = vpop.eup %8149 }
0x14ee   : > { %7599 = vmatmul.mubr.msk.bf16.vlgmr.msra.gmra.mrb[64].mxu1 %vm2477_vm12, %v2805_v9  ;;  %v2910_v16 = vmul.f32 %v8150_v10, %v8140_v55  ;;  %v3018_v17 = vpop.permute.xlu0 %3017 }
0x14ef   : > { %7611 = vmatpush3.bf16.msra.mxu1 %v2916_v14  ;;  %7612 = vmatprep.mubr.msk.bf16.mxu1 %vm8541_vm0, %v8540_v1  ;;  %v3023_v21 = vsel %vm2553_vm6, %v3018_v17, 0 }
0x14f0   : > { %7624 = vmatprep.subr.bf16.mxu1 %v8540_v1  ;;  %v2911_v19 = vpack.c.bf16 %v2910_v16, %v2910_v16 }
0x14f1   : > { %v8152_v57 = vpop.eup %8151 }
0x14f2   : > { %v3014_v26 = vmul.f32 %v8152_v57, %v8142_v60  ;;  %v3124_v31 = vpop.permute.xlu0 %3123 }
0x14f3   : > { %v3129_v34 = vsel %vm2553_vm6, %v3124_v31, 0 }
0x14f4   : > { %v3015_v32 = vpack.c.bf16 %v3014_v26, %v3014_v26 }
0x14f5   : > { %v8154_v33 = vpop.eup %8153 }
0x14f6   : > { %7613 = vmatmul.mubr.msk.bf16.vlgmr.msra.gmra.mrb[68].mxu1 %vm2477_vm12, %v2911_v19  ;;  %v3121_v35 = vmul.f32 %v8154_v33, %v8144_v39  ;;  %v3230_v36 = vpop.permute.xlu0 %3229  ;;  %v8156_v37 = vpop.eup %8155 }
0x14f7   : > { %7625 = vmatpush3.bf16.msra.mxu1 %v3023_v21  ;;  %7626 = vmatprep.mubr.msk.bf16.mxu1 %vm8541_vm0, %v8540_v1  ;;  %v3235_v38 = vsel %vm2553_vm6, %v3230_v36, 0  ;;  %v3227_v40 = vmul.f32 %v8156_v37, %v9297_v42  ;;  %v8058_v36 = vld [vmem:[%s10993_s12 + $0x18] sm:$0xff]  }
0x14f8   : > { %7638 = vmatprep.subr.bf16.mxu1 %v8540_v1  ;;  %v3122_v50 = vpack.c.bf16 %v3121_v35, %v3121_v35  ;;  %v8057_v35 = vld [vmem:[%s10993_s12 + $0x10] sm:$0xff]  }
0x14f9   : > { %v3228_v41 = vpack.c.bf16 %v3227_v40, %v3227_v40  ;;  %7659 = vmatpush3.bf16.msra.mxu0 %v8057_v35  ;;  %v709_v35 = vld [vmem:[%s648_s26 + $0x8] sm:$0xff] }
0x14fa   : > { %7660 = vmatprep.subr.bf16.mxu0 %v8540_v1 }
0x14fd   : > { %7661 = vmatpush3.bf16.msra.mxu0 %v8058_v36  ;;  %v8468_v36 = vld [vmem:[%s8727_s2] sm:$0xff] }
0x14fe   : > { %7627 = vmatmul.mubr.msk.bf16.vlgmr.msra.gmra.mrb[72].mxu1 %vm2477_vm12, %v3015_v32 }
0x14ff   : > { %7639 = vmatpush3.bf16.msra.mxu1 %v3129_v34  ;;  %7640 = vmatprep.mubr.msk.bf16.mxu1 %vm8541_vm0, %v8540_v1 }
0x1500   : > { %7652 = vmatprep.subr.bf16.mxu1 %v8540_v1 }
0x1506   : > { %7641 = vmatmul.mubr.msk.bf16.vlgmr.msra.gmra.mrb[76].mxu1 %vm2477_vm12, %v3122_v50 }
0x1507   : > { %7653 = vmatpush3.bf16.msra.mxu1 %v3235_v38  ;;  %7654 = vmatprep.mubr.msk.bf16.mxu1 %vm8541_vm0, %v8540_v1 }
0x1508   : > { %7666 = vmatprep.subr.bf16.mxu1 %v8540_v1 }
0x150e   : > { %7655 = vmatmul.mubr.msk.bf16.vlgmr.msra.gmra.mrb[80].mxu1 %vm2477_vm12, %v3228_v41  ;;  %v6876_v41 = vld [vmem:[%s10991_s10 + $0x1] ss:$0 sm:$0xff] }
0x150f   : > { %7682 = vmatprep.mubr.msk.bf16.mxu1 %vm8541_vm0, %v8540_v1 }
0x1512   : > { %v2637_v51 = vpop.f32.mrb[56].mxu1 }
0x1513   : > { %v2638_v48 = vadd.f32 %v2637_v51, %v9278_v59  ;;  %v7572_v24 = vpop.f32.mrb[57].mxu1 }
0x1514   : > { %v2640_v56 = vpop.f32.mrb[58].mxu1 }
0x1515   : > { %v7573_v49 = vpop.f32.mrb[59].mxu1 }
0x158c   : > { %v2742_v12 = vpop.f32.mrb[60].mxu1 }
0x158d   : > { %v2748_v52 = vadd.f32 %v2742_v12, %v2638_v48  ;;  %v7586_v54 = vpop.f32.mrb[61].mxu1  ;;  %v6877_v48 = vld [vmem:[%s10992_s11 + $0x1] ss:$0 sm:$0xff]  ;;  %v8060_v12 = vld [vmem:[%s10995_s14 + $0x48] sm:$0xff]  }
0x158e   : > { %v2745_v27 = vpop.f32.mrb[62].mxu1  ;;  %v8062_v54 = vld [vmem:[%s10995_s14 + $0x58] sm:$0xff]  }
0x158f   : > { %v7587_v55 = vpop.f32.mrb[63].mxu1  ;;  %v8063_v27 = vld [vmem:[%s10995_s14 + $0x60] sm:$0xff]  }
0x1590   : > { %v8064_v55 = vld [vmem:[%s10995_s14 + $0x68] sm:$0xff]  }
0x15c1   : > { %v2848_v42 = vpop.f32.mrb[64].mxu1 }
0x15c2   : > { %v2854_v22 = vadd.f32 %v2848_v42, %v2748_v52  ;;  %v7600_v60 = vpop.f32.mrb[65].mxu1  ;;  %v8061_v52 = vld [vmem:[%s10995_s14 + $0x50] sm:$0xff]  }
0x15c3   : > { %v2851_v45 = vpop.f32.mrb[66].mxu1  ;;  %v8065_v42 = vld [vmem:[%s10995_s14 + $0x70] sm:$0xff]   ;;  %v6883_v60 = vld [vmem:[%s10994_s13 + $0x1] ss:$0 sm:$0xff] }
0x15c4   : > { %v7601_v39 = vpop.f32.mrb[67].mxu1 }
0x15c9   : > { %v2952_v61 = vpop.f32.mrb[68].mxu1 }
0x15ca   : > { %v2958_v4 = vadd.f32 %v2952_v61, %v2854_v22  ;;  %v7614_v43 = vpop.f32.mrb[69].mxu1  ;;  %v8066_v22 = vld [vmem:[%s10995_s14 + $0x78] sm:$0xff]  }
0x15cb   : > { %v2955_v2 = vpop.f32.mrb[70].mxu1 }
0x15cc   : > { %v7615_v13 = vpop.f32.mrb[71].mxu1 }
0x15d1   : > { %v3059_v3 = vpop.f32.mrb[72].mxu1 }
0x15d2   : > { %v3065_v59 = vadd.f32 %v3059_v3, %v2958_v4  ;;  %v7628_v5 = vpop.f32.mrb[73].mxu1 }
0x15d3   : > { %v3062_v6 = vpop.f32.mrb[74].mxu1 }
0x15d4   : > { %v7629_v30 = vpop.f32.mrb[75].mxu1 }
0x15d9   : > { %v3165_v23 = vpop.f32.mrb[76].mxu1 }
0x15da   : > { %v3171_v46 = vadd.f32 %v3165_v23, %v3065_v59  ;;  %v7642_v7 = vpop.f32.mrb[77].mxu1 }
0x15db   : > { %v3168_v8 = vpop.f32.mrb[78].mxu1 }
0x15dc   : > { %v7643_v9 = vpop.f32.mrb[79].mxu1  ;;  %v6904_v8 = vld [vmem:[%s10996_s15 + $0x1] ss:$0 sm:$0xff] }
0x15e1   : > { %v3271_v10 = vpop.f32.mrb[80].mxu1 }
0x15e2   : > { %v3277_v14 = vadd.f32 %v3271_v10, %v3171_v46  ;;  %v7656_v16 = vpop.f32.mrb[81].mxu1 }
0x15e3   : > { %v3274_v17 = vpop.f32.mrb[82].mxu1 }
0x15e4   : > { %v3286_v19 = vadd.f32 %v6873_v11, %v3277_v14  ;;  %v7657_v57 = vpop.f32.mrb[83].mxu1 }
0x15e5   : > { %v8067_v57 = vld [vmem:[%s11085_s29 + $0x20] sm:$0xff]  }
0x15e6   : > { %v3287_v21 = vadd.f32 %v3286_v19, %v9137_v62  ;;  %v8059_v62 = vld [vmem:[%s10995_s14 + $0x40] sm:$0xff]   ;;  %7686 = vmatprep.subr.bf16.mxu0 %v8067_v57 }
0x15e7   : > { %7667 = vmatpush3.bf16.msra.mxu1 %v8059_v62 }
0x15e8   : > { %v3292_v25 = vsel %vm740_vm1, %v3287_v21, 0.0  ;;  %7668 = vmatprep.subr.bf16.mxu1 %v8540_v1 }
0x15e9   : > { %3293 = vadd.xlane.f32.xlu0 %v3292_v25 }
0x15eb   : > { %7669 = vmatpush3.bf16.msra.mxu1 %v8060_v12  ;;  %v712_v12 = vld [vmem:[%s648_s26 + $0x20] sm:$0xff] }
0x15ec   : > { %7670 = vmatprep.subr.bf16.mxu1 %v8540_v1 }
0x15ef   : > { %7671 = vmatpush3.bf16.msra.mxu1 %v8061_v52  ;;  %v713_v52 = vld [vmem:[%s648_s26 + $0x28] sm:$0xff] }
0x15f0   : > { %7672 = vmatprep.subr.bf16.mxu1 %v8540_v1 }
0x15f3   : > { %7673 = vmatpush3.bf16.msra.mxu1 %v8062_v54  ;;  %v8472_v54 = vld [vmem:[%s8727_s2 + $0x20] sm:$0xff] }
0x15f4   : > { %7674 = vmatprep.subr.bf16.mxu1 %v8540_v1 }
0x15f7   : > { %7675 = vmatpush3.bf16.msra.mxu1 %v8063_v27  ;;  %v9430_v27 = vadd.f32 %v8472_v54, %v712_v12 }
0x15f8   : > { %7676 = vmatprep.subr.bf16.mxu1 %v8540_v1 }
0x15f9   : > { %11096 = vst [vmem:[#allocation15_spill] sm:$0xff] %v9430_v27 }
0x15fb   : > { %7677 = vmatpush3.bf16.msra.mxu1 %v8064_v55  ;;  %v8473_v55 = vld [vmem:[%s8727_s2 + $0x28] sm:$0xff] }
0x15fc   : > { %7678 = vmatprep.subr.bf16.mxu1 %v8540_v1 }
0x15ff   : > { %7679 = vmatpush3.bf16.msra.mxu1 %v8065_v42  ;;  %v9433_v42 = vadd.f32 %v8473_v55, %v713_v52 }
0x1600   : > { %7680 = vmatprep.subr.bf16.mxu1 %v8540_v1 }
0x1601   : > { %11097 = vst [vmem:[#allocation16_spill] sm:$0xff] %v9433_v42 }
0x1603   : > { %7681 = vmatpush3.bf16.msra.mxu1 %v8066_v22  ;;  %v714_v22 = vld [vmem:[%s648_s26 + $0x30] sm:$0xff] }
0x1676   : > { %v3294_v26 = vpop.xlane.xlu0 %3293 }
0x1677   : > { %v3295_v31 = vmul.f32 0.03125, %v3294_v26 }
0x1679   : > { %v3296_v32 = vsub.f32 %v3287_v21, %v3295_v31 }
0x167b   : > { %v3297_v33 = vmul.f32 %v3296_v32, %v3296_v32 }
0x167d   : > { %v3298_v34 = vsel %vm740_vm1, %v3297_v33, 0.0  ;;  %v8068_v33 = vld [vmem:[%s11085_s29 + $0x28] sm:$0xff]  }
0x167e   : > { %3299 = vadd.xlane.f32.xlu1 %v3298_v34  ;;  %v708_v34 = vld [vmem:[%s648_s26] sm:$0xff] }
0x167f   : > { %v9411_v62 = vadd.f32 %v8468_v36, %v708_v34 }
0x1681   : > { %11092 = vst [vmem:[#allocation11_spill] sm:$0xff] %v9411_v62 }
0x170b   : > { %v3300_v50 = vpop.xlane.xlu1 %3299 }
0x170c   : > { %v3301_v37 = vmul.f32 0.03125, %v3300_v50  ;;  %v8469_v50 = vld [vmem:[%s8727_s2 + $0x8] sm:$0xff] }
0x170e   : > { %v3302_v38 = vadd.f32 1e-05, %v3301_v37  ;;  %v9414_v37 = vadd.f32 %v8469_v50, %v709_v35 }
0x1710   : > { %8157 = vrsqrt.f32 %v3302_v38  ;;  %11093 = vst [vmem:[#allocation12_spill] sm:$0xff] %v9414_v37  ;;  %v710_v38 = vld [vmem:[%s648_s26 + $0x10] sm:$0xff] }
0x171a   : > { %v8158_v40 = vpop.eup %8157 }
0x171b   : > { %v3304_v51 = vmul.f32 %v8158_v40, %v3296_v32  ;;  %v711_v40 = vld [vmem:[%s648_s26 + $0x18] sm:$0xff] }
0x171d   : > { %v3311_v24 = vmul.f32 %v6876_v41, %v3304_v51  ;;  %v8470_v41 = vld [vmem:[%s8727_s2 + $0x10] sm:$0xff] }
0x171e   : > { %v9417_v51 = vadd.f32 %v8470_v41, %v710_v38 }
0x171f   : > { %v3318_v56 = vadd.f32 %v6877_v48, %v3311_v24  ;;  %v8471_v48 = vld [vmem:[%s8727_s2 + $0x18] sm:$0xff] }
0x1720   : > { %11094 = vst [vmem:[#allocation13_spill] sm:$0xff] %v9417_v51  ;;  %v9420_v24 = vadd.f32 %v8471_v48, %v711_v40 }
0x1721   : > { %v3319_v49 = vpack.c.bf16 %v3318_v56, %v3318_v56 }
0x1722   : > { %11095 = vst [vmem:[#allocation14_spill] sm:$0xff] %v9420_v24 }
0x1723   : > { %7663 = vmatmul.mubr.msk.bf16.vlgmr.msra.gmra.mrb[92].mxu0 %vm740_vm1, %v3319_v49  ;;  %v3552_v49 = vpack.c.bf16 %v9420_v24, %v9417_v51 }
0x1724   : > { %7687 = vmatpush3.bf16.msra.mxu0 %v8067_v57 }
0x1725   : > { %7688 = vmatprep.subr.bf16.mxu0 %v8068_v33 }
0x1728   : > { %7689 = vmatpush3.bf16.msra.mxu0 %v8068_v33 }
0x1729   : > { %7698 = vmatprep.subr.bf16.mxu0 %v8540_v1 }
0x17f6   : > { %v3382_v45 = vpop.f32.mrb[92].mxu0 }
0x17f7   : > { %v3383_v39 = vadd.f32 %v6883_v60, %v3382_v45  ;;  %v7664_v61 = vpop.f32.mrb[93].mxu0  ;;  %v715_v60 = vld [vmem:[%s648_s26 + $0x38] sm:$0xff]  ;;  %v8474_v45 = vld [vmem:[%s8727_s2 + $0x30] sm:$0xff]  ;;  %s631_s26 = sand.u32 1, %s8530_s30  }
0x17f8   : > { %v3385_v4 = vpop.f32.mrb[94].mxu0  ;;  %v8475_v61 = vld [vmem:[%s8727_s2 + $0x38] sm:$0xff]  ;;  %s9465_s25 = sshll.u32 %s631_s26, 3  ;;  %s7061_s2 = sshll.u32 %s8668_s1, 7 }
0x17f9   : > { %v3389_v43 = vmul.f32 0.044715, %v3383_v39  ;;  %v7665_v2 = vpop.f32.mrb[95].mxu0  ;;  %v3388_v30 = vmul.f32 0.5, %v3383_v39  ;;  %v9439_v4 = vadd.f32 %v8475_v61, %v715_v60  ;;  %s633_s18 = scalar_lea.vmem [#allocation2], %s9465_s25  ;;  %s10907_s23 = scalar_lea.hbm %s11000_s19, %s7061_s2 }
0x17fa   : > { %s6630_s28 = scalar_lea.sflag [#allocation3], %s631_s26 }
0x17fb   : > { %v3390_v13 = vmul.f32 %v3389_v43, %v3383_v39  ;;  %11099 = vst [vmem:[#allocation18_spill] sm:$0xff] %v9439_v4  ;;  %v3553_v43 = vpack.c.bf16 %v9433_v42, %v9430_v27 }
0x17fd   : > { %v3391_v3 = vmul.f32 %v3390_v13, %v3383_v39  ;;  %v8069_v13 = vld [vmem:[%s11086_s5 + $0x20] sm:$0xff]  }
0x17ff   : > { %v3392_v59 = vadd.f32 %v3391_v3, %v3383_v39  ;;  %v9436_v39 = vadd.f32 %v8474_v45, %v714_v22  ;;  %v8070_v3 = vld [vmem:[%s11086_s5 + $0x28] sm:$0xff]  }
0x1801   : > { %v3393_v5 = vmul.f32 0.7978846, %v3392_v59  ;;  %11098 = vst [vmem:[#allocation17_spill] sm:$0xff] %v9436_v39  ;;  %v3554_v2 = vpack.c.bf16 %v9439_v4, %v9436_v39  ;;  %v8073_v59 = vld [vmem:[%s10988_s7 + $0x44] ss:$8 sps:$4 sm:$0xff]  }
0x1803   : > { %8159 = vtanh.f32 %v3393_v5 }
0x180d   : > { %v8160_v6 = vpop.eup %8159 }
0x180e   : > { %v3395_v23 = vadd.f32 1.0, %v8160_v6 }
0x1810   : > { %v3396_v46 = vmul.f32 %v3395_v23, %v3388_v30 }
0x1812   : > { %v3397_v7 = vpack.c.bf16 %v3396_v46, %v3396_v46 }
0x1814   : > { %7683 = vmatmul.mubr.bf16.vlgmr.msra.gmra.mrb[84].mxu1 %v3397_v7  ;;  %v6916_v7 = vld [vmem:[%s10998_s17 + $0x1] ss:$0 sm:$0xff] }
0x18e7   : > { %v3505_v9 = vpop.f32.mrb[84].mxu1 }
0x18e8   : > { %v3506_v10 = vadd.f32 %v6904_v8, %v3505_v9  ;;  %v7684_v11 = vpop.f32.mrb[85].mxu1 }
0x18e9   : > { %v3508_v14 = vpop.f32.mrb[86].mxu1 }
0x18ea   : > { %v7685_v16 = vpop.f32.mrb[87].mxu1  ;;  %v3511_v17 = vadd.f32 %v3506_v10, %v3318_v56  ;;  %v3551_v56 = vpack.c.bf16 %v9414_v37, %v9411_v62  ;;  %v8071_v10 = vld [vmem:[%s10988_s7 + $0x40] ss:$8 sps:$4 sm:$0xff]   ;;  %v8076_v14 = vld [vmem:[%s10988_s7 + $0x54] ss:$8 sps:$4 sm:$0xff]  }
0x18eb   : > { %v8074_v16 = vld [vmem:[%s10988_s7 + $0x50] ss:$8 sps:$4 sm:$0xff]  }
0x18ec   : > { %v3516_v19 = vsel %vm740_vm1, %v3511_v17, 0.0  ;;  %7690 = vmatprep.mubr.msk.bf16.mxu0 %vm740_vm1, %v3551_v56 }
0x18ed   : > { %3517 = vadd.xlane.f32.xlu1 %v3516_v19  ;;  %7691 = vmatmul.mubr.msk.bf16.vlgmr.msra.gmra.mrb[96].mxu0 %vm740_vm1, %v3552_v49 }
0x18ee   : > { %7694 = vmatprep.mubr.msk.bf16.mxu0 %vm740_vm1, %v3553_v43  ;;  %7699 = vmatpush3.bf16.msra.mxu0 %v8069_v13 }
0x18ef   : > { %7700 = vmatprep.subr.bf16.mxu0 %v8540_v1 }
0x18f2   : > { %7701 = vmatpush3.bf16.msra.mxu0 %v8070_v3 }
0x18f3   : > { %3764 = vmatprep.subr.bf16.mxu0 %v8073_v59 }
0x18f5   : > { %7695 = vmatmul.mubr.msk.bf16.gmra.mrb[100].mxu0 %vm740_vm1, %v3554_v2 }
0x18f6   : > { %7702 = vmatprep.mubr.msk.bf16.mxu0 %vm8541_vm0, %v8540_v1  ;;  %v6915_v1 = vld [vmem:[%s10997_s16 + $0x1] ss:$0 sm:$0xff] }
0x197a   : > { %v3518_v21 = vpop.xlane.xlu1 %3517 }
0x197b   : > { %v3519_v25 = vmul.f32 0.03125, %v3518_v21 }
0x197d   : > { %v3520_v26 = vsub.f32 %v3511_v17, %v3519_v25  ;;  %v6922_v17 = vld [vmem:[%s11089_s4 + $0x2] ss:$0 sm:$0xff]  ;;  %s8480_s4 = sshll.u32 %s8546_s20, 4  ;;  %s8481_s4 = int_to_ptr.vmem [resolvable:$false] %s8480_s4 }
0x197e   : > { %s8482_s5 = scalar_lea.vmem %s8481_s4, 256 }
0x197f   : > { %v3521_v31 = vmul.f32 %v3520_v26, %v3520_v26 }
0x1981   : > { %v3522_v32 = vsel %vm740_vm1, %v3521_v31, 0.0 }
0x1982   : > { %3523 = vadd.xlane.f32.xlu1 %v3522_v32 }
0x19c0   : > { %v7692_v19 = vpop.f32.mrb[96].mxu0 }
0x19c1   : > { %v9489_v57 = vadd.f32 %v7692_v19, %v6922_v17  ;;  %v3626_v21 = vpop.f32.mrb[97].mxu0 }
0x19c2   : > { %v9491_v25 = vadd.f32 %v6922_v17, %v3626_v21 }
0x19c3   : > { %v9507_v50 = vmul.f32 %v8783_v53, %v9489_v57  ;;  %v9515_v40 = vmul.f32 %v8794_v58, %v9489_v57  ;;  %v9533_v55 = vmul.f32 %v8862_v15, %v9489_v57  ;;  %v9703_v45 = vmul.f32 %v8942_v29, %v9489_v57 }
0x19c4   : > { %v4022_v34 = vmul.f32 %v8794_v58, %v9491_v25  ;;  %v9523_v48 = vmul.f32 %v8862_v15, %v9491_v25  ;;  %v9551_v3 = vmul.f32 %v8876_v18, %v9491_v25  ;;  %v9743_v37 = vmul.f32 %v8987_v28, %v9489_v57 }
0x19c5   : > { %11100 = vst [vmem:[#allocation19_spill] sm:$0xff] %v9703_v45  ;;  %v9773_v51 = vmul.f32 %v9003_v47, %v9491_v25 }
0x19c7   : > { %11107 = vst [vmem:[#allocation26_spill] sm:$0xff] %v9773_v51 }
0x1a0f   : > { %v3524_v5 = vpop.xlane.xlu1 %3523 }
0x1a10   : > { %v3525_v6 = vmul.f32 0.03125, %v3524_v5 }
0x1a12   : > { %v3526_v30 = vadd.f32 1e-05, %v3525_v6 }
0x1a14   : > { %8161 = vrsqrt.f32 %v3526_v30 }
0x1a1e   : > { %v8162_v23 = vpop.eup %8161 }
0x1a1f   : > { %v3528_v46 = vmul.f32 %v8162_v23, %v3520_v26  ;;  %v7693_v26 = vpop.f32.mrb[98].mxu0  ;;  %v9563_v23 = vmul.f32 %v8876_v18, %v9489_v57 }
0x1a20   : > { %v9493_v31 = vadd.f32 %v7693_v26, %v6922_v17  ;;  %v3629_v32 = vpop.f32.mrb[99].mxu0 }
0x1a21   : > { %v3535_v8 = vmul.f32 %v6915_v1, %v3528_v46  ;;  %v9495_v33 = vadd.f32 %v6922_v17, %v3629_v32  ;;  %v7696_v49 = vpop.f32.mrb[100].mxu0 }
0x1a22   : > { %v9511_v38 = vmul.f32 %v8783_v53, %v9493_v31  ;;  %v9519_v41 = vmul.f32 %v8794_v58, %v9493_v31  ;;  %v9535_v22 = vadd.f32 %v7696_v49, %v6922_v17  ;;  %v3642_v60 = vpop.f32.mrb[101].mxu0  ;;  %v9543_v43 = vmul.f32 %v8862_v15, %v9493_v31 }
0x1a23   : > { %v3542_v9 = vadd.f32 %v6916_v7, %v3535_v8  ;;  %v3842_v35 = vmul.f32 %v8783_v53, %v9495_v33  ;;  %v4023_v36 = vmul.f32 %v8794_v58, %v9495_v33  ;;  %v9527_v56 = vmul.f32 %v8862_v15, %v9495_v33  ;;  %v7697_v13 = vpop.f32.mrb[102].mxu0 }
0x1a24   : > { %v9545_v2 = vadd.f32 %v6922_v17, %v3642_v60  ;;  %v9555_v59 = vmul.f32 %v8876_v18, %v9495_v33  ;;  %v9557_v5 = vadd.f32 %v7697_v13, %v6922_v17  ;;  %v3645_v6 = vpop.f32.mrb[103].mxu0  ;;  %v9567_v1 = vmul.f32 %v8876_v18, %v9493_v31 }
0x1a25   : > { %v3657_v11 = vpack.c.bf16 %v3542_v9, %v3542_v9  ;;  %6623 = vst.msk [vmem:[%s633_s18] sm:$0xff] %vm740_vm1, %v3542_v9  ;;  %v4030_v52 = vpack.c.bf16 %v4023_v36, %v4022_v34  ;;  %v9569_v46 = vadd.f32 %v6922_v17, %v3645_v6  ;;  %v9575_v8 = vmul.f32 %v8928_v20, %v9491_v25 }
0x1a26   : > { %v9579_v9 = vmul.f32 %v8928_v20, %v9495_v33  ;;  %v9597_v17 = vmul.f32 %v8783_v53, %v9545_v2  ;;  %v9605_v21 = vmul.f32 %v8794_v58, %v9545_v2  ;;  %v9613_v32 = vmul.f32 %v8783_v53, %v9535_v22 }
0x1a27   : > { %7703 = vmatmul.mubr.msk.bf16.vlgmr.msra.gmra.mrb[104].mxu0 %vm740_vm1, %v3657_v11  ;;  %v9601_v19 = vmul.f32 %v8783_v53, %v9569_v46  ;;  %v9609_v26 = vmul.f32 %v8794_v58, %v9569_v46  ;;  %v9621_v34 = vmul.f32 %v8794_v58, %v9535_v22  ;;  %v9645_v60 = vmul.f32 %v8862_v15, %v9535_v22 }
0x1a28   : > { %3765 = vmatpush1.bf16.msra.mxu0 %v8071_v10  ;;  %3796 = vmatprep.mubr.bf16.mxu0 %v8542_v44  ;;  %v3841_v44 = vmul.f32 %v8783_v53, %v9491_v25  ;;  %v9649_v13 = vmul.f32 %v8862_v15, %v9557_v5  ;;  %v9655_v10 = vmul.f32 %v8876_v18, %v9545_v2 }
0x1a29   : > { %3766 = vmatprep.subr.bf16.mxu0 %v8076_v14  ;;  %v9589_v14 = vmul.f32 %v8928_v20, %v9493_v31  ;;  %v9659_v7 = vmul.f32 %v8876_v18, %v9569_v46  ;;  %v9663_v30 = vmul.f32 %v8876_v18, %v9535_v22  ;;  %v9679_v49 = vmul.f32 %v8928_v20, %v9545_v2 }
0x1a2a   : > { %v3849_v12 = vpack.c.bf16 %v3842_v35, %v3841_v44  ;;  %v9617_v44 = vmul.f32 %v8783_v53, %v9557_v5  ;;  %v9625_v35 = vmul.f32 %v8794_v58, %v9557_v5  ;;  %v9637_v53 = vmul.f32 %v8862_v15, %v9569_v46 }
0x1a2b   : > { %v9683_v61 = vmul.f32 %v8928_v20, %v9569_v46  ;;  %v9693_v58 = vmul.f32 %v8928_v20, %v9557_v5  ;;  %v9707_v54 = vmul.f32 %v8942_v29, %v9493_v31  ;;  %v9711_v6 = vmul.f32 %v8942_v29, %v9545_v2 }
0x1a2c   : > { %3767 = vmatpush1.bf16.msra.mxu0 %v8074_v16  ;;  %7710 = vmatprep.mubr.msk.bf16.mxu1 %vm740_vm1, %v3849_v12  ;;  %v9593_v16 = vmul.f32 %v8942_v29, %v9491_v25  ;;  %v9633_v12 = vmul.f32 %v8862_v15, %v9545_v2  ;;  %v9669_v15 = vmul.f32 %v8876_v18, %v9557_v5 }
0x1a2d   : > { %v9687_v18 = vmul.f32 %v8928_v20, %v9535_v22  ;;  %11101 = vst [vmem:[#allocation20_spill] sm:$0xff] %v9711_v6  ;;  %v9719_v36 = vmul.f32 %v8942_v29, %v9569_v46  ;;  %v9723_v42 = vmul.f32 %v8942_v29, %v9535_v22  ;;  %v9729_v39 = vmul.f32 %v8942_v29, %v9557_v5 }
0x1a2e   : > { %v9737_v4 = vmul.f32 %v8987_v28, %v9495_v33  ;;  %v9747_v27 = vmul.f32 %v8987_v28, %v9493_v31  ;;  %v9759_v24 = vmul.f32 %v8987_v28, %v9569_v46  ;;  %v9763_v6 = vmul.f32 %v8987_v28, %v9535_v22 }
0x1a2f   : > { %6947 = vmatmul.mubr.msk.bf16.vlgmr.msra.gmra.mrb[108].mxu0 %vm740_vm1, %v3657_v11  ;;  %v9585_v11 = vmul.f32 %v8928_v20, %v9489_v57  ;;  %11102 = vst [vmem:[#allocation21_spill] sm:$0xff] %v9719_v36  ;;  %v9733_v20 = vmul.f32 %v8987_v28, %v9491_v25  ;;  %v9769_v45 = vmul.f32 %v8987_v28, %v9557_v5 }
0x1a30   : > { %7722 = vmatprep.mubr.msk.bf16.mxu0 %vm740_vm1, %v4030_v52  ;;  %v9697_v52 = vmul.f32 %v8942_v29, %v9495_v33  ;;  %11104 = vst [vmem:[#allocation23_spill] sm:$0xff] %v9737_v4  ;;  %v9751_v29 = vmul.f32 %v8987_v28, %v9545_v2  ;;  %11105 = vst [vmem:[#allocation24_spill] sm:$0xff] %v9763_v6  ;;  %v9783_v4 = vmul.f32 %v9003_v47, %v9489_v57 }
0x1a31   : > { %11103 = vst [vmem:[#allocation22_spill] sm:$0xff] %v9733_v20  ;;  %11106 = vst [vmem:[#allocation25_spill] sm:$0xff] %v9769_v45  ;;  %v9779_v20 = vmul.f32 %v9003_v47, %v9495_v33  ;;  %v9787_v36 = vmul.f32 %v9003_v47, %v9493_v31  ;;  %v9793_v25 = vmul.f32 %v9003_v47, %v9545_v2  ;;  %v6942_v31 = vld [vmem:[%s10989_s8 + $0x4] sm:$0x3] }
0x1a32   : > { %11108 = vst [vmem:[#allocation27_spill] sm:$0xff] %v9783_v4  ;;  %v9797_v62 = vmul.f32 %v9003_v47, %v9569_v46  ;;  %v9801_v33 = vmul.f32 %v9003_v47, %v9535_v22  ;;  %v9809_v28 = vmul.f32 %v9003_v47, %v9557_v5  ;;  %v6934_v22 = vld [vmem:[%s10987_s6 + $0x2] ss:$0 sm:$0xff]  ;;  %v3737_v5 = vrot.slane %v6942_v31, %v8811_v63 }
0x1a33   : > { %11109 = vst [vmem:[#allocation28_spill] sm:$0xff] %v9793_v25  ;;  %v3741_v2 = vrot.slane %v6942_v31, %v8813_v0  ;;  %v11118_v31 = vpack.c.bf16 %v9601_v19, %v9597_v17  ;;  %v11123_v19 = vpack.c.bf16 %v9543_v43, %v9533_v55  ;;  %v11127_v55 = vpack.c.bf16 %v9567_v1, %v9563_v23 }
0x1a34   : > { %11110 = vst [vmem:[#allocation29_spill] sm:$0xff] %v9797_v62  ;;  %11111 = vst [vmem:[#allocation30_spill] sm:$0xff] %v9801_v33  ;;  %v11128_v43 = vpack.c.bf16 %v9659_v7, %v9655_v10  ;;  %v11132_v23 = vpack.c.bf16 %v9683_v61, %v9679_v49  ;;  %v11134_v1 = vpack.c.bf16 %v9697_v52, %v9593_v16  ;;  %v11135_v7 = vld [vmem:[#allocation19_spill] sm:$0xff] }
0x1a35   : > { %11112 = vst [vmem:[#allocation31_spill] sm:$0xff] %v9809_v28 }
0x1a36   : > { %v11137_v61 = vld [vmem:[#allocation21_spill] sm:$0xff] }
0x1a38   : > { %v11142_v16 = vld [vmem:[#allocation22_spill] sm:$0xff] }
0x1a3c   : > { %v11156_v52 = vld [vmem:[#allocation31_spill] sm:$0xff] }
0x1afa   : > { %v3720_v6 = vpop.f32.mrb[104].mxu0 }
0x1afb   : > { %v3721_v45 = vadd.f32 %v6934_v22, %v3720_v6  ;;  %v7704_v57 = vpop.f32.mrb[105].mxu0 }
0x1afc   : > { %v3723_v51 = vpop.f32.mrb[106].mxu0  ;;  %v11117_v57 = vpack.c.bf16 %v9519_v41, %v9515_v40  ;;  %v11122_v40 = vpack.c.bf16 %v9527_v56, %v9523_v48  ;;  %v11124_v48 = vpack.c.bf16 %v9637_v53, %v9633_v12  ;;  %v11125_v56 = vpack.c.bf16 %v9649_v13, %v9645_v60  ;;  %v11154_v12 = vld [vmem:[#allocation28_spill] sm:$0xff] }
0x1afd   : > { %3807 = vxpose.xlu1.b32.start.end [1/1] (short) (narrow) %v3721_v45, 32  ;;  %v7705_v47 = vpop.f32.mrb[107].mxu0 }
0x1b02   : > { %v3798_v25 = vpop.f32.mrb[108].mxu0 }
0x1b03   : > { %v3799_v46 = vadd.f32 %v3798_v25, %v3737_v5  ;;  %v3800_v33 = vpop.f32.mrb[109].mxu0 }
0x1b04   : > { %v9823_v28 = vadd.f32 %v3800_v33, %v3741_v2  ;;  %v3802_v62 = vpop.f32.mrb[110].mxu0  ;;  %v11116_v33 = vpack.c.bf16 %v9511_v38, %v9507_v50  ;;  %v11119_v2 = vpack.c.bf16 %v9609_v26, %v9605_v21  ;;  %v11120_v50 = vpack.c.bf16 %v9617_v44, %v9613_v32 }
0x1b05   : > { %v9825_v4 = vpack.c.bf16 %v3799_v46, %v3799_v46  ;;  %v3803_v6 = vpop.f32.mrb[111].mxu0  ;;  %v11121_v38 = vpack.c.bf16 %v9625_v35, %v9621_v34  ;;  %v11126_v21 = vpack.c.bf16 %v9555_v59, %v9551_v3  ;;  %v11129_v26 = vpack.c.bf16 %v9669_v15, %v9663_v30  ;;  %v11149_v35 = vld [vmem:[#allocation26_spill] sm:$0xff] }
0x1b06   : > { %11113 = vst [vmem:[#allocation32_spill] sm:$0xff] %v9823_v28  ;;  %v11130_v3 = vpack.c.bf16 %v9579_v9, %v9575_v8  ;;  %v11131_v59 = vpack.c.bf16 %v9589_v14, %v9585_v11  ;;  %v11133_v30 = vpack.c.bf16 %v9693_v58, %v9687_v18  ;;  %v11136_v8 = vpack.c.bf16 %v9707_v54, %v11135_v7  ;;  %v11138_v9 = vld [vmem:[#allocation20_spill] sm:$0xff]  ;;  %v11141_v14 = vld [vmem:[#allocation23_spill] sm:$0xff]  ;;  %v11157_v58 = vld [vmem:[#allocation30_spill] sm:$0xff] }
0x1b07   : > { %11114 = vst [vmem:[#allocation33_spill] sm:$0xff] %v9825_v4  ;;  %4818 = vrot.lane.b32.xlu0 %v9825_v4, %s11090_s0  ;;  %v11139_v10 = vpack.c.bf16 %v11137_v61, %v11138_v9  ;;  %v11140_v11 = vpack.c.bf16 %v9729_v39, %v9723_v42  ;;  %v11143_v32 = vpack.c.bf16 %v11141_v14, %v11142_v16  ;;  %v11146_v42 = vld [vmem:[#allocation25_spill] sm:$0xff]  ;;  %v11147_v39 = vld [vmem:[#allocation24_spill] sm:$0xff] }
0x1b08   : > { %v11144_v54 = vpack.c.bf16 %v9747_v27, %v9743_v37  ;;  %v11145_v44 = vpack.c.bf16 %v9759_v24, %v9751_v29  ;;  %v11148_v34 = vpack.c.bf16 %v11146_v42, %v11147_v39  ;;  %v11150_v49 = vpack.c.bf16 %v9779_v20, %v11149_v35  ;;  %v11151_v37 = vld [vmem:[#allocation27_spill] sm:$0xff]  ;;  %v11153_v24 = vld [vmem:[#allocation29_spill] sm:$0xff] }
0x1b09   : > { %v11152_v27 = vpack.c.bf16 %v9787_v36, %v11151_v37  ;;  %v11155_v53 = vpack.c.bf16 %v11153_v24, %v11154_v12  ;;  %v11158_v60 = vpack.c.bf16 %v11156_v52, %v11157_v58 }
0x1b27   : > { %4204 = vrot.lane.b32.xlu1 %v9825_v4, %s8543_s22 }
0x1b2b   : > { %4547 = vrot.lane.b32.xlu1 %v9825_v4, %s11115_s21 }
0x1b7d   : > { %v3823_v63 = vpop.trf.xlu1 }
0x1b81   : > { %v3824_v0 = vpop.trf.xlu1 }
0x1b82   : > { %v3839_v51 = vpack.c.bf16 %v3824_v0, %v3823_v63 }
0x1b84   : > { %7706 = vmatprep.subr.bf16.mxu1 %v3839_v51  ;;  %7718 = vmatprep.subr.bf16.mxu0 %v3839_v51 }
0x1b85   : > { %7707 = vmatpush3.bf16.msra.mxu1 %v3839_v51  ;;  %7719 = vmatpush3.bf16.msra.mxu0 %v3839_v51  ;;  %v3825_v62 = vpop.trf.xlu1 }
0x1b89   : > { %v3826_v45 = vpop.trf.xlu1 }
0x1b8a   : > { %v3840_v25 = vpack.c.bf16 %v3826_v45, %v3825_v62 }
0x1b8c   : > { %7708 = vmatprep.subr.bf16.mxu1 %v3840_v25  ;;  %7720 = vmatprep.subr.bf16.mxu0 %v3840_v25 }
0x1b8d   : > { %7709 = vmatpush3.bf16.msra.mxu1 %v3840_v25  ;;  %7721 = vmatpush3.bf16.msra.mxu0 %v3840_v25 }
0x1b8e   : > { %7750 = vmatprep.subr.bf16.mxu0 %v3839_v51 }
0x1b90   : > { %7711 = vmatmul.mubr.msk.bf16.vlgmr.msra.gmra.mrb[88].mxu1 %vm740_vm1, %v11116_v33  ;;  %7723 = vmatmul.mubr.msk.bf16.vlgmr.msra.gmra.mrb[112].mxu0 %vm740_vm1, %v11117_v57 }
0x1b91   : > { %7714 = vmatprep.mubr.msk.bf16.mxu1 %vm740_vm1, %v11118_v31  ;;  %7726 = vmatprep.mubr.msk.bf16.mxu0 %vm740_vm1, %v11119_v2 }
0x1b92   : > { %7751 = vmatpush3.bf16.msra.mxu0 %v3839_v51 }
0x1b93   : > { %7752 = vmatprep.subr.bf16.mxu0 %v3840_v25 }
0x1b96   : > { %7753 = vmatpush3.bf16.msra.mxu0 %v3840_v25 }
0x1b97   : > { %7772 = vmatprep.subr.bf16.mxu0 %v3839_v51 }
0x1b98   : > { %7715 = vmatmul.mubr.msk.bf16.gmra.mrb[92].mxu1 %vm740_vm1, %v11120_v50  ;;  %7727 = vmatmul.mubr.msk.bf16.gmra.mrb[116].mxu0 %vm740_vm1, %v11121_v38 }
0x1b99   : > { %7754 = vmatprep.mubr.msk.bf16.mxu0 %vm740_vm1, %v11122_v40  ;;  %v4205_v41 = vpop.permute.xlu1 %4204 }
0x1b9a   : > { %7974 = vmatprep.subr.msk.bf16.mxu1 %vm2553_vm6, %v4205_v41  ;;  %v4219_v17 = vsel %vm2553_vm6, %v4205_v41, 0 }
0x1b9b   : > { %7731 = vmatpush3.bf16.msra.mxu1 %v4219_v17 }
0x1b9c   : > { %7975 = vmatprep.subr.msk.bf16.mxu1 %vm2553_vm6, %v9825_v4 }
0x1ba0   : > { %7755 = vmatmul.mubr.msk.bf16.vlgmr.msra.gmra.mrb[120].mxu0 %vm740_vm1, %v11123_v19 }
0x1ba1   : > { %7773 = vmatpush3.bf16.msra.mxu0 %v3839_v51  ;;  %7758 = vmatprep.mubr.msk.bf16.mxu0 %vm740_vm1, %v11124_v48 }
0x1ba2   : > { %7774 = vmatprep.subr.bf16.mxu0 %v3840_v25 }
0x1ba5   : > { %7775 = vmatpush3.bf16.msra.mxu0 %v3840_v25 }
0x1ba6   : > { %7794 = vmatprep.subr.bf16.mxu0 %v3839_v51 }
0x1ba8   : > { %7759 = vmatmul.mubr.msk.bf16.gmra.mrb[124].mxu0 %vm740_vm1, %v11125_v56 }
0x1ba9   : > { %7776 = vmatprep.mubr.msk.bf16.mxu0 %vm740_vm1, %v11126_v21 }
0x1bb0   : > { %7777 = vmatmul.mubr.msk.bf16.vlgmr.msra.gmra.mrb[128].mxu0 %vm740_vm1, %v11127_v55 }
0x1bb1   : > { %7795 = vmatpush3.bf16.msra.mxu0 %v3839_v51  ;;  %7780 = vmatprep.mubr.msk.bf16.mxu0 %vm740_vm1, %v11128_v43 }
0x1bb2   : > { %7796 = vmatprep.subr.bf16.mxu0 %v3840_v25 }
0x1bb5   : > { %7797 = vmatpush3.bf16.msra.mxu0 %v3840_v25 }
0x1bb6   : > { %7816 = vmatprep.subr.bf16.mxu0 %v3839_v51 }
0x1bb8   : > { %7781 = vmatmul.mubr.msk.bf16.gmra.mrb[132].mxu0 %vm740_vm1, %v11129_v26 }
0x1bb9   : > { %7798 = vmatprep.mubr.msk.bf16.mxu0 %vm740_vm1, %v11130_v3 }
0x1bc0   : > { %7799 = vmatmul.mubr.msk.bf16.vlgmr.msra.gmra.mrb[136].mxu0 %vm740_vm1, %v11131_v59 }
0x1bc1   : > { %7817 = vmatpush3.bf16.msra.mxu0 %v3839_v51  ;;  %7802 = vmatprep.mubr.msk.bf16.mxu0 %vm740_vm1, %v11132_v23 }
0x1bc2   : > { %7818 = vmatprep.subr.bf16.mxu0 %v3840_v25 }
0x1bc5   : > { %7819 = vmatpush3.bf16.msra.mxu0 %v3840_v25 }
0x1bc6   : > { %7838 = vmatprep.subr.bf16.mxu0 %v3839_v51 }
0x1bc8   : > { %7803 = vmatmul.mubr.msk.bf16.gmra.mrb[140].mxu0 %vm740_vm1, %v11133_v30 }
0x1bc9   : > { %7820 = vmatprep.mubr.msk.bf16.mxu0 %vm740_vm1, %v11134_v1 }
0x1bd0   : > { %7821 = vmatmul.mubr.msk.bf16.vlgmr.msra.gmra.mrb[144].mxu0 %vm740_vm1, %v11136_v8 }
0x1bd1   : > { %7839 = vmatpush3.bf16.msra.mxu0 %v3839_v51  ;;  %7824 = vmatprep.mubr.msk.bf16.mxu0 %vm740_vm1, %v11139_v10 }
0x1bd2   : > { %7840 = vmatprep.subr.bf16.mxu0 %v3840_v25 }
0x1bd5   : > { %7841 = vmatpush3.bf16.msra.mxu0 %v3840_v25 }
0x1bd6   : > { %7860 = vmatprep.subr.bf16.mxu0 %v3839_v51 }
0x1bd8   : > { %7825 = vmatmul.mubr.msk.bf16.gmra.mrb[148].mxu0 %vm740_vm1, %v11140_v11 }
0x1bd9   : > { %7842 = vmatprep.mubr.msk.bf16.mxu0 %vm740_vm1, %v11143_v32 }
0x1be0   : > { %7843 = vmatmul.mubr.msk.bf16.vlgmr.msra.gmra.mrb[152].mxu0 %vm740_vm1, %v11144_v54 }
0x1be1   : > { %7861 = vmatpush3.bf16.msra.mxu0 %v3839_v51  ;;  %7846 = vmatprep.mubr.msk.bf16.mxu0 %vm740_vm1, %v11145_v44 }
0x1be2   : > { %7862 = vmatprep.subr.bf16.mxu0 %v3840_v25 }
0x1be5   : > { %7863 = vmatpush3.bf16.msra.mxu0 %v3840_v25 }
0x1be8   : > { %7847 = vmatmul.mubr.msk.bf16.gmra.mrb[156].mxu0 %vm740_vm1, %v11148_v34 }
0x1be9   : > { %7864 = vmatprep.mubr.msk.bf16.mxu0 %vm740_vm1, %v11150_v49 }
0x1bf0   : > { %7865 = vmatmul.mubr.msk.bf16.vlgmr.msra.gmra.mrb[160].mxu0 %vm740_vm1, %v11152_v27 }
0x1bf1   : > { %7868 = vmatprep.mubr.msk.bf16.mxu0 %vm740_vm1, %v11155_v53 }
0x1bf8   : > { %7869 = vmatmul.mubr.msk.bf16.gmra.mrb[164].mxu0 %vm740_vm1, %v11158_v60 }
0x1c63   : > { %v9957_v13 = vpop.f32.mrb[88].mxu1  ;;  %v9959_v15 = vpop.f32.mrb[112].mxu0 }
0x1c64   : > { %v9961_v18 = vpop.f32.mrb[89].mxu1  ;;  %v9963_v20 = vpop.f32.mrb[113].mxu0  ;;  %v4117_v36 = vsel %vm2477_vm12, %v9959_v15, -inf  ;;  %v3936_v5 = vsel %vm2477_vm12, %v9957_v13, -inf }
0x1c65   : > { %v9967_v29 = vpop.f32.mrb[114].mxu0  ;;  %4118 = vmax.xlane.f32.xlu0 %v4117_v36  ;;  %v9969_v46 = vpop.f32.mrb[90].mxu1  ;;  %v4111_v62 = vsel %vm2477_vm12, %v9963_v20, -inf  ;;  %v3930_v2 = vsel %vm2477_vm12, %v9961_v18, -inf }
0x1c66   : > { %v9971_v22 = vpop.f32.mrb[91].mxu1  ;;  %v9973_v47 = vpop.f32.mrb[115].mxu0  ;;  %v4120_v40 = vsel %vm2477_vm12, %v9967_v29, -inf  ;;  %v3939_v19 = vsel %vm2477_vm12, %v9969_v46, -inf }
0x1c67   : > { %v4114_v21 = vsel %vm2477_vm12, %v9973_v47, -inf  ;;  %v3933_v26 = vsel %vm2477_vm12, %v9971_v22, -inf }
0x1c69   : > { %3937 = vmax.xlane.f32.xlu0 %v3936_v5 }
0x1c6b   : > { %v9977_v6 = vpop.f32.mrb[92].mxu1  ;;  %v9979_v63 = vpop.f32.mrb[116].mxu0 }
0x1c6c   : > { %v9981_v0 = vpop.f32.mrb[93].mxu1  ;;  %v9983_v51 = vpop.f32.mrb[117].mxu0  ;;  %v4129_v23 = vsel %vm2477_vm12, %v9979_v63, -inf  ;;  %v3948_v8 = vsel %vm2477_vm12, %v9977_v6, -inf }
0x1c6d   : > { %v9987_v45 = vpop.f32.mrb[118].mxu0  ;;  %4112 = vmax.xlane.f32.xlu0 %v4111_v62  ;;  %v9989_v25 = vpop.f32.mrb[94].mxu1  ;;  %v3942_v33 = vsel %vm2477_vm12, %v9981_v0, -inf  ;;  %v4123_v10 = vsel %vm2477_vm12, %v9983_v51, -inf }
0x1c6e   : > { %v9993_v57 = vpop.f32.mrb[119].mxu0  ;;  %3943 = vmax.xlane.f32.xlu1 %v3942_v33  ;;  %v9995_v31 = vpop.f32.mrb[95].mxu1  ;;  %v4132_v32 = vsel %vm2477_vm12, %v9987_v45, -inf  ;;  %v3951_v34 = vsel %vm2477_vm12, %v9989_v25, -inf }
0x1c6f   : > { %v4126_v27 = vsel %vm2477_vm12, %v9993_v57, -inf  ;;  %v3945_v52 = vsel %vm2477_vm12, %v9995_v31, -inf }
0x1c71   : > { %3931 = vmax.xlane.f32.xlu0 %v3930_v2 }
0x1c73   : > { %v9999_v50 = vpop.f32.mrb[120].mxu0 }
0x1c74   : > { %v10001_v38 = vpop.f32.mrb[121].mxu0  ;;  %v4461_v5 = vsel %vm2477_vm12, %v9999_v50, -inf }
0x1c75   : > { %v10005_v41 = vpop.f32.mrb[122].mxu0  ;;  %4121 = vmax.xlane.f32.xlu0 %v4120_v40  ;;  %v4455_v40 = vsel %vm2477_vm12, %v10001_v38, -inf }
0x1c76   : > { %v10007_v17 = vpop.f32.mrb[123].mxu0 }
0x1c79   : > { %3940 = vmax.xlane.f32.xlu0 %v3939_v19 }
0x1c7b   : > { %v10011_v48 = vpop.f32.mrb[124].mxu0 }
0x1c7c   : > { %v10013_v56 = vpop.f32.mrb[125].mxu0 }
0x1c7d   : > { %v10017_v55 = vpop.f32.mrb[126].mxu0  ;;  %4115 = vmax.xlane.f32.xlu0 %v4114_v21 }
0x1c7e   : > { %v10019_v43 = vpop.f32.mrb[127].mxu0 }
0x1c81   : > { %3934 = vmax.xlane.f32.xlu0 %v3933_v26 }
0x1c83   : > { %v10023_v3 = vpop.f32.mrb[128].mxu0 }
0x1c84   : > { %v10025_v59 = vpop.f32.mrb[129].mxu0  ;;  %v4732_v30 = vsel %vm2477_vm12, %v10023_v3, -inf }
0x1c85   : > { %v10031_v1 = vpop.f32.mrb[130].mxu0  ;;  %4130 = vmax.xlane.f32.xlu0 %v4129_v23  ;;  %4733 = vmax.xlane.f32.xlu1 %v4732_v30  ;;  %v4464_v23 = vsel %vm2477_vm12, %v10005_v41, -inf }
0x1c86   : > { %v10033_v7 = vpop.f32.mrb[131].mxu0 }
0x1c89   : > { %3949 = vmax.xlane.f32.xlu0 %v3948_v8 }
0x1c8b   : > { %v10037_v61 = vpop.f32.mrb[132].mxu0 }
0x1c8c   : > { %v10039_v9 = vpop.f32.mrb[133].mxu0  ;;  %v4744_v11 = vsel %vm2477_vm12, %v10037_v61, -inf }
0x1c8d   : > { %v10045_v14 = vpop.f32.mrb[134].mxu0  ;;  %4124 = vmax.xlane.f32.xlu0 %v4123_v10  ;;  %4745 = vmax.xlane.f32.xlu1 %v4744_v11  ;;  %v4738_v54 = vsel %vm2477_vm12, %v10039_v9, -inf  ;;  %v4458_v11 = vsel %vm2477_vm12, %v10007_v17, -inf }
0x1c8e   : > { %v10047_v16 = vpop.f32.mrb[135].mxu0 }
0x1c91   : > { %4133 = vmax.xlane.f32.xlu0 %v4132_v32  ;;  %4739 = vmax.xlane.f32.xlu1 %v4738_v54 }
0x1c93   : > { %v10053_v44 = vpop.f32.mrb[136].mxu0 }
0x1c94   : > { %v10055_v42 = vpop.f32.mrb[137].mxu0  ;;  %v5003_v39 = vsel %vm2477_vm12, %v10053_v44, -inf }
0x1c95   : > { %v10061_v35 = vpop.f32.mrb[138].mxu0  ;;  %5004 = vmax.xlane.f32.xlu1 %v5003_v39  ;;  %3952 = vmax.xlane.f32.xlu0 %v3951_v34  ;;  %v4997_v37 = vsel %vm2477_vm12, %v10055_v42, -inf  ;;  %v4473_v34 = vsel %vm2477_vm12, %v10011_v48, -inf }
0x1c96   : > { %v10063_v49 = vpop.f32.mrb[139].mxu0 }
0x1c99   : > { %4998 = vmax.xlane.f32.xlu1 %v4997_v37  ;;  %4127 = vmax.xlane.f32.xlu0 %v4126_v27 }
0x1c9b   : > { %v10069_v24 = vpop.f32.mrb[140].mxu0 }
0x1c9c   : > { %v10071_v12 = vpop.f32.mrb[141].mxu0  ;;  %v5015_v53 = vsel %vm2477_vm12, %v10069_v24, -inf }
0x1c9d   : > { %v10077_v58 = vpop.f32.mrb[142].mxu0  ;;  %5016 = vmax.xlane.f32.xlu1 %v5015_v53  ;;  %3946 = vmax.xlane.f32.xlu0 %v3945_v52  ;;  %v5009_v36 = vsel %vm2477_vm12, %v10071_v12, -inf  ;;  %v4467_v52 = vsel %vm2477_vm12, %v10013_v56, -inf }
0x1c9e   : > { %v10079_v60 = vpop.f32.mrb[143].mxu0 }
0x1ca1   : > { %5010 = vmax.xlane.f32.xlu1 %v5009_v36  ;;  %4462 = vmax.xlane.f32.xlu0 %v4461_v5 }
0x1ca3   : > { %v10085_v62 = vpop.f32.mrb[144].mxu0 }
0x1ca4   : > { %v10087_v33 = vpop.f32.mrb[145].mxu0  ;;  %v5272_v2 = vsel %vm2477_vm12, %v10085_v62, -inf }
0x1ca5   : > { %11159 = vst [vmem:[#allocation19_spill] sm:$0xff] %v10087_v33  ;;  %v10093_v19 = vpop.f32.mrb[146].mxu0  ;;  %5273 = vmax.xlane.f32.xlu1 %v5272_v2  ;;  %4456 = vmax.xlane.f32.xlu0 %v4455_v40  ;;  %v5266_v26 = vsel %vm2477_vm12, %v10087_v33, -inf  ;;  %v4476_v40 = vsel %vm2477_vm12, %v10017_v55, -inf }
0x1ca6   : > { %v10095_v21 = vpop.f32.mrb[147].mxu0 }
0x1ca7   : > { %11160 = vst [vmem:[#allocation21_spill] sm:$0xff] %v10095_v21 }
0x1ca9   : > { %5267 = vmax.xlane.f32.xlu1 %v5266_v26  ;;  %4465 = vmax.xlane.f32.xlu0 %v4464_v23 }
0x1cab   : > { %v10101_v30 = vpop.f32.mrb[148].mxu0 }
0x1cac   : > { %v10103_v8 = vpop.f32.mrb[149].mxu0  ;;  %v5284_v10 = vsel %vm2477_vm12, %v10101_v30, -inf }
0x1cad   : > { %11161 = vst [vmem:[#allocation20_spill] sm:$0xff] %v10103_v8  ;;  %v10109_v32 = vpop.f32.mrb[150].mxu0  ;;  %5285 = vmax.xlane.f32.xlu1 %v5284_v10  ;;  %4459 = vmax.xlane.f32.xlu0 %v4458_v11  ;;  %v5278_v39 = vsel %vm2477_vm12, %v10103_v8, -inf  ;;  %v4470_v11 = vsel %vm2477_vm12, %v10019_v43, -inf }
0x1cae   : > { %11162 = vst [vmem:[#allocation23_spill] sm:$0xff] %v10109_v32  ;;  %v10111_v54 = vpop.f32.mrb[151].mxu0 }
0x1cb1   : > { %5279 = vmax.xlane.f32.xlu1 %v5278_v39  ;;  %4474 = vmax.xlane.f32.xlu0 %v4473_v34 }
0x1cb3   : > { %v10117_v37 = vpop.f32.mrb[152].mxu0 }
0x1cb4   : > { %11163 = vst [vmem:[#allocation22_spill] sm:$0xff] %v10117_v37  ;;  %v10119_v27 = vpop.f32.mrb[153].mxu0  ;;  %v5544_v53 = vsel %vm2477_vm12, %v10117_v37, -inf  ;;  %v5275_v37 = vsel %vm2477_vm12, %v10093_v19, -inf }
0x1cb5   : > { %11164 = vst [vmem:[#allocation25_spill] sm:$0xff] %v10119_v27  ;;  %v10125_v36 = vpop.f32.mrb[154].mxu0  ;;  %5545 = vmax.xlane.f32.xlu1 %v5544_v53  ;;  %4468 = vmax.xlane.f32.xlu0 %v4467_v52  ;;  %v5538_v2 = vsel %vm2477_vm12, %v10119_v27, -inf  ;;  %v4726_v52 = vsel %vm2477_vm12, %v10025_v59, -inf }
0x1cb6   : > { %v10127_v5 = vpop.f32.mrb[155].mxu0 }
0x1cb9   : > { %5539 = vmax.xlane.f32.xlu1 %v5538_v2  ;;  %4477 = vmax.xlane.f32.xlu0 %v4476_v40 }
0x1cbb   : > { %v10133_v26 = vpop.f32.mrb[156].mxu0 }
0x1cbc   : > { %11165 = vst [vmem:[#allocation24_spill] sm:$0xff] %v10133_v26  ;;  %v10135_v23 = vpop.f32.mrb[157].mxu0  ;;  %v5556_v10 = vsel %vm2477_vm12, %v10133_v26, -inf  ;;  %v4747_v26 = vsel %vm2477_vm12, %v10045_v14, -inf }
0x1cbd   : > { %11166 = vst [vmem:[#allocation26_spill] sm:$0xff] %v10135_v23  ;;  %v10141_v39 = vpop.f32.mrb[158].mxu0  ;;  %5557 = vmax.xlane.f32.xlu1 %v5556_v10  ;;  %4471 = vmax.xlane.f32.xlu0 %v4470_v11  ;;  %v5550_v53 = vsel %vm2477_vm12, %v10135_v23, -inf  ;;  %v4735_v10 = vsel %vm2477_vm12, %v10031_v1, -inf }
0x1cbe   : > { %v10143_v34 = vpop.f32.mrb[159].mxu0 }
0x1cc1   : > { %5551 = vmax.xlane.f32.xlu1 %v5550_v53  ;;  %4727 = vmax.xlane.f32.xlu0 %v4726_v52  ;;  %v4729_v52 = vsel %vm2477_vm12, %v10033_v7, -inf }
0x1cc3   : > { %v10149_v2 = vpop.f32.mrb[160].mxu0 }
0x1cc4   : > { %11167 = vst [vmem:[#allocation27_spill] sm:$0xff] %v10149_v2  ;;  %v10151_v40 = vpop.f32.mrb[161].mxu0  ;;  %v5815_v4 = vsel %vm2477_vm12, %v10149_v2, -inf }
0x1cc5   : > { %11168 = vst [vmem:[#allocation29_spill] sm:$0xff] %v10151_v40  ;;  %v10157_v11 = vpop.f32.mrb[162].mxu0  ;;  %5816 = vmax.xlane.f32.xlu1 %v5815_v4  ;;  %4736 = vmax.xlane.f32.xlu0 %v4735_v10  ;;  %v5809_v53 = vsel %vm2477_vm12, %v10151_v40, -inf  ;;  %v4741_v10 = vsel %vm2477_vm12, %v10047_v16, -inf  ;;  %v5018_v40 = vsel %vm2477_vm12, %v10077_v58, -inf }
0x1cc6   : > { %v10159_v28 = vpop.f32.mrb[163].mxu0 }
0x1cc9   : > { %5810 = vmax.xlane.f32.xlu1 %v5809_v53  ;;  %4730 = vmax.xlane.f32.xlu0 %v4729_v52  ;;  %v5006_v53 = vsel %vm2477_vm12, %v10061_v35, -inf  ;;  %v5000_v52 = vsel %vm2477_vm12, %v10063_v49, -inf }
0x1ccb   : > { %v10165_v23 = vpop.f32.mrb[164].mxu0 }
0x1ccc   : > { %v10167_v2 = vpop.f32.mrb[165].mxu0 }
0x1ccd   : > { %v10171_v27 = vpop.f32.mrb[166].mxu0  ;;  %4748 = vmax.xlane.f32.xlu0 %v4747_v26  ;;  %v5012_v26 = vsel %vm2477_vm12, %v10079_v60, -inf }
0x1cce   : > { %v10173_v4 = vpop.f32.mrb[167].mxu0 }
0x1ccf   : > { %11169 = vst [vmem:[#allocation28_spill] sm:$0xff] %v10173_v4 }
0x1cd1   : > { %4742 = vmax.xlane.f32.xlu0 %v4741_v10  ;;  %v5269_v10 = vsel %vm2477_vm12, %v10095_v21, -inf }
0x1cd5   : > { %5007 = vmax.xlane.f32.xlu0 %v5006_v53  ;;  %v5287_v53 = vsel %vm2477_vm12, %v10109_v32, -inf }
0x1cd9   : > { %5001 = vmax.xlane.f32.xlu0 %v5000_v52  ;;  %v10191_v52 = vpop.permute.xlu0 %4818 }
0x1cda   : > { %11170 = vst [vmem:[#allocation31_spill] sm:$0xff] %v10191_v52 }
0x1cdd   : > { %5019 = vmax.xlane.f32.xlu0 %v5018_v40  ;;  %v5281_v40 = vsel %vm2477_vm12, %v10111_v54, -inf }
0x1ce1   : > { %5013 = vmax.xlane.f32.xlu0 %v5012_v26 }
0x1ce5   : > { %5276 = vmax.xlane.f32.xlu0 %v5275_v37  ;;  %v5547_v37 = vsel %vm2477_vm12, %v10125_v36, -inf }
0x1ce9   : > { %5270 = vmax.xlane.f32.xlu0 %v5269_v10 }
0x1ced   : > { %5288 = vmax.xlane.f32.xlu0 %v5287_v53  ;;  %v5541_v53 = vsel %vm2477_vm12, %v10127_v5, -inf }
0x1cf1   : > { %5282 = vmax.xlane.f32.xlu0 %v5281_v40 }
0x1cf2   : > { %v4119_v33 = vpop.xlane.xlu0 %4118 }
0x1cf3   : > { %v4137_v26 = vsub.f32 %v9959_v15, %v4119_v33  ;;  %v5559_v15 = vsel %vm2477_vm12, %v10141_v39, -inf }
0x1cf5   : > { %v4147_v8 = vmul.f32 1.442695, %v4137_v26  ;;  %5548 = vmax.xlane.f32.xlu0 %v5547_v37 }
0x1cf6   : > { %v3938_v21 = vpop.xlane.xlu0 %3937 }
0x1cf7   : > { %8163 = vpow2.f32 %v4147_v8  ;;  %v3956_v10 = vsub.f32 %v9957_v13, %v3938_v21  ;;  %v5553_v13 = vsel %vm2477_vm12, %v10143_v34, -inf }
0x1cf9   : > { %v3966_v52 = vmul.f32 1.442695, %v3956_v10  ;;  %5542 = vmax.xlane.f32.xlu0 %v5541_v53 }
0x1cfa   : > { %v4113_v32 = vpop.xlane.xlu0 %4112 }
0x1cfb   : > { %8165 = vpow2.f32 %v3966_v52  ;;  %v4135_v40 = vsub.f32 %v9963_v20, %v4113_v32  ;;  %v5818_v32 = vsel %vm2477_vm12, %v10157_v11, -inf }
0x1cfd   : > { %v4143_v33 = vmul.f32 1.442695, %v4135_v40  ;;  %5560 = vmax.xlane.f32.xlu0 %v5559_v15  ;;  %v5812_v15 = vsel %vm2477_vm12, %v10159_v28, -inf }
0x1cfe   : > { %v3932_v26 = vpop.xlane.xlu0 %3931 }
0x1cff   : > { %8167 = vpow2.f32 %v4143_v33  ;;  %v3954_v8 = vsub.f32 %v9961_v18, %v3932_v26 }
0x1d01   : > { %v10207_v21 = vpop.eup %8163  ;;  %v3962_v37 = vmul.f32 1.442695, %v3954_v8  ;;  %5554 = vmax.xlane.f32.xlu0 %v5553_v13 }
0x1d02   : > { %v4122_v10 = vpop.xlane.xlu0 %4121  ;;  %v4165_v20 = vsel %vm2477_vm12, %v10207_v21, 0.0 }
0x1d03   : > { %8169 = vpow2.f32 %v3962_v37  ;;  %4166 = vadd.xlane.f32.xlu1 %v4165_v20  ;;  %v4138_v40 = vsub.f32 %v9967_v29, %v4122_v10  ;;  %v5827_v20 = vsel %vm2477_vm12, %v10165_v23, -inf  ;;  %v10229_v29 = vpop.permute.xlu1 %4547 }
0x1d04   : > { %11172 = vst [vmem:[#allocation34_spill] sm:$0xff] %v10229_v29 }
0x1d05   : > { %v10213_v52 = vpop.eup %8165  ;;  %5819 = vmax.xlane.f32.xlu0 %v5818_v32  ;;  %v4149_v13 = vmul.f32 1.442695, %v4138_v40 }
0x1d06   : > { %11171 = vst [vmem:[#allocation30_spill] sm:$0xff] %v10213_v52  ;;  %v3941_v18 = vpop.xlane.xlu0 %3940  ;;  %v3984_v53 = vsel %vm2477_vm12, %v10213_v52, 0.0 }
0x1d07   : > { %3985 = vadd.xlane.f32.xlu1 %v3984_v53  ;;  %v3957_v37 = vsub.f32 %v9969_v46, %v3941_v18  ;;  %8171 = vpow2.f32 %v4149_v13  ;;  %v5821_v46 = vsel %vm2477_vm12, %v10167_v2, -inf  ;;  %v3944_v18 = vpop.xlane.xlu1 %3943 }
0x1d09   : > { %v10220_v33 = vpop.eup %8167  ;;  %5813 = vmax.xlane.f32.xlu0 %v5812_v15  ;;  %v3968_v52 = vmul.f32 1.442695, %v3957_v37 }
0x1d0a   : > { %v4116_v26 = vpop.xlane.xlu0 %4115  ;;  %v4159_v8 = vsel %vm2477_vm12, %v10220_v33, 0.0 }
0x1d0b   : > { %4160 = vadd.xlane.f32.xlu1 %v4159_v8  ;;  %v4136_v10 = vsub.f32 %v9973_v47, %v4116_v26  ;;  %8173 = vpow2.f32 %v3968_v52  ;;  %v5830_v47 = vsel %vm2477_vm12, %v10171_v27, -inf }
0x1d0d   : > { %v10227_v32 = vpop.eup %8169  ;;  %5828 = vmax.xlane.f32.xlu0 %v5827_v20  ;;  %v4145_v40 = vmul.f32 1.442695, %v4136_v10 }
0x1d0e   : > { %v3935_v53 = vpop.xlane.xlu0 %3934  ;;  %v3978_v15 = vsel %vm2477_vm12, %v10227_v32, 0.0 }
0x1d0f   : > { %3979 = vadd.xlane.f32.xlu1 %v3978_v15  ;;  %v3955_v8 = vsub.f32 %v9971_v22, %v3935_v53  ;;  %8175 = vpow2.f32 %v4145_v40  ;;  %v5824_v22 = vsel %vm2477_vm12, %v10173_v4, -inf }
0x1d11   : > { %5822 = vmax.xlane.f32.xlu0 %v5821_v46  ;;  %v3964_v13 = vmul.f32 1.442695, %v3955_v8  ;;  %v10245_v10 = vpop.eup %8171 }
0x1d12   : > { %v4131_v20 = vpop.xlane.xlu0 %4130  ;;  %v10240_v37 = vpop.xlane.xlu1 %4733  ;;  %v4168_v8 = vsel %vm2477_vm12, %v10245_v10, 0.0 }
0x1d13   : > { %v4141_v29 = vsub.f32 %v9979_v63, %v4131_v20  ;;  %v3958_v63 = vsub.f32 %v9981_v0, %v3944_v18 }
0x1d15   : > { %v4155_v26 = vmul.f32 1.442695, %v4141_v29  ;;  %5831 = vmax.xlane.f32.xlu0 %v5830_v47  ;;  %v3970_v20 = vmul.f32 1.442695, %v3958_v63 }
0x1d16   : > { %v3950_v15 = vpop.xlane.xlu0 %3949 }
0x1d17   : > { %8177 = vpow2.f32 %v4155_v26  ;;  %v3960_v46 = vsub.f32 %v9977_v6, %v3950_v15  ;;  %v10253_v6 = vpop.eup %8173 }
0x1d18   : > { %8179 = vpow2.f32 %v3964_v13  ;;  %11173 = vst [vmem:[#allocation35_spill] sm:$0xff] %v10253_v6  ;;  %v3987_v13 = vsel %vm2477_vm12, %v10253_v6, 0.0 }
0x1d19   : > { %v3974_v52 = vmul.f32 1.442695, %v3960_v46  ;;  %5825 = vmax.xlane.f32.xlu0 %v5824_v22  ;;  %v10258_v18 = vpop.eup %8175 }
0x1d1a   : > { %v4125_v29 = vpop.xlane.xlu0 %4124  ;;  %v10248_v53 = vpop.xlane.xlu1 %4745 }
0x1d1b   : > { %8181 = vpow2.f32 %v3974_v52  ;;  %v4139_v40 = vsub.f32 %v9983_v51, %v4125_v29 }
0x1d1d   : > { %v4151_v47 = vmul.f32 1.442695, %v4139_v40  ;;  %4169 = vadd.xlane.f32.xlu0 %v4168_v8  ;;  %v4162_v40 = vsel %vm2477_vm12, %v10258_v18, 0.0 }
0x1d1e   : > { %v4134_v26 = vpop.xlane.xlu0 %4133  ;;  %v10255_v15 = vpop.xlane.xlu1 %4739 }
0x1d1f   : > { %8183 = vpow2.f32 %v4151_v47  ;;  %v4142_v0 = vsub.f32 %v9987_v45, %v4134_v26 }
0x1d20   : > { %8185 = vpow2.f32 %v3970_v20 }
0x1d21   : > { %v10262_v51 = vpop.eup %8177  ;;  %v4157_v46 = vmul.f32 1.442695, %v4142_v0  ;;  %3988 = vadd.xlane.f32.xlu0 %v3987_v13 }
0x1d22   : > { %v3953_v22 = vpop.xlane.xlu0 %3952  ;;  %v4177_v63 = vsel %vm2477_vm12, %v10262_v51, 0.0  ;;  %v10266_v52 = vpop.xlane.xlu1 %5004 }
0x1d23   : > { %8187 = vpow2.f32 %v4157_v46  ;;  %v3961_v29 = vsub.f32 %v9989_v25, %v3953_v22  ;;  %4178 = vadd.xlane.f32.xlu1 %v4177_v63  ;;  %v10269_v45 = vpop.eup %8179 }
0x1d24   : > { %v3981_v25 = vsel %vm2477_vm12, %v10269_v45, 0.0 }
0x1d25   : > { %v10273_v8 = vpop.eup %8181  ;;  %v3976_v20 = vmul.f32 1.442695, %v3961_v29  ;;  %4163 = vadd.xlane.f32.xlu0 %v4162_v40 }
0x1d26   : > { %11174 = vst [vmem:[#allocation36_spill] sm:$0xff] %v10273_v8  ;;  %v4128_v47 = vpop.xlane.xlu0 %4127  ;;  %v3996_v26 = vsel %vm2477_vm12, %v10273_v8, 0.0  ;;  %v10282_v46 = vpop.xlane.xlu1 %4998 }
0x1d27   : > { %v4140_v0 = vsub.f32 %v9993_v57, %v4128_v47  ;;  %3997 = vadd.xlane.f32.xlu1 %v3996_v26  ;;  %8189 = vpow2.f32 %v3976_v20  ;;  %v4752_v47 = vsub.f32 %v10023_v3, %v10240_v37  ;;  %v4756_v3 = vsub.f32 %v10037_v61, %v10248_v53 }
0x1d29   : > { %v10280_v13 = vpop.eup %8183  ;;  %v4153_v22 = vmul.f32 1.442695, %v4140_v0  ;;  %3982 = vadd.xlane.f32.xlu0 %v3981_v25 }
0x1d2a   : > { %v3947_v63 = vpop.xlane.xlu0 %3946  ;;  %v4171_v29 = vsel %vm2477_vm12, %v10280_v13, 0.0  ;;  %v10286_v40 = vpop.eup %8185 }
0x1d2b   : > { %11175 = vst [vmem:[#allocation37_spill] sm:$0xff] %v10286_v40  ;;  %v3959_v8 = vsub.f32 %v9995_v31, %v3947_v63  ;;  %4172 = vadd.xlane.f32.xlu1 %v4171_v29  ;;  %8191 = vpow2.f32 %v4153_v22  ;;  %v3990_v0 = vsel %vm2477_vm12, %v10286_v40, 0.0  ;;  %v10297_v6 = vpop.xlane.xlu1 %5016 }
0x1d2d   : > { %v10289_v57 = vpop.eup %8187  ;;  %v3972_v20 = vmul.f32 1.442695, %v3959_v8  ;;  %v4762_v8 = vmul.f32 1.442695, %v4752_v47 }
0x1d2e   : > { %v4463_v26 = vpop.xlane.xlu0 %4462  ;;  %v4180_v25 = vsel %vm2477_vm12, %v10289_v57, 0.0 }
0x1d2f   : > { %v4481_v4 = vsub.f32 %v9999_v50, %v4463_v26  ;;  %3991 = vadd.xlane.f32.xlu1 %v3990_v0  ;;  %4181 = vadd.xlane.f32.xlu0 %v4180_v25  ;;  %8193 = vpow2.f32 %v3972_v20  ;;  %v5011_v40 = vpop.xlane.xlu1 %5010  ;;  %v4754_v20 = vsub.f32 %v10039_v9, %v10255_v15 }
0x1d31   : > { %v4491_v31 = vmul.f32 1.442695, %v4481_v4  ;;  %v10300_v22 = vpop.eup %8189  ;;  %v4770_v4 = vmul.f32 1.442695, %v4756_v3  ;;  %v4766_v25 = vmul.f32 1.442695, %v4754_v20 }
0x1d32   : > { %v4457_v37 = vpop.xlane.xlu0 %4456  ;;  %v3999_v29 = vsel %vm2477_vm12, %v10300_v22, 0.0 }
0x1d33   : > { %v4479_v63 = vsub.f32 %v10001_v38, %v4457_v37  ;;  %8195 = vpow2.f32 %v4491_v31  ;;  %4000 = vadd.xlane.f32.xlu0 %v3999_v29  ;;  %v5025_v31 = vsub.f32 %v10071_v12, %v5011_v40  ;;  %v5274_v3 = vpop.xlane.xlu1 %5273 }
0x1d34   : > { %8197 = vpow2.f32 %v4762_v8  ;;  %v5292_v29 = vsub.f32 %v10085_v62, %v5274_v3 }
0x1d35   : > { %v4487_v50 = vmul.f32 1.442695, %v4479_v63  ;;  %v10307_v26 = vpop.eup %8191  ;;  %v5037_v63 = vmul.f32 1.442695, %v5025_v31 }
0x1d36   : > { %v4466_v47 = vpop.xlane.xlu0 %4465  ;;  %v4174_v38 = vsel %vm2477_vm12, %v10307_v26, 0.0 }
0x1d37   : > { %v4482_v61 = vsub.f32 %v10005_v41, %v4466_v47  ;;  %8199 = vpow2.f32 %v4487_v50  ;;  %4175 = vadd.xlane.f32.xlu0 %v4174_v38  ;;  %v5302_v47 = vmul.f32 1.442695, %v5292_v29 }
0x1d38   : > { %8201 = vpow2.f32 %v4770_v4 }
0x1d39   : > { %v4493_v53 = vmul.f32 1.442695, %v4482_v61  ;;  %v10314_v0 = vpop.eup %8193 }
0x1d3a   : > { %v4460_v8 = vpop.xlane.xlu0 %4459  ;;  %v3993_v9 = vsel %vm2477_vm12, %v10314_v0, 0.0 }
0x1d3b   : > { %v4480_v37 = vsub.f32 %v10007_v17, %v4460_v8  ;;  %8203 = vpow2.f32 %v4493_v53  ;;  %3994 = vadd.xlane.f32.xlu0 %v3993_v9 }
0x1d3c   : > { %8205 = vpow2.f32 %v4766_v25 }
0x1d3d   : > { %v4489_v41 = vmul.f32 1.442695, %v4480_v37  ;;  %v10320_v15 = vpop.eup %8195 }
0x1d3e   : > { %v4475_v50 = vpop.xlane.xlu0 %4474  ;;  %v4509_v12 = vsel %vm2477_vm12, %v10320_v15, 0.0  ;;  %v10326_v40 = vpop.eup %8197 }
0x1d3f   : > { %v4485_v4 = vsub.f32 %v10011_v48, %v4475_v50  ;;  %8207 = vpow2.f32 %v4489_v41  ;;  %4510 = vadd.xlane.f32.xlu1 %v4509_v12  ;;  %v4780_v62 = vsel %vm2477_vm12, %v10326_v40, 0.0 }
0x1d40   : > { %8209 = vpow2.f32 %v5037_v63 }
0x1d41   : > { %v4499_v17 = vmul.f32 1.442695, %v4485_v4  ;;  %v10328_v20 = vpop.eup %8199 }
0x1d42   : > { %v4469_v61 = vpop.xlane.xlu0 %4468  ;;  %v4503_v48 = vsel %vm2477_vm12, %v10328_v20, 0.0  ;;  %v10335_v53 = vpop.eup %8201 }
0x1d43   : > { %v4483_v38 = vsub.f32 %v10013_v56, %v4469_v61  ;;  %8211 = vpow2.f32 %v4499_v17  ;;  %4781 = vadd.xlane.f32.xlu1 %v4780_v62  ;;  %4504 = vadd.xlane.f32.xlu0 %v4503_v48  ;;  %v4792_v56 = vsel %vm2477_vm12, %v10335_v53, 0.0 }
0x1d44   : > { %8213 = vpow2.f32 %v5302_v47 }
0x1d45   : > { %v4495_v25 = vmul.f32 1.442695, %v4483_v38  ;;  %v10337_v31 = vpop.eup %8203 }
0x1d46   : > { %v4478_v8 = vpop.xlane.xlu0 %4477  ;;  %v4512_v37 = vsel %vm2477_vm12, %v10337_v31, 0.0  ;;  %v10344_v9 = vpop.eup %8205 }
0x1d47   : > { %v4486_v3 = vsub.f32 %v10017_v55, %v4478_v8  ;;  %8215 = vpow2.f32 %v4495_v25  ;;  %4793 = vadd.xlane.f32.xlu1 %v4792_v56  ;;  %4513 = vadd.xlane.f32.xlu0 %v4512_v37  ;;  %v4786_v55 = vsel %vm2477_vm12, %v10344_v9, 0.0 }
0x1d49   : > { %v4501_v41 = vmul.f32 1.442695, %v4486_v3  ;;  %v10346_v63 = vpop.eup %8207 }
0x1d4a   : > { %v4472_v29 = vpop.xlane.xlu0 %4471  ;;  %v4506_v4 = vsel %vm2477_vm12, %v10346_v63, 0.0  ;;  %v10353_v12 = vpop.eup %8209 }
0x1d4b   : > { %v4484_v50 = vsub.f32 %v10019_v43, %v4472_v29  ;;  %8217 = vpow2.f32 %v4501_v41  ;;  %4787 = vadd.xlane.f32.xlu1 %v4786_v55  ;;  %4507 = vadd.xlane.f32.xlu0 %v4506_v4  ;;  %v5057_v43 = vsel %vm2477_vm12, %v10353_v12, 0.0 }
0x1d4d   : > { %v4497_v17 = vmul.f32 1.442695, %v4484_v50  ;;  %v10355_v47 = vpop.eup %8211 }
0x1d4e   : > { %v4728_v61 = vpop.xlane.xlu0 %4727  ;;  %v4521_v62 = vsel %vm2477_vm12, %v10355_v47, 0.0  ;;  %v10362_v48 = vpop.eup %8213 }
0x1d4f   : > { %v4750_v38 = vsub.f32 %v10025_v59, %v4728_v61  ;;  %11176 = vst [vmem:[#allocation38_spill] sm:$0xff] %v10362_v48  ;;  %8219 = vpow2.f32 %v4497_v17  ;;  %5058 = vadd.xlane.f32.xlu1 %v5057_v43  ;;  %4522 = vadd.xlane.f32.xlu0 %v4521_v62  ;;  %v5320_v59 = vsel %vm2477_vm12, %v10362_v48, 0.0 }
0x1d51   : > { %v4758_v25 = vmul.f32 1.442695, %v4750_v38  ;;  %v10364_v8 = vpop.eup %8215 }
0x1d52   : > { %v4737_v3 = vpop.xlane.xlu0 %4736  ;;  %v4515_v37 = vsel %vm2477_vm12, %v10364_v8, 0.0 }
0x1d53   : > { %v4753_v56 = vsub.f32 %v10031_v1, %v4737_v3  ;;  %8221 = vpow2.f32 %v4758_v25  ;;  %5321 = vadd.xlane.f32.xlu1 %v5320_v59  ;;  %4516 = vadd.xlane.f32.xlu0 %v4515_v37 }
0x1d55   : > { %v4764_v41 = vmul.f32 1.442695, %v4753_v56  ;;  %v10371_v29 = vpop.eup %8217  ;;  %v10385_v56 = vpop.xlane.xlu1 %5267 }
0x1d56   : > { %v4731_v50 = vpop.xlane.xlu0 %4730  ;;  %v4524_v4 = vsel %vm2477_vm12, %v10371_v29, 0.0 }
0x1d57   : > { %v4751_v55 = vsub.f32 %v10033_v7, %v4731_v50  ;;  %8223 = vpow2.f32 %v4764_v41  ;;  %4525 = vadd.xlane.f32.xlu0 %v4524_v4  ;;  %v5023_v7 = vsub.f32 %v10053_v44, %v10266_v52 }
0x1d59   : > { %v4760_v1 = vmul.f32 1.442695, %v4751_v55  ;;  %v10376_v17 = vpop.eup %8219  ;;  %v5033_v50 = vmul.f32 1.442695, %v5023_v7  ;;  %v5021_v55 = vsub.f32 %v10055_v42, %v10282_v46  ;;  %v5286_v52 = vpop.xlane.xlu1 %5285 }
0x1d5a   : > { %v4749_v61 = vpop.xlane.xlu0 %4748  ;;  %v4518_v43 = vsel %vm2477_vm12, %v10376_v17, 0.0 }
0x1d5b   : > { %v4757_v38 = vsub.f32 %v10045_v14, %v4749_v61  ;;  %8225 = vpow2.f32 %v4760_v1  ;;  %4519 = vadd.xlane.f32.xlu0 %v4518_v43 }
0x1d5d   : > { %v4772_v62 = vmul.f32 1.442695, %v4757_v38  ;;  %v10381_v25 = vpop.eup %8221 }
0x1d5e   : > { %v4743_v3 = vpop.xlane.xlu0 %4742  ;;  %v4774_v14 = vsel %vm2477_vm12, %v10381_v25, 0.0 }
0x1d5f   : > { %8227 = vpow2.f32 %v4772_v62  ;;  %v4755_v59 = vsub.f32 %v10047_v16, %v4743_v3  ;;  %4775 = vadd.xlane.f32.xlu0 %v4774_v14  ;;  %v5029_v16 = vmul.f32 1.442695, %v5021_v55 }
0x1d61   : > { %v4768_v37 = vmul.f32 1.442695, %v4755_v59  ;;  %v10390_v41 = vpop.eup %8223  ;;  %v5280_v59 = vpop.xlane.xlu1 %5279 }
0x1d62   : > { %v5008_v4 = vpop.xlane.xlu0 %5007  ;;  %v4783_v44 = vsel %vm2477_vm12, %v10390_v41, 0.0 }
0x1d63   : > { %8229 = vpow2.f32 %v4768_v37  ;;  %4784 = vadd.xlane.f32.xlu0 %v4783_v44  ;;  %v5024_v61 = vsub.f32 %v10061_v35, %v5008_v4  ;;  %v5027_v35 = vsub.f32 %v10069_v24, %v10297_v6 }
0x1d64   : > { %8231 = vpow2.f32 %v5033_v50 }
0x1d65   : > { %v10396_v1 = vpop.eup %8225  ;;  %8233 = vpow2.f32 %v5029_v16  ;;  %v5035_v42 = vmul.f32 1.442695, %v5024_v61  ;;  %v5041_v44 = vmul.f32 1.442695, %v5027_v35 }
0x1d66   : > { %v5002_v38 = vpop.xlane.xlu0 %5001  ;;  %v4777_v43 = vsel %vm2477_vm12, %v10396_v1, 0.0 }
0x1d67   : > { %4778 = vadd.xlane.f32.xlu0 %v4777_v43  ;;  %v5022_v46 = vsub.f32 %v10063_v49, %v5002_v38  ;;  %8235 = vpow2.f32 %v5035_v42  ;;  %v10414_v49 = vpop.xlane.xlu1 %5545  ;;  %v5296_v43 = vsub.f32 %v10101_v30, %v5286_v52 }
0x1d69   : > { %v10401_v62 = vpop.eup %8227  ;;  %v5031_v37 = vmul.f32 1.442695, %v5022_v46 }
0x1d6a   : > { %v5020_v7 = vpop.xlane.xlu0 %5019  ;;  %v4795_v3 = vsel %vm2477_vm12, %v10401_v62, 0.0 }
0x1d6b   : > { %4796 = vadd.xlane.f32.xlu0 %v4795_v3  ;;  %8237 = vpow2.f32 %v5031_v37  ;;  %v5028_v16 = vsub.f32 %v10077_v58, %v5020_v7  ;;  %v10424_v37 = vpop.xlane.xlu1 %5539  ;;  %v11177_v58 = vld [vmem:[#allocation21_spill] sm:$0xff] }
0x1d6c   : > { %8239 = vpow2.f32 %v5041_v44  ;;  %v11179_v44 = vld [vmem:[#allocation19_spill] sm:$0xff] }
0x1d6d   : > { %v10406_v14 = vpop.eup %8229  ;;  %v5043_v46 = vmul.f32 1.442695, %v5028_v16  ;;  %v5290_v16 = vsub.f32 %v11179_v44, %v10385_v56 }
0x1d6e   : > { %v5014_v50 = vpop.xlane.xlu0 %5013  ;;  %v4789_v55 = vsel %vm2477_vm12, %v10406_v14, 0.0  ;;  %v10412_v4 = vpop.eup %8231 }
0x1d6f   : > { %4790 = vadd.xlane.f32.xlu0 %v4789_v55  ;;  %v5051_v24 = vsel %vm2477_vm12, %v10412_v4, 0.0  ;;  %v10420_v6 = vpop.eup %8233  ;;  %v5026_v3 = vsub.f32 %v10079_v60, %v5014_v50 }
0x1d71   : > { %v10429_v55 = vpop.eup %8235  ;;  %v5039_v60 = vmul.f32 1.442695, %v5026_v3 }
0x1d72   : > { %v5277_v61 = vpop.xlane.xlu0 %5276 }
0x1d73   : > { %v5293_v38 = vsub.f32 %v10093_v19, %v5277_v61  ;;  %5052 = vadd.xlane.f32.xlu0 %v5051_v24  ;;  %v5045_v19 = vsel %vm2477_vm12, %v10420_v6, 0.0  ;;  %v5310_v61 = vmul.f32 1.442695, %v5296_v43  ;;  %v11178_v24 = vld [vmem:[#allocation20_spill] sm:$0xff]  ;;  %v11180_v43 = vld [vmem:[#allocation23_spill] sm:$0xff] }
0x1d74   : > { %v5294_v30 = vsub.f32 %v11178_v24, %v5280_v59 }
0x1d75   : > { %v5304_v42 = vmul.f32 1.442695, %v5293_v38  ;;  %v5054_v38 = vsel %vm2477_vm12, %v10429_v55, 0.0 }
0x1d76   : > { %v5271_v35 = vpop.xlane.xlu0 %5270 }
0x1d77   : > { %8241 = vpow2.f32 %v5304_v42  ;;  %v5291_v7 = vsub.f32 %v11177_v58, %v5271_v35  ;;  %5046 = vadd.xlane.f32.xlu0 %v5045_v19  ;;  %v10436_v42 = vpop.eup %8237  ;;  %v5306_v35 = vmul.f32 1.442695, %v5294_v30  ;;  %v10438_v58 = vpop.xlane.xlu1 %5557 }
0x1d78   : > { %8243 = vpow2.f32 %v5043_v46  ;;  %v5048_v56 = vsel %vm2477_vm12, %v10436_v42, 0.0  ;;  %v10443_v46 = vpop.eup %8239 }
0x1d79   : > { %v5300_v52 = vmul.f32 1.442695, %v5291_v7  ;;  %v5298_v7 = vmul.f32 1.442695, %v5290_v16 }
0x1d7a   : > { %v5289_v50 = vpop.xlane.xlu0 %5288 }
0x1d7b   : > { %8245 = vpow2.f32 %v5300_v52  ;;  %5055 = vadd.xlane.f32.xlu0 %v5054_v38  ;;  %v5297_v59 = vsub.f32 %v11180_v43, %v5289_v50  ;;  %v10450_v44 = vpop.xlane.xlu1 %5551  ;;  %v11182_v38 = vld [vmem:[#allocation22_spill] sm:$0xff] }
0x1d7c   : > { %8247 = vpow2.f32 %v5310_v61 }
0x1d7d   : > { %8249 = vpow2.f32 %v5039_v60  ;;  %v5312_v24 = vmul.f32 1.442695, %v5297_v59  ;;  %v5063_v60 = vsel %vm2477_vm12, %v10443_v46, 0.0 }
0x1d7e   : > { %v5283_v19 = vpop.xlane.xlu0 %5282  ;;  %8251 = vpow2.f32 %v5306_v35  ;;  %v5564_v35 = vsub.f32 %v11182_v38, %v10414_v49 }
0x1d7f   : > { %5049 = vadd.xlane.f32.xlu0 %v5048_v56  ;;  %v5295_v61 = vsub.f32 %v10111_v54, %v5283_v19  ;;  %8253 = vpow2.f32 %v5298_v7 }
0x1d80   : > { %8255 = vpow2.f32 %v5312_v24  ;;  %v11184_v24 = vld [vmem:[#allocation25_spill] sm:$0xff] }
0x1d81   : > { %v10445_v3 = vpop.eup %8241  ;;  %v5308_v43 = vmul.f32 1.442695, %v5295_v61  ;;  %v5562_v61 = vsub.f32 %v11184_v24, %v10424_v37 }
0x1d82   : > { %11181 = vst [vmem:[#allocation21_spill] sm:$0xff] %v10445_v3  ;;  %v5549_v30 = vpop.xlane.xlu0 %5548  ;;  %v5323_v52 = vsel %vm2477_vm12, %v10445_v3, 0.0  ;;  %v10455_v50 = vpop.eup %8243 }
0x1d83   : > { %v5565_v16 = vsub.f32 %v10125_v36, %v5549_v30  ;;  %5324 = vadd.xlane.f32.xlu1 %v5323_v52  ;;  %5064 = vadd.xlane.f32.xlu0 %v5063_v60  ;;  %v5066_v30 = vsel %vm2477_vm12, %v10455_v50, 0.0  ;;  %v5574_v52 = vmul.f32 1.442695, %v5564_v35  ;;  %v5570_v37 = vmul.f32 1.442695, %v5562_v61 }
0x1d85   : > { %v10459_v54 = vpop.eup %8245  ;;  %v5576_v59 = vmul.f32 1.442695, %v5565_v16  ;;  %v5817_v16 = vpop.xlane.xlu1 %5816 }
0x1d86   : > { %v5543_v7 = vpop.xlane.xlu0 %5542  ;;  %v5317_v19 = vsel %vm2477_vm12, %v10459_v54, 0.0  ;;  %v10463_v36 = vpop.eup %8247 }
0x1d87   : > { %11183 = vst [vmem:[#allocation20_spill] sm:$0xff] %v10463_v36  ;;  %8257 = vpow2.f32 %v5576_v59  ;;  %v5563_v56 = vsub.f32 %v10127_v5, %v5543_v7  ;;  %5318 = vadd.xlane.f32.xlu1 %v5317_v19  ;;  %v10468_v49 = vpop.eup %8249  ;;  %5067 = vadd.xlane.f32.xlu0 %v5066_v30  ;;  %v5332_v59 = vsel %vm2477_vm12, %v10463_v36, 0.0 }
0x1d88   : > { %8259 = vpow2.f32 %v5308_v43  ;;  %v10474_v48 = vpop.eup %8251  ;;  %v5060_v7 = vsel %vm2477_vm12, %v10468_v49, 0.0  ;;  %v11186_v43 = vld [vmem:[#allocation24_spill] sm:$0xff] }
0x1d89   : > { %v5572_v60 = vmul.f32 1.442695, %v5563_v56  ;;  %11185 = vst [vmem:[#allocation19_spill] sm:$0xff] %v10474_v48  ;;  %v10479_v35 = vpop.eup %8253  ;;  %v5568_v19 = vsub.f32 %v11186_v43, %v10438_v58  ;;  %v11187_v56 = vld [vmem:[#allocation27_spill] sm:$0xff] }
0x1d8a   : > { %v5561_v38 = vpop.xlane.xlu0 %5560  ;;  %v5835_v30 = vsub.f32 %v11187_v56, %v5817_v16  ;;  %v11190_v16 = vld [vmem:[#allocation26_spill] sm:$0xff]  ;;  %v11191_v56 = vld [vmem:[#allocation29_spill] sm:$0xff] }
0x1d8b   : > { %8261 = vpow2.f32 %v5572_v60  ;;  %v5569_v5 = vsub.f32 %v10141_v39, %v5561_v38  ;;  %5333 = vadd.xlane.f32.xlu1 %v5332_v59  ;;  %5061 = vadd.xlane.f32.xlu0 %v5060_v7  ;;  %v5326_v60 = vsel %vm2477_vm12, %v10474_v48, 0.0  ;;  %v10486_v39 = vpop.eup %8255  ;;  %v5811_v38 = vpop.xlane.xlu1 %5810  ;;  %v5582_v58 = vmul.f32 1.442695, %v5568_v19 }
0x1d8c   : > { %8263 = vpow2.f32 %v5574_v52  ;;  %11188 = vst [vmem:[#allocation23_spill] sm:$0xff] %v10486_v39  ;;  %v5314_v52 = vsel %vm2477_vm12, %v10479_v35, 0.0  ;;  %v5845_v7 = vmul.f32 1.442695, %v5835_v30  ;;  %v5833_v48 = vsub.f32 %v11191_v56, %v5811_v38 }
0x1d8d   : > { %v5584_v24 = vmul.f32 1.442695, %v5569_v5  ;;  %v5566_v5 = vsub.f32 %v11190_v16, %v10450_v44 }
0x1d8e   : > { %v5555_v36 = vpop.xlane.xlu0 %5554  ;;  %v5841_v30 = vmul.f32 1.442695, %v5833_v48 }
0x1d8f   : > { %8265 = vpow2.f32 %v5584_v24  ;;  %v5567_v59 = vsub.f32 %v10143_v34, %v5555_v36  ;;  %5327 = vadd.xlane.f32.xlu1 %v5326_v60  ;;  %5315 = vadd.xlane.f32.xlu0 %v5314_v52  ;;  %v5335_v34 = vsel %vm2477_vm12, %v10486_v39, 0.0  ;;  %v5578_v44 = vmul.f32 1.442695, %v5566_v5 }
0x1d90   : > { %8267 = vpow2.f32 %v5570_v37 }
0x1d91   : > { %v10491_v61 = vpop.eup %8257  ;;  %v5580_v43 = vmul.f32 1.442695, %v5567_v59 }
0x1d92   : > { %11189 = vst [vmem:[#allocation22_spill] sm:$0xff] %v10491_v61  ;;  %v5820_v3 = vpop.xlane.xlu0 %5819  ;;  %v5595_v36 = vsel %vm2477_vm12, %v10491_v61, 0.0  ;;  %v10500_v24 = vpop.eup %8259 }
0x1d93   : > { %11192 = vst [vmem:[#allocation25_spill] sm:$0xff] %v10500_v24  ;;  %8269 = vpow2.f32 %v5580_v43  ;;  %5336 = vadd.xlane.f32.xlu1 %v5335_v34  ;;  %5596 = vadd.xlane.f32.xlu0 %v5595_v36  ;;  %v5836_v60 = vsub.f32 %v10157_v11, %v5820_v3  ;;  %v5329_v59 = vsel %vm2477_vm12, %v10500_v24, 0.0  ;;  %v11206_v24 = vld [vmem:[#allocation33_spill] sm:$0xff] }
0x1d94   : > { %8271 = vpow2.f32 %v5582_v58 }
0x1d95   : > { %v10502_v37 = vpop.eup %8261  ;;  %8273 = vpow2.f32 %v5845_v7  ;;  %v5847_v48 = vmul.f32 1.442695, %v5836_v60 }
0x1d96   : > { %11193 = vst [vmem:[#allocation24_spill] sm:$0xff] %v10502_v37  ;;  %v10504_v19 = vpop.eup %8263  ;;  %v5814_v38 = vpop.xlane.xlu0 %5813  ;;  %v5589_v52 = vsel %vm2477_vm12, %v10502_v37, 0.0  ;;  %8275 = vpow2.f32 %v5578_v44 }
0x1d97   : > { %11194 = vst [vmem:[#allocation27_spill] sm:$0xff] %v10504_v19  ;;  %5330 = vadd.xlane.f32.xlu1 %v5329_v59  ;;  %5590 = vadd.xlane.f32.xlu0 %v5589_v52  ;;  %v5592_v16 = vsel %vm2477_vm12, %v10504_v19, 0.0  ;;  %8277 = vpow2.f32 %v5841_v30  ;;  %v5834_v11 = vsub.f32 %v10159_v28, %v5814_v38  ;;  %v4167_v38 = vpop.xlane.xlu1 %4166 }
0x1d98   : > { %8279 = vpow2.f32 %v5847_v48 }
0x1d99   : > { %v10511_v58 = vpop.eup %8265  ;;  %v5843_v36 = vmul.f32 1.442695, %v5834_v11 }
0x1d9a   : > { %11195 = vst [vmem:[#allocation26_spill] sm:$0xff] %v10511_v58  ;;  %v10515_v5 = vpop.eup %8267  ;;  %v5829_v3 = vpop.xlane.xlu0 %5828  ;;  %v5607_v7 = vsel %vm2477_vm12, %v10511_v58, 0.0 }
0x1d9b   : > { %11196 = vst [vmem:[#allocation29_spill] sm:$0xff] %v10515_v5  ;;  %5593 = vadd.xlane.f32.xlu1 %v5592_v16  ;;  %5608 = vadd.xlane.f32.xlu0 %v5607_v7  ;;  %v5586_v56 = vsel %vm2477_vm12, %v10515_v5, 0.0  ;;  %v5839_v44 = vsub.f32 %v10165_v23, %v5829_v3  ;;  %8281 = vpow2.f32 %v5843_v36  ;;  %v3986_v3 = vpop.xlane.xlu1 %3985 }
0x1d9d   : > { %v10520_v43 = vpop.eup %8269  ;;  %v5853_v59 = vmul.f32 1.442695, %v5839_v44 }
0x1d9e   : > { %11197 = vst [vmem:[#allocation39_spill] sm:$0xff] %v10520_v43  ;;  %v10524_v34 = vpop.eup %8271  ;;  %v10527_v30 = vpop.xlane.xlu0 %5822  ;;  %v5601_v28 = vsel %vm2477_vm12, %v10520_v43, 0.0  ;;  %v11205_v43 = vld [vmem:[#allocation32_spill] sm:$0xff] }
0x1d9f   : > { %11198 = vst [vmem:[#allocation40_spill] sm:$0xff] %v10524_v34  ;;  %v10531_v60 = vpop.eup %8273  ;;  %5587 = vadd.xlane.f32.xlu1 %v5586_v56  ;;  %5602 = vadd.xlane.f32.xlu0 %v5601_v28  ;;  %v5604_v16 = vsel %vm2477_vm12, %v10524_v34, 0.0  ;;  %8283 = vpow2.f32 %v5853_v59 }
0x1da0   : > { %11199 = vst [vmem:[#allocation41_spill] sm:$0xff] %v10531_v60  ;;  %v10537_v48 = vpop.eup %8275  ;;  %v5863_v23 = vsel %vm2477_vm12, %v10531_v60, 0.0 }
0x1da1   : > { %11200 = vst [vmem:[#allocation42_spill] sm:$0xff] %v10537_v48  ;;  %v10541_v11 = vpop.eup %8277  ;;  %v5598_v56 = vsel %vm2477_vm12, %v10537_v48, 0.0 }
0x1da2   : > { %v10533_v52 = vpop.xlane.xlu0 %5831  ;;  %11201 = vst [vmem:[#allocation43_spill] sm:$0xff] %v10541_v11  ;;  %v5857_v36 = vsel %vm2477_vm12, %v10541_v11, 0.0  ;;  %v10549_v44 = vpop.eup %8279 }
0x1da3   : > { %5605 = vadd.xlane.f32.xlu1 %v5604_v16  ;;  %5864 = vadd.xlane.f32.xlu0 %v5863_v23  ;;  %11202 = vst [vmem:[#allocation44_spill] sm:$0xff] %v10549_v44  ;;  %v4161_v16 = vpop.xlane.xlu1 %4160  ;;  %v5866_v60 = vsel %vm2477_vm12, %v10549_v44, 0.0 }
0x1da5   : > { %v10553_v23 = vpop.eup %8281 }
0x1da6   : > { %v10543_v7 = vpop.xlane.xlu0 %5825  ;;  %11203 = vst [vmem:[#allocation45_spill] sm:$0xff] %v10553_v23  ;;  %v5860_v58 = vsel %vm2477_vm12, %v10553_v23, 0.0 }
0x1da7   : > { %5599 = vadd.xlane.f32.xlu1 %v5598_v56  ;;  %5858 = vadd.xlane.f32.xlu0 %v5857_v36  ;;  %v3980_v56 = vpop.xlane.xlu1 %3979 }
0x1da9   : > { %v10557_v34 = vpop.eup %8283 }
0x1daa   : > { %v4170_v28 = vpop.xlane.xlu0 %4169  ;;  %11204 = vst [vmem:[#allocation46_spill] sm:$0xff] %v10557_v34  ;;  %v5875_v11 = vsel %vm2477_vm12, %v10557_v34, 0.0 }
0x1dab   : > { %5867 = vadd.xlane.f32.xlu0 %v5866_v60  ;;  %8285 = vrcp.f32 %v4170_v28  ;;  %v10563_v60 = vpack.c.bf16 %v11205_v43, %v11205_v43 }
0x1dac   : > { %8287 = vrcp.f32 %v4161_v16 }
0x1dad   : > { %8289 = vrcp.f32 %v4167_v38 }
0x1dae   : > { %v3989_v59 = vpop.xlane.xlu0 %3988 }
0x1daf   : > { %5861 = vadd.xlane.f32.xlu0 %v5860_v58 }
0x1db0   : > { %v4179_v44 = vpop.xlane.xlu1 %4178 }
0x1db2   : > { %v4164_v36 = vpop.xlane.xlu0 %4163 }
0x1db3   : > { %8291 = vrcp.f32 %v4164_v36  ;;  %5876 = vadd.xlane.f32.xlu0 %v5875_v11 }
0x1db4   : > { %v3998_v16 = vpop.xlane.xlu1 %3997  ;;  %8293 = vrcp.f32 %v3980_v56 }
0x1db5   : > { %v8286_v28 = vpop.eup %8285 }
0x1db6   : > { %v3983_v61 = vpop.xlane.xlu0 %3982  ;;  %v8288_v58 = vpop.eup %8287  ;;  %v4194_v36 = vmul.f32 %v8286_v28, %v10245_v10  ;;  %v4299_v10 = vsel %vm2553_vm6, %v11206_v24, 0 }
0x1db7   : > { %v8290_v23 = vpop.eup %8289  ;;  %v4191_v34 = vmul.f32 %v8288_v58, %v10220_v33  ;;  %8295 = vrcp.f32 %v3983_v61  ;;  %v5837_v33 = vsub.f32 %v10167_v2, %v10527_v30 }
0x1db8   : > { %5359 = vrot.lane.b32.xlu1 %v10563_v60, %s8543_s22  ;;  %v4193_v19 = vmul.f32 %v8290_v23, %v10207_v21  ;;  %v4173_v5 = vpop.xlane.xlu1 %4172  ;;  %v11207_v21 = vld [vmem:[#allocation34_spill] sm:$0xff] }
0x1db9   : > { %v5849_v61 = vmul.f32 1.442695, %v5837_v33 }
0x1dba   : > { %v4200_v37 = vpack.c.bf16 %v4194_v36, %v4193_v19 }
0x1dbc   : > { %v4182_v38 = vpop.xlane.xlu0 %4181  ;;  %v3992_v24 = vpop.xlane.xlu1 %3991 }
0x1dbd   : > { %v8292_v48 = vpop.eup %8291  ;;  %8297 = vrcp.f32 %v4182_v38 }
0x1dbe   : > { %v4192_v11 = vmul.f32 %v8292_v48, %v10258_v18  ;;  %8299 = vrcp.f32 %v4173_v5 }
0x1dbf   : > { %8301 = vrcp.f32 %v4179_v44  ;;  %v5840_v44 = vsub.f32 %v10171_v27, %v10533_v52 }
0x1dc0   : > { %v4199_v43 = vpack.c.bf16 %v4192_v11, %v4191_v34  ;;  %v4001_v39 = vpop.xlane.xlu0 %4000 }
0x1dc2   : > { %7732 = vmatprep.mubr.msk.bf16.mxu1 %vm2477_vm12, %v4199_v43  ;;  %v5855_v43 = vmul.f32 1.442695, %v5840_v44 }
0x1dc3   : > { %7733 = vmatmul.mubr.msk.bf16.vlgmr.msra.gmra.mrb[96].mxu1 %vm2477_vm12, %v4200_v37  ;;  %v8294_v37 = vpop.eup %8293 }
0x1dc4   : > { %7741 = vmatpush3.bf16.msra.mxu1 %v4299_v10  ;;  %v4176_v18 = vpop.xlane.xlu0 %4175  ;;  %v8296_v5 = vpop.eup %8295  ;;  %v4010_v36 = vmul.f32 %v8294_v37, %v10227_v32 }
0x1dc5   : > { %7976 = vmatprep.subr.msk.bf16.mxu1 %vm2553_vm6, %v11207_v21  ;;  %8303 = vrcp.f32 %v4176_v18 }
0x1dc6   : > { %8305 = vrcp.f32 %v3986_v3 }
0x1dc7   : > { %8307 = vrcp.f32 %v3989_v59  ;;  %v8298_v34 = vpop.eup %8297  ;;  %v4011_v59 = vmul.f32 %v8296_v5, %v10269_v45 }
0x1dc8   : > { %v3995_v19 = vpop.xlane.xlu0 %3994  ;;  %v8300_v2 = vpop.eup %8299  ;;  %v4198_v23 = vmul.f32 %v8298_v34, %v10289_v57 }
0x1dc9   : > { %5630 = vrot.lane.b32.xlu0 %v10563_v60, %s11115_s21  ;;  %8309 = vrcp.f32 %v3995_v19  ;;  %v8302_v30 = vpop.eup %8301  ;;  %v4195_v56 = vmul.f32 %v8300_v2, %v10280_v13  ;;  %v4018_v57 = vpack.c.bf16 %v4011_v59, %v4010_v36  ;;  %s6647_s21 = sshll.u32 %s633_s18, 4  ;;  %s6648_s21 = int_to_ptr.vmem [resolvable:$true] %s6647_s21 }
0x1dca   : > { %8311 = vpow2.f32 %v5849_v61  ;;  %v4197_v58 = vmul.f32 %v8302_v30, %v10262_v51  ;;  %v11208_v51 = vld [vmem:[#allocation28_spill] sm:$0xff]  ;;  %v11210_v61 = vld [vmem:[#allocation30_spill] sm:$0xff]  ;;  %s8476_s27 = scalar_lea.vmem %s6648_s21, 128  ;;  %p8483_p1 = scmp.lt.s32.totalorder %s6648_s21, %s8481_s4 }
0x1dcb   : > { %8313 = vrcp.f32 %v3992_v24  ;;  %v5838_v45 = vsub.f32 %v11208_v51, %v10543_v7  ;;  %v11211_v7 = vld [vmem:[#allocation37_spill] sm:$0xff]  ;;  %p8477_p12 = scmp.ne.s32.totalorder %s6648_s21, %s8476_s27  ;;  %p8484_p2 = scmp.lt.s32.totalorder %s8482_s5, %s8476_s27 }
0x1dcc   : > { %8315 = vrcp.f32 %v4001_v39  ;;  %v4202_v10 = vpack.c.bf16 %v4198_v23, %v4197_v58  ;;  %v11209_v39 = vld [vmem:[#allocation35_spill] sm:$0xff]  ;;  %v4511_v37 = vpop.xlane.xlu1 %4510  ;;  %v11213_v58 = vld [vmem:[#allocation36_spill] sm:$0xff] }
0x1dcd   : > { %8317 = vrcp.f32 %v3998_v16  ;;  %v5851_v24 = vmul.f32 1.442695, %v5838_v45  ;;  %p8478_p13 = pnand %p8477_p12, %p8685_p5  ;;  %p8485_p3 = por %p8484_p2, %p8483_p1 }
0x1dce   : > { %8319 = vpow2.f32 %v5855_v43 }
0x1dcf   : > { %v8304_v48 = vpop.eup %8303  ;;  %p8479_p0 = pneg %p8478_p13 }
0x1dd0   : > { %v4505_v3 = vpop.xlane.xlu0 %4504  ;;  %v4196_v28 = vmul.f32 %v8304_v48, %v10307_v26  ;;  %v8306_v11 = vpop.eup %8305 }
0x1dd1   : > { %v8308_v33 = vpop.eup %8307  ;;  %8321 = vrcp.f32 %v4505_v3  ;;  %v4012_v19 = vmul.f32 %v8306_v11, %v11210_v61  ;;  %v11212_v3 = vld [vmem:[#allocation31_spill] sm:$0xff]  ;;  %p8486_p4 = pnand %p8485_p3, %p8479_p0 }
0x1dd2   : > { %v4201_v38 = vpack.c.bf16 %v4196_v28, %v4195_v56  ;;  %v4013_v52 = vmul.f32 %v8308_v33, %v11209_v39 }
0x1dd3   : > { %v8310_v13 = vpop.eup %8309 }
0x1dd4   : > { %7736 = vmatprep.mubr.msk.bf16.mxu1 %vm2477_vm12, %v4201_v38  ;;  %v4514_v27 = vpop.xlane.xlu0 %4513  ;;  %v10591_v26 = vpop.eup %8311  ;;  %v4015_v18 = vmul.f32 %v8310_v13, %v10314_v0  ;;  %v4019_v2 = vpack.c.bf16 %v4013_v52, %v4012_v19  ;;  %v4562_v0 = vsel %vm2553_vm6, %v11207_v21, 0 }
0x1dd5   : > { %7737 = vmatmul.mubr.msk.bf16.gmra.mrb[100].mxu1 %vm2477_vm12, %v4202_v10  ;;  %v8314_v32 = vpop.eup %8313  ;;  %8323 = vrcp.f32 %v4514_v27  ;;  %v5869_v5 = vsel %vm2477_vm12, %v10591_v26, 0.0 }
0x1dd6   : > { %7742 = vmatprep.mubr.msk.bf16.mxu1 %vm2477_vm12, %v4018_v57  ;;  %v4014_v34 = vmul.f32 %v8314_v32, %v11211_v7  ;;  %v8316_v30 = vpop.eup %8315 }
0x1dd7   : > { %v8318_v23 = vpop.eup %8317  ;;  %v4017_v56 = vmul.f32 %v8316_v30, %v10300_v22 }
0x1dd8   : > { %v4508_v16 = vpop.xlane.xlu0 %4507  ;;  %v4020_v44 = vpack.c.bf16 %v4015_v18, %v4014_v34  ;;  %v10609_v59 = vpop.eup %8319  ;;  %v4016_v38 = vmul.f32 %v8318_v23, %v11213_v58 }
0x1dd9   : > { %8325 = vrcp.f32 %v4508_v16  ;;  %v5878_v13 = vsel %vm2477_vm12, %v10609_v59, 0.0  ;;  %v4833_v16 = vsel %vm2553_vm6, %v11212_v3, 0 }
0x1dda   : > { %8327 = vrcp.f32 %v4511_v37  ;;  %v4021_v43 = vpack.c.bf16 %v4017_v56, %v4016_v38 }
0x1ddb   : > { %8329 = vpow2.f32 %v5851_v24  ;;  %v8322_v36 = vpop.eup %8321 }
0x1ddc   : > { %5870 = vadd.xlane.f32.xlu1 %v5869_v5  ;;  %v4523_v48 = vpop.xlane.xlu0 %4522  ;;  %v4535_v33 = vmul.f32 %v8322_v36, %v10328_v20 }
0x1ddd   : > { %7743 = vmatmul.mubr.msk.bf16.vlgmr.msra.gmra.mrb[96].mxu1 %vm2477_vm12, %v4019_v2 }
0x1dde   : > { %7763 = vmatpush3.bf16.msra.mxu1 %v4562_v0  ;;  %7746 = vmatprep.mubr.msk.bf16.mxu1 %vm2477_vm12, %v4020_v44 }
0x1ddf   : > { %7977 = vmatprep.subr.msk.bf16.mxu1 %vm2553_vm6, %v11212_v3  ;;  %v8324_v11 = vpop.eup %8323 }
0x1de0   : > { %v4517_v28 = vpop.xlane.xlu0 %4516  ;;  %v4538_v22 = vmul.f32 %v8324_v11, %v10337_v31  ;;  %v4782_v31 = vpop.xlane.xlu1 %4781 }
0x1de3   : > { %v8326_v10 = vpop.eup %8325 }
0x1de4   : > { %v4526_v21 = vpop.xlane.xlu0 %4525  ;;  %v4536_v27 = vmul.f32 %v8326_v10, %v10346_v63  ;;  %v8328_v57 = vpop.eup %8327 }
0x1de5   : > { %7747 = vmatmul.mubr.msk.bf16.gmra.mrb[100].mxu1 %vm2477_vm12, %v4021_v43  ;;  %8331 = vrcp.f32 %v4526_v21  ;;  %v10618_v45 = vpop.eup %8329  ;;  %v4537_v39 = vmul.f32 %v8328_v57, %v10320_v15  ;;  %v4794_v37 = vpop.xlane.xlu1 %4793 }
0x1de6   : > { %8333 = vrcp.f32 %v4517_v28  ;;  %v4543_v51 = vpack.c.bf16 %v4536_v27, %v4535_v33  ;;  %v5872_v63 = vsel %vm2477_vm12, %v10618_v45, 0.0 }
0x1de7   : > { %8335 = vrcp.f32 %v4523_v48  ;;  %v4544_v20 = vpack.c.bf16 %v4538_v22, %v4537_v39 }
0x1de8   : > { %5879 = vadd.xlane.f32.xlu0 %v5878_v13  ;;  %v4520_v32 = vpop.xlane.xlu0 %4519  ;;  %7764 = vmatprep.mubr.msk.bf16.mxu1 %vm2477_vm12, %v4543_v51 }
0x1de9   : > { %8337 = vrcp.f32 %v4520_v32  ;;  %v4788_v0 = vpop.xlane.xlu1 %4787 }
0x1dec   : > { %5873 = vadd.xlane.f32.xlu0 %v5872_v63  ;;  %v4776_v52 = vpop.xlane.xlu0 %4775 }
0x1ded   : > { %7765 = vmatmul.mubr.msk.bf16.vlgmr.msra.gmra.mrb[96].mxu1 %vm2477_vm12, %v4544_v20  ;;  %v5059_v27 = vpop.xlane.xlu1 %5058 }
0x1dee   : > { %7785 = vmatpush3.bf16.msra.mxu1 %v4833_v16 }
0x1def   : > { %7978 = vmatprep.subr.msk.bf16.mxu1 %vm2553_vm6, %v10563_v60  ;;  %v8332_v15 = vpop.eup %8331 }
0x1df0   : > { %v4785_v18 = vpop.xlane.xlu0 %4784  ;;  %v8334_v61 = vpop.eup %8333  ;;  %v4542_v5 = vmul.f32 %v8332_v15, %v10371_v29 }
0x1df1   : > { %v8336_v19 = vpop.eup %8335  ;;  %8339 = vrcp.f32 %v4785_v18  ;;  %v4539_v34 = vmul.f32 %v8334_v61, %v10364_v8  ;;  %v5322_v39 = vpop.xlane.xlu1 %5321 }
0x1df2   : > { %8341 = vrcp.f32 %v4776_v52  ;;  %v4541_v30 = vmul.f32 %v8336_v19, %v10355_v47 }
0x1df3   : > { %v8338_v24 = vpop.eup %8337  ;;  %8343 = vrcp.f32 %v4782_v31 }
0x1df4   : > { %v4779_v7 = vpop.xlane.xlu0 %4778  ;;  %v4540_v2 = vmul.f32 %v8338_v24, %v10376_v17  ;;  %v4546_v44 = vpack.c.bf16 %v4542_v5, %v4541_v30 }
0x1df5   : > { %8345 = vrcp.f32 %v4779_v7 }
0x1df6   : > { %v4545_v48 = vpack.c.bf16 %v4540_v2, %v4539_v34 }
0x1df8   : > { %7768 = vmatprep.mubr.msk.bf16.mxu1 %vm2477_vm12, %v4545_v48  ;;  %v4797_v23 = vpop.xlane.xlu0 %4796 }
0x1df9   : > { %7769 = vmatmul.mubr.msk.bf16.gmra.mrb[100].mxu1 %vm2477_vm12, %v4546_v44  ;;  %8347 = vrcp.f32 %v4797_v23 }
0x1dfa   : > { %8349 = vrcp.f32 %v4788_v0 }
0x1dfb   : > { %v8340_v29 = vpop.eup %8339  ;;  %8351 = vrcp.f32 %v4794_v37 }
0x1dfc   : > { %v4791_v3 = vpop.xlane.xlu0 %4790  ;;  %v8342_v56 = vpop.eup %8341  ;;  %v4809_v28 = vmul.f32 %v8340_v29, %v10390_v41 }
0x1dfd   : > { %8353 = vrcp.f32 %v4791_v3  ;;  %v8344_v8 = vpop.eup %8343  ;;  %v4806_v58 = vmul.f32 %v8342_v56, %v10381_v25  ;;  %v5102_v25 = vsel %vm2553_vm6, %v10563_v60, 0 }
0x1dfe   : > { %v4808_v36 = vmul.f32 %v8344_v8, %v10326_v40 }
0x1dff   : > { %v8346_v17 = vpop.eup %8345 }
0x1e00   : > { %v5053_v47 = vpop.xlane.xlu0 %5052  ;;  %v4807_v38 = vmul.f32 %v8346_v17, %v10396_v1  ;;  %v4815_v43 = vpack.c.bf16 %v4809_v28, %v4808_v36 }
0x1e02   : > { %5901 = vrot.lane.b32.xlu0 %v10563_v60, %s11090_s0  ;;  %v4814_v11 = vpack.c.bf16 %v4807_v38, %v4806_v58 }
0x1e03   : > { %v8348_v10 = vpop.eup %8347 }
0x1e04   : > { %7786 = vmatprep.mubr.msk.bf16.mxu1 %vm2477_vm12, %v4814_v11  ;;  %v5047_v21 = vpop.xlane.xlu0 %5046  ;;  %v8350_v33 = vpop.eup %8349  ;;  %v4813_v40 = vmul.f32 %v8348_v10, %v10401_v62 }
0x1e05   : > { %7787 = vmatmul.mubr.msk.bf16.vlgmr.msra.gmra.mrb[96].mxu1 %vm2477_vm12, %v4815_v43  ;;  %v8352_v41 = vpop.eup %8351  ;;  %v4810_v22 = vmul.f32 %v8350_v33, %v10344_v9 }
0x1e06   : > { %7807 = vmatpush3.bf16.msra.mxu1 %v5102_v25  ;;  %v4812_v51 = vmul.f32 %v8352_v41, %v10335_v53  ;;  %v11214_v25 = vld [vmem:[#allocation21_spill] sm:$0xff] }
0x1e07   : > { %v8354_v1 = vpop.eup %8353 }
0x1e08   : > { %v5056_v57 = vpop.xlane.xlu0 %5055  ;;  %v4811_v13 = vmul.f32 %v8354_v1, %v10406_v14  ;;  %v4817_v20 = vpack.c.bf16 %v4813_v40, %v4812_v51  ;;  %v11215_v40 = vld [vmem:[#allocation25_spill] sm:$0xff] }
0x1e09   : > { %8355 = vrcp.f32 %v5056_v57 }
0x1e0a   : > { %v4816_v32 = vpack.c.bf16 %v4811_v13, %v4810_v22  ;;  %8357 = vrcp.f32 %v5047_v21  ;;  %v11216_v22 = vld [vmem:[#allocation38_spill] sm:$0xff] }
0x1e0b   : > { %8359 = vrcp.f32 %v5053_v47 }
0x1e0c   : > { %7790 = vmatprep.mubr.msk.bf16.mxu1 %vm2477_vm12, %v4816_v32  ;;  %v5050_v60 = vpop.xlane.xlu0 %5049 }
0x1e0d   : > { %8361 = vrcp.f32 %v5050_v60  ;;  %7791 = vmatmul.mubr.msk.bf16.gmra.mrb[100].mxu1 %vm2477_vm12, %v4817_v20 }
0x1e10   : > { %v5325_v62 = vpop.xlane.xlu1 %5324  ;;  %v5065_v63 = vpop.xlane.xlu0 %5064 }
0x1e13   : > { %v8356_v9 = vpop.eup %8355 }
0x1e14   : > { %v5319_v31 = vpop.xlane.xlu1 %5318  ;;  %v5068_v52 = vpop.xlane.xlu0 %5067  ;;  %v5080_v15 = vmul.f32 %v8356_v9, %v10429_v55 }
0x1e15   : > { %v8358_v14 = vpop.eup %8357  ;;  %8363 = vrcp.f32 %v5068_v52 }
0x1e16   : > { %v8360_v16 = vpop.eup %8359  ;;  %8365 = vrcp.f32 %v5059_v27  ;;  %v5077_v19 = vmul.f32 %v8358_v14, %v10420_v6 }
0x1e17   : > { %v8362_v53 = vpop.eup %8361  ;;  %8367 = vrcp.f32 %v5065_v63  ;;  %v5079_v24 = vmul.f32 %v8360_v16, %v10412_v4  ;;  %v11218_v16 = vld [vmem:[#allocation23_spill] sm:$0xff] }
0x1e18   : > { %v5334_v18 = vpop.xlane.xlu1 %5333  ;;  %v5062_v61 = vpop.xlane.xlu0 %5061  ;;  %v5078_v37 = vmul.f32 %v8362_v53, %v10436_v42 }
0x1e19   : > { %8369 = vrcp.f32 %v5062_v61  ;;  %v5086_v7 = vpack.c.bf16 %v5080_v15, %v5079_v24  ;;  %v11219_v15 = vld [vmem:[#allocation29_spill] sm:$0xff]  ;;  %v11221_v24 = vld [vmem:[#allocation24_spill] sm:$0xff] }
0x1e1a   : > { %v5085_v5 = vpack.c.bf16 %v5078_v37, %v5077_v19  ;;  %8371 = vrcp.f32 %v5319_v31  ;;  %v11220_v19 = vld [vmem:[#allocation20_spill] sm:$0xff] }
0x1e1c   : > { %v5328_v34 = vpop.xlane.xlu1 %5327  ;;  %7808 = vmatprep.mubr.msk.bf16.mxu1 %vm2477_vm12, %v5085_v5  ;;  %v5316_v2 = vpop.xlane.xlu0 %5315 }
0x1e1d   : > { %8373 = vrcp.f32 %v5316_v2  ;;  %7809 = vmatmul.mubr.msk.bf16.vlgmr.msra.gmra.mrb[96].mxu1 %vm2477_vm12, %v5086_v7 }
0x1e1e   : > { %8375 = vrcp.f32 %v5325_v62 }
0x1e1f   : > { %v8364_v30 = vpop.eup %8363 }
0x1e20   : > { %v5337_v55 = vpop.xlane.xlu1 %5336  ;;  %v5597_v48 = vpop.xlane.xlu0 %5596  ;;  %v5084_v4 = vmul.f32 %v8364_v30, %v10455_v50 }
0x1e21   : > { %v8366_v44 = vpop.eup %8365 }
0x1e22   : > { %v8368_v6 = vpop.eup %8367  ;;  %v5081_v29 = vmul.f32 %v8366_v44, %v10353_v12 }
0x1e23   : > { %v8370_v0 = vpop.eup %8369  ;;  %v5083_v8 = vmul.f32 %v8368_v6, %v10443_v46 }
0x1e24   : > { %v5331_v42 = vpop.xlane.xlu1 %5330  ;;  %v5591_v23 = vpop.xlane.xlu0 %5590  ;;  %v5082_v3 = vmul.f32 %v8370_v0, %v10468_v49  ;;  %v11222_v0 = vld [vmem:[#allocation27_spill] sm:$0xff] }
0x1e25   : > { %v8372_v56 = vpop.eup %8371  ;;  %v5088_v58 = vpack.c.bf16 %v5084_v4, %v5083_v8  ;;  %8377 = vrcp.f32 %v5331_v42  ;;  %v11223_v4 = vld [vmem:[#allocation42_spill] sm:$0xff] }
0x1e26   : > { %v5087_v17 = vpack.c.bf16 %v5082_v3, %v5081_v29  ;;  %v5347_v11 = vmul.f32 %v8372_v56, %v10459_v54  ;;  %8379 = vrcp.f32 %v5322_v39  ;;  %v11217_v39 = vld [vmem:[#allocation19_spill] sm:$0xff]  ;;  %v11224_v29 = vld [vmem:[#allocation22_spill] sm:$0xff] }
0x1e27   : > { %v8374_v28 = vpop.eup %8373  ;;  %8381 = vrcp.f32 %v5328_v34  ;;  %v11225_v56 = vld [vmem:[#allocation39_spill] sm:$0xff] }
0x1e28   : > { %v5594_v47 = vpop.xlane.xlu1 %5593  ;;  %7812 = vmatprep.mubr.msk.bf16.mxu1 %vm2477_vm12, %v5087_v17  ;;  %v5609_v38 = vpop.xlane.xlu0 %5608  ;;  %v5346_v36 = vmul.f32 %v8374_v28, %v10479_v35  ;;  %8383 = vrcp.f32 %v5337_v55 }
0x1e29   : > { %7813 = vmatmul.mubr.msk.bf16.gmra.mrb[100].mxu1 %vm2477_vm12, %v5088_v58  ;;  %v8376_v10 = vpop.eup %8375 }
0x1e2a   : > { %v5354_v12 = vpack.c.bf16 %v5347_v11, %v5346_v36  ;;  %v5349_v41 = vmul.f32 %v8376_v10, %v11214_v25  ;;  %v11226_v11 = vld [vmem:[#allocation40_spill] sm:$0xff] }
0x1e2c   : > { %v5588_v50 = vpop.xlane.xlu1 %5587  ;;  %7830 = vmatprep.mubr.msk.bf16.mxu1 %vm2477_vm12, %v5354_v12  ;;  %v5603_v46 = vpop.xlane.xlu0 %5602 }
0x1e2d   : > { %8385 = vrcp.f32 %v5588_v50  ;;  %v11227_v50 = vld [vmem:[#allocation45_spill] sm:$0xff] }
0x1e2e   : > { %8387 = vrcp.f32 %v5334_v18 }
0x1e2f   : > { %v8378_v54 = vpop.eup %8377  ;;  %8389 = vrcp.f32 %v5591_v23 }
0x1e30   : > { %v5606_v49 = vpop.xlane.xlu1 %5605  ;;  %v10666_v43 = vpop.xlane.xlu0 %5864  ;;  %v5351_v57 = vmul.f32 %v8378_v54, %v11215_v40  ;;  %8391 = vrcp.f32 %v5594_v47 }
0x1e31   : > { %v8380_v33 = vpop.eup %8379 }
0x1e32   : > { %v8382_v27 = vpop.eup %8381  ;;  %v5348_v13 = vmul.f32 %v8380_v33, %v11216_v22 }
0x1e33   : > { %v5350_v20 = vmul.f32 %v8382_v27, %v11217_v39  ;;  %v8384_v62 = vpop.eup %8383 }
0x1e34   : > { %v5600_v35 = vpop.xlane.xlu1 %5599  ;;  %v5859_v21 = vpop.xlane.xlu0 %5858  ;;  %v5355_v60 = vpack.c.bf16 %v5349_v41, %v5348_v13  ;;  %v5353_v53 = vmul.f32 %v8384_v62, %v11218_v16 }
0x1e35   : > { %8393 = vrcp.f32 %v5600_v35  ;;  %v5356_v63 = vpack.c.bf16 %v5351_v57, %v5350_v20  ;;  %v11229_v35 = vld [vmem:[#allocation43_spill] sm:$0xff]  ;;  %v11230_v57 = vld [vmem:[#allocation44_spill] sm:$0xff] }
0x1e36   : > { %8395 = vrcp.f32 %v5597_v48 }
0x1e37   : > { %v8386_v31 = vpop.eup %8385  ;;  %8397 = vrcp.f32 %v5603_v46 }
0x1e38   : > { %v5360_v1 = vpop.permute.xlu1 %5359  ;;  %v5868_v32 = vpop.xlane.xlu0 %5867  ;;  %v5618_v18 = vmul.f32 %v8386_v31, %v11219_v15  ;;  %8399 = vrcp.f32 %v5606_v49  ;;  %v11228_v49 = vld [vmem:[#allocation26_spill] sm:$0xff] }
0x1e39   : > { %v5374_v51 = vsel %vm2553_vm6, %v5360_v1, 0  ;;  %7979 = vmatprep.subr.msk.bf16.mxu1 %vm2553_vm6, %v5360_v1  ;;  %v8388_v52 = vpop.eup %8387 }
0x1e3a   : > { %7829 = vmatpush3.bf16.msra.mxu1 %v5374_v51  ;;  %v8390_v14 = vpop.eup %8389  ;;  %v5352_v37 = vmul.f32 %v8388_v52, %v11220_v19  ;;  %v11231_v51 = vld [vmem:[#allocation41_spill] sm:$0xff] }
0x1e3b   : > { %v5619_v5 = vmul.f32 %v8390_v14, %v11221_v24  ;;  %v8392_v34 = vpop.eup %8391  ;;  %v11232_v14 = vld [vmem:[#allocation46_spill] sm:$0xff] }
0x1e3c   : > { %v5862_v9 = vpop.xlane.xlu0 %5861  ;;  %v5357_v7 = vpack.c.bf16 %v5353_v53, %v5352_v37  ;;  %v5620_v42 = vmul.f32 %v8392_v34, %v11222_v0  ;;  %v11234_v34 = vld [vmem:[#allocation13_spill] sm:$0xff] }
0x1e3d   : > { %7831 = vmatmul.mubr.msk.bf16.vlgmr.msra.gmra.mrb[96].mxu1 %vm2477_vm12, %v5355_v60  ;;  %8401 = vrcp.f32 %v5862_v9  ;;  %v5626_v2 = vpack.c.bf16 %v5619_v5, %v5618_v18  ;;  %v7013_v18 = vld [vmem:[%s10990_s9 + $0x2] ss:$0 sm:$0xff]  ;;  %v11233_v5 = vld [vmem:[#allocation11_spill] sm:$0xff] }
0x1e3e   : > { %7834 = vmatprep.mubr.msk.bf16.mxu1 %vm2477_vm12, %v5356_v63  ;;  %8403 = vrcp.f32 %v5609_v38 }
0x1e3f   : > { %v8394_v55 = vpop.eup %8393  ;;  %8405 = vrcp.f32 %v5859_v21 }
0x1e40   : > { %v5877_v61 = vpop.xlane.xlu0 %5876  ;;  %v8396_v48 = vpop.eup %8395  ;;  %v5622_v23 = vmul.f32 %v8394_v55, %v11223_v4  ;;  %8407 = vrcp.f32 %v5868_v32  ;;  %v11236_v4 = vld [vmem:[#allocation14_spill] sm:$0xff] }
0x1e41   : > { %v8398_v6 = vpop.eup %8397  ;;  %v5621_v3 = vmul.f32 %v8396_v48, %v11224_v29  ;;  %8409 = vrcp.f32 %v10666_v43 }
0x1e42   : > { %v5623_v8 = vmul.f32 %v8398_v6, %v11225_v56  ;;  %v8400_v28 = vpop.eup %8399 }
0x1e43   : > { %v5627_v17 = vpack.c.bf16 %v5621_v3, %v5620_v42  ;;  %v5624_v12 = vmul.f32 %v8400_v28, %v11226_v11 }
0x1e44   : > { %v5631_v30 = vpop.permute.xlu0 %5630  ;;  %v5628_v47 = vpack.c.bf16 %v5623_v8, %v5622_v23 }
0x1e45   : > { %7835 = vmatmul.mubr.msk.bf16.gmra.mrb[100].mxu1 %vm2477_vm12, %v5357_v7  ;;  %v5645_v44 = vsel %vm2553_vm6, %v5631_v30, 0  ;;  %7980 = vmatprep.subr.msk.bf16.mxu1 %vm2553_vm6, %v5631_v30  ;;  %v11235_v30 = vld [vmem:[#allocation12_spill] sm:$0xff] }
0x1e46   : > { %7852 = vmatprep.mubr.msk.bf16.mxu1 %vm2477_vm12, %v5626_v2  ;;  %7851 = vmatpush3.bf16.msra.mxu1 %v5645_v44 }
0x1e47   : > { %v8402_v58 = vpop.eup %8401 }
0x1e48   : > { %v8404_v38 = vpop.eup %8403  ;;  %v5890_v46 = vmul.f32 %v8402_v58, %v11227_v50 }
0x1e49   : > { %v8406_v36 = vpop.eup %8405  ;;  %v5625_v10 = vmul.f32 %v8404_v38, %v11228_v49  ;;  %v11238_v38 = vld [vmem:[#allocation15_spill] sm:$0xff] }
0x1e4a   : > { %v5889_v54 = vmul.f32 %v8406_v36, %v11229_v35  ;;  %v8408_v41 = vpop.eup %8407  ;;  %v11240_v35 = vld [vmem:[#allocation18_spill] sm:$0xff] }
0x1e4b   : > { %v5629_v21 = vpack.c.bf16 %v5625_v10, %v5624_v12  ;;  %v8410_v40 = vpop.eup %8409  ;;  %v5892_v22 = vmul.f32 %v8408_v41, %v11230_v57 }
0x1e4c   : > { %v5897_v33 = vpack.c.bf16 %v5890_v46, %v5889_v54  ;;  %v5891_v39 = vmul.f32 %v8410_v40, %v11231_v51  ;;  %v11239_v46 = vld [vmem:[#allocation16_spill] sm:$0xff] }
0x1e4d   : > { %7853 = vmatmul.mubr.msk.bf16.vlgmr.msra.gmra.mrb[96].mxu1 %vm2477_vm12, %v5627_v17  ;;  %v11237_v17 = vld [vmem:[#allocation17_spill] sm:$0xff] }
0x1e4e   : > { %7856 = vmatprep.mubr.msk.bf16.mxu1 %vm2477_vm12, %v5628_v47  ;;  %v5898_v43 = vpack.c.bf16 %v5892_v22, %v5891_v39 }
0x1e55   : > { %7857 = vmatmul.mubr.msk.bf16.gmra.mrb[100].mxu1 %vm2477_vm12, %v5629_v21 }
0x1e56   : > { %7874 = vmatprep.mubr.msk.bf16.mxu1 %vm2477_vm12, %v5897_v33 }
0x1e69   : > { %v5871_v27 = vpop.xlane.xlu1 %5870 }
0x1e75   : > { %v5880_v25 = vpop.xlane.xlu0 %5879 }
0x1e76   : > { %8411 = vrcp.f32 %v5880_v25 }
0x1e77   : > { %8413 = vrcp.f32 %v5871_v27 }
0x1e78   : > { %8415 = vrcp.f32 %v5877_v61 }
0x1e79   : > { %v5874_v1 = vpop.xlane.xlu0 %5873 }
0x1e7a   : > { %8417 = vrcp.f32 %v5874_v1 }
0x1e7d   : > { %v5902_v13 = vpop.permute.xlu0 %5901 }
0x1e7e   : > { %v5916_v20 = vsel %vm2553_vm6, %v5902_v13, 0  ;;  %7981 = vmatprep.subr.msk.bf16.mxu1 %vm2553_vm6, %v5902_v13 }
0x1e7f   : > { %7873 = vmatpush3.bf16.msra.mxu1 %v5916_v20 }
0x1e80   : > { %v8412_v32 = vpop.eup %8411 }
0x1e81   : > { %v8414_v60 = vpop.eup %8413  ;;  %v5896_v31 = vmul.f32 %v8412_v32, %v10609_v59 }
0x1e82   : > { %7875 = vmatmul.mubr.msk.bf16.vlgmr.msra.gmra.mrb[96].mxu1 %vm2477_vm12, %v5898_v43  ;;  %v8416_v62 = vpop.eup %8415  ;;  %v5893_v9 = vmul.f32 %v8414_v60, %v10591_v26 }
0x1e83   : > { %v5895_v16 = vmul.f32 %v8416_v62, %v11232_v14 }
0x1e84   : > { %v8418_v63 = vpop.eup %8417 }
0x1e85   : > { %v5894_v52 = vmul.f32 %v8418_v63, %v10618_v45  ;;  %v5900_v15 = vpack.c.bf16 %v5896_v31, %v5895_v16 }
0x1e87   : > { %v5899_v53 = vpack.c.bf16 %v5894_v52, %v5893_v9 }
0x1e89   : > { %7878 = vmatprep.mubr.msk.bf16.mxu1 %vm2477_vm12, %v5899_v53 }
0x1e8a   : > { %7879 = vmatmul.mubr.msk.bf16.gmra.mrb[100].mxu1 %vm2477_vm12, %v5900_v15 }
0x1f55   : > { %v7876_v61 = vpop.f32.mrb[96].mxu1 }
0x1f56   : > { %v5952_v19 = vpop.f32.mrb[97].mxu1  ;;  %v6001_v37 = vadd.f32 %v7876_v61, %v7013_v18 }
0x1f57   : > { %v5999_v59 = vadd.f32 %v7013_v18, %v5952_v19  ;;  %v7877_v24 = vpop.f32.mrb[98].mxu1 }
0x1f58   : > { %v5955_v26 = vpop.f32.mrb[99].mxu1  ;;  %v6009_v2 = vadd.f32 %v6001_v37, %v11234_v34  ;;  %v6002_v55 = vadd.f32 %v7877_v24, %v7013_v18 }
0x1f59   : > { %v6007_v45 = vadd.f32 %v5999_v59, %v11233_v5  ;;  %v6000_v7 = vadd.f32 %v7013_v18, %v5955_v26 }
0x1f5a   : > { %v6010_v23 = vadd.f32 %v6002_v55, %v11236_v4  ;;  %v6025_v56 = vsel %vm740_vm1, %v6009_v2, 0.0 }
0x1f5b   : > { %v6008_v48 = vadd.f32 %v6000_v7, %v11235_v30  ;;  %v6019_v44 = vsel %vm740_vm1, %v6007_v45, 0.0 }
0x1f5c   : > { %6020 = vadd.xlane.f32.xlu1 %v6019_v44  ;;  %v6028_v58 = vsel %vm740_vm1, %v6010_v23, 0.0 }
0x1f5d   : > { %v7880_v6 = vpop.f32.mrb[100].mxu1  ;;  %v6022_v0 = vsel %vm740_vm1, %v6008_v48, 0.0 }
0x1f5e   : > { %6023 = vadd.xlane.f32.xlu0 %v6022_v0  ;;  %v5968_v42 = vpop.f32.mrb[101].mxu1  ;;  %v6005_v29 = vadd.f32 %v7880_v6, %v7013_v18  ;;  %v8077_v0 = vld [vmem:[%s10993_s12 + $0x20] sm:$0xff]  }
0x1f5f   : > { %v7881_v3 = vpop.f32.mrb[102].mxu1  ;;  %v6003_v47 = vadd.f32 %v7013_v18, %v5968_v42  ;;  %7882 = vmatprep.subr.bf16.mxu0 %v8077_v0  ;;  %v8078_v42 = vld [vmem:[%s10993_s12 + $0x28] sm:$0xff]  }
0x1f60   : > { %6026 = vadd.xlane.f32.xlu1 %v6025_v56  ;;  %v5971_v8 = vpop.f32.mrb[103].mxu1  ;;  %v6013_v28 = vadd.f32 %v6005_v29, %v11237_v17  ;;  %v6006_v50 = vadd.f32 %v7881_v3, %v7013_v18  ;;  %7883 = vmatpush3.bf16.msra.mxu0 %v8077_v0 }
0x1f61   : > { %v6011_v36 = vadd.f32 %v6003_v47, %v11238_v38  ;;  %v6004_v11 = vadd.f32 %v7013_v18, %v5971_v8  ;;  %7884 = vmatprep.subr.bf16.mxu0 %v8078_v42 }
0x1f62   : > { %v6037_v12 = vsel %vm740_vm1, %v6013_v28, 0.0  ;;  %v6014_v54 = vadd.f32 %v6006_v50, %v11240_v35 }
0x1f63   : > { %v6012_v49 = vadd.f32 %v6004_v11, %v11239_v46  ;;  %v6031_v10 = vsel %vm740_vm1, %v6011_v36, 0.0  ;;  %v7016_v46 = vld [vmem:[%s10991_s10 + $0x2] ss:$0 sm:$0xff] }
0x1f64   : > { %6029 = vadd.xlane.f32.xlu1 %v6028_v58  ;;  %v6040_v33 = vsel %vm740_vm1, %v6014_v54, 0.0  ;;  %7885 = vmatpush3.bf16.msra.mxu0 %v8078_v42 }
0x1f65   : > { %v6034_v21 = vsel %vm740_vm1, %v6012_v49, 0.0 }
0x1f68   : > { %6038 = vadd.xlane.f32.xlu1 %v6037_v12 }
0x1f6c   : > { %6032 = vadd.xlane.f32.xlu1 %v6031_v10 }
0x1f70   : > { %6035 = vadd.xlane.f32.xlu1 %v6034_v21 }
0x1f74   : > { %6041 = vadd.xlane.f32.xlu1 %v6040_v33 }
0x1fe9   : > { %v6021_v27 = vpop.xlane.xlu1 %6020 }
0x1fea   : > { %v6043_v25 = vmul.f32 0.03125, %v6021_v27 }
0x1feb   : > { %v6024_v41 = vpop.xlane.xlu0 %6023 }
0x1fec   : > { %v10727_v1 = vsub.f32 %v6007_v45, %v6043_v25  ;;  %v6044_v40 = vmul.f32 0.03125, %v6024_v41 }
0x1fed   : > { %v6027_v57 = vpop.xlane.xlu1 %6026 }
0x1fee   : > { %v10729_v22 = vsub.f32 %v6008_v48, %v6044_v40  ;;  %v6045_v13 = vmul.f32 0.03125, %v6027_v57  ;;  %v6059_v51 = vmul.f32 %v10727_v1, %v10727_v1 }
0x1ff0   : > { %v10733_v39 = vsub.f32 %v6009_v2, %v6045_v13  ;;  %v6067_v20 = vsel %vm740_vm1, %v6059_v51, 0.0  ;;  %v6060_v43 = vmul.f32 %v10729_v22, %v10729_v22 }
0x1ff1   : > { %v6030_v32 = vpop.xlane.xlu1 %6029  ;;  %6068 = vadd.xlane.f32.xlu1 %v6067_v20 }
0x1ff2   : > { %v6046_v60 = vmul.f32 0.03125, %v6030_v32  ;;  %v6061_v62 = vmul.f32 %v10733_v39, %v10733_v39  ;;  %v6070_v9 = vsel %vm740_vm1, %v6060_v43, 0.0 }
0x1ff4   : > { %v10740_v63 = vsub.f32 %v6010_v23, %v6046_v60  ;;  %v6073_v31 = vsel %vm740_vm1, %v6061_v62, 0.0 }
0x1ff5   : > { %6074 = vadd.xlane.f32.xlu0 %v6073_v31  ;;  %v6039_v52 = vpop.xlane.xlu1 %6038  ;;  %6071 = vadd.xlane.f32.xlu1 %v6070_v9 }
0x1ff6   : > { %v6062_v14 = vmul.f32 %v10740_v63, %v10740_v63  ;;  %v6049_v16 = vmul.f32 0.03125, %v6039_v52 }
0x1ff8   : > { %v6076_v53 = vsel %vm740_vm1, %v6062_v14, 0.0  ;;  %v10747_v61 = vsub.f32 %v6013_v28, %v6049_v16 }
0x1ff9   : > { %v6033_v15 = vpop.xlane.xlu1 %6032  ;;  %6077 = vadd.xlane.f32.xlu1 %v6076_v53 }
0x1ffa   : > { %v6047_v18 = vmul.f32 0.03125, %v6033_v15  ;;  %v6065_v45 = vmul.f32 %v10747_v61, %v10747_v61 }
0x1ffc   : > { %v10749_v19 = vsub.f32 %v6011_v36, %v6047_v18  ;;  %v6085_v30 = vsel %vm740_vm1, %v6065_v45, 0.0 }
0x1ffd   : > { %v6036_v37 = vpop.xlane.xlu1 %6035 }
0x1ffe   : > { %v6048_v59 = vmul.f32 0.03125, %v6036_v37  ;;  %v6063_v24 = vmul.f32 %v10749_v19, %v10749_v19 }
0x2000   : > { %v10753_v26 = vsub.f32 %v6012_v49, %v6048_v59  ;;  %v6079_v5 = vsel %vm740_vm1, %v6063_v24, 0.0 }
0x2001   : > { %6080 = vadd.xlane.f32.xlu0 %v6079_v5  ;;  %v6042_v7 = vpop.xlane.xlu1 %6041 }
0x2002   : > { %v6050_v34 = vmul.f32 0.03125, %v6042_v7  ;;  %v6064_v2 = vmul.f32 %v10753_v26, %v10753_v26 }
0x2004   : > { %v10760_v55 = vsub.f32 %v6014_v54, %v6050_v34  ;;  %v6082_v48 = vsel %vm740_vm1, %v6064_v2, 0.0 }
0x2005   : > { %6086 = vadd.xlane.f32.xlu0 %v6085_v30  ;;  %6083 = vadd.xlane.f32.xlu1 %v6082_v48 }
0x2006   : > { %v6066_v44 = vmul.f32 %v10760_v55, %v10760_v55 }
0x2008   : > { %v6088_v6 = vsel %vm740_vm1, %v6066_v44, 0.0 }
0x2009   : > { %6089 = vadd.xlane.f32.xlu1 %v6088_v6 }
0x207e   : > { %v6069_v4 = vpop.xlane.xlu1 %6068 }
0x207f   : > { %v6091_v23 = vmul.f32 0.03125, %v6069_v4  ;;  %v8081_v4 = vld [vmem:[%s10995_s14 + $0x90] sm:$0xff]  }
0x2081   : > { %v6099_v29 = vadd.f32 1e-05, %v6091_v23  ;;  %v8082_v23 = vld [vmem:[%s10995_s14 + $0x98] sm:$0xff]  }
0x2082   : > { %v6075_v3 = vpop.xlane.xlu0 %6074  ;;  %v6072_v56 = vpop.xlane.xlu1 %6071 }
0x2083   : > { %8419 = vrsqrt.f32 %v6099_v29  ;;  %v6093_v8 = vmul.f32 0.03125, %v6075_v3  ;;  %v6092_v17 = vmul.f32 0.03125, %v6072_v56  ;;  %v8083_v29 = vld [vmem:[%s10995_s14 + $0xa0] sm:$0xff]   ;;  %v8084_v3 = vld [vmem:[%s10995_s14 + $0xa8] sm:$0xff]   ;;  %v8085_v56 = vld [vmem:[%s10995_s14 + $0xb0] sm:$0xff]  }
0x2085   : > { %v6101_v28 = vadd.f32 1e-05, %v6093_v8  ;;  %v6100_v47 = vadd.f32 1e-05, %v6092_v17  ;;  %v8086_v8 = vld [vmem:[%s10995_s14 + $0xb8] sm:$0xff]  }
0x2086   : > { %v6078_v58 = vpop.xlane.xlu1 %6077  ;;  %v7023_v17 = vld [vmem:[%s10994_s13 + $0x2] ss:$0 sm:$0xff] }
0x2087   : > { %8421 = vrsqrt.f32 %v6101_v28  ;;  %v6094_v38 = vmul.f32 0.03125, %v6078_v58 }
0x2088   : > { %8423 = vrsqrt.f32 %v6100_v47 }
0x2089   : > { %v6102_v36 = vadd.f32 1e-05, %v6094_v38 }
0x208b   : > { %8425 = vrsqrt.f32 %v6102_v36 }
0x208d   : > { %v8420_v11 = vpop.eup %8419 }
0x208e   : > { %v6115_v12 = vmul.f32 %v8420_v11, %v10727_v1  ;;  %v6081_v50 = vpop.xlane.xlu0 %6080  ;;  %v7017_v1 = vld [vmem:[%s10992_s11 + $0x2] ss:$0 sm:$0xff] }
0x208f   : > { %v6095_v49 = vmul.f32 0.03125, %v6081_v50 }
0x2090   : > { %v6129_v25 = vmul.f32 %v7016_v46, %v6115_v12 }
0x2091   : > { %v8422_v10 = vpop.eup %8421  ;;  %v6103_v35 = vadd.f32 1e-05, %v6095_v49 }
0x2092   : > { %v8424_v54 = vpop.eup %8423  ;;  %v6117_v21 = vmul.f32 %v8422_v10, %v10733_v39  ;;  %v6087_v33 = vpop.xlane.xlu0 %6086  ;;  %v10783_v31 = vadd.f32 %v7017_v1, %v6129_v25 }
0x2093   : > { %v6084_v27 = vpop.xlane.xlu1 %6083  ;;  %v6116_v41 = vmul.f32 %v8424_v54, %v10729_v22  ;;  %8427 = vrsqrt.f32 %v6103_v35  ;;  %v6097_v40 = vmul.f32 0.03125, %v6087_v33 }
0x2094   : > { %v6096_v57 = vmul.f32 0.03125, %v6084_v27  ;;  %v6131_v32 = vmul.f32 %v7016_v46, %v6117_v21 }
0x2095   : > { %v8426_v13 = vpop.eup %8425  ;;  %v6105_v51 = vadd.f32 1e-05, %v6097_v40  ;;  %v6130_v43 = vmul.f32 %v7016_v46, %v6116_v41 }
0x2096   : > { %v6104_v20 = vadd.f32 1e-05, %v6096_v57  ;;  %v6118_v60 = vmul.f32 %v8426_v13, %v10740_v63  ;;  %v10789_v16 = vadd.f32 %v7017_v1, %v6131_v32 }
0x2097   : > { %v6090_v39 = vpop.xlane.xlu1 %6089  ;;  %8429 = vrsqrt.f32 %v6105_v51  ;;  %v10785_v22 = vadd.f32 %v7017_v1, %v6130_v43 }
0x2098   : > { %v6098_v62 = vmul.f32 0.03125, %v6090_v39  ;;  %v6132_v9 = vmul.f32 %v7016_v46, %v6118_v60  ;;  %8431 = vrsqrt.f32 %v6104_v20 }
0x2099   : > { %v6151_v14 = vpack.c.bf16 %v10785_v22, %v10783_v31 }
0x209a   : > { %v6106_v52 = vadd.f32 1e-05, %v6098_v62  ;;  %v10791_v53 = vadd.f32 %v7017_v1, %v6132_v9 }
0x209b   : > { %7886 = vmatprep.mubr.msk.bf16.mxu0 %vm740_vm1, %v6151_v14 }
0x209c   : > { %8433 = vrsqrt.f32 %v6106_v52  ;;  %v6152_v63 = vpack.c.bf16 %v10791_v53, %v10789_v16 }
0x209d   : > { %v8428_v15 = vpop.eup %8427 }
0x209e   : > { %7887 = vmatmul.mubr.msk.bf16.vlgmr.msra.gmra.mrb[168].mxu0 %vm740_vm1, %v6152_v63  ;;  %v6119_v18 = vmul.f32 %v8428_v15, %v10749_v19 }
0x20a0   : > { %v6133_v45 = vmul.f32 %v7016_v46, %v6119_v18 }
0x20a1   : > { %v8430_v37 = vpop.eup %8429 }
0x20a2   : > { %v8432_v59 = vpop.eup %8431  ;;  %v6121_v24 = vmul.f32 %v8430_v37, %v10747_v61  ;;  %v10801_v48 = vadd.f32 %v7017_v1, %v6133_v45 }
0x20a3   : > { %v6120_v5 = vmul.f32 %v8432_v59, %v10753_v26  ;;  %v8079_v26 = vld [vmem:[%s10995_s14 + $0x80] sm:$0xff]  }
0x20a4   : > { %v6135_v30 = vmul.f32 %v7016_v46, %v6121_v24  ;;  %7894 = vmatprep.subr.bf16.mxu0 %v8079_v26 }
0x20a5   : > { %v6134_v34 = vmul.f32 %v7016_v46, %v6120_v5  ;;  %7895 = vmatpush3.bf16.msra.mxu0 %v8079_v26 }
0x20a6   : > { %v8434_v7 = vpop.eup %8433  ;;  %v10807_v0 = vadd.f32 %v7017_v1, %v6135_v30 }
0x20a7   : > { %v6122_v2 = vmul.f32 %v8434_v7, %v10760_v55  ;;  %v10803_v44 = vadd.f32 %v7017_v1, %v6134_v34  ;;  %v8080_v55 = vld [vmem:[%s10995_s14 + $0x88] sm:$0xff]  }
0x20a8   : > { %7896 = vmatprep.subr.bf16.mxu0 %v8080_v55 }
0x20a9   : > { %v6136_v6 = vmul.f32 %v7016_v46, %v6122_v2  ;;  %v6153_v19 = vpack.c.bf16 %v10803_v44, %v10801_v48  ;;  %7897 = vmatpush3.bf16.msra.mxu0 %v8080_v55 }
0x20aa   : > { %7898 = vmatprep.subr.bf16.mxu0 %v8081_v4 }
0x20ab   : > { %v10809_v42 = vadd.f32 %v7017_v1, %v6136_v6  ;;  %7890 = vmatprep.mubr.msk.bf16.mxu0 %vm740_vm1, %v6153_v19 }
0x20ad   : > { %v6154_v61 = vpack.c.bf16 %v10809_v42, %v10807_v0  ;;  %7899 = vmatpush3.bf16.msra.mxu0 %v8081_v4 }
0x20ae   : > { %7900 = vmatprep.subr.bf16.mxu0 %v8082_v23 }
0x20af   : > { %7891 = vmatmul.mubr.msk.bf16.gmra.mrb[172].mxu0 %vm740_vm1, %v6154_v61 }
0x20b1   : > { %7901 = vmatpush3.bf16.msra.mxu0 %v8082_v23 }
0x20b2   : > { %7902 = vmatprep.subr.bf16.mxu0 %v8083_v29 }
0x20b5   : > { %7903 = vmatpush3.bf16.msra.mxu0 %v8083_v29 }
0x20b6   : > { %7904 = vmatprep.subr.bf16.mxu0 %v8084_v3 }
0x20b9   : > { %7905 = vmatpush3.bf16.msra.mxu0 %v8084_v3 }
0x20ba   : > { %7906 = vmatprep.subr.bf16.mxu0 %v8085_v56 }
0x20bd   : > { %7907 = vmatpush3.bf16.msra.mxu0 %v8085_v56 }
0x20be   : > { %7908 = vmatprep.subr.bf16.mxu0 %v8086_v8 }
0x20c1   : > { %7909 = vmatpush3.bf16.msra.mxu0 %v8086_v8 }
0x2171   : > { %v7888_v28 = vpop.f32.mrb[168].mxu0 }
0x2172   : > { %v6235_v47 = vadd.f32 %v7888_v28, %v7023_v17  ;;  %v6226_v58 = vpop.f32.mrb[169].mxu0 }
0x2173   : > { %v6227_v38 = vadd.f32 %v7023_v17, %v6226_v58  ;;  %v7889_v36 = vpop.f32.mrb[170].mxu0 }
0x2174   : > { %v6267_v11 = vmul.f32 0.044715, %v6235_v47  ;;  %v6238_v12 = vadd.f32 %v7889_v36, %v7023_v17  ;;  %v6229_v50 = vpop.f32.mrb[171].mxu0  ;;  %v6259_v61 = vmul.f32 0.5, %v6235_v47 }
0x2175   : > { %v6265_v46 = vmul.f32 0.044715, %v6227_v38  ;;  %v6230_v49 = vadd.f32 %v7023_v17, %v6229_v50  ;;  %v6257_v3 = vmul.f32 0.5, %v6227_v38 }
0x2176   : > { %v6275_v10 = vmul.f32 %v6267_v11, %v6235_v47  ;;  %v6268_v35 = vmul.f32 0.044715, %v6238_v12  ;;  %v6260_v58 = vmul.f32 0.5, %v6238_v12 }
0x2177   : > { %v6273_v54 = vmul.f32 %v6265_v46, %v6227_v38  ;;  %v6266_v21 = vmul.f32 0.044715, %v6230_v49  ;;  %v6258_v50 = vmul.f32 0.5, %v6230_v49 }
0x2178   : > { %v6283_v33 = vmul.f32 %v6275_v10, %v6235_v47  ;;  %v6276_v27 = vmul.f32 %v6268_v35, %v6238_v12 }
0x2179   : > { %v6281_v25 = vmul.f32 %v6273_v54, %v6227_v38  ;;  %v6274_v41 = vmul.f32 %v6266_v21, %v6230_v49 }
0x217a   : > { %v6291_v40 = vadd.f32 %v6283_v33, %v6235_v47  ;;  %v6284_v57 = vmul.f32 %v6276_v27, %v6238_v12 }
0x217b   : > { %v6282_v1 = vmul.f32 %v6274_v41, %v6230_v49  ;;  %v6289_v13 = vadd.f32 %v6281_v25, %v6227_v38 }
0x217c   : > { %v6299_v51 = vmul.f32 0.7978846, %v6291_v40  ;;  %v6292_v20 = vadd.f32 %v6284_v57, %v6238_v12 }
0x217d   : > { %v6290_v43 = vadd.f32 %v6282_v1, %v6230_v49  ;;  %v6297_v32 = vmul.f32 0.7978846, %v6289_v13 }
0x217e   : > { %8435 = vtanh.f32 %v6299_v51  ;;  %v6300_v60 = vmul.f32 0.7978846, %v6292_v20 }
0x217f   : > { %v6298_v39 = vmul.f32 0.7978846, %v6290_v43  ;;  %8437 = vtanh.f32 %v6297_v32 }
0x2180   : > { %8439 = vtanh.f32 %v6300_v60 }
0x2181   : > { %8441 = vtanh.f32 %v6298_v39 }
0x2182   : > { %v7892_v62 = vpop.f32.mrb[172].mxu0 }
0x2183   : > { %v6251_v9 = vadd.f32 %v7892_v62, %v7023_v17  ;;  %v6242_v52 = vpop.f32.mrb[173].mxu0 }
0x2184   : > { %v6243_v14 = vadd.f32 %v7023_v17, %v6242_v52  ;;  %v7893_v63 = vpop.f32.mrb[174].mxu0 }
0x2185   : > { %v6271_v15 = vmul.f32 0.044715, %v6251_v9  ;;  %v6254_v18 = vadd.f32 %v7893_v63, %v7023_v17  ;;  %v6245_v37 = vpop.f32.mrb[175].mxu0  ;;  %v6263_v43 = vmul.f32 0.5, %v6251_v9 }
0x2186   : > { %v6269_v59 = vmul.f32 0.044715, %v6243_v14  ;;  %v6246_v24 = vadd.f32 %v7023_v17, %v6245_v37  ;;  %v6261_v39 = vmul.f32 0.5, %v6243_v14 }
0x2187   : > { %v6279_v5 = vmul.f32 %v6271_v15, %v6251_v9  ;;  %v6272_v45 = vmul.f32 0.044715, %v6254_v18  ;;  %v6264_v32 = vmul.f32 0.5, %v6254_v18 }
0x2188   : > { %v6277_v7 = vmul.f32 %v6269_v59, %v6243_v14  ;;  %v6270_v34 = vmul.f32 0.044715, %v6246_v24  ;;  %v8436_v2 = vpop.eup %8435  ;;  %v6262_v62 = vmul.f32 0.5, %v6246_v24 }
0x2189   : > { %v6287_v30 = vmul.f32 %v6279_v5, %v6251_v9  ;;  %v6280_v6 = vmul.f32 %v6272_v45, %v6254_v18  ;;  %v8438_v19 = vpop.eup %8437  ;;  %v6315_v4 = vadd.f32 1.0, %v8436_v2 }
0x218a   : > { %v6285_v26 = vmul.f32 %v6277_v7, %v6243_v14  ;;  %v6278_v55 = vmul.f32 %v6270_v34, %v6246_v24  ;;  %v8440_v23 = vpop.eup %8439  ;;  %v6313_v56 = vadd.f32 1.0, %v8438_v19  ;;  %v7047_v7 = vld [vmem:[%s10996_s15 + $0x2] ss:$0 sm:$0xff] }
0x218b   : > { %v6288_v29 = vmul.f32 %v6280_v6, %v6254_v18  ;;  %v6295_v8 = vadd.f32 %v6287_v30, %v6251_v9  ;;  %v8442_v28 = vpop.eup %8441  ;;  %v6316_v36 = vadd.f32 1.0, %v8440_v23  ;;  %v6323_v54 = vmul.f32 %v6315_v4, %v6259_v61 }
0x218c   : > { %v6286_v17 = vmul.f32 %v6278_v55, %v6246_v24  ;;  %v6293_v11 = vadd.f32 %v6285_v26, %v6243_v14  ;;  %v6314_v46 = vadd.f32 1.0, %v8442_v28  ;;  %v6321_v27 = vmul.f32 %v6313_v56, %v6257_v3 }
0x218d   : > { %v6296_v10 = vadd.f32 %v6288_v29, %v6254_v18  ;;  %v6303_v35 = vmul.f32 0.7978846, %v6295_v8  ;;  %v6324_v21 = vmul.f32 %v6316_v36, %v6260_v58 }
0x218e   : > { %v6294_v47 = vadd.f32 %v6286_v17, %v6246_v24  ;;  %v6301_v33 = vmul.f32 0.7978846, %v6293_v11  ;;  %v6322_v25 = vmul.f32 %v6314_v46, %v6258_v50 }
0x218f   : > { %v6304_v41 = vmul.f32 0.7978846, %v6296_v10  ;;  %8443 = vtanh.f32 %v6303_v35  ;;  %v6330_v38 = vpack.c.bf16 %v6324_v21, %v6323_v54 }
0x2190   : > { %v6302_v40 = vmul.f32 0.7978846, %v6294_v47  ;;  %8445 = vtanh.f32 %v6301_v33  ;;  %v6329_v57 = vpack.c.bf16 %v6322_v25, %v6321_v27 }
0x2191   : > { %8447 = vtanh.f32 %v6304_v41 }
0x2192   : > { %8449 = vtanh.f32 %v6302_v40  ;;  %7910 = vmatprep.mubr.bf16.mxu0 %v6329_v57 }
0x2193   : > { %7911 = vmatmul.mubr.bf16.vlgmr.msra.gmra.mrb[176].mxu0 %v6330_v38 }
0x2199   : > { %v8444_v12 = vpop.eup %8443 }
0x219a   : > { %v8446_v49 = vpop.eup %8445  ;;  %v6319_v1 = vadd.f32 1.0, %v8444_v12 }
0x219b   : > { %v8448_v13 = vpop.eup %8447  ;;  %v6317_v51 = vadd.f32 1.0, %v8446_v49 }
0x219c   : > { %v8450_v20 = vpop.eup %8449  ;;  %v6320_v60 = vadd.f32 1.0, %v8448_v13  ;;  %v6327_v63 = vmul.f32 %v6319_v1, %v6263_v43 }
0x219d   : > { %v6318_v52 = vadd.f32 1.0, %v8450_v20  ;;  %v6325_v37 = vmul.f32 %v6317_v51, %v6261_v39 }
0x219e   : > { %v6328_v15 = vmul.f32 %v6320_v60, %v6264_v32 }
0x219f   : > { %v6326_v59 = vmul.f32 %v6318_v52, %v6262_v62 }
0x21a0   : > { %v6332_v5 = vpack.c.bf16 %v6328_v15, %v6327_v63 }
0x21a1   : > { %v6331_v45 = vpack.c.bf16 %v6326_v59, %v6325_v37 }
0x21a3   : > { %7914 = vmatprep.mubr.bf16.mxu0 %v6331_v45 }
0x21a4   : > { %7915 = vmatmul.mubr.bf16.gmra.mrb[180].mxu0 %v6332_v5 }
0x2266   : > { %v7912_v34 = vpop.f32.mrb[176].mxu0 }
0x2267   : > { %v6449_v2 = vadd.f32 %v7912_v34, %v7047_v7  ;;  %v6440_v9 = vpop.f32.mrb[177].mxu0 }
0x2268   : > { %v6441_v18 = vadd.f32 %v7047_v7, %v6440_v9  ;;  %v7913_v30 = vpop.f32.mrb[178].mxu0 }
0x2269   : > { %v6473_v14 = vadd.f32 %v6449_v2, %v10789_v16  ;;  %v6452_v24 = vadd.f32 %v7913_v30, %v7047_v7  ;;  %v6443_v6 = vpop.f32.mrb[179].mxu0 }
0x226a   : > { %v6444_v19 = vadd.f32 %v7047_v7, %v6443_v6  ;;  %v6471_v61 = vadd.f32 %v6441_v18, %v10783_v31 }
0x226b   : > { %v6474_v26 = vadd.f32 %v6452_v24, %v10791_v53  ;;  %v6489_v55 = vsel %vm740_vm1, %v6473_v14, 0.0 }
0x226c   : > { %6490 = vadd.xlane.f32.xlu0 %v6489_v55  ;;  %v6472_v4 = vadd.f32 %v6444_v19, %v10785_v22  ;;  %v6483_v29 = vsel %vm740_vm1, %v6471_v61, 0.0 }
0x226d   : > { %v6492_v23 = vsel %vm740_vm1, %v6474_v26, 0.0 }
0x226e   : > { %6493 = vadd.xlane.f32.xlu1 %v6492_v23  ;;  %v6486_v16 = vsel %vm740_vm1, %v6472_v4, 0.0 }
0x2270   : > { %6484 = vadd.xlane.f32.xlu0 %v6483_v29 }
0x2272   : > { %6487 = vadd.xlane.f32.xlu1 %v6486_v16 }
0x2277   : > { %v7916_v3 = vpop.f32.mrb[180].mxu0 }
0x2278   : > { %v6456_v56 = vpop.f32.mrb[181].mxu0  ;;  %v6465_v8 = vadd.f32 %v7916_v3, %v7047_v7 }
0x2279   : > { %v6457_v31 = vadd.f32 %v7047_v7, %v6456_v56  ;;  %v7917_v28 = vpop.f32.mrb[182].mxu0 }
0x227a   : > { %v6459_v53 = vpop.f32.mrb[183].mxu0  ;;  %v6468_v17 = vadd.f32 %v7917_v28, %v7047_v7  ;;  %v6477_v22 = vadd.f32 %v6465_v8, %v10807_v0 }
0x227b   : > { %v6475_v58 = vadd.f32 %v6457_v31, %v10801_v48  ;;  %v6460_v36 = vadd.f32 %v7047_v7, %v6459_v53 }
0x227c   : > { %v6478_v46 = vadd.f32 %v6468_v17, %v10809_v42  ;;  %v6501_v35 = vsel %vm740_vm1, %v6477_v22, 0.0 }
0x227d   : > { %v6476_v11 = vadd.f32 %v6460_v36, %v10803_v44  ;;  %v6495_v50 = vsel %vm740_vm1, %v6475_v58, 0.0 }
0x227e   : > { %6496 = vadd.xlane.f32.xlu0 %v6495_v50  ;;  %v6504_v54 = vsel %vm740_vm1, %v6478_v46, 0.0 }
0x227f   : > { %v6498_v10 = vsel %vm740_vm1, %v6476_v11, 0.0 }
0x2280   : > { %6499 = vadd.xlane.f32.xlu1 %v6498_v10 }
0x2282   : > { %6502 = vadd.xlane.f32.xlu0 %v6501_v35 }
0x2284   : > { %6505 = vadd.xlane.f32.xlu1 %v6504_v54 }
0x22f9   : > { %v6491_v48 = vpop.xlane.xlu0 %6490 }
0x22fa   : > { %v6509_v21 = vmul.f32 0.03125, %v6491_v48 }
0x22fb   : > { %v6494_v47 = vpop.xlane.xlu1 %6493 }
0x22fc   : > { %v10861_v0 = vsub.f32 %v6473_v14, %v6509_v21  ;;  %v6510_v44 = vmul.f32 0.03125, %v6494_v47 }
0x22fd   : > { %v6485_v33 = vpop.xlane.xlu0 %6484 }
0x22fe   : > { %v10863_v27 = vsub.f32 %v6474_v26, %v6510_v44  ;;  %v6507_v25 = vmul.f32 0.03125, %v6485_v33  ;;  %v6525_v42 = vmul.f32 %v10861_v0, %v10861_v0 }
0x22ff   : > { %v6488_v41 = vpop.xlane.xlu1 %6487 }
0x2300   : > { %v10867_v38 = vsub.f32 %v6471_v61, %v6507_v25  ;;  %v6508_v40 = vmul.f32 0.03125, %v6488_v41  ;;  %v6537_v57 = vsel %vm740_vm1, %v6525_v42, 0.0  ;;  %v6526_v12 = vmul.f32 %v10863_v27, %v10863_v27 }
0x2301   : > { %6538 = vadd.xlane.f32.xlu0 %v6537_v57 }
0x2302   : > { %v10872_v49 = vsub.f32 %v6472_v4, %v6508_v40  ;;  %v6540_v1 = vsel %vm740_vm1, %v6526_v12, 0.0  ;;  %v6523_v13 = vmul.f32 %v10867_v38, %v10867_v38 }
0x2303   : > { %6541 = vadd.xlane.f32.xlu1 %v6540_v1 }
0x2304   : > { %v6531_v51 = vsel %vm740_vm1, %v6523_v13, 0.0  ;;  %v6524_v20 = vmul.f32 %v10872_v49, %v10872_v49 }
0x2305   : > { %6532 = vadd.xlane.f32.xlu0 %v6531_v51 }
0x2306   : > { %v6534_v43 = vsel %vm740_vm1, %v6524_v20, 0.0 }
0x2307   : > { %6535 = vadd.xlane.f32.xlu1 %v6534_v43 }
0x230b   : > { %v6497_v32 = vpop.xlane.xlu0 %6496 }
0x230c   : > { %v6511_v60 = vmul.f32 0.03125, %v6497_v32 }
0x230d   : > { %v6500_v39 = vpop.xlane.xlu1 %6499 }
0x230e   : > { %v10881_v62 = vsub.f32 %v6475_v58, %v6511_v60  ;;  %v6512_v52 = vmul.f32 0.03125, %v6500_v39 }
0x230f   : > { %v6503_v63 = vpop.xlane.xlu0 %6502 }
0x2310   : > { %v10883_v15 = vsub.f32 %v6476_v11, %v6512_v52  ;;  %v6513_v37 = vmul.f32 0.03125, %v6503_v63  ;;  %v6527_v59 = vmul.f32 %v10881_v62, %v10881_v62 }
0x2311   : > { %v6506_v5 = vpop.xlane.xlu1 %6505 }
0x2312   : > { %v10887_v45 = vsub.f32 %v6477_v22, %v6513_v37  ;;  %v6514_v7 = vmul.f32 0.03125, %v6506_v5  ;;  %v6543_v34 = vsel %vm740_vm1, %v6527_v59, 0.0  ;;  %v6528_v2 = vmul.f32 %v10883_v15, %v10883_v15 }
0x2313   : > { %6544 = vadd.xlane.f32.xlu0 %v6543_v34 }
0x2314   : > { %v10892_v9 = vsub.f32 %v6478_v46, %v6514_v7  ;;  %v6546_v18 = vsel %vm740_vm1, %v6528_v2, 0.0  ;;  %v6529_v30 = vmul.f32 %v10887_v45, %v10887_v45 }
0x2315   : > { %6547 = vadd.xlane.f32.xlu1 %v6546_v18 }
0x2316   : > { %v6549_v14 = vsel %vm740_vm1, %v6529_v30, 0.0  ;;  %v6530_v24 = vmul.f32 %v10892_v9, %v10892_v9 }
0x2317   : > { %6550 = vadd.xlane.f32.xlu0 %v6549_v14 }
0x2318   : > { %v6552_v6 = vsel %vm740_vm1, %v6530_v24, 0.0 }
0x2319   : > { %6553 = vadd.xlane.f32.xlu1 %v6552_v6 }
0x231a   : > { %8489 = shalt.err (!%p8486_p4)
}
0x231b   : > { %s8490_s1 = scalar_lea.hbm %s10907_s23, 128  ;;  %s8494_s18 = scalar_lea.hbm %s11000_s19, 256 }
0x231c   : > { %p8491_p7 = scmp.ne.s32.totalorder %s10907_s23, %s8490_s1  ;;  %p8495_p10 = scmp.lt.u32.totalorder %s10907_s23, %s11000_s19 }
0x231d   : > { %p8496_p11 = scmp.lt.u32.totalorder %s8494_s18, %s8490_s1  ;;  %p8498_p13 = scmp.lt.u32.totalorder %s8490_s1, %s10907_s23 }
0x231e   : > { %p8492_p8 = pnand %p8491_p7, %p8685_p5 }
0x231f   : > { %p8497_p12 = por %p8496_p11, %p8495_p10 }
0x2320   : > { %p8493_p9 = pneg %p8492_p8 }
0x2321   : > { %p8499_p0 = por %p8498_p13, %p8497_p12 }
0x2323   : > { %p8500_p1 = pnand %p8499_p0, %p8493_p9 }
0x2325   : > { %8503 = shalt.err (!%p8500_p1)
}
0x2326   : > { %7982 = dma.vmem_to_hbm [thread:$0]  (%p8685_p5), %s6648_s21, 128, %s10907_s23, %s6630_s28   ;;  %v7058_v53 = vld [vmem:[%s10997_s16 + $0x2] ss:$0 sm:$0xff] }
0x2327   : > { %v7059_v36 = vld [vmem:[%s10998_s17 + $0x2] ss:$0 sm:$0xff]  ;;  %s11241_s28 = sld [smem:[#allocation53_spill]] }
0x232d   : > { %s10940_s27 = scalar_lea.vmem %s11241_s28, %s8720_s24 }
0x238e   : > { %v6539_v19 = vpop.xlane.xlu0 %6538 }
0x238f   : > { %v6557_v61 = vmul.f32 0.03125, %v6539_v19 }
0x2390   : > { %v6542_v26 = vpop.xlane.xlu1 %6541 }
0x2391   : > { %v6565_v55 = vadd.f32 1e-05, %v6557_v61  ;;  %v6558_v4 = vmul.f32 0.03125, %v6542_v26 }
0x2392   : > { %v6533_v23 = vpop.xlane.xlu0 %6532 }
0x2393   : > { %8451 = vrsqrt.f32 %v6565_v55  ;;  %v6566_v29 = vadd.f32 1e-05, %v6558_v4  ;;  %v6555_v16 = vmul.f32 0.03125, %v6533_v23 }
0x2394   : > { %v6536_v3 = vpop.xlane.xlu1 %6535 }
0x2395   : > { %8453 = vrsqrt.f32 %v6566_v29  ;;  %v6563_v56 = vadd.f32 1e-05, %v6555_v16  ;;  %v6556_v8 = vmul.f32 0.03125, %v6536_v3 }
0x2397   : > { %8455 = vrsqrt.f32 %v6563_v56  ;;  %v6564_v31 = vadd.f32 1e-05, %v6556_v8 }
0x2399   : > { %8457 = vrsqrt.f32 %v6564_v31 }
0x239d   : > { %v8452_v28 = vpop.eup %8451 }
0x239e   : > { %v6581_v58 = vmul.f32 %v8452_v28, %v10861_v0 }
0x239f   : > { %v8454_v17 = vpop.eup %8453 }
0x23a0   : > { %v6545_v22 = vpop.xlane.xlu0 %6544  ;;  %v6595_v11 = vmul.f32 %v7058_v53, %v6581_v58  ;;  %v6582_v50 = vmul.f32 %v8454_v17, %v10863_v27 }
0x23a1   : > { %v6559_v46 = vmul.f32 0.03125, %v6545_v22  ;;  %v8456_v10 = vpop.eup %8455 }
0x23a2   : > { %v6548_v35 = vpop.xlane.xlu1 %6547  ;;  %v6609_v54 = vadd.f32 %v7059_v36, %v6595_v11  ;;  %v6596_v48 = vmul.f32 %v7058_v53, %v6582_v50  ;;  %v6579_v21 = vmul.f32 %v8456_v10, %v10867_v38 }
0x23a3   : > { %v6567_v47 = vadd.f32 1e-05, %v6559_v46  ;;  %v8458_v0 = vpop.eup %8457  ;;  %v6560_v44 = vmul.f32 0.03125, %v6548_v35 }
0x23a4   : > { %v6551_v33 = vpop.xlane.xlu0 %6550  ;;  %6617 = vst.msk [vmem:[%s10940_s27 + $0x10] sm:$0xff] %vm740_vm1, %v6609_v54  ;;  %v6610_v27 = vadd.f32 %v7059_v36, %v6596_v48  ;;  %v6593_v25 = vmul.f32 %v7058_v53, %v6579_v21  ;;  %v6580_v42 = vmul.f32 %v8458_v0, %v10872_v49 }
0x23a5   : > { %8459 = vrsqrt.f32 %v6567_v47  ;;  %v6568_v41 = vadd.f32 1e-05, %v6560_v44  ;;  %v6561_v40 = vmul.f32 0.03125, %v6551_v33 }
0x23a6   : > { %v6554_v57 = vpop.xlane.xlu1 %6553  ;;  %6618 = vst.msk [vmem:[%s10940_s27 + $0x18] sm:$0xff] %vm740_vm1, %v6610_v27  ;;  %v6607_v12 = vadd.f32 %v7059_v36, %v6593_v25  ;;  %v6594_v38 = vmul.f32 %v7058_v53, %v6580_v42 }
0x23a7   : > { %v6562_v1 = vmul.f32 0.03125, %v6554_v57  ;;  %8461 = vrsqrt.f32 %v6568_v41  ;;  %v6569_v13 = vadd.f32 1e-05, %v6561_v40 }
0x23a8   : > { %6615 = vst.msk [vmem:[%s10940_s27] sm:$0xff] %vm740_vm1, %v6607_v12  ;;  %v6608_v51 = vadd.f32 %v7059_v36, %v6594_v38 }
0x23a9   : > { %v6570_v20 = vadd.f32 1e-05, %v6562_v1  ;;  %8463 = vrsqrt.f32 %v6569_v13 }
0x23aa   : > { %6616 = vst.msk [vmem:[%s10940_s27 + $0x8] sm:$0xff] %vm740_vm1, %v6608_v51 }
0x23ab   : > { %8465 = vrsqrt.f32 %v6570_v20 }
0x23af   : > { %v8460_v49 = vpop.eup %8459 }
0x23b0   : > { %v6583_v43 = vmul.f32 %v8460_v49, %v10881_v62 }
0x23b1   : > { %v8462_v32 = vpop.eup %8461 }
0x23b2   : > { %v6597_v60 = vmul.f32 %v7058_v53, %v6583_v43  ;;  %v6584_v39 = vmul.f32 %v8462_v32, %v10883_v15 }
0x23b3   : > { %v8464_v52 = vpop.eup %8463 }
0x23b4   : > { %v6611_v63 = vadd.f32 %v7059_v36, %v6597_v60  ;;  %v6598_v59 = vmul.f32 %v7058_v53, %v6584_v39  ;;  %v6585_v5 = vmul.f32 %v8464_v52, %v10887_v45 }
0x23b5   : > { %v8466_v37 = vpop.eup %8465 }
0x23b6   : > { %6619 = vst.msk [vmem:[%s10940_s27 + $0x20] sm:$0xff] %vm740_vm1, %v6611_v63  ;;  %v6586_v7 = vmul.f32 %v8466_v37, %v10892_v9  ;;  %v6612_v34 = vadd.f32 %v7059_v36, %v6598_v59  ;;  %v6599_v2 = vmul.f32 %v7058_v53, %v6585_v5 }
0x23b8   : > { %v6600_v18 = vmul.f32 %v7058_v53, %v6586_v7  ;;  %6620 = vst.msk [vmem:[%s10940_s27 + $0x28] sm:$0xff] %vm740_vm1, %v6612_v34  ;;  %v6613_v62 = vadd.f32 %v7059_v36, %v6599_v2 }
0x23ba   : > { %v6614_v30 = vadd.f32 %v7059_v36, %v6600_v18  ;;  %6621 = vst.msk [vmem:[%s10940_s27 + $0x30] sm:$0xff] %vm740_vm1, %v6613_v62 }
0x23bc   : > { %6622 = vst.msk [vmem:[%s10940_s27 + $0x38] sm:$0xff] %vm740_vm1, %v6614_v30 }
0x23bd PF: > { %s11242_s24 = sld [smem:[#allocation7_spill]]  ;;  %s11243_s20 = sld [smem:[#allocation5_spill]] }
0x23c3   : > { %p7988_p5 = scmp.ge.s32.totalorder %s11242_s24, 2  ;;  %s6667_s26 = sand.u32 1, %s11243_s20  }
0x23c4   : > { %s6668_s25 = scalar_lea.sflag [#allocation3], %s6667_s26 }
0x23c5   : > { %p7985_p2 = pnand %p7988_p5, %p8689_p6 }
0x23c7   : > { %8521 = dma.done.wait (!%p7985_p2), %s6668_s25, 128  }
0x23c8   : > { %8523 = vsyncadd (!%p7985_p2), %s6668_s25, 4294967168  ;;  %s11245_s21 = sld [smem:[#allocation8_spill]]  ;;  %s11246_s18 = sld [smem:[#allocation6_spill]] }
0x23c9   : > { %s11247_s20 = sld [smem:[#allocation9_spill]]  ;;  %s11248_s0 = smov %s8530_s30 }
0x23ce   : > { %p30_p3 = scmp.ge.s32.totalorder %s11245_s21, 4   ;;  %s11249_s30 = smov %s11246_s18 }
0x23d0   :  { %32 = sbr.rel (!%p30_p3) target bundleno = 11 (0xb), region = 175 }
0x23d7   :  { %6673 = vsyncpa [#allocation3], 1 }
0x23d8   :  { %6675 = vsyncpa [#allocation3 + $0x1], 1 }

</bundles_post_ra>
